<compile_context>
chip_gen: v6e
topology: v6e:2x2x1
jax: 0.10.0
libtpu: 0.0.40
codegen_flags: <defaults>
</compile_context>

<pallas_src>
import functools

import jax
import jax.numpy as jnp
from jax.experimental import pallas as pl
from jax.experimental.pallas import tpu as pltpu


def _round_up(x, m):
    return (x + m - 1) // m * m


def _ceil_div(a, b):
    return -(-a // b)


def _compiler_params(*block_bytes):
    # double-buffered blocks + headroom, clamped to stay inside v7x's 64 MiB.
    need = 2 * int(sum(block_bytes)) + (8 << 20)
    return pltpu.CompilerParams(
        dimension_semantics=("parallel",),
        vmem_limit_bytes=int(min(max(need, 16 << 20), 48 << 20)))


def _pad_flat(x, pad):
    """Spatial pad by `pad` (+1 extra bottom row) and flatten (H, W) -> H*W.

    The extra bottom row guarantees the shifted flat slices inside the kernel
    never read out of bounds; flattening lets every conv tap be one contiguous
    2-D slice ("shift trick")."""
    B, H, W, C = x.shape
    xp = jnp.pad(x, ((0, 0), (pad, pad + 1), (pad, pad), (0, 0)))
    WP = W + 2 * pad
    return xp.reshape(B, (H + 2 * pad + 1) * WP, C), WP


def _pick_rb(OH, WP, target=128):
    # rows per block so the matmul M dimension (rb*WP) is ~target.
    return max(1, min(OH, _ceil_div(target, WP)))


# ----------------------------------------------------------------------------
# Pallas kernel 1: shift-trick stride-1 "VALID" conv, fused bias (+ ReLU)
# ----------------------------------------------------------------------------
def _conv_kernel(x_ref, w_ref, b_ref, o_ref, *, kh, kw, rb, relu):
    # x_ref: (1, FLAT, Cin) flattened padded image
    # w_ref: (kh*kw, Cin, Cout) bf16 per-tap weights
    # b_ref: (1, Cout) f32 ; o_ref: (1, OH, OW, Cout)
    OH, OW, cout = o_ref.shape[1], o_ref.shape[2], o_ref.shape[3]
    WP = OW + kw - 1
    L = rb * WP
    bias = b_ref[...]
    taps = [w_ref[t] for t in range(kh * kw)]

    for bi in range(_ceil_div(OH, rb)):
        u0 = min(bi * rb, OH - rb)          # last block overlaps; idempotent
        acc = jnp.zeros((L, cout), jnp.float32)
        for dy in range(kh):
            for dx in range(kw):
                start = (u0 + dy) * WP + dx
                lhs = x_ref[0, start:start + L, :].astype(jnp.bfloat16)
                acc = acc + jnp.dot(lhs, taps[dy * kw + dx],
                                    preferred_element_type=jnp.float32)
        out = acc + bias
        if relu:
            out = jnp.maximum(out, 0.0)
        out = out.astype(o_ref.dtype)
        for r in range(rb):
            o_ref[0, u0 + r, :, :] = out[r * WP:r * WP + OW, :]


def _conv_flat_call(x, w, b, kh, kw, pad, relu, out_dtype):
    B, H, W, Cin = x.shape
    OH, OW = H + 2 * pad - kh + 1, W + 2 * pad - kw + 1
    x2d, WP = _pad_flat(x, pad)
    flat = x2d.shape[1]
    T, _, Cout = w.shape
    rb = _pick_rb(OH, WP)
    kernel = functools.partial(_conv_kernel, kh=kh, kw=kw, rb=rb, relu=relu)
    return pl.pallas_call(
        kernel,
        out_shape=jax.ShapeDtypeStruct((B, OH, OW, Cout), out_dtype),
        grid_spec=pltpu.PrefetchScalarGridSpec(
            num_scalar_prefetch=0,
            grid=(B,),
            in_specs=[pl.BlockSpec((1, flat, Cin), lambda bb: (bb, 0, 0)),
                      pl.BlockSpec((T, Cin, Cout), lambda bb: (0, 0, 0)),
                      pl.BlockSpec((1, Cout), lambda bb: (0, 0))],
            out_specs=pl.BlockSpec((1, OH, OW, Cout), lambda bb: (bb, 0, 0, 0)),
        ),
        compiler_params=_compiler_params(
            flat * Cin * x2d.dtype.itemsize,
            OH * OW * Cout * jnp.dtype(out_dtype).itemsize,
            T * Cin * Cout * 2),
    )(x2d, w, b)


def conv_s1(x, p, kh, kw, relu, pad, out_dtype=jnp.bfloat16):
    return _conv_flat_call(x, p['w'], p['b'], kh, kw, pad, relu, out_dtype)


def conv_s2(x, p, relu, out_dtype=jnp.bfloat16):
    # Conv2d(k=4, stride=2, pad=1) == stride-1 2x2 VALID conv over the
    # space-to-depth phase-packed padded input.
    xp = jnp.pad(x, ((0, 0), (1, 1), (1, 1), (0, 0)))
    phases = [xp[:, ph::2, pw::2, :] for ph in (0, 1) for pw in (0, 1)]
    xph = jnp.concatenate(phases, axis=-1)        # (B, H/2+1, W/2+1, 4*Cin)
    return _conv_flat_call(xph, p['w'], p['b'], 2, 2, 0, relu, out_dtype)


# ----------------------------------------------------------------------------
# Pallas kernel 2: fused ResBlock (3x3 -> ReLU -> 1x1 -> +x -> ReLU),
#                  optionally with the encoder's 1x1 projection fused in.
# ----------------------------------------------------------------------------
def _resblock_kernel(*refs, rb, proj):
    if proj:
        (x_ref, w1_ref, b1_ref, w2_ref, b2_ref, wp_ref, bp_ref, o_ref) = refs
    else:
        (x_ref, w1_ref, b1_ref, w2_ref, b2_ref, o_ref) = refs
        wp_ref = bp_ref = None
    OH, OW = o_ref.shape[1], o_ref.shape[2]
    WP = OW + 2
    L = rb * WP
    cmid = w1_ref.shape[2]
    taps = [w1_ref[t] for t in range(9)]
    b1 = b1_ref[...]
    w2 = w2_ref[...]
    b2 = b2_ref[...]

    for bi in range(_ceil_div(OH, rb)):
        u0 = min(bi * rb, OH - rb)
        acc = jnp.zeros((L, cmid), jnp.float32)
        for dy in range(3):
            for dx in range(3):
                start = (u0 + dy) * WP + dx
                lhs = x_ref[0, start:start + L, :].astype(jnp.bfloat16)
                acc = acc + jnp.dot(lhs, taps[dy * 3 + dx],
                                    preferred_element_type=jnp.float32)
        h = jnp.maximum(acc + b1, 0.0).astype(jnp.bfloat16)
        rstart = (u0 + 1) * WP + 1                       # residual = unpadded x
        res = x_ref[0, rstart:rstart + L, :].astype(jnp.float32)
        out = jnp.dot(h, w2, preferred_element_type=jnp.float32) + b2 + res
        out = jnp.maximum(out, 0.0)
        if proj:                                          # fused 1x1 projection
            out = jnp.dot(out, wp_ref[...],
                          preferred_element_type=jnp.float32) + bp_ref[...]
        out = out.astype(o_ref.dtype)
        for r in range(rb):
            o_ref[0, u0 + r, :, :] = out[r * WP:r * WP + OW, :]


def resblock(x, p, proj=None, out_dtype=jnp.bfloat16):
    B, H, W, C = x.shape
    x2d, WP = _pad_flat(x, 1)
    flat = x2d.shape[1]
    cmid = p['w1'].shape[2]
    rb = _pick_rb(H, WP)
    if proj is None:
        Cout = C
        operands = (x2d, p['w1'], p['b1'], p['w2'], p['b2'])
        extra_specs = []
    else:
        Cout = proj['w'].shape[1]
        operands = (x2d, p['w1'], p['b1'], p['w2'], p['b2'],
                    proj['w'], proj['b'])
        extra_specs = [pl.BlockSpec((C, Cout), lambda bb: (0, 0)),
                       pl.BlockSpec((1, Cout), lambda bb: (0, 0))]
    kernel = functools.partial(_resblock_kernel, rb=rb, proj=proj is not None)
    return pl.pallas_call(
        kernel,
        out_shape=jax.ShapeDtypeStruct((B, H, W, Cout), out_dtype),
        grid_spec=pltpu.PrefetchScalarGridSpec(
            num_scalar_prefetch=0,
            grid=(B,),
            in_specs=[pl.BlockSpec((1, flat, C), lambda bb: (bb, 0, 0)),
                      pl.BlockSpec((9, C, cmid), lambda bb: (0, 0, 0)),
                      pl.BlockSpec((1, cmid), lambda bb: (0, 0)),
                      pl.BlockSpec((cmid, C), lambda bb: (0, 0)),
                      pl.BlockSpec((1, C), lambda bb: (0, 0))] + extra_specs,
            out_specs=pl.BlockSpec((1, H, W, Cout), lambda bb: (bb, 0, 0, 0)),
        ),
        compiler_params=_compiler_params(
            flat * C * x2d.dtype.itemsize,
            H * W * Cout * jnp.dtype(out_dtype).itemsize,
            9 * C * cmid * 2 + cmid * C * 2),
    )(*operands)


# ----------------------------------------------------------------------------
# Pallas kernel 3: ConvTranspose2d(4, stride=2, pad=1) as 4 phase-wise 2x2
#                  convs (exact transposed-conv FLOPs), fused bias (+ ReLU).
# ----------------------------------------------------------------------------
def _deconv_kernel(x_ref, w_ref, b_ref, o_ref, *, rb, relu):
    # x_ref: (1, FLAT, Cin) 1-padded flattened input
    # w_ref: (4, 4, Cin, Cout)  [phase = 2a+b, tap = 2dh+dw]
    # b_ref: (1, 4*Cout) ; o_ref: (1, H, W, 4*Cout) phase-major channels
    H, W = o_ref.shape[1], o_ref.shape[2]
    cout = w_ref.shape[3]
    WP = W + 2
    L = rb * WP
    bias = b_ref[...]
    wt = [[w_ref[p, t] for t in range(4)] for p in range(4)]

    for bi in range(_ceil_div(H, rb)):
        u0 = min(bi * rb, H - rb)
        accs = [jnp.zeros((L, cout), jnp.float32) for _ in range(4)]
        for dy in range(3):
            for dx in range(3):
                start = (u0 + dy) * WP + dx
                lhs = x_ref[0, start:start + L, :].astype(jnp.bfloat16)
                for a in (0, 1):
                    dh = dy - a
                    if dh < 0 or dh > 1:
                        continue
                    for b in (0, 1):
                        dw = dx - b
                        if dw < 0 or dw > 1:
                            continue
                        ph = 2 * a + b
                        accs[ph] = accs[ph] + jnp.dot(
                            lhs, wt[ph][2 * dh + dw],
                            preferred_element_type=jnp.float32)
        out = jnp.concatenate(accs, axis=-1) + bias
        if relu:
            out = jnp.maximum(out, 0.0)
        out = out.astype(o_ref.dtype)
        for r in range(rb):
            o_ref[0, u0 + r, :, :] = out[r * WP:r * WP + W, :]


def deconv_s2(x, p, relu, out_dtype=jnp.bfloat16):
    B, H, W, Cin = x.shape
    x2d, WP = _pad_flat(x, 1)
    flat = x2d.shape[1]
    Cout = p['w'].shape[3]
    rb = _pick_rb(H, WP)
    kernel = functools.partial(_deconv_kernel, rb=rb, relu=relu)
    z = pl.pallas_call(
        kernel,
        out_shape=jax.ShapeDtypeStruct((B, H, W, 4 * Cout), out_dtype),
        grid_spec=pltpu.PrefetchScalarGridSpec(
            num_scalar_prefetch=0,
            grid=(B,),
            in_specs=[pl.BlockSpec((1, flat, Cin), lambda bb: (bb, 0, 0)),
                      pl.BlockSpec((4, 4, Cin, Cout), lambda bb: (0, 0, 0, 0)),
                      pl.BlockSpec((1, 4 * Cout), lambda bb: (0, 0))],
            out_specs=pl.BlockSpec((1, H, W, 4 * Cout),
                                   lambda bb: (bb, 0, 0, 0)),
        ),
        compiler_params=_compiler_params(
            flat * Cin * x2d.dtype.itemsize,
            H * W * 4 * Cout * jnp.dtype(out_dtype).itemsize,
            16 * Cin * Cout * 2),
    )(x2d, p['w'], p['b'])
    # depth-to-space: phase channels ordered (a, b) major.
    # TODO(synk): could be fused into the kernel store with a strided output
    # indexer to save one full-resolution HBM round trip.
    z = z.reshape(B, H, W, 2, 2, Cout)
    z = jnp.transpose(z, (0, 1, 3, 2, 4, 5)).reshape(B, 2 * H, 2 * W, Cout)
    return z


# ----------------------------------------------------------------------------
# Pallas kernel 4: vector quantizer, M-tiled, codebook resident in VMEM
# ----------------------------------------------------------------------------
def _vq_kernel(z_ref, et_ref, e_ref, esq_ref, zq_ref, idx_ref):
    z = z_ref[...]                                               # (tm, D) f32
    # ||z - e||^2 up to a per-row constant: ||e||^2 - 2 z.e  (all f32 so the
    # nearest-neighbour selection matches an f32 reference exactly).
    scores = esq_ref[...] - 2.0 * jnp.dot(z, et_ref[...],
                                          preferred_element_type=jnp.float32)
    min_s = jnp.min(scores, axis=-1, keepdims=True)
    col = jax.lax.broadcasted_iota(jnp.int32, scores.shape, 1)
    idx = jnp.min(jnp.where(scores <= min_s, col, jnp.int32(2 ** 30)),
                  axis=-1, keepdims=True)                        # first argmin
    onehot = (col == idx).astype(jnp.float32)                    # (tm, NE)
    zq_ref[...] = jnp.dot(onehot, e_ref[...],
                          preferred_element_type=jnp.float32)    # exact rows
    idx_ref[...] = idx


def pallas_vq(z_flat, codebook, codebook_t, codebook_sq):
    M, D = z_flat.shape
    NE = codebook.shape[0]
    tm = min(512, _round_up(M, 8))
    Mp = _round_up(M, tm)
    z_p = z_flat if Mp == M else jnp.pad(z_flat, ((0, Mp - M), (0, 0)))
    zq, idx = pl.pallas_call(
        _vq_kernel,
        out_shape=(jax.ShapeDtypeStruct((Mp, D), jnp.float32),
                   jax.ShapeDtypeStruct((Mp, 1), jnp.int32)),
        grid_spec=pltpu.PrefetchScalarGridSpec(
            num_scalar_prefetch=0,
            grid=(Mp // tm,),
            in_specs=[pl.BlockSpec((tm, D), lambda i: (i, 0)),
                      pl.BlockSpec((D, NE), lambda i: (0, 0)),
                      pl.BlockSpec((NE, D), lambda i: (0, 0)),
                      pl.BlockSpec((1, NE), lambda i: (0, 0))],
            out_specs=(pl.BlockSpec((tm, D), lambda i: (i, 0)),
                       pl.BlockSpec((tm, 1), lambda i: (i, 0))),
        ),
        compiler_params=pltpu.CompilerParams(
            dimension_semantics=("parallel",)),
    )(z_p, codebook_t, codebook, codebook_sq)
    return zq[:M], idx[:M, 0]


# ----------------------------------------------------------------------------
# Parameter construction: PyTorch-default-like init, hoisted kernel re-layout.
# (No Python ints inside the params pytree -> safe under jit.)
# ----------------------------------------------------------------------------
def _init_conv(key, cout, cin, kh, kw):
    k1, k2 = jax.random.split(key)
    bound = 1.0 / (cin * kh * kw) ** 0.5
    w = jax.random.uniform(k1, (cout, cin, kh, kw), jnp.float32, -bound, bound)
    b = jax.random.uniform(k2, (cout,), jnp.float32, -bound, bound)
    return w, b


def _init_convT(key, cin, cout, kh, kw):
    k1, k2 = jax.random.split(key)
    bound = 1.0 / (cout * kh * kw) ** 0.5
    w = jax.random.uniform(k1, (cin, cout, kh, kw), jnp.float32, -bound, bound)
    b = jax.random.uniform(k2, (cout,), jnp.float32, -bound, bound)
    return w, b


def _prep_conv_s1(w, b):
    Cout, Cin, kh, kw = w.shape
    wk = jnp.transpose(w, (2, 3, 1, 0)).reshape(kh * kw, Cin, Cout)
    return {'w': wk.astype(jnp.bfloat16),
            'b': b.reshape(1, Cout).astype(jnp.float32)}


def _prep_conv_s2(w, b):
    # (Cout, Cin, 4, 4) -> stride-1 2x2 conv over phase-packed 4*Cin channels.
    Cout, Cin, _, _ = w.shape
    wr = w.reshape(Cout, Cin, 2, 2, 2, 2)            # (co, ci, ah, ph, aw, pw)
    wr = jnp.transpose(wr, (2, 4, 3, 5, 1, 0))       # (ah, aw, ph, pw, ci, co)
    wk = wr.reshape(4, 4 * Cin, Cout)
    return {'w': wk.astype(jnp.bfloat16),
            'b': b.reshape(1, Cout).astype(jnp.float32)}


def _prep_proj(w, b):
    # 1x1 conv (D, C, 1, 1) -> (C, D) matmul weight (kept f32; tiny).
    D = w.shape[0]
    return {'w': jnp.transpose(w[:, :, 0, 0], (1, 0)).astype(jnp.float32),
            'b': b.reshape(1, D).astype(jnp.float32)}


def _prep_resblock(c3, c1):
    (w1, b1), (w2, b2) = c3, c1
    cmid, C, _, _ = w1.shape
    w1k = jnp.transpose(w1, (2, 3, 1, 0)).reshape(9, C, cmid).astype(jnp.bfloat16)
    w2k = jnp.transpose(w2[:, :, 0, 0], (1, 0)).astype(jnp.bfloat16)  # (cmid, C)
    return {'w1': w1k, 'b1': b1.reshape(1, cmid).astype(jnp.float32),
            'w2': w2k, 'b2': b2.reshape(1, C).astype(jnp.float32)}


def _prep_deconv(w, b):
    # ConvTranspose2d(k=4, s=2, p=1) == 4 phase-wise 2x2 convs on the 1-padded
    # input: phase (a, b), tap (dh, dw) uses W[:, :, 3-2dh-a, 3-2dw-b].
    Cin, Cout = w.shape[0], w.shape[1]
    taps = jnp.zeros((4, 4, Cin, Cout), jnp.float32)
    for a in (0, 1):
        for bb in (0, 1):
            for dh in (0, 1):
                for dw in (0, 1):
                    taps = taps.at[2 * a + bb, 2 * dh + dw].set(
                        w[:, :, 3 - 2 * dh - a, 3 - 2 * dw - bb])
    return {'w': taps.astype(jnp.bfloat16),
            'b': jnp.tile(b.astype(jnp.float32), 4).reshape(1, 4 * Cout)}


def init_vqvae_params(key, h_dim, n_embeddings, embedding_dim, input_channels):
    keys = jax.random.split(key, 16)
    nh, nh2 = h_dim, 2 * h_dim
    ch = nh2 // 4
    p = {}
    # encoder
    p['enc0'] = _prep_conv_s2(*_init_conv(keys[0], nh, input_channels, 4, 4))
    p['enc1'] = _prep_conv_s2(*_init_conv(keys[1], nh2, nh, 4, 4))
    p['enc2'] = _prep_conv_s1(*_init_conv(keys[2], nh2, nh2, 3, 3))
    p['enc_rb1'] = _prep_resblock(_init_conv(keys[3], ch, nh2, 3, 3),
                                  _init_conv(keys[4], nh2, ch, 1, 1))
    p['enc_rb2'] = _prep_resblock(_init_conv(keys[5], ch, nh2, 3, 3),
                                  _init_conv(keys[6], nh2, ch, 1, 1))
    p['proj'] = _prep_proj(*_init_conv(keys[7], embedding_dim, nh2, 1, 1))
    # codebook (+ derived tensors hoisted to init)
    codebook = jax.random.uniform(
        keys[8], (n_embeddings, embedding_dim), jnp.float32,
        -1.0 / n_embeddings, 1.0 / n_embeddings)
    p['codebook'] = codebook
    p['codebook_t'] = jnp.transpose(codebook)
    p['codebook_sq'] = jnp.sum(codebook * codebook, axis=-1).reshape(
        1, n_embeddings)
    # decoder
    p['dec0'] = _prep_conv_s1(*_init_conv(keys[9], nh2, embedding_dim, 3, 3))
    p['dec_rb1'] = _prep_resblock(_init_conv(keys[10], ch, nh2, 3, 3),
                                  _init_conv(keys[11], nh2, ch, 1, 1))
    p['dec_rb2'] = _prep_resblock(_init_conv(keys[12], ch, nh2, 3, 3),
                                  _init_conv(keys[13], nh2, ch, 1, 1))
    p['dec_ct1'] = _prep_deconv(*_init_convT(keys[14], nh2, nh, 4, 4))
    p['dec_ct2'] = _prep_deconv(*_init_convT(keys[15], nh, input_channels, 4, 4))
    return p


# ----------------------------------------------------------------------------
# VQVAE forward
# ----------------------------------------------------------------------------
def vqvae_forward(params, x_nchw):
    x = jnp.transpose(x_nchw, (0, 2, 3, 1)).astype(jnp.bfloat16)  # NCHW -> NHWC

    # --- Encoder (final 1x1 projection fused into the last ResBlock) ---
    h = conv_s2(x, params['enc0'], relu=True)
    h = conv_s2(h, params['enc1'], relu=True)
    h = conv_s1(h, params['enc2'], kh=3, kw=3, relu=True, pad=1)
    h = resblock(h, params['enc_rb1'])
    z_e = resblock(h, params['enc_rb2'], proj=params['proj'],
                   out_dtype=jnp.float32)

    # --- Quantizer ---
    # TODO(synk): Codebook class not given in the reference; standard VQ-VAE
    # codebook (L2 nearest neighbour, codebook + 0.25 * commitment forward
    # value).  Forward-only: no stop_gradient / straight-through estimator.
    B, Hh, Ww, D = z_e.shape
    z_flat = z_e.reshape(B * Hh * Ww, D)
    zq_flat, idx = pallas_vq(z_flat, params['codebook'],
                             params['codebook_t'], params['codebook_sq'])
    z_q = zq_flat.reshape(B, Hh, Ww, D)
    mse = jnp.mean(jnp.square(z_q - z_e))
    latent_loss = mse + 0.25 * mse
    ind = idx.reshape(B, Hh, Ww)

    # --- Decoder ---
    d = conv_s1(z_q.astype(jnp.bfloat16), params['dec0'],
                kh=3, kw=3, relu=True, pad=1)
    d = resblock(d, params['dec_rb1'])
    d = resblock(d, params['dec_rb2'])
    d = deconv_s2(d, params['dec_ct1'], relu=True)
    d = deconv_s2(d, params['dec_ct2'], relu=False, out_dtype=jnp.float32)

    x_hat = jnp.transpose(d, (0, 3, 1, 2)).astype(jnp.float32)    # NHWC -> NCHW
    return x_hat, latent_loss, ind


if __name__ == "__main__":
    key = jax.random.PRNGKey(0)
    k_params, k_x = jax.random.split(key)

    B, C, H, W = 2, 3, 16, 16
    h_dim, n_embeddings, embedding_dim = 16, 32, 8

    params = init_vqvae_params(k_params, h_dim, n_embeddings,
                               embedding_dim, input_channels=C)
    x = jax.random.normal(k_x, (B, C, H, W), jnp.float32)

    fwd = jax.jit(vqvae_forward)
    x_hat, latent_loss, ind = fwd(params, x)
    jax.block_until_ready((x_hat, latent_loss, ind))

    assert x_hat.shape == (B, C, H, W), x_hat.shape
    assert ind.shape == (B, H // 4, W // 4), ind.shape
    assert latent_loss.shape == (), latent_loss.shape
    print("KERNEL_OK")
</pallas_src>

<mosaic_0001>
module attributes {stable_mosaic.version = 11 : i64} {
  func.func @_conv_kernel(%arg0: i32, %arg1: memref<1x90x12xbf16, #tpu.memory_space<vmem>>, %arg2: memref<4x12x16xbf16, #tpu.memory_space<vmem>>, %arg3: memref<1x16xf32, #tpu.memory_space<vmem>>, %arg4: memref<1x8x8x16xbf16, #tpu.memory_space<vmem>>) attributes {dimension_semantics = [#tpu.dimension_semantics<parallel>], iteration_bounds = array<i64: 2>, scalar_prefetch = 0 : i64, scratch_operands = 0 : i64, tpu.core_type = #tpu.core_type<tc>, window_params = [{transform_indices = @transform_0, window_bounds = array<i64: 1, 90, 12>}, {pipeline_mode = #tpu.pipeline_mode<synchronous>, transform_indices = @transform_1, window_bounds = array<i64: 4, 12, 16>}, {pipeline_mode = #tpu.pipeline_mode<synchronous>, transform_indices = @transform_2, window_bounds = array<i64: 1, 16>}, {transform_indices = @transform_3, window_bounds = array<i64: 1, 8, 8, 16>}]} {
    %c0 = arith.constant 0 : index
    %c0_0 = arith.constant 0 : index
    %0 = vector.load %arg3[%c0, %c0_0] : memref<1x16xf32, #tpu.memory_space<vmem>>, vector<1x16xf32>
    %c0_1 = arith.constant 0 : index
    %c0_2 = arith.constant 0 : index
    %c0_3 = arith.constant 0 : index
    %1 = vector.load %arg2[%c0_1, %c0_2, %c0_3] : memref<4x12x16xbf16, #tpu.memory_space<vmem>>, vector<1x12x16xbf16>
    %2 = vector.shape_cast %1 : vector<1x12x16xbf16> to vector<12x16xbf16>
    %c1 = arith.constant 1 : index
    %c0_4 = arith.constant 0 : index
    %c0_5 = arith.constant 0 : index
    %3 = vector.load %arg2[%c1, %c0_4, %c0_5] : memref<4x12x16xbf16, #tpu.memory_space<vmem>>, vector<1x12x16xbf16>
    %4 = vector.shape_cast %3 : vector<1x12x16xbf16> to vector<12x16xbf16>
    %c2 = arith.constant 2 : index
    %c0_6 = arith.constant 0 : index
    %c0_7 = arith.constant 0 : index
    %5 = vector.load %arg2[%c2, %c0_6, %c0_7] : memref<4x12x16xbf16, #tpu.memory_space<vmem>>, vector<1x12x16xbf16>
    %6 = vector.shape_cast %5 : vector<1x12x16xbf16> to vector<12x16xbf16>
    %c3 = arith.constant 3 : index
    %c0_8 = arith.constant 0 : index
    %c0_9 = arith.constant 0 : index
    %7 = vector.load %arg2[%c3, %c0_8, %c0_9] : memref<4x12x16xbf16, #tpu.memory_space<vmem>>, vector<1x12x16xbf16>
    %8 = vector.shape_cast %7 : vector<1x12x16xbf16> to vector<12x16xbf16>
    %cst = arith.constant 0.000000e+00 : f32
    %9 = vector.broadcast %cst : f32 to vector<72x16xf32>
    %c0_10 = arith.constant 0 : index
    %c0_11 = arith.constant 0 : index
    %c0_12 = arith.constant 0 : index
    %10 = vector.load %arg1[%c0_10, %c0_11, %c0_12] : memref<1x90x12xbf16, #tpu.memory_space<vmem>>, vector<1x72x12xbf16>
    %11 = vector.shape_cast %10 : vector<1x72x12xbf16> to vector<72x12xbf16>
    %cst_13 = arith.constant dense<0.000000e+00> : vector<72x16xf32>
    %12 = tpu.matmul %11, %2, %cst_13 {dimension_numbers = #tpu.dot_dimension_numbers<[1], [0], [0], [1], [0, 0, 1, 1], [], []>} : vector<72x12xbf16>, vector<12x16xbf16>, vector<72x16xf32> -> vector<72x16xf32>
    %13 = arith.addf %9, %12 : vector<72x16xf32>
    %c0_14 = arith.constant 0 : index
    %c1_15 = arith.constant 1 : index
    %c0_16 = arith.constant 0 : index
    %14 = vector.load %arg1[%c0_14, %c1_15, %c0_16] : memref<1x90x12xbf16, #tpu.memory_space<vmem>>, vector<1x72x12xbf16>
    %15 = vector.shape_cast %14 : vector<1x72x12xbf16> to vector<72x12xbf16>
    %cst_17 = arith.constant dense<0.000000e+00> : vector<72x16xf32>
    %16 = tpu.matmul %15, %4, %cst_17 {dimension_numbers = #tpu.dot_dimension_numbers<[1], [0], [0], [1], [0, 0, 1, 1], [], []>} : vector<72x12xbf16>, vector<12x16xbf16>, vector<72x16xf32> -> vector<72x16xf32>
    %17 = arith.addf %13, %16 : vector<72x16xf32>
    %c0_18 = arith.constant 0 : index
    %c9 = arith.constant 9 : index
    %c0_19 = arith.constant 0 : index
    %18 = vector.load %arg1[%c0_18, %c9, %c0_19] : memref<1x90x12xbf16, #tpu.memory_space<vmem>>, vector<1x72x12xbf16>
    %19 = vector.shape_cast %18 : vector<1x72x12xbf16> to vector<72x12xbf16>
    %cst_20 = arith.constant dense<0.000000e+00> : vector<72x16xf32>
    %20 = tpu.matmul %19, %6, %cst_20 {dimension_numbers = #tpu.dot_dimension_numbers<[1], [0], [0], [1], [0, 0, 1, 1], [], []>} : vector<72x12xbf16>, vector<12x16xbf16>, vector<72x16xf32> -> vector<72x16xf32>
    %21 = arith.addf %17, %20 : vector<72x16xf32>
    %c0_21 = arith.constant 0 : index
    %c10 = arith.constant 10 : index
    %c0_22 = arith.constant 0 : index
    %22 = vector.load %arg1[%c0_21, %c10, %c0_22] : memref<1x90x12xbf16, #tpu.memory_space<vmem>>, vector<1x72x12xbf16>
    %23 = vector.shape_cast %22 : vector<1x72x12xbf16> to vector<72x12xbf16>
    %cst_23 = arith.constant dense<0.000000e+00> : vector<72x16xf32>
    %24 = tpu.matmul %23, %8, %cst_23 {dimension_numbers = #tpu.dot_dimension_numbers<[1], [0], [0], [1], [0, 0, 1, 1], [], []>} : vector<72x12xbf16>, vector<12x16xbf16>, vector<72x16xf32> -> vector<72x16xf32>
    %25 = arith.addf %21, %24 : vector<72x16xf32>
    %26 = vector.broadcast %0 : vector<1x16xf32> to vector<72x16xf32>
    %27 = arith.addf %25, %26 : vector<72x16xf32>
    %cst_24 = arith.constant 0.000000e+00 : f32
    %28 = vector.broadcast %cst_24 : f32 to vector<72x16xf32>
    %29 = arith.maximumf %27, %28 : vector<72x16xf32>
    %30 = arith.truncf %29 : vector<72x16xf32> to vector<72x16xbf16>
    %31 = vector.extract_strided_slice %30 {offsets = [0, 0], sizes = [8, 16], strides = [1, 1]} : vector<72x16xbf16> to vector<8x16xbf16>
    %c0_25 = arith.constant 0 : index
    %c0_26 = arith.constant 0 : index
    %c0_27 = arith.constant 0 : index
    %c0_28 = arith.constant 0 : index
    %32 = vector.load %arg4[%c0_25, %c0_26, %c0_27, %c0_28] : memref<1x8x8x16xbf16, #tpu.memory_space<vmem>>, vector<1x1x8x16xbf16>
    %33 = vector.shape_cast %32 : vector<1x1x8x16xbf16> to vector<8x16xbf16>
    %34 = vector.shape_cast %31 : vector<8x16xbf16> to vector<1x1x8x16xbf16>
    tpu.vector_store %arg4[%c0_25, %c0_26, %c0_27, %c0_28], %34 {strides = array<i32>} : memref<1x8x8x16xbf16, #tpu.memory_space<vmem>>, vector<1x1x8x16xbf16>,
    %35 = vector.extract_strided_slice %30 {offsets = [9, 0], sizes = [8, 16], strides = [1, 1]} : vector<72x16xbf16> to vector<8x16xbf16>
    %c0_29 = arith.constant 0 : index
    %c1_30 = arith.constant 1 : index
    %c0_31 = arith.constant 0 : index
    %c0_32 = arith.constant 0 : index
    %36 = vector.load %arg4[%c0_29, %c1_30, %c0_31, %c0_32] : memref<1x8x8x16xbf16, #tpu.memory_space<vmem>>, vector<1x1x8x16xbf16>
    %37 = vector.shape_cast %36 : vector<1x1x8x16xbf16> to vector<8x16xbf16>
    %38 = vector.shape_cast %35 : vector<8x16xbf16> to vector<1x1x8x16xbf16>
    tpu.vector_store %arg4[%c0_29, %c1_30, %c0_31, %c0_32], %38 {strides = array<i32>} : memref<1x8x8x16xbf16, #tpu.memory_space<vmem>>, vector<1x1x8x16xbf16>,
    %39 = vector.extract_strided_slice %30 {offsets = [18, 0], sizes = [8, 16], strides = [1, 1]} : vector<72x16xbf16> to vector<8x16xbf16>
    %c0_33 = arith.constant 0 : index
    %c2_34 = arith.constant 2 : index
    %c0_35 = arith.constant 0 : index
    %c0_36 = arith.constant 0 : index
    %40 = vector.load %arg4[%c0_33, %c2_34, %c0_35, %c0_36] : memref<1x8x8x16xbf16, #tpu.memory_space<vmem>>, vector<1x1x8x16xbf16>
    %41 = vector.shape_cast %40 : vector<1x1x8x16xbf16> to vector<8x16xbf16>
    %42 = vector.shape_cast %39 : vector<8x16xbf16> to vector<1x1x8x16xbf16>
    tpu.vector_store %arg4[%c0_33, %c2_34, %c0_35, %c0_36], %42 {strides = array<i32>} : memref<1x8x8x16xbf16, #tpu.memory_space<vmem>>, vector<1x1x8x16xbf16>,
    %43 = vector.extract_strided_slice %30 {offsets = [27, 0], sizes = [8, 16], strides = [1, 1]} : vector<72x16xbf16> to vector<8x16xbf16>
    %c0_37 = arith.constant 0 : index
    %c3_38 = arith.constant 3 : index
    %c0_39 = arith.constant 0 : index
    %c0_40 = arith.constant 0 : index
    %44 = vector.load %arg4[%c0_37, %c3_38, %c0_39, %c0_40] : memref<1x8x8x16xbf16, #tpu.memory_space<vmem>>, vector<1x1x8x16xbf16>
    %45 = vector.shape_cast %44 : vector<1x1x8x16xbf16> to vector<8x16xbf16>
    %46 = vector.shape_cast %43 : vector<8x16xbf16> to vector<1x1x8x16xbf16>
    tpu.vector_store %arg4[%c0_37, %c3_38, %c0_39, %c0_40], %46 {strides = array<i32>} : memref<1x8x8x16xbf16, #tpu.memory_space<vmem>>, vector<1x1x8x16xbf16>,
    %47 = vector.extract_strided_slice %30 {offsets = [36, 0], sizes = [8, 16], strides = [1, 1]} : vector<72x16xbf16> to vector<8x16xbf16>
    %c0_41 = arith.constant 0 : index
    %c4 = arith.constant 4 : index
    %c0_42 = arith.constant 0 : index
    %c0_43 = arith.constant 0 : index
    %48 = vector.load %arg4[%c0_41, %c4, %c0_42, %c0_43] : memref<1x8x8x16xbf16, #tpu.memory_space<vmem>>, vector<1x1x8x16xbf16>
    %49 = vector.shape_cast %48 : vector<1x1x8x16xbf16> to vector<8x16xbf16>
    %50 = vector.shape_cast %47 : vector<8x16xbf16> to vector<1x1x8x16xbf16>
    tpu.vector_store %arg4[%c0_41, %c4, %c0_42, %c0_43], %50 {strides = array<i32>} : memref<1x8x8x16xbf16, #tpu.memory_space<vmem>>, vector<1x1x8x16xbf16>,
    %51 = vector.extract_strided_slice %30 {offsets = [45, 0], sizes = [8, 16], strides = [1, 1]} : vector<72x16xbf16> to vector<8x16xbf16>
    %c0_44 = arith.constant 0 : index
    %c5 = arith.constant 5 : index
    %c0_45 = arith.constant 0 : index
    %c0_46 = arith.constant 0 : index
    %52 = vector.load %arg4[%c0_44, %c5, %c0_45, %c0_46] : memref<1x8x8x16xbf16, #tpu.memory_space<vmem>>, vector<1x1x8x16xbf16>
    %53 = vector.shape_cast %52 : vector<1x1x8x16xbf16> to vector<8x16xbf16>
    %54 = vector.shape_cast %51 : vector<8x16xbf16> to vector<1x1x8x16xbf16>
    tpu.vector_store %arg4[%c0_44, %c5, %c0_45, %c0_46], %54 {strides = array<i32>} : memref<1x8x8x16xbf16, #tpu.memory_space<vmem>>, vector<1x1x8x16xbf16>,
    %55 = vector.extract_strided_slice %30 {offsets = [54, 0], sizes = [8, 16], strides = [1, 1]} : vector<72x16xbf16> to vector<8x16xbf16>
    %c0_47 = arith.constant 0 : index
    %c6 = arith.constant 6 : index
    %c0_48 = arith.constant 0 : index
    %c0_49 = arith.constant 0 : index
    %56 = vector.load %arg4[%c0_47, %c6, %c0_48, %c0_49] : memref<1x8x8x16xbf16, #tpu.memory_space<vmem>>, vector<1x1x8x16xbf16>
    %57 = vector.shape_cast %56 : vector<1x1x8x16xbf16> to vector<8x16xbf16>
    %58 = vector.shape_cast %55 : vector<8x16xbf16> to vector<1x1x8x16xbf16>
    tpu.vector_store %arg4[%c0_47, %c6, %c0_48, %c0_49], %58 {strides = array<i32>} : memref<1x8x8x16xbf16, #tpu.memory_space<vmem>>, vector<1x1x8x16xbf16>,
    %59 = vector.extract_strided_slice %30 {offsets = [63, 0], sizes = [8, 16], strides = [1, 1]} : vector<72x16xbf16> to vector<8x16xbf16>
    %c0_50 = arith.constant 0 : index
    %c7 = arith.constant 7 : index
    %c0_51 = arith.constant 0 : index
    %c0_52 = arith.constant 0 : index
    %60 = vector.load %arg4[%c0_50, %c7, %c0_51, %c0_52] : memref<1x8x8x16xbf16, #tpu.memory_space<vmem>>, vector<1x1x8x16xbf16>
    %61 = vector.shape_cast %60 : vector<1x1x8x16xbf16> to vector<8x16xbf16>
    %62 = vector.shape_cast %59 : vector<8x16xbf16> to vector<1x1x8x16xbf16>
    tpu.vector_store %arg4[%c0_50, %c7, %c0_51, %c0_52], %62 {strides = array<i32>} : memref<1x8x8x16xbf16, #tpu.memory_space<vmem>>, vector<1x1x8x16xbf16>,
    return
  }
  func.func @transform_0(%arg0: i32) -> (i32, i32, i32) {
    %c0_i32 = arith.constant 0 : i32
    %c0_i32_0 = arith.constant 0 : i32
    %c0_i32_1 = arith.constant 0 : i32
    return %arg0, %c0_i32, %c0_i32_0 : i32, i32, i32
  }
  func.func @transform_1(%arg0: i32) -> (i32, i32, i32) {
    %c0_i32 = arith.constant 0 : i32
    %c0_i32_0 = arith.constant 0 : i32
    %c0_i32_1 = arith.constant 0 : i32
    %c0_i32_2 = arith.constant 0 : i32
    return %c0_i32, %c0_i32_0, %c0_i32_1 : i32, i32, i32
  }
  func.func @transform_2(%arg0: i32) -> (i32, i32) {
    %c0_i32 = arith.constant 0 : i32
    %c0_i32_0 = arith.constant 0 : i32
    %c0_i32_1 = arith.constant 0 : i32
    return %c0_i32, %c0_i32_0 : i32, i32
  }
  func.func @transform_3(%arg0: i32) -> (i32, i32, i32, i32) {
    %c0_i32 = arith.constant 0 : i32
    %c0_i32_0 = arith.constant 0 : i32
    %c0_i32_1 = arith.constant 0 : i32
    %c0_i32_2 = arith.constant 0 : i32
    return %arg0, %c0_i32, %c0_i32_0, %c0_i32_1 : i32, i32, i32, i32
  }
}

module attributes {stable_mosaic.version = 11 : i64} {
  func.func @_conv_kernel(%arg0: i32, %arg1: memref<1x30x64xbf16, #tpu.memory_space<vmem>>, %arg2: memref<4x64x32xbf16, #tpu.memory_space<vmem>>, %arg3: memref<1x32xf32, #tpu.memory_space<vmem>>, %arg4: memref<1x4x4x32xbf16, #tpu.memory_space<vmem>>) attributes {dimension_semantics = [#tpu.dimension_semantics<parallel>], iteration_bounds = array<i64: 2>, scalar_prefetch = 0 : i64, scratch_operands = 0 : i64, tpu.core_type = #tpu.core_type<tc>, window_params = [{transform_indices = @transform_0, window_bounds = array<i64: 1, 30, 64>}, {pipeline_mode = #tpu.pipeline_mode<synchronous>, transform_indices = @transform_1, window_bounds = array<i64: 4, 64, 32>}, {pipeline_mode = #tpu.pipeline_mode<synchronous>, transform_indices = @transform_2, window_bounds = array<i64: 1, 32>}, {transform_indices = @transform_3, window_bounds = array<i64: 1, 4, 4, 32>}]} {
    %c0 = arith.constant 0 : index
    %c0_0 = arith.constant 0 : index
    %0 = vector.load %arg3[%c0, %c0_0] : memref<1x32xf32, #tpu.memory_space<vmem>>, vector<1x32xf32>
    %c0_1 = arith.constant 0 : index
    %c0_2 = arith.constant 0 : index
    %c0_3 = arith.constant 0 : index
    %1 = vector.load %arg2[%c0_1, %c0_2, %c0_3] : memref<4x64x32xbf16, #tpu.memory_space<vmem>>, vector<1x64x32xbf16>
    %2 = vector.shape_cast %1 : vector<1x64x32xbf16> to vector<64x32xbf16>
    %c1 = arith.constant 1 : index
    %c0_4 = arith.constant 0 : index
    %c0_5 = arith.constant 0 : index
    %3 = vector.load %arg2[%c1, %c0_4, %c0_5] : memref<4x64x32xbf16, #tpu.memory_space<vmem>>, vector<1x64x32xbf16>
    %4 = vector.shape_cast %3 : vector<1x64x32xbf16> to vector<64x32xbf16>
    %c2 = arith.constant 2 : index
    %c0_6 = arith.constant 0 : index
    %c0_7 = arith.constant 0 : index
    %5 = vector.load %arg2[%c2, %c0_6, %c0_7] : memref<4x64x32xbf16, #tpu.memory_space<vmem>>, vector<1x64x32xbf16>
    %6 = vector.shape_cast %5 : vector<1x64x32xbf16> to vector<64x32xbf16>
    %c3 = arith.constant 3 : index
    %c0_8 = arith.constant 0 : index
    %c0_9 = arith.constant 0 : index
    %7 = vector.load %arg2[%c3, %c0_8, %c0_9] : memref<4x64x32xbf16, #tpu.memory_space<vmem>>, vector<1x64x32xbf16>
    %8 = vector.shape_cast %7 : vector<1x64x32xbf16> to vector<64x32xbf16>
    %cst = arith.constant 0.000000e+00 : f32
    %9 = vector.broadcast %cst : f32 to vector<20x32xf32>
    %c0_10 = arith.constant 0 : index
    %c0_11 = arith.constant 0 : index
    %c0_12 = arith.constant 0 : index
    %10 = vector.load %arg1[%c0_10, %c0_11, %c0_12] : memref<1x30x64xbf16, #tpu.memory_space<vmem>>, vector<1x20x64xbf16>
    %11 = vector.shape_cast %10 : vector<1x20x64xbf16> to vector<20x64xbf16>
    %cst_13 = arith.constant dense<0.000000e+00> : vector<20x32xf32>
    %12 = tpu.matmul %11, %2, %cst_13 {dimension_numbers = #tpu.dot_dimension_numbers<[1], [0], [0], [1], [0, 0, 1, 1], [], []>} : vector<20x64xbf16>, vector<64x32xbf16>, vector<20x32xf32> -> vector<20x32xf32>
    %13 = arith.addf %9, %12 : vector<20x32xf32>
    %c0_14 = arith.constant 0 : index
    %c1_15 = arith.constant 1 : index
    %c0_16 = arith.constant 0 : index
    %14 = vector.load %arg1[%c0_14, %c1_15, %c0_16] : memref<1x30x64xbf16, #tpu.memory_space<vmem>>, vector<1x20x64xbf16>
    %15 = vector.shape_cast %14 : vector<1x20x64xbf16> to vector<20x64xbf16>
    %cst_17 = arith.constant dense<0.000000e+00> : vector<20x32xf32>
    %16 = tpu.matmul %15, %4, %cst_17 {dimension_numbers = #tpu.dot_dimension_numbers<[1], [0], [0], [1], [0, 0, 1, 1], [], []>} : vector<20x64xbf16>, vector<64x32xbf16>, vector<20x32xf32> -> vector<20x32xf32>
    %17 = arith.addf %13, %16 : vector<20x32xf32>
    %c0_18 = arith.constant 0 : index
    %c5 = arith.constant 5 : index
    %c0_19 = arith.constant 0 : index
    %18 = vector.load %arg1[%c0_18, %c5, %c0_19] : memref<1x30x64xbf16, #tpu.memory_space<vmem>>, vector<1x20x64xbf16>
    %19 = vector.shape_cast %18 : vector<1x20x64xbf16> to vector<20x64xbf16>
    %cst_20 = arith.constant dense<0.000000e+00> : vector<20x32xf32>
    %20 = tpu.matmul %19, %6, %cst_20 {dimension_numbers = #tpu.dot_dimension_numbers<[1], [0], [0], [1], [0, 0, 1, 1], [], []>} : vector<20x64xbf16>, vector<64x32xbf16>, vector<20x32xf32> -> vector<20x32xf32>
    %21 = arith.addf %17, %20 : vector<20x32xf32>
    %c0_21 = arith.constant 0 : index
    %c6 = arith.constant 6 : index
    %c0_22 = arith.constant 0 : index
    %22 = vector.load %arg1[%c0_21, %c6, %c0_22] : memref<1x30x64xbf16, #tpu.memory_space<vmem>>, vector<1x20x64xbf16>
    %23 = vector.shape_cast %22 : vector<1x20x64xbf16> to vector<20x64xbf16>
    %cst_23 = arith.constant dense<0.000000e+00> : vector<20x32xf32>
    %24 = tpu.matmul %23, %8, %cst_23 {dimension_numbers = #tpu.dot_dimension_numbers<[1], [0], [0], [1], [0, 0, 1, 1], [], []>} : vector<20x64xbf16>, vector<64x32xbf16>, vector<20x32xf32> -> vector<20x32xf32>
    %25 = arith.addf %21, %24 : vector<20x32xf32>
    %26 = vector.broadcast %0 : vector<1x32xf32> to vector<20x32xf32>
    %27 = arith.addf %25, %26 : vector<20x32xf32>
    %cst_24 = arith.constant 0.000000e+00 : f32
    %28 = vector.broadcast %cst_24 : f32 to vector<20x32xf32>
    %29 = arith.maximumf %27, %28 : vector<20x32xf32>
    %30 = arith.truncf %29 : vector<20x32xf32> to vector<20x32xbf16>
    %31 = vector.extract_strided_slice %30 {offsets = [0, 0], sizes = [4, 32], strides = [1, 1]} : vector<20x32xbf16> to vector<4x32xbf16>
    %c0_25 = arith.constant 0 : index
    %c0_26 = arith.constant 0 : index
    %c0_27 = arith.constant 0 : index
    %c0_28 = arith.constant 0 : index
    %32 = vector.load %arg4[%c0_25, %c0_26, %c0_27, %c0_28] : memref<1x4x4x32xbf16, #tpu.memory_space<vmem>>, vector<1x1x4x32xbf16>
    %33 = vector.shape_cast %32 : vector<1x1x4x32xbf16> to vector<4x32xbf16>
    %34 = vector.shape_cast %31 : vector<4x32xbf16> to vector<1x1x4x32xbf16>
    tpu.vector_store %arg4[%c0_25, %c0_26, %c0_27, %c0_28], %34 {strides = array<i32>} : memref<1x4x4x32xbf16, #tpu.memory_space<vmem>>, vector<1x1x4x32xbf16>,
    %35 = vector.extract_strided_slice %30 {offsets = [5, 0], sizes = [4, 32], strides = [1, 1]} : vector<20x32xbf16> to vector<4x32xbf16>
    %c0_29 = arith.constant 0 : index
    %c1_30 = arith.constant 1 : index
    %c0_31 = arith.constant 0 : index
    %c0_32 = arith.constant 0 : index
    %36 = vector.load %arg4[%c0_29, %c1_30, %c0_31, %c0_32] : memref<1x4x4x32xbf16, #tpu.memory_space<vmem>>, vector<1x1x4x32xbf16>
    %37 = vector.shape_cast %36 : vector<1x1x4x32xbf16> to vector<4x32xbf16>
    %38 = vector.shape_cast %35 : vector<4x32xbf16> to vector<1x1x4x32xbf16>
    tpu.vector_store %arg4[%c0_29, %c1_30, %c0_31, %c0_32], %38 {strides = array<i32>} : memref<1x4x4x32xbf16, #tpu.memory_space<vmem>>, vector<1x1x4x32xbf16>,
    %39 = vector.extract_strided_slice %30 {offsets = [10, 0], sizes = [4, 32], strides = [1, 1]} : vector<20x32xbf16> to vector<4x32xbf16>
    %c0_33 = arith.constant 0 : index
    %c2_34 = arith.constant 2 : index
    %c0_35 = arith.constant 0 : index
    %c0_36 = arith.constant 0 : index
    %40 = vector.load %arg4[%c0_33, %c2_34, %c0_35, %c0_36] : memref<1x4x4x32xbf16, #tpu.memory_space<vmem>>, vector<1x1x4x32xbf16>
    %41 = vector.shape_cast %40 : vector<1x1x4x32xbf16> to vector<4x32xbf16>
    %42 = vector.shape_cast %39 : vector<4x32xbf16> to vector<1x1x4x32xbf16>
    tpu.vector_store %arg4[%c0_33, %c2_34, %c0_35, %c0_36], %42 {strides = array<i32>} : memref<1x4x4x32xbf16, #tpu.memory_space<vmem>>, vector<1x1x4x32xbf16>,
    %43 = vector.extract_strided_slice %30 {offsets = [15, 0], sizes = [4, 32], strides = [1, 1]} : vector<20x32xbf16> to vector<4x32xbf16>
    %c0_37 = arith.constant 0 : index
    %c3_38 = arith.constant 3 : index
    %c0_39 = arith.constant 0 : index
    %c0_40 = arith.constant 0 : index
    %44 = vector.load %arg4[%c0_37, %c3_38, %c0_39, %c0_40] : memref<1x4x4x32xbf16, #tpu.memory_space<vmem>>, vector<1x1x4x32xbf16>
    %45 = vector.shape_cast %44 : vector<1x1x4x32xbf16> to vector<4x32xbf16>
    %46 = vector.shape_cast %43 : vector<4x32xbf16> to vector<1x1x4x32xbf16>
    tpu.vector_store %arg4[%c0_37, %c3_38, %c0_39, %c0_40], %46 {strides = array<i32>} : memref<1x4x4x32xbf16, #tpu.memory_space<vmem>>, vector<1x1x4x32xbf16>,
    return
  }
  func.func @transform_0(%arg0: i32) -> (i32, i32, i32) {
    %c0_i32 = arith.constant 0 : i32
    %c0_i32_0 = arith.constant 0 : i32
    %c0_i32_1 = arith.constant 0 : i32
    return %arg0, %c0_i32, %c0_i32_0 : i32, i32, i32
  }
  func.func @transform_1(%arg0: i32) -> (i32, i32, i32) {
    %c0_i32 = arith.constant 0 : i32
    %c0_i32_0 = arith.constant 0 : i32
    %c0_i32_1 = arith.constant 0 : i32
    %c0_i32_2 = arith.constant 0 : i32
    return %c0_i32, %c0_i32_0, %c0_i32_1 : i32, i32, i32
  }
  func.func @transform_2(%arg0: i32) -> (i32, i32) {
    %c0_i32 = arith.constant 0 : i32
    %c0_i32_0 = arith.constant 0 : i32
    %c0_i32_1 = arith.constant 0 : i32
    return %c0_i32, %c0_i32_0 : i32, i32
  }
  func.func @transform_3(%arg0: i32) -> (i32, i32, i32, i32) {
    %c0_i32 = arith.constant 0 : i32
    %c0_i32_0 = arith.constant 0 : i32
    %c0_i32_1 = arith.constant 0 : i32
    %c0_i32_2 = arith.constant 0 : i32
    return %arg0, %c0_i32, %c0_i32_0, %c0_i32_1 : i32, i32, i32, i32
  }
}

module attributes {stable_mosaic.version = 11 : i64} {
  func.func @_resblock_kernel(%arg0: i32, %arg1: memref<1x42x32xbf16, #tpu.memory_space<vmem>>, %arg2: memref<9x32x8xbf16, #tpu.memory_space<vmem>>, %arg3: memref<1x8xf32, #tpu.memory_space<vmem>>, %arg4: memref<8x32xbf16, #tpu.memory_space<vmem>>, %arg5: memref<1x32xf32, #tpu.memory_space<vmem>>, %arg6: memref<1x4x4x32xbf16, #tpu.memory_space<vmem>>) attributes {dimension_semantics = [#tpu.dimension_semantics<parallel>], iteration_bounds = array<i64: 2>, scalar_prefetch = 0 : i64, scratch_operands = 0 : i64, tpu.core_type = #tpu.core_type<tc>, window_params = [{transform_indices = @transform_0, window_bounds = array<i64: 1, 42, 32>}, {pipeline_mode = #tpu.pipeline_mode<synchronous>, transform_indices = @transform_1, window_bounds = array<i64: 9, 32, 8>}, {pipeline_mode = #tpu.pipeline_mode<synchronous>, transform_indices = @transform_2, window_bounds = array<i64: 1, 8>}, {pipeline_mode = #tpu.pipeline_mode<synchronous>, transform_indices = @transform_3, window_bounds = array<i64: 8, 32>}, {pipeline_mode = #tpu.pipeline_mode<synchronous>, transform_indices = @transform_4, window_bounds = array<i64: 1, 32>}, {transform_indices = @transform_5, window_bounds = array<i64: 1, 4, 4, 32>}]} {
    %c0 = arith.constant 0 : index
    %c0_0 = arith.constant 0 : index
    %c0_1 = arith.constant 0 : index
    %0 = vector.load %arg2[%c0, %c0_0, %c0_1] : memref<9x32x8xbf16, #tpu.memory_space<vmem>>, vector<1x32x8xbf16>
    %1 = vector.shape_cast %0 : vector<1x32x8xbf16> to vector<32x8xbf16>
    %c1 = arith.constant 1 : index
    %c0_2 = arith.constant 0 : index
    %c0_3 = arith.constant 0 : index
    %2 = vector.load %arg2[%c1, %c0_2, %c0_3] : memref<9x32x8xbf16, #tpu.memory_space<vmem>>, vector<1x32x8xbf16>
    %3 = vector.shape_cast %2 : vector<1x32x8xbf16> to vector<32x8xbf16>
    %c2 = arith.constant 2 : index
    %c0_4 = arith.constant 0 : index
    %c0_5 = arith.constant 0 : index
    %4 = vector.load %arg2[%c2, %c0_4, %c0_5] : memref<9x32x8xbf16, #tpu.memory_space<vmem>>, vector<1x32x8xbf16>
    %5 = vector.shape_cast %4 : vector<1x32x8xbf16> to vector<32x8xbf16>
    %c3 = arith.constant 3 : index
    %c0_6 = arith.constant 0 : index
    %c0_7 = arith.constant 0 : index
    %6 = vector.load %arg2[%c3, %c0_6, %c0_7] : memref<9x32x8xbf16, #tpu.memory_space<vmem>>, vector<1x32x8xbf16>
    %7 = vector.shape_cast %6 : vector<1x32x8xbf16> to vector<32x8xbf16>
    %c4 = arith.constant 4 : index
    %c0_8 = arith.constant 0 : index
    %c0_9 = arith.constant 0 : index
    %8 = vector.load %arg2[%c4, %c0_8, %c0_9] : memref<9x32x8xbf16, #tpu.memory_space<vmem>>, vector<1x32x8xbf16>
    %9 = vector.shape_cast %8 : vector<1x32x8xbf16> to vector<32x8xbf16>
    %c5 = arith.constant 5 : index
    %c0_10 = arith.constant 0 : index
    %c0_11 = arith.constant 0 : index
    %10 = vector.load %arg2[%c5, %c0_10, %c0_11] : memref<9x32x8xbf16, #tpu.memory_space<vmem>>, vector<1x32x8xbf16>
    %11 = vector.shape_cast %10 : vector<1x32x8xbf16> to vector<32x8xbf16>
    %c6 = arith.constant 6 : index
    %c0_12 = arith.constant 0 : index
    %c0_13 = arith.constant 0 : index
    %12 = vector.load %arg2[%c6, %c0_12, %c0_13] : memref<9x32x8xbf16, #tpu.memory_space<vmem>>, vector<1x32x8xbf16>
    %13 = vector.shape_cast %12 : vector<1x32x8xbf16> to vector<32x8xbf16>
    %c7 = arith.constant 7 : index
    %c0_14 = arith.constant 0 : index
    %c0_15 = arith.constant 0 : index
    %14 = vector.load %arg2[%c7, %c0_14, %c0_15] : memref<9x32x8xbf16, #tpu.memory_space<vmem>>, vector<1x32x8xbf16>
    %15 = vector.shape_cast %14 : vector<1x32x8xbf16> to vector<32x8xbf16>
    %c8 = arith.constant 8 : index
    %c0_16 = arith.constant 0 : index
    %c0_17 = arith.constant 0 : index
    %16 = vector.load %arg2[%c8, %c0_16, %c0_17] : memref<9x32x8xbf16, #tpu.memory_space<vmem>>, vector<1x32x8xbf16>
    %17 = vector.shape_cast %16 : vector<1x32x8xbf16> to vector<32x8xbf16>
    %c0_18 = arith.constant 0 : index
    %c0_19 = arith.constant 0 : index
    %18 = vector.load %arg3[%c0_18, %c0_19] : memref<1x8xf32, #tpu.memory_space<vmem>>, vector<1x8xf32>
    %c0_20 = arith.constant 0 : index
    %c0_21 = arith.constant 0 : index
    %19 = vector.load %arg4[%c0_20, %c0_21] : memref<8x32xbf16, #tpu.memory_space<vmem>>, vector<8x32xbf16>
    %c0_22 = arith.constant 0 : index
    %c0_23 = arith.constant 0 : index
    %20 = vector.load %arg5[%c0_22, %c0_23] : memref<1x32xf32, #tpu.memory_space<vmem>>, vector<1x32xf32>
    %cst = arith.constant 0.000000e+00 : f32
    %21 = vector.broadcast %cst : f32 to vector<24x8xf32>
    %c0_24 = arith.constant 0 : index
    %c0_25 = arith.constant 0 : index
    %c0_26 = arith.constant 0 : index
    %22 = vector.load %arg1[%c0_24, %c0_25, %c0_26] : memref<1x42x32xbf16, #tpu.memory_space<vmem>>, vector<1x24x32xbf16>
    %23 = vector.shape_cast %22 : vector<1x24x32xbf16> to vector<24x32xbf16>
    %cst_27 = arith.constant dense<0.000000e+00> : vector<24x8xf32>
    %24 = tpu.matmul %23, %1, %cst_27 {dimension_numbers = #tpu.dot_dimension_numbers<[1], [0], [0], [1], [0, 0, 1, 1], [], []>} : vector<24x32xbf16>, vector<32x8xbf16>, vector<24x8xf32> -> vector<24x8xf32>
    %25 = arith.addf %21, %24 : vector<24x8xf32>
    %c0_28 = arith.constant 0 : index
    %c1_29 = arith.constant 1 : index
    %c0_30 = arith.constant 0 : index
    %26 = vector.load %arg1[%c0_28, %c1_29, %c0_30] : memref<1x42x32xbf16, #tpu.memory_space<vmem>>, vector<1x24x32xbf16>
    %27 = vector.shape_cast %26 : vector<1x24x32xbf16> to vector<24x32xbf16>
    %cst_31 = arith.constant dense<0.000000e+00> : vector<24x8xf32>
    %28 = tpu.matmul %27, %3, %cst_31 {dimension_numbers = #tpu.dot_dimension_numbers<[1], [0], [0], [1], [0, 0, 1, 1], [], []>} : vector<24x32xbf16>, vector<32x8xbf16>, vector<24x8xf32> -> vector<24x8xf32>
    %29 = arith.addf %25, %28 : vector<24x8xf32>
    %c0_32 = arith.constant 0 : index
    %c2_33 = arith.constant 2 : index
    %c0_34 = arith.constant 0 : index
    %30 = vector.load %arg1[%c0_32, %c2_33, %c0_34] : memref<1x42x32xbf16, #tpu.memory_space<vmem>>, vector<1x24x32xbf16>
    %31 = vector.shape_cast %30 : vector<1x24x32xbf16> to vector<24x32xbf16>
    %cst_35 = arith.constant dense<0.000000e+00> : vector<24x8xf32>
    %32 = tpu.matmul %31, %5, %cst_35 {dimension_numbers = #tpu.dot_dimension_numbers<[1], [0], [0], [1], [0, 0, 1, 1], [], []>} : vector<24x32xbf16>, vector<32x8xbf16>, vector<24x8xf32> -> vector<24x8xf32>
    %33 = arith.addf %29, %32 : vector<24x8xf32>
    %c0_36 = arith.constant 0 : index
    %c6_37 = arith.constant 6 : index
    %c0_38 = arith.constant 0 : index
    %34 = vector.load %arg1[%c0_36, %c6_37, %c0_38] : memref<1x42x32xbf16, #tpu.memory_space<vmem>>, vector<1x24x32xbf16>
    %35 = vector.shape_cast %34 : vector<1x24x32xbf16> to vector<24x32xbf16>
    %cst_39 = arith.constant dense<0.000000e+00> : vector<24x8xf32>
    %36 = tpu.matmul %35, %7, %cst_39 {dimension_numbers = #tpu.dot_dimension_numbers<[1], [0], [0], [1], [0, 0, 1, 1], [], []>} : vector<24x32xbf16>, vector<32x8xbf16>, vector<24x8xf32> -> vector<24x8xf32>
    %37 = arith.addf %33, %36 : vector<24x8xf32>
    %c0_40 = arith.constant 0 : index
    %c7_41 = arith.constant 7 : index
    %c0_42 = arith.constant 0 : index
    %38 = vector.load %arg1[%c0_40, %c7_41, %c0_42] : memref<1x42x32xbf16, #tpu.memory_space<vmem>>, vector<1x24x32xbf16>
    %39 = vector.shape_cast %38 : vector<1x24x32xbf16> to vector<24x32xbf16>
    %cst_43 = arith.constant dense<0.000000e+00> : vector<24x8xf32>
    %40 = tpu.matmul %39, %9, %cst_43 {dimension_numbers = #tpu.dot_dimension_numbers<[1], [0], [0], [1], [0, 0, 1, 1], [], []>} : vector<24x32xbf16>, vector<32x8xbf16>, vector<24x8xf32> -> vector<24x8xf32>
    %41 = arith.addf %37, %40 : vector<24x8xf32>
    %c0_44 = arith.constant 0 : index
    %c8_45 = arith.constant 8 : index
    %c0_46 = arith.constant 0 : index
    %42 = vector.load %arg1[%c0_44, %c8_45, %c0_46] : memref<1x42x32xbf16, #tpu.memory_space<vmem>>, vector<1x24x32xbf16>
    %43 = vector.shape_cast %42 : vector<1x24x32xbf16> to vector<24x32xbf16>
    %cst_47 = arith.constant dense<0.000000e+00> : vector<24x8xf32>
    %44 = tpu.matmul %43, %11, %cst_47 {dimension_numbers = #tpu.dot_dimension_numbers<[1], [0], [0], [1], [0, 0, 1, 1], [], []>} : vector<24x32xbf16>, vector<32x8xbf16>, vector<24x8xf32> -> vector<24x8xf32>
    %45 = arith.addf %41, %44 : vector<24x8xf32>
    %c0_48 = arith.constant 0 : index
    %c12 = arith.constant 12 : index
    %c0_49 = arith.constant 0 : index
    %46 = vector.load %arg1[%c0_48, %c12, %c0_49] : memref<1x42x32xbf16, #tpu.memory_space<vmem>>, vector<1x24x32xbf16>
    %47 = vector.shape_cast %46 : vector<1x24x32xbf16> to vector<24x32xbf16>
    %cst_50 = arith.constant dense<0.000000e+00> : vector<24x8xf32>
    %48 = tpu.matmul %47, %13, %cst_50 {dimension_numbers = #tpu.dot_dimension_numbers<[1], [0], [0], [1], [0, 0, 1, 1], [], []>} : vector<24x32xbf16>, vector<32x8xbf16>, vector<24x8xf32> -> vector<24x8xf32>
    %49 = arith.addf %45, %48 : vector<24x8xf32>
    %c0_51 = arith.constant 0 : index
    %c13 = arith.constant 13 : index
    %c0_52 = arith.constant 0 : index
    %50 = vector.load %arg1[%c0_51, %c13, %c0_52] : memref<1x42x32xbf16, #tpu.memory_space<vmem>>, vector<1x24x32xbf16>
    %51 = vector.shape_cast %50 : vector<1x24x32xbf16> to vector<24x32xbf16>
    %cst_53 = arith.constant dense<0.000000e+00> : vector<24x8xf32>
    %52 = tpu.matmul %51, %15, %cst_53 {dimension_numbers = #tpu.dot_dimension_numbers<[1], [0], [0], [1], [0, 0, 1, 1], [], []>} : vector<24x32xbf16>, vector<32x8xbf16>, vector<24x8xf32> -> vector<24x8xf32>
    %53 = arith.addf %49, %52 : vector<24x8xf32>
    %c0_54 = arith.constant 0 : index
    %c14 = arith.constant 14 : index
    %c0_55 = arith.constant 0 : index
    %54 = vector.load %arg1[%c0_54, %c14, %c0_55] : memref<1x42x32xbf16, #tpu.memory_space<vmem>>, vector<1x24x32xbf16>
    %55 = vector.shape_cast %54 : vector<1x24x32xbf16> to vector<24x32xbf16>
    %cst_56 = arith.constant dense<0.000000e+00> : vector<24x8xf32>
    %56 = tpu.matmul %55, %17, %cst_56 {dimension_numbers = #tpu.dot_dimension_numbers<[1], [0], [0], [1], [0, 0, 1, 1], [], []>} : vector<24x32xbf16>, vector<32x8xbf16>, vector<24x8xf32> -> vector<24x8xf32>
    %57 = arith.addf %53, %56 : vector<24x8xf32>
    %58 = vector.broadcast %18 : vector<1x8xf32> to vector<24x8xf32>
    %59 = arith.addf %57, %58 : vector<24x8xf32>
    %cst_57 = arith.constant 0.000000e+00 : f32
    %60 = vector.broadcast %cst_57 : f32 to vector<24x8xf32>
    %61 = arith.maximumf %59, %60 : vector<24x8xf32>
    %62 = arith.truncf %61 : vector<24x8xf32> to vector<24x8xbf16>
    %c0_58 = arith.constant 0 : index
    %c7_59 = arith.constant 7 : index
    %c0_60 = arith.constant 0 : index
    %63 = vector.load %arg1[%c0_58, %c7_59, %c0_60] : memref<1x42x32xbf16, #tpu.memory_space<vmem>>, vector<1x24x32xbf16>
    %64 = vector.shape_cast %63 : vector<1x24x32xbf16> to vector<24x32xbf16>
    %65 = arith.extf %64 : vector<24x32xbf16> to vector<24x32xf32>
    %cst_61 = arith.constant dense<0.000000e+00> : vector<24x32xf32>
    %66 = tpu.matmul %62, %19, %cst_61 {dimension_numbers = #tpu.dot_dimension_numbers<[1], [0], [0], [1], [0, 0, 1, 1], [], []>} : vector<24x8xbf16>, vector<8x32xbf16>, vector<24x32xf32> -> vector<24x32xf32>
    %67 = vector.broadcast %20 : vector<1x32xf32> to vector<24x32xf32>
    %68 = arith.addf %66, %67 : vector<24x32xf32>
    %69 = arith.addf %68, %65 : vector<24x32xf32>
    %cst_62 = arith.constant 0.000000e+00 : f32
    %70 = vector.broadcast %cst_62 : f32 to vector<24x32xf32>
    %71 = arith.maximumf %69, %70 : vector<24x32xf32>
    %72 = arith.truncf %71 : vector<24x32xf32> to vector<24x32xbf16>
    %73 = vector.extract_strided_slice %72 {offsets = [0, 0], sizes = [4, 32], strides = [1, 1]} : vector<24x32xbf16> to vector<4x32xbf16>
    %c0_63 = arith.constant 0 : index
    %c0_64 = arith.constant 0 : index
    %c0_65 = arith.constant 0 : index
    %c0_66 = arith.constant 0 : index
    %74 = vector.load %arg6[%c0_63, %c0_64, %c0_65, %c0_66] : memref<1x4x4x32xbf16, #tpu.memory_space<vmem>>, vector<1x1x4x32xbf16>
    %75 = vector.shape_cast %74 : vector<1x1x4x32xbf16> to vector<4x32xbf16>
    %76 = vector.shape_cast %73 : vector<4x32xbf16> to vector<1x1x4x32xbf16>
    tpu.vector_store %arg6[%c0_63, %c0_64, %c0_65, %c0_66], %76 {strides = array<i32>} : memref<1x4x4x32xbf16, #tpu.memory_space<vmem>>, vector<1x1x4x32xbf16>,
    %77 = vector.extract_strided_slice %72 {offsets = [6, 0], sizes = [4, 32], strides = [1, 1]} : vector<24x32xbf16> to vector<4x32xbf16>
    %c0_67 = arith.constant 0 : index
    %c1_68 = arith.constant 1 : index
    %c0_69 = arith.constant 0 : index
    %c0_70 = arith.constant 0 : index
    %78 = vector.load %arg6[%c0_67, %c1_68, %c0_69, %c0_70] : memref<1x4x4x32xbf16, #tpu.memory_space<vmem>>, vector<1x1x4x32xbf16>
    %79 = vector.shape_cast %78 : vector<1x1x4x32xbf16> to vector<4x32xbf16>
    %80 = vector.shape_cast %77 : vector<4x32xbf16> to vector<1x1x4x32xbf16>
    tpu.vector_store %arg6[%c0_67, %c1_68, %c0_69, %c0_70], %80 {strides = array<i32>} : memref<1x4x4x32xbf16, #tpu.memory_space<vmem>>, vector<1x1x4x32xbf16>,
    %81 = vector.extract_strided_slice %72 {offsets = [12, 0], sizes = [4, 32], strides = [1, 1]} : vector<24x32xbf16> to vector<4x32xbf16>
    %c0_71 = arith.constant 0 : index
    %c2_72 = arith.constant 2 : index
    %c0_73 = arith.constant 0 : index
    %c0_74 = arith.constant 0 : index
    %82 = vector.load %arg6[%c0_71, %c2_72, %c0_73, %c0_74] : memref<1x4x4x32xbf16, #tpu.memory_space<vmem>>, vector<1x1x4x32xbf16>
    %83 = vector.shape_cast %82 : vector<1x1x4x32xbf16> to vector<4x32xbf16>
    %84 = vector.shape_cast %81 : vector<4x32xbf16> to vector<1x1x4x32xbf16>
    tpu.vector_store %arg6[%c0_71, %c2_72, %c0_73, %c0_74], %84 {strides = array<i32>} : memref<1x4x4x32xbf16, #tpu.memory_space<vmem>>, vector<1x1x4x32xbf16>,
    %85 = vector.extract_strided_slice %72 {offsets = [18, 0], sizes = [4, 32], strides = [1, 1]} : vector<24x32xbf16> to vector<4x32xbf16>
    %c0_75 = arith.constant 0 : index
    %c3_76 = arith.constant 3 : index
    %c0_77 = arith.constant 0 : index
    %c0_78 = arith.constant 0 : index
    %86 = vector.load %arg6[%c0_75, %c3_76, %c0_77, %c0_78] : memref<1x4x4x32xbf16, #tpu.memory_space<vmem>>, vector<1x1x4x32xbf16>
    %87 = vector.shape_cast %86 : vector<1x1x4x32xbf16> to vector<4x32xbf16>
    %88 = vector.shape_cast %85 : vector<4x32xbf16> to vector<1x1x4x32xbf16>
    tpu.vector_store %arg6[%c0_75, %c3_76, %c0_77, %c0_78], %88 {strides = array<i32>} : memref<1x4x4x32xbf16, #tpu.memory_space<vmem>>, vector<1x1x4x32xbf16>,
    return
  }
  func.func @transform_0(%arg0: i32) -> (i32, i32, i32) {
    %c0_i32 = arith.constant 0 : i32
    %c0_i32_0 = arith.constant 0 : i32
    %c0_i32_1 = arith.constant 0 : i32
    return %arg0, %c0_i32, %c0_i32_0 : i32, i32, i32
  }
  func.func @transform_1(%arg0: i32) -> (i32, i32, i32) {
    %c0_i32 = arith.constant 0 : i32
    %c0_i32_0 = arith.constant 0 : i32
    %c0_i32_1 = arith.constant 0 : i32
    %c0_i32_2 = arith.constant 0 : i32
    return %c0_i32, %c0_i32_0, %c0_i32_1 : i32, i32, i32
  }
  func.func @transform_2(%arg0: i32) -> (i32, i32) {
    %c0_i32 = arith.constant 0 : i32
    %c0_i32_0 = arith.constant 0 : i32
    %c0_i32_1 = arith.constant 0 : i32
    return %c0_i32, %c0_i32_0 : i32, i32
  }
  func.func @transform_3(%arg0: i32) -> (i32, i32) {
    %c0_i32 = arith.constant 0 : i32
    %c0_i32_0 = arith.constant 0 : i32
    %c0_i32_1 = arith.constant 0 : i32
    return %c0_i32, %c0_i32_0 : i32, i32
  }
  func.func @transform_4(%arg0: i32) -> (i32, i32) {
    %c0_i32 = arith.constant 0 : i32
    %c0_i32_0 = arith.constant 0 : i32
    %c0_i32_1 = arith.constant 0 : i32
    return %c0_i32, %c0_i32_0 : i32, i32
  }
  func.func @transform_5(%arg0: i32) -> (i32, i32, i32, i32) {
    %c0_i32 = arith.constant 0 : i32
    %c0_i32_0 = arith.constant 0 : i32
    %c0_i32_1 = arith.constant 0 : i32
    %c0_i32_2 = arith.constant 0 : i32
    return %arg0, %c0_i32, %c0_i32_0, %c0_i32_1 : i32, i32, i32, i32
  }
}

module attributes {stable_mosaic.version = 11 : i64} {
  func.func @_conv_kernel(%arg0: i32, %arg1: memref<1x42x32xbf16, #tpu.memory_space<vmem>>, %arg2: memref<9x32x32xbf16, #tpu.memory_space<vmem>>, %arg3: memref<1x32xf32, #tpu.memory_space<vmem>>, %arg4: memref<1x4x4x32xbf16, #tpu.memory_space<vmem>>) attributes {dimension_semantics = [#tpu.dimension_semantics<parallel>], iteration_bounds = array<i64: 2>, scalar_prefetch = 0 : i64, scratch_operands = 0 : i64, tpu.core_type = #tpu.core_type<tc>, window_params = [{transform_indices = @transform_0, window_bounds = array<i64: 1, 42, 32>}, {pipeline_mode = #tpu.pipeline_mode<synchronous>, transform_indices = @transform_1, window_bounds = array<i64: 9, 32, 32>}, {pipeline_mode = #tpu.pipeline_mode<synchronous>, transform_indices = @transform_2, window_bounds = array<i64: 1, 32>}, {transform_indices = @transform_3, window_bounds = array<i64: 1, 4, 4, 32>}]} {
    %c0 = arith.constant 0 : index
    %c0_0 = arith.constant 0 : index
    %0 = vector.load %arg3[%c0, %c0_0] : memref<1x32xf32, #tpu.memory_space<vmem>>, vector<1x32xf32>
    %c0_1 = arith.constant 0 : index
    %c0_2 = arith.constant 0 : index
    %c0_3 = arith.constant 0 : index
    %1 = vector.load %arg2[%c0_1, %c0_2, %c0_3] : memref<9x32x32xbf16, #tpu.memory_space<vmem>>, vector<1x32x32xbf16>
    %2 = vector.shape_cast %1 : vector<1x32x32xbf16> to vector<32x32xbf16>
    %c1 = arith.constant 1 : index
    %c0_4 = arith.constant 0 : index
    %c0_5 = arith.constant 0 : index
    %3 = vector.load %arg2[%c1, %c0_4, %c0_5] : memref<9x32x32xbf16, #tpu.memory_space<vmem>>, vector<1x32x32xbf16>
    %4 = vector.shape_cast %3 : vector<1x32x32xbf16> to vector<32x32xbf16>
    %c2 = arith.constant 2 : index
    %c0_6 = arith.constant 0 : index
    %c0_7 = arith.constant 0 : index
    %5 = vector.load %arg2[%c2, %c0_6, %c0_7] : memref<9x32x32xbf16, #tpu.memory_space<vmem>>, vector<1x32x32xbf16>
    %6 = vector.shape_cast %5 : vector<1x32x32xbf16> to vector<32x32xbf16>
    %c3 = arith.constant 3 : index
    %c0_8 = arith.constant 0 : index
    %c0_9 = arith.constant 0 : index
    %7 = vector.load %arg2[%c3, %c0_8, %c0_9] : memref<9x32x32xbf16, #tpu.memory_space<vmem>>, vector<1x32x32xbf16>
    %8 = vector.shape_cast %7 : vector<1x32x32xbf16> to vector<32x32xbf16>
    %c4 = arith.constant 4 : index
    %c0_10 = arith.constant 0 : index
    %c0_11 = arith.constant 0 : index
    %9 = vector.load %arg2[%c4, %c0_10, %c0_11] : memref<9x32x32xbf16, #tpu.memory_space<vmem>>, vector<1x32x32xbf16>
    %10 = vector.shape_cast %9 : vector<1x32x32xbf16> to vector<32x32xbf16>
    %c5 = arith.constant 5 : index
    %c0_12 = arith.constant 0 : index
    %c0_13 = arith.constant 0 : index
    %11 = vector.load %arg2[%c5, %c0_12, %c0_13] : memref<9x32x32xbf16, #tpu.memory_space<vmem>>, vector<1x32x32xbf16>
    %12 = vector.shape_cast %11 : vector<1x32x32xbf16> to vector<32x32xbf16>
    %c6 = arith.constant 6 : index
    %c0_14 = arith.constant 0 : index
    %c0_15 = arith.constant 0 : index
    %13 = vector.load %arg2[%c6, %c0_14, %c0_15] : memref<9x32x32xbf16, #tpu.memory_space<vmem>>, vector<1x32x32xbf16>
    %14 = vector.shape_cast %13 : vector<1x32x32xbf16> to vector<32x32xbf16>
    %c7 = arith.constant 7 : index
    %c0_16 = arith.constant 0 : index
    %c0_17 = arith.constant 0 : index
    %15 = vector.load %arg2[%c7, %c0_16, %c0_17] : memref<9x32x32xbf16, #tpu.memory_space<vmem>>, vector<1x32x32xbf16>
    %16 = vector.shape_cast %15 : vector<1x32x32xbf16> to vector<32x32xbf16>
    %c8 = arith.constant 8 : index
    %c0_18 = arith.constant 0 : index
    %c0_19 = arith.constant 0 : index
    %17 = vector.load %arg2[%c8, %c0_18, %c0_19] : memref<9x32x32xbf16, #tpu.memory_space<vmem>>, vector<1x32x32xbf16>
    %18 = vector.shape_cast %17 : vector<1x32x32xbf16> to vector<32x32xbf16>
    %cst = arith.constant 0.000000e+00 : f32
    %19 = vector.broadcast %cst : f32 to vector<24x32xf32>
    %c0_20 = arith.constant 0 : index
    %c0_21 = arith.constant 0 : index
    %c0_22 = arith.constant 0 : index
    %20 = vector.load %arg1[%c0_20, %c0_21, %c0_22] : memref<1x42x32xbf16, #tpu.memory_space<vmem>>, vector<1x24x32xbf16>
    %21 = vector.shape_cast %20 : vector<1x24x32xbf16> to vector<24x32xbf16>
    %cst_23 = arith.constant dense<0.000000e+00> : vector<24x32xf32>
    %22 = tpu.matmul %21, %2, %cst_23 {dimension_numbers = #tpu.dot_dimension_numbers<[1], [0], [0], [1], [0, 0, 1, 1], [], []>} : vector<24x32xbf16>, vector<32x32xbf16>, vector<24x32xf32> -> vector<24x32xf32>
    %23 = arith.addf %19, %22 : vector<24x32xf32>
    %c0_24 = arith.constant 0 : index
    %c1_25 = arith.constant 1 : index
    %c0_26 = arith.constant 0 : index
    %24 = vector.load %arg1[%c0_24, %c1_25, %c0_26] : memref<1x42x32xbf16, #tpu.memory_space<vmem>>, vector<1x24x32xbf16>
    %25 = vector.shape_cast %24 : vector<1x24x32xbf16> to vector<24x32xbf16>
    %cst_27 = arith.constant dense<0.000000e+00> : vector<24x32xf32>
    %26 = tpu.matmul %25, %4, %cst_27 {dimension_numbers = #tpu.dot_dimension_numbers<[1], [0], [0], [1], [0, 0, 1, 1], [], []>} : vector<24x32xbf16>, vector<32x32xbf16>, vector<24x32xf32> -> vector<24x32xf32>
    %27 = arith.addf %23, %26 : vector<24x32xf32>
    %c0_28 = arith.constant 0 : index
    %c2_29 = arith.constant 2 : index
    %c0_30 = arith.constant 0 : index
    %28 = vector.load %arg1[%c0_28, %c2_29, %c0_30] : memref<1x42x32xbf16, #tpu.memory_space<vmem>>, vector<1x24x32xbf16>
    %29 = vector.shape_cast %28 : vector<1x24x32xbf16> to vector<24x32xbf16>
    %cst_31 = arith.constant dense<0.000000e+00> : vector<24x32xf32>
    %30 = tpu.matmul %29, %6, %cst_31 {dimension_numbers = #tpu.dot_dimension_numbers<[1], [0], [0], [1], [0, 0, 1, 1], [], []>} : vector<24x32xbf16>, vector<32x32xbf16>, vector<24x32xf32> -> vector<24x32xf32>
    %31 = arith.addf %27, %30 : vector<24x32xf32>
    %c0_32 = arith.constant 0 : index
    %c6_33 = arith.constant 6 : index
    %c0_34 = arith.constant 0 : index
    %32 = vector.load %arg1[%c0_32, %c6_33, %c0_34] : memref<1x42x32xbf16, #tpu.memory_space<vmem>>, vector<1x24x32xbf16>
    %33 = vector.shape_cast %32 : vector<1x24x32xbf16> to vector<24x32xbf16>
    %cst_35 = arith.constant dense<0.000000e+00> : vector<24x32xf32>
    %34 = tpu.matmul %33, %8, %cst_35 {dimension_numbers = #tpu.dot_dimension_numbers<[1], [0], [0], [1], [0, 0, 1, 1], [], []>} : vector<24x32xbf16>, vector<32x32xbf16>, vector<24x32xf32> -> vector<24x32xf32>
    %35 = arith.addf %31, %34 : vector<24x32xf32>
    %c0_36 = arith.constant 0 : index
    %c7_37 = arith.constant 7 : index
    %c0_38 = arith.constant 0 : index
    %36 = vector.load %arg1[%c0_36, %c7_37, %c0_38] : memref<1x42x32xbf16, #tpu.memory_space<vmem>>, vector<1x24x32xbf16>
    %37 = vector.shape_cast %36 : vector<1x24x32xbf16> to vector<24x32xbf16>
    %cst_39 = arith.constant dense<0.000000e+00> : vector<24x32xf32>
    %38 = tpu.matmul %37, %10, %cst_39 {dimension_numbers = #tpu.dot_dimension_numbers<[1], [0], [0], [1], [0, 0, 1, 1], [], []>} : vector<24x32xbf16>, vector<32x32xbf16>, vector<24x32xf32> -> vector<24x32xf32>
    %39 = arith.addf %35, %38 : vector<24x32xf32>
    %c0_40 = arith.constant 0 : index
    %c8_41 = arith.constant 8 : index
    %c0_42 = arith.constant 0 : index
    %40 = vector.load %arg1[%c0_40, %c8_41, %c0_42] : memref<1x42x32xbf16, #tpu.memory_space<vmem>>, vector<1x24x32xbf16>
    %41 = vector.shape_cast %40 : vector<1x24x32xbf16> to vector<24x32xbf16>
    %cst_43 = arith.constant dense<0.000000e+00> : vector<24x32xf32>
    %42 = tpu.matmul %41, %12, %cst_43 {dimension_numbers = #tpu.dot_dimension_numbers<[1], [0], [0], [1], [0, 0, 1, 1], [], []>} : vector<24x32xbf16>, vector<32x32xbf16>, vector<24x32xf32> -> vector<24x32xf32>
    %43 = arith.addf %39, %42 : vector<24x32xf32>
    %c0_44 = arith.constant 0 : index
    %c12 = arith.constant 12 : index
    %c0_45 = arith.constant 0 : index
    %44 = vector.load %arg1[%c0_44, %c12, %c0_45] : memref<1x42x32xbf16, #tpu.memory_space<vmem>>, vector<1x24x32xbf16>
    %45 = vector.shape_cast %44 : vector<1x24x32xbf16> to vector<24x32xbf16>
    %cst_46 = arith.constant dense<0.000000e+00> : vector<24x32xf32>
    %46 = tpu.matmul %45, %14, %cst_46 {dimension_numbers = #tpu.dot_dimension_numbers<[1], [0], [0], [1], [0, 0, 1, 1], [], []>} : vector<24x32xbf16>, vector<32x32xbf16>, vector<24x32xf32> -> vector<24x32xf32>
    %47 = arith.addf %43, %46 : vector<24x32xf32>
    %c0_47 = arith.constant 0 : index
    %c13 = arith.constant 13 : index
    %c0_48 = arith.constant 0 : index
    %48 = vector.load %arg1[%c0_47, %c13, %c0_48] : memref<1x42x32xbf16, #tpu.memory_space<vmem>>, vector<1x24x32xbf16>
    %49 = vector.shape_cast %48 : vector<1x24x32xbf16> to vector<24x32xbf16>
    %cst_49 = arith.constant dense<0.000000e+00> : vector<24x32xf32>
    %50 = tpu.matmul %49, %16, %cst_49 {dimension_numbers = #tpu.dot_dimension_numbers<[1], [0], [0], [1], [0, 0, 1, 1], [], []>} : vector<24x32xbf16>, vector<32x32xbf16>, vector<24x32xf32> -> vector<24x32xf32>
    %51 = arith.addf %47, %50 : vector<24x32xf32>
    %c0_50 = arith.constant 0 : index
    %c14 = arith.constant 14 : index
    %c0_51 = arith.constant 0 : index
    %52 = vector.load %arg1[%c0_50, %c14, %c0_51] : memref<1x42x32xbf16, #tpu.memory_space<vmem>>, vector<1x24x32xbf16>
    %53 = vector.shape_cast %52 : vector<1x24x32xbf16> to vector<24x32xbf16>
    %cst_52 = arith.constant dense<0.000000e+00> : vector<24x32xf32>
    %54 = tpu.matmul %53, %18, %cst_52 {dimension_numbers = #tpu.dot_dimension_numbers<[1], [0], [0], [1], [0, 0, 1, 1], [], []>} : vector<24x32xbf16>, vector<32x32xbf16>, vector<24x32xf32> -> vector<24x32xf32>
    %55 = arith.addf %51, %54 : vector<24x32xf32>
    %56 = vector.broadcast %0 : vector<1x32xf32> to vector<24x32xf32>
    %57 = arith.addf %55, %56 : vector<24x32xf32>
    %cst_53 = arith.constant 0.000000e+00 : f32
    %58 = vector.broadcast %cst_53 : f32 to vector<24x32xf32>
    %59 = arith.maximumf %57, %58 : vector<24x32xf32>
    %60 = arith.truncf %59 : vector<24x32xf32> to vector<24x32xbf16>
    %61 = vector.extract_strided_slice %60 {offsets = [0, 0], sizes = [4, 32], strides = [1, 1]} : vector<24x32xbf16> to vector<4x32xbf16>
    %c0_54 = arith.constant 0 : index
    %c0_55 = arith.constant 0 : index
    %c0_56 = arith.constant 0 : index
    %c0_57 = arith.constant 0 : index
    %62 = vector.load %arg4[%c0_54, %c0_55, %c0_56, %c0_57] : memref<1x4x4x32xbf16, #tpu.memory_space<vmem>>, vector<1x1x4x32xbf16>
    %63 = vector.shape_cast %62 : vector<1x1x4x32xbf16> to vector<4x32xbf16>
    %64 = vector.shape_cast %61 : vector<4x32xbf16> to vector<1x1x4x32xbf16>
    tpu.vector_store %arg4[%c0_54, %c0_55, %c0_56, %c0_57], %64 {strides = array<i32>} : memref<1x4x4x32xbf16, #tpu.memory_space<vmem>>, vector<1x1x4x32xbf16>,
    %65 = vector.extract_strided_slice %60 {offsets = [6, 0], sizes = [4, 32], strides = [1, 1]} : vector<24x32xbf16> to vector<4x32xbf16>
    %c0_58 = arith.constant 0 : index
    %c1_59 = arith.constant 1 : index
    %c0_60 = arith.constant 0 : index
    %c0_61 = arith.constant 0 : index
    %66 = vector.load %arg4[%c0_58, %c1_59, %c0_60, %c0_61] : memref<1x4x4x32xbf16, #tpu.memory_space<vmem>>, vector<1x1x4x32xbf16>
    %67 = vector.shape_cast %66 : vector<1x1x4x32xbf16> to vector<4x32xbf16>
    %68 = vector.shape_cast %65 : vector<4x32xbf16> to vector<1x1x4x32xbf16>
    tpu.vector_store %arg4[%c0_58, %c1_59, %c0_60, %c0_61], %68 {strides = array<i32>} : memref<1x4x4x32xbf16, #tpu.memory_space<vmem>>, vector<1x1x4x32xbf16>,
    %69 = vector.extract_strided_slice %60 {offsets = [12, 0], sizes = [4, 32], strides = [1, 1]} : vector<24x32xbf16> to vector<4x32xbf16>
    %c0_62 = arith.constant 0 : index
    %c2_63 = arith.constant 2 : index
    %c0_64 = arith.constant 0 : index
    %c0_65 = arith.constant 0 : index
    %70 = vector.load %arg4[%c0_62, %c2_63, %c0_64, %c0_65] : memref<1x4x4x32xbf16, #tpu.memory_space<vmem>>, vector<1x1x4x32xbf16>
    %71 = vector.shape_cast %70 : vector<1x1x4x32xbf16> to vector<4x32xbf16>
    %72 = vector.shape_cast %69 : vector<4x32xbf16> to vector<1x1x4x32xbf16>
    tpu.vector_store %arg4[%c0_62, %c2_63, %c0_64, %c0_65], %72 {strides = array<i32>} : memref<1x4x4x32xbf16, #tpu.memory_space<vmem>>, vector<1x1x4x32xbf16>,
    %73 = vector.extract_strided_slice %60 {offsets = [18, 0], sizes = [4, 32], strides = [1, 1]} : vector<24x32xbf16> to vector<4x32xbf16>
    %c0_66 = arith.constant 0 : index
    %c3_67 = arith.constant 3 : index
    %c0_68 = arith.constant 0 : index
    %c0_69 = arith.constant 0 : index
    %74 = vector.load %arg4[%c0_66, %c3_67, %c0_68, %c0_69] : memref<1x4x4x32xbf16, #tpu.memory_space<vmem>>, vector<1x1x4x32xbf16>
    %75 = vector.shape_cast %74 : vector<1x1x4x32xbf16> to vector<4x32xbf16>
    %76 = vector.shape_cast %73 : vector<4x32xbf16> to vector<1x1x4x32xbf16>
    tpu.vector_store %arg4[%c0_66, %c3_67, %c0_68, %c0_69], %76 {strides = array<i32>} : memref<1x4x4x32xbf16, #tpu.memory_space<vmem>>, vector<1x1x4x32xbf16>,
    return
  }
  func.func @transform_0(%arg0: i32) -> (i32, i32, i32) {
    %c0_i32 = arith.constant 0 : i32
    %c0_i32_0 = arith.constant 0 : i32
    %c0_i32_1 = arith.constant 0 : i32
    return %arg0, %c0_i32, %c0_i32_0 : i32, i32, i32
  }
  func.func @transform_1(%arg0: i32) -> (i32, i32, i32) {
    %c0_i32 = arith.constant 0 : i32
    %c0_i32_0 = arith.constant 0 : i32
    %c0_i32_1 = arith.constant 0 : i32
    %c0_i32_2 = arith.constant 0 : i32
    return %c0_i32, %c0_i32_0, %c0_i32_1 : i32, i32, i32
  }
  func.func @transform_2(%arg0: i32) -> (i32, i32) {
    %c0_i32 = arith.constant 0 : i32
    %c0_i32_0 = arith.constant 0 : i32
    %c0_i32_1 = arith.constant 0 : i32
    return %c0_i32, %c0_i32_0 : i32, i32
  }
  func.func @transform_3(%arg0: i32) -> (i32, i32, i32, i32) {
    %c0_i32 = arith.constant 0 : i32
    %c0_i32_0 = arith.constant 0 : i32
    %c0_i32_1 = arith.constant 0 : i32
    %c0_i32_2 = arith.constant 0 : i32
    return %arg0, %c0_i32, %c0_i32_0, %c0_i32_1 : i32, i32, i32, i32
  }
}

module attributes {stable_mosaic.version = 11 : i64} {
  func.func @_resblock_kernel(%arg0: i32, %arg1: memref<1x42x32xbf16, #tpu.memory_space<vmem>>, %arg2: memref<9x32x8xbf16, #tpu.memory_space<vmem>>, %arg3: memref<1x8xf32, #tpu.memory_space<vmem>>, %arg4: memref<8x32xbf16, #tpu.memory_space<vmem>>, %arg5: memref<1x32xf32, #tpu.memory_space<vmem>>, %arg6: memref<32x8xf32, #tpu.memory_space<vmem>>, %arg7: memref<1x8xf32, #tpu.memory_space<vmem>>, %arg8: memref<1x4x4x8xf32, #tpu.memory_space<vmem>>) attributes {dimension_semantics = [#tpu.dimension_semantics<parallel>], iteration_bounds = array<i64: 2>, scalar_prefetch = 0 : i64, scratch_operands = 0 : i64, tpu.core_type = #tpu.core_type<tc>, window_params = [{transform_indices = @transform_0, window_bounds = array<i64: 1, 42, 32>}, {pipeline_mode = #tpu.pipeline_mode<synchronous>, transform_indices = @transform_1, window_bounds = array<i64: 9, 32, 8>}, {pipeline_mode = #tpu.pipeline_mode<synchronous>, transform_indices = @transform_2, window_bounds = array<i64: 1, 8>}, {pipeline_mode = #tpu.pipeline_mode<synchronous>, transform_indices = @transform_3, window_bounds = array<i64: 8, 32>}, {pipeline_mode = #tpu.pipeline_mode<synchronous>, transform_indices = @transform_4, window_bounds = array<i64: 1, 32>}, {pipeline_mode = #tpu.pipeline_mode<synchronous>, transform_indices = @transform_5, window_bounds = array<i64: 32, 8>}, {pipeline_mode = #tpu.pipeline_mode<synchronous>, transform_indices = @transform_6, window_bounds = array<i64: 1, 8>}, {transform_indices = @transform_7, window_bounds = array<i64: 1, 4, 4, 8>}]} {
    %c0 = arith.constant 0 : index
    %c0_0 = arith.constant 0 : index
    %c0_1 = arith.constant 0 : index
    %0 = vector.load %arg2[%c0, %c0_0, %c0_1] : memref<9x32x8xbf16, #tpu.memory_space<vmem>>, vector<1x32x8xbf16>
    %1 = vector.shape_cast %0 : vector<1x32x8xbf16> to vector<32x8xbf16>
    %c1 = arith.constant 1 : index
    %c0_2 = arith.constant 0 : index
    %c0_3 = arith.constant 0 : index
    %2 = vector.load %arg2[%c1, %c0_2, %c0_3] : memref<9x32x8xbf16, #tpu.memory_space<vmem>>, vector<1x32x8xbf16>
    %3 = vector.shape_cast %2 : vector<1x32x8xbf16> to vector<32x8xbf16>
    %c2 = arith.constant 2 : index
    %c0_4 = arith.constant 0 : index
    %c0_5 = arith.constant 0 : index
    %4 = vector.load %arg2[%c2, %c0_4, %c0_5] : memref<9x32x8xbf16, #tpu.memory_space<vmem>>, vector<1x32x8xbf16>
    %5 = vector.shape_cast %4 : vector<1x32x8xbf16> to vector<32x8xbf16>
    %c3 = arith.constant 3 : index
    %c0_6 = arith.constant 0 : index
    %c0_7 = arith.constant 0 : index
    %6 = vector.load %arg2[%c3, %c0_6, %c0_7] : memref<9x32x8xbf16, #tpu.memory_space<vmem>>, vector<1x32x8xbf16>
    %7 = vector.shape_cast %6 : vector<1x32x8xbf16> to vector<32x8xbf16>
    %c4 = arith.constant 4 : index
    %c0_8 = arith.constant 0 : index
    %c0_9 = arith.constant 0 : index
    %8 = vector.load %arg2[%c4, %c0_8, %c0_9] : memref<9x32x8xbf16, #tpu.memory_space<vmem>>, vector<1x32x8xbf16>
    %9 = vector.shape_cast %8 : vector<1x32x8xbf16> to vector<32x8xbf16>
    %c5 = arith.constant 5 : index
    %c0_10 = arith.constant 0 : index
    %c0_11 = arith.constant 0 : index
    %10 = vector.load %arg2[%c5, %c0_10, %c0_11] : memref<9x32x8xbf16, #tpu.memory_space<vmem>>, vector<1x32x8xbf16>
    %11 = vector.shape_cast %10 : vector<1x32x8xbf16> to vector<32x8xbf16>
    %c6 = arith.constant 6 : index
    %c0_12 = arith.constant 0 : index
    %c0_13 = arith.constant 0 : index
    %12 = vector.load %arg2[%c6, %c0_12, %c0_13] : memref<9x32x8xbf16, #tpu.memory_space<vmem>>, vector<1x32x8xbf16>
    %13 = vector.shape_cast %12 : vector<1x32x8xbf16> to vector<32x8xbf16>
    %c7 = arith.constant 7 : index
    %c0_14 = arith.constant 0 : index
    %c0_15 = arith.constant 0 : index
    %14 = vector.load %arg2[%c7, %c0_14, %c0_15] : memref<9x32x8xbf16, #tpu.memory_space<vmem>>, vector<1x32x8xbf16>
    %15 = vector.shape_cast %14 : vector<1x32x8xbf16> to vector<32x8xbf16>
    %c8 = arith.constant 8 : index
    %c0_16 = arith.constant 0 : index
    %c0_17 = arith.constant 0 : index
    %16 = vector.load %arg2[%c8, %c0_16, %c0_17] : memref<9x32x8xbf16, #tpu.memory_space<vmem>>, vector<1x32x8xbf16>
    %17 = vector.shape_cast %16 : vector<1x32x8xbf16> to vector<32x8xbf16>
    %c0_18 = arith.constant 0 : index
    %c0_19 = arith.constant 0 : index
    %18 = vector.load %arg3[%c0_18, %c0_19] : memref<1x8xf32, #tpu.memory_space<vmem>>, vector<1x8xf32>
    %c0_20 = arith.constant 0 : index
    %c0_21 = arith.constant 0 : index
    %19 = vector.load %arg4[%c0_20, %c0_21] : memref<8x32xbf16, #tpu.memory_space<vmem>>, vector<8x32xbf16>
    %c0_22 = arith.constant 0 : index
    %c0_23 = arith.constant 0 : index
    %20 = vector.load %arg5[%c0_22, %c0_23] : memref<1x32xf32, #tpu.memory_space<vmem>>, vector<1x32xf32>
    %cst = arith.constant 0.000000e+00 : f32
    %21 = vector.broadcast %cst : f32 to vector<24x8xf32>
    %c0_24 = arith.constant 0 : index
    %c0_25 = arith.constant 0 : index
    %c0_26 = arith.constant 0 : index
    %22 = vector.load %arg1[%c0_24, %c0_25, %c0_26] : memref<1x42x32xbf16, #tpu.memory_space<vmem>>, vector<1x24x32xbf16>
    %23 = vector.shape_cast %22 : vector<1x24x32xbf16> to vector<24x32xbf16>
    %cst_27 = arith.constant dense<0.000000e+00> : vector<24x8xf32>
    %24 = tpu.matmul %23, %1, %cst_27 {dimension_numbers = #tpu.dot_dimension_numbers<[1], [0], [0], [1], [0, 0, 1, 1], [], []>} : vector<24x32xbf16>, vector<32x8xbf16>, vector<24x8xf32> -> vector<24x8xf32>
    %25 = arith.addf %21, %24 : vector<24x8xf32>
    %c0_28 = arith.constant 0 : index
    %c1_29 = arith.constant 1 : index
    %c0_30 = arith.constant 0 : index
    %26 = vector.load %arg1[%c0_28, %c1_29, %c0_30] : memref<1x42x32xbf16, #tpu.memory_space<vmem>>, vector<1x24x32xbf16>
    %27 = vector.shape_cast %26 : vector<1x24x32xbf16> to vector<24x32xbf16>
    %cst_31 = arith.constant dense<0.000000e+00> : vector<24x8xf32>
    %28 = tpu.matmul %27, %3, %cst_31 {dimension_numbers = #tpu.dot_dimension_numbers<[1], [0], [0], [1], [0, 0, 1, 1], [], []>} : vector<24x32xbf16>, vector<32x8xbf16>, vector<24x8xf32> -> vector<24x8xf32>
    %29 = arith.addf %25, %28 : vector<24x8xf32>
    %c0_32 = arith.constant 0 : index
    %c2_33 = arith.constant 2 : index
    %c0_34 = arith.constant 0 : index
    %30 = vector.load %arg1[%c0_32, %c2_33, %c0_34] : memref<1x42x32xbf16, #tpu.memory_space<vmem>>, vector<1x24x32xbf16>
    %31 = vector.shape_cast %30 : vector<1x24x32xbf16> to vector<24x32xbf16>
    %cst_35 = arith.constant dense<0.000000e+00> : vector<24x8xf32>
    %32 = tpu.matmul %31, %5, %cst_35 {dimension_numbers = #tpu.dot_dimension_numbers<[1], [0], [0], [1], [0, 0, 1, 1], [], []>} : vector<24x32xbf16>, vector<32x8xbf16>, vector<24x8xf32> -> vector<24x8xf32>
    %33 = arith.addf %29, %32 : vector<24x8xf32>
    %c0_36 = arith.constant 0 : index
    %c6_37 = arith.constant 6 : index
    %c0_38 = arith.constant 0 : index
    %34 = vector.load %arg1[%c0_36, %c6_37, %c0_38] : memref<1x42x32xbf16, #tpu.memory_space<vmem>>, vector<1x24x32xbf16>
    %35 = vector.shape_cast %34 : vector<1x24x32xbf16> to vector<24x32xbf16>
    %cst_39 = arith.constant dense<0.000000e+00> : vector<24x8xf32>
    %36 = tpu.matmul %35, %7, %cst_39 {dimension_numbers = #tpu.dot_dimension_numbers<[1], [0], [0], [1], [0, 0, 1, 1], [], []>} : vector<24x32xbf16>, vector<32x8xbf16>, vector<24x8xf32> -> vector<24x8xf32>
    %37 = arith.addf %33, %36 : vector<24x8xf32>
    %c0_40 = arith.constant 0 : index
    %c7_41 = arith.constant 7 : index
    %c0_42 = arith.constant 0 : index
    %38 = vector.load %arg1[%c0_40, %c7_41, %c0_42] : memref<1x42x32xbf16, #tpu.memory_space<vmem>>, vector<1x24x32xbf16>
    %39 = vector.shape_cast %38 : vector<1x24x32xbf16> to vector<24x32xbf16>
    %cst_43 = arith.constant dense<0.000000e+00> : vector<24x8xf32>
    %40 = tpu.matmul %39, %9, %cst_43 {dimension_numbers = #tpu.dot_dimension_numbers<[1], [0], [0], [1], [0, 0, 1, 1], [], []>} : vector<24x32xbf16>, vector<32x8xbf16>, vector<24x8xf32> -> vector<24x8xf32>
    %41 = arith.addf %37, %40 : vector<24x8xf32>
    %c0_44 = arith.constant 0 : index
    %c8_45 = arith.constant 8 : index
    %c0_46 = arith.constant 0 : index
    %42 = vector.load %arg1[%c0_44, %c8_45, %c0_46] : memref<1x42x32xbf16, #tpu.memory_space<vmem>>, vector<1x24x32xbf16>
    %43 = vector.shape_cast %42 : vector<1x24x32xbf16> to vector<24x32xbf16>
    %cst_47 = arith.constant dense<0.000000e+00> : vector<24x8xf32>
    %44 = tpu.matmul %43, %11, %cst_47 {dimension_numbers = #tpu.dot_dimension_numbers<[1], [0], [0], [1], [0, 0, 1, 1], [], []>} : vector<24x32xbf16>, vector<32x8xbf16>, vector<24x8xf32> -> vector<24x8xf32>
    %45 = arith.addf %41, %44 : vector<24x8xf32>
    %c0_48 = arith.constant 0 : index
    %c12 = arith.constant 12 : index
    %c0_49 = arith.constant 0 : index
    %46 = vector.load %arg1[%c0_48, %c12, %c0_49] : memref<1x42x32xbf16, #tpu.memory_space<vmem>>, vector<1x24x32xbf16>
    %47 = vector.shape_cast %46 : vector<1x24x32xbf16> to vector<24x32xbf16>
    %cst_50 = arith.constant dense<0.000000e+00> : vector<24x8xf32>
    %48 = tpu.matmul %47, %13, %cst_50 {dimension_numbers = #tpu.dot_dimension_numbers<[1], [0], [0], [1], [0, 0, 1, 1], [], []>} : vector<24x32xbf16>, vector<32x8xbf16>, vector<24x8xf32> -> vector<24x8xf32>
    %49 = arith.addf %45, %48 : vector<24x8xf32>
    %c0_51 = arith.constant 0 : index
    %c13 = arith.constant 13 : index
    %c0_52 = arith.constant 0 : index
    %50 = vector.load %arg1[%c0_51, %c13, %c0_52] : memref<1x42x32xbf16, #tpu.memory_space<vmem>>, vector<1x24x32xbf16>
    %51 = vector.shape_cast %50 : vector<1x24x32xbf16> to vector<24x32xbf16>
    %cst_53 = arith.constant dense<0.000000e+00> : vector<24x8xf32>
    %52 = tpu.matmul %51, %15, %cst_53 {dimension_numbers = #tpu.dot_dimension_numbers<[1], [0], [0], [1], [0, 0, 1, 1], [], []>} : vector<24x32xbf16>, vector<32x8xbf16>, vector<24x8xf32> -> vector<24x8xf32>
    %53 = arith.addf %49, %52 : vector<24x8xf32>
    %c0_54 = arith.constant 0 : index
    %c14 = arith.constant 14 : index
    %c0_55 = arith.constant 0 : index
    %54 = vector.load %arg1[%c0_54, %c14, %c0_55] : memref<1x42x32xbf16, #tpu.memory_space<vmem>>, vector<1x24x32xbf16>
    %55 = vector.shape_cast %54 : vector<1x24x32xbf16> to vector<24x32xbf16>
    %cst_56 = arith.constant dense<0.000000e+00> : vector<24x8xf32>
    %56 = tpu.matmul %55, %17, %cst_56 {dimension_numbers = #tpu.dot_dimension_numbers<[1], [0], [0], [1], [0, 0, 1, 1], [], []>} : vector<24x32xbf16>, vector<32x8xbf16>, vector<24x8xf32> -> vector<24x8xf32>
    %57 = arith.addf %53, %56 : vector<24x8xf32>
    %58 = vector.broadcast %18 : vector<1x8xf32> to vector<24x8xf32>
    %59 = arith.addf %57, %58 : vector<24x8xf32>
    %cst_57 = arith.constant 0.000000e+00 : f32
    %60 = vector.broadcast %cst_57 : f32 to vector<24x8xf32>
    %61 = arith.maximumf %59, %60 : vector<24x8xf32>
    %62 = arith.truncf %61 : vector<24x8xf32> to vector<24x8xbf16>
    %c0_58 = arith.constant 0 : index
    %c7_59 = arith.constant 7 : index
    %c0_60 = arith.constant 0 : index
    %63 = vector.load %arg1[%c0_58, %c7_59, %c0_60] : memref<1x42x32xbf16, #tpu.memory_space<vmem>>, vector<1x24x32xbf16>
    %64 = vector.shape_cast %63 : vector<1x24x32xbf16> to vector<24x32xbf16>
    %65 = arith.extf %64 : vector<24x32xbf16> to vector<24x32xf32>
    %cst_61 = arith.constant dense<0.000000e+00> : vector<24x32xf32>
    %66 = tpu.matmul %62, %19, %cst_61 {dimension_numbers = #tpu.dot_dimension_numbers<[1], [0], [0], [1], [0, 0, 1, 1], [], []>} : vector<24x8xbf16>, vector<8x32xbf16>, vector<24x32xf32> -> vector<24x32xf32>
    %67 = vector.broadcast %20 : vector<1x32xf32> to vector<24x32xf32>
    %68 = arith.addf %66, %67 : vector<24x32xf32>
    %69 = arith.addf %68, %65 : vector<24x32xf32>
    %cst_62 = arith.constant 0.000000e+00 : f32
    %70 = vector.broadcast %cst_62 : f32 to vector<24x32xf32>
    %71 = arith.maximumf %69, %70 : vector<24x32xf32>
    %c0_63 = arith.constant 0 : index
    %c0_64 = arith.constant 0 : index
    %72 = vector.load %arg6[%c0_63, %c0_64] : memref<32x8xf32, #tpu.memory_space<vmem>>, vector<32x8xf32>
    %cst_65 = arith.constant dense<0.000000e+00> : vector<24x8xf32>
    %73 = tpu.matmul %71, %72, %cst_65 {dimension_numbers = #tpu.dot_dimension_numbers<[1], [0], [0], [1], [0, 0, 1, 1], [], []>} : vector<24x32xf32>, vector<32x8xf32>, vector<24x8xf32> -> vector<24x8xf32>
    %c0_66 = arith.constant 0 : index
    %c0_67 = arith.constant 0 : index
    %74 = vector.load %arg7[%c0_66, %c0_67] : memref<1x8xf32, #tpu.memory_space<vmem>>, vector<1x8xf32>
    %75 = vector.broadcast %74 : vector<1x8xf32> to vector<24x8xf32>
    %76 = arith.addf %73, %75 : vector<24x8xf32>
    %77 = vector.extract_strided_slice %76 {offsets = [0, 0], sizes = [4, 8], strides = [1, 1]} : vector<24x8xf32> to vector<4x8xf32>
    %c0_68 = arith.constant 0 : index
    %c0_69 = arith.constant 0 : index
    %c0_70 = arith.constant 0 : index
    %c0_71 = arith.constant 0 : index
    %78 = vector.load %arg8[%c0_68, %c0_69, %c0_70, %c0_71] : memref<1x4x4x8xf32, #tpu.memory_space<vmem>>, vector<1x1x4x8xf32>
    %79 = vector.shape_cast %78 : vector<1x1x4x8xf32> to vector<4x8xf32>
    %80 = vector.shape_cast %77 : vector<4x8xf32> to vector<1x1x4x8xf32>
    tpu.vector_store %arg8[%c0_68, %c0_69, %c0_70, %c0_71], %80 {strides = array<i32>} : memref<1x4x4x8xf32, #tpu.memory_space<vmem>>, vector<1x1x4x8xf32>,
    %81 = vector.extract_strided_slice %76 {offsets = [6, 0], sizes = [4, 8], strides = [1, 1]} : vector<24x8xf32> to vector<4x8xf32>
    %c0_72 = arith.constant 0 : index
    %c1_73 = arith.constant 1 : index
    %c0_74 = arith.constant 0 : index
    %c0_75 = arith.constant 0 : index
    %82 = vector.load %arg8[%c0_72, %c1_73, %c0_74, %c0_75] : memref<1x4x4x8xf32, #tpu.memory_space<vmem>>, vector<1x1x4x8xf32>
    %83 = vector.shape_cast %82 : vector<1x1x4x8xf32> to vector<4x8xf32>
    %84 = vector.shape_cast %81 : vector<4x8xf32> to vector<1x1x4x8xf32>
    tpu.vector_store %arg8[%c0_72, %c1_73, %c0_74, %c0_75], %84 {strides = array<i32>} : memref<1x4x4x8xf32, #tpu.memory_space<vmem>>, vector<1x1x4x8xf32>,
    %85 = vector.extract_strided_slice %76 {offsets = [12, 0], sizes = [4, 8], strides = [1, 1]} : vector<24x8xf32> to vector<4x8xf32>
    %c0_76 = arith.constant 0 : index
    %c2_77 = arith.constant 2 : index
    %c0_78 = arith.constant 0 : index
    %c0_79 = arith.constant 0 : index
    %86 = vector.load %arg8[%c0_76, %c2_77, %c0_78, %c0_79] : memref<1x4x4x8xf32, #tpu.memory_space<vmem>>, vector<1x1x4x8xf32>
    %87 = vector.shape_cast %86 : vector<1x1x4x8xf32> to vector<4x8xf32>
    %88 = vector.shape_cast %85 : vector<4x8xf32> to vector<1x1x4x8xf32>
    tpu.vector_store %arg8[%c0_76, %c2_77, %c0_78, %c0_79], %88 {strides = array<i32>} : memref<1x4x4x8xf32, #tpu.memory_space<vmem>>, vector<1x1x4x8xf32>,
    %89 = vector.extract_strided_slice %76 {offsets = [18, 0], sizes = [4, 8], strides = [1, 1]} : vector<24x8xf32> to vector<4x8xf32>
    %c0_80 = arith.constant 0 : index
    %c3_81 = arith.constant 3 : index
    %c0_82 = arith.constant 0 : index
    %c0_83 = arith.constant 0 : index
    %90 = vector.load %arg8[%c0_80, %c3_81, %c0_82, %c0_83] : memref<1x4x4x8xf32, #tpu.memory_space<vmem>>, vector<1x1x4x8xf32>
    %91 = vector.shape_cast %90 : vector<1x1x4x8xf32> to vector<4x8xf32>
    %92 = vector.shape_cast %89 : vector<4x8xf32> to vector<1x1x4x8xf32>
    tpu.vector_store %arg8[%c0_80, %c3_81, %c0_82, %c0_83], %92 {strides = array<i32>} : memref<1x4x4x8xf32, #tpu.memory_space<vmem>>, vector<1x1x4x8xf32>,
    return
  }
  func.func @transform_0(%arg0: i32) -> (i32, i32, i32) {
    %c0_i32 = arith.constant 0 : i32
    %c0_i32_0 = arith.constant 0 : i32
    %c0_i32_1 = arith.constant 0 : i32
    return %arg0, %c0_i32, %c0_i32_0 : i32, i32, i32
  }
  func.func @transform_1(%arg0: i32) -> (i32, i32, i32) {
    %c0_i32 = arith.constant 0 : i32
    %c0_i32_0 = arith.constant 0 : i32
    %c0_i32_1 = arith.constant 0 : i32
    %c0_i32_2 = arith.constant 0 : i32
    return %c0_i32, %c0_i32_0, %c0_i32_1 : i32, i32, i32
  }
  func.func @transform_2(%arg0: i32) -> (i32, i32) {
    %c0_i32 = arith.constant 0 : i32
    %c0_i32_0 = arith.constant 0 : i32
    %c0_i32_1 = arith.constant 0 : i32
    return %c0_i32, %c0_i32_0 : i32, i32
  }
  func.func @transform_3(%arg0: i32) -> (i32, i32) {
    %c0_i32 = arith.constant 0 : i32
    %c0_i32_0 = arith.constant 0 : i32
    %c0_i32_1 = arith.constant 0 : i32
    return %c0_i32, %c0_i32_0 : i32, i32
  }
  func.func @transform_4(%arg0: i32) -> (i32, i32) {
    %c0_i32 = arith.constant 0 : i32
    %c0_i32_0 = arith.constant 0 : i32
    %c0_i32_1 = arith.constant 0 : i32
    return %c0_i32, %c0_i32_0 : i32, i32
  }
  func.func @transform_5(%arg0: i32) -> (i32, i32) {
    %c0_i32 = arith.constant 0 : i32
    %c0_i32_0 = arith.constant 0 : i32
    %c0_i32_1 = arith.constant 0 : i32
    return %c0_i32, %c0_i32_0 : i32, i32
  }
  func.func @transform_6(%arg0: i32) -> (i32, i32) {
    %c0_i32 = arith.constant 0 : i32
    %c0_i32_0 = arith.constant 0 : i32
    %c0_i32_1 = arith.constant 0 : i32
    return %c0_i32, %c0_i32_0 : i32, i32
  }
  func.func @transform_7(%arg0: i32) -> (i32, i32, i32, i32) {
    %c0_i32 = arith.constant 0 : i32
    %c0_i32_0 = arith.constant 0 : i32
    %c0_i32_1 = arith.constant 0 : i32
    %c0_i32_2 = arith.constant 0 : i32
    return %arg0, %c0_i32, %c0_i32_0, %c0_i32_1 : i32, i32, i32, i32
  }
}

module attributes {stable_mosaic.version = 11 : i64} {
  func.func @_vq_kernel(%arg0: i32, %arg1: memref<32x8xf32, #tpu.memory_space<vmem>>, %arg2: memref<8x32xf32, #tpu.memory_space<vmem>>, %arg3: memref<32x8xf32, #tpu.memory_space<vmem>>, %arg4: memref<1x32xf32, #tpu.memory_space<vmem>>, %arg5: memref<32x8xf32, #tpu.memory_space<vmem>>, %arg6: memref<32x1xi32, #tpu.memory_space<vmem>>) attributes {dimension_semantics = [#tpu.dimension_semantics<parallel>], iteration_bounds = array<i64: 1>, scalar_prefetch = 0 : i64, scratch_operands = 0 : i64, tpu.core_type = #tpu.core_type<tc>, window_params = [{transform_indices = @transform_0, window_bounds = array<i64: 32, 8>}, {pipeline_mode = #tpu.pipeline_mode<synchronous>, transform_indices = @transform_1, window_bounds = array<i64: 8, 32>}, {pipeline_mode = #tpu.pipeline_mode<synchronous>, transform_indices = @transform_2, window_bounds = array<i64: 32, 8>}, {pipeline_mode = #tpu.pipeline_mode<synchronous>, transform_indices = @transform_3, window_bounds = array<i64: 1, 32>}, {transform_indices = @transform_4, window_bounds = array<i64: 32, 8>}, {transform_indices = @transform_5, window_bounds = array<i64: 32, 1>}]} {
    %c0 = arith.constant 0 : index
    %c0_0 = arith.constant 0 : index
    %0 = vector.load %arg1[%c0, %c0_0] : memref<32x8xf32, #tpu.memory_space<vmem>>, vector<32x8xf32>
    %c0_1 = arith.constant 0 : index
    %c0_2 = arith.constant 0 : index
    %1 = vector.load %arg4[%c0_1, %c0_2] : memref<1x32xf32, #tpu.memory_space<vmem>>, vector<1x32xf32>
    %c0_3 = arith.constant 0 : index
    %c0_4 = arith.constant 0 : index
    %2 = vector.load %arg2[%c0_3, %c0_4] : memref<8x32xf32, #tpu.memory_space<vmem>>, vector<8x32xf32>
    %cst = arith.constant dense<0.000000e+00> : vector<32x32xf32>
    %3 = tpu.matmul %0, %2, %cst {dimension_numbers = #tpu.dot_dimension_numbers<[1], [0], [0], [1], [0, 0, 1, 1], [], []>} : vector<32x8xf32>, vector<8x32xf32>, vector<32x32xf32> -> vector<32x32xf32>
    %cst_5 = arith.constant 2.000000e+00 : f32
    %4 = vector.broadcast %cst_5 : f32 to vector<32x32xf32>
    %5 = arith.mulf %4, %3 : vector<32x32xf32>
    %6 = vector.broadcast %1 : vector<1x32xf32> to vector<32x32xf32>
    %7 = arith.subf %6, %5 : vector<32x32xf32>
    %cst_6 = arith.constant dense<0x7F800000> : vector<32xf32>
    %8 = vector.multi_reduction <minimumf>, %7, %cst_6 [1] : vector<32x32xf32> to vector<32xf32>
    %9 = vector.shape_cast %8 : vector<32xf32> to vector<32x1xf32>
    %10 = tpu.iota {dimensions = array<i32: 1>} : vector<32x32xi32>
    %11 = vector.broadcast %9 : vector<32x1xf32> to vector<32x32xf32>
    %12 = arith.cmpf ole, %7, %11 : vector<32x32xf32>
    %c1073741824_i32 = arith.constant 1073741824 : i32
    %13 = vector.broadcast %c1073741824_i32 : i32 to vector<32x32xi32>
    %14 = arith.select %12, %10, %13 : vector<32x32xi1>, vector<32x32xi32>
    %cst_7 = arith.constant dense<2147483647> : vector<32xi32>
    %15 = vector.multi_reduction <minsi>, %14, %cst_7 [1] : vector<32x32xi32> to vector<32xi32>
    %16 = vector.shape_cast %15 : vector<32xi32> to vector<32x1xi32>
    %17 = vector.broadcast %16 : vector<32x1xi32> to vector<32x32xi32>
    %18 = arith.cmpi eq, %10, %17 : vector<32x32xi32>
    %19 = arith.extui %18 : vector<32x32xi1> to vector<32x32xi32>
    %20 = arith.sitofp %19 : vector<32x32xi32> to vector<32x32xf32>
    %c0_8 = arith.constant 0 : index
    %c0_9 = arith.constant 0 : index
    %21 = vector.load %arg3[%c0_8, %c0_9] : memref<32x8xf32, #tpu.memory_space<vmem>>, vector<32x8xf32>
    %cst_10 = arith.constant dense<0.000000e+00> : vector<32x8xf32>
    %22 = tpu.matmul %20, %21, %cst_10 {dimension_numbers = #tpu.dot_dimension_numbers<[1], [0], [0], [1], [0, 0, 1, 1], [], []>} : vector<32x32xf32>, vector<32x8xf32>, vector<32x8xf32> -> vector<32x8xf32>
    %c0_11 = arith.constant 0 : index
    %c0_12 = arith.constant 0 : index
    %23 = vector.load %arg5[%c0_11, %c0_12] : memref<32x8xf32, #tpu.memory_space<vmem>>, vector<32x8xf32>
    tpu.vector_store %arg5[%c0_11, %c0_12], %22 {strides = array<i32>} : memref<32x8xf32, #tpu.memory_space<vmem>>, vector<32x8xf32>,
    %c0_13 = arith.constant 0 : index
    %c0_14 = arith.constant 0 : index
    %24 = vector.load %arg6[%c0_13, %c0_14] : memref<32x1xi32, #tpu.memory_space<vmem>>, vector<32x1xi32>
    tpu.vector_store %arg6[%c0_13, %c0_14], %16 {strides = array<i32>} : memref<32x1xi32, #tpu.memory_space<vmem>>, vector<32x1xi32>,
    return
  }
  func.func @transform_0(%arg0: i32) -> (i32, i32) {
    %c0_i32 = arith.constant 0 : i32
    %c0_i32_0 = arith.constant 0 : i32
    return %arg0, %c0_i32 : i32, i32
  }
  func.func @transform_1(%arg0: i32) -> (i32, i32) {
    %c0_i32 = arith.constant 0 : i32
    %c0_i32_0 = arith.constant 0 : i32
    %c0_i32_1 = arith.constant 0 : i32
    return %c0_i32, %c0_i32_0 : i32, i32
  }
  func.func @transform_2(%arg0: i32) -> (i32, i32) {
    %c0_i32 = arith.constant 0 : i32
    %c0_i32_0 = arith.constant 0 : i32
    %c0_i32_1 = arith.constant 0 : i32
    return %c0_i32, %c0_i32_0 : i32, i32
  }
  func.func @transform_3(%arg0: i32) -> (i32, i32) {
    %c0_i32 = arith.constant 0 : i32
    %c0_i32_0 = arith.constant 0 : i32
    %c0_i32_1 = arith.constant 0 : i32
    return %c0_i32, %c0_i32_0 : i32, i32
  }
  func.func @transform_4(%arg0: i32) -> (i32, i32) {
    %c0_i32 = arith.constant 0 : i32
    %c0_i32_0 = arith.constant 0 : i32
    return %arg0, %c0_i32 : i32, i32
  }
  func.func @transform_5(%arg0: i32) -> (i32, i32) {
    %c0_i32 = arith.constant 0 : i32
    %c0_i32_0 = arith.constant 0 : i32
    return %arg0, %c0_i32 : i32, i32
  }
}

module attributes {stable_mosaic.version = 11 : i64} {
  func.func @_conv_kernel(%arg0: i32, %arg1: memref<1x42x8xbf16, #tpu.memory_space<vmem>>, %arg2: memref<9x8x32xbf16, #tpu.memory_space<vmem>>, %arg3: memref<1x32xf32, #tpu.memory_space<vmem>>, %arg4: memref<1x4x4x32xbf16, #tpu.memory_space<vmem>>) attributes {dimension_semantics = [#tpu.dimension_semantics<parallel>], iteration_bounds = array<i64: 2>, scalar_prefetch = 0 : i64, scratch_operands = 0 : i64, tpu.core_type = #tpu.core_type<tc>, window_params = [{transform_indices = @transform_0, window_bounds = array<i64: 1, 42, 8>}, {pipeline_mode = #tpu.pipeline_mode<synchronous>, transform_indices = @transform_1, window_bounds = array<i64: 9, 8, 32>}, {pipeline_mode = #tpu.pipeline_mode<synchronous>, transform_indices = @transform_2, window_bounds = array<i64: 1, 32>}, {transform_indices = @transform_3, window_bounds = array<i64: 1, 4, 4, 32>}]} {
    %c0 = arith.constant 0 : index
    %c0_0 = arith.constant 0 : index
    %0 = vector.load %arg3[%c0, %c0_0] : memref<1x32xf32, #tpu.memory_space<vmem>>, vector<1x32xf32>
    %c0_1 = arith.constant 0 : index
    %c0_2 = arith.constant 0 : index
    %c0_3 = arith.constant 0 : index
    %1 = vector.load %arg2[%c0_1, %c0_2, %c0_3] : memref<9x8x32xbf16, #tpu.memory_space<vmem>>, vector<1x8x32xbf16>
    %2 = vector.shape_cast %1 : vector<1x8x32xbf16> to vector<8x32xbf16>
    %c1 = arith.constant 1 : index
    %c0_4 = arith.constant 0 : index
    %c0_5 = arith.constant 0 : index
    %3 = vector.load %arg2[%c1, %c0_4, %c0_5] : memref<9x8x32xbf16, #tpu.memory_space<vmem>>, vector<1x8x32xbf16>
    %4 = vector.shape_cast %3 : vector<1x8x32xbf16> to vector<8x32xbf16>
    %c2 = arith.constant 2 : index
    %c0_6 = arith.constant 0 : index
    %c0_7 = arith.constant 0 : index
    %5 = vector.load %arg2[%c2, %c0_6, %c0_7] : memref<9x8x32xbf16, #tpu.memory_space<vmem>>, vector<1x8x32xbf16>
    %6 = vector.shape_cast %5 : vector<1x8x32xbf16> to vector<8x32xbf16>
    %c3 = arith.constant 3 : index
    %c0_8 = arith.constant 0 : index
    %c0_9 = arith.constant 0 : index
    %7 = vector.load %arg2[%c3, %c0_8, %c0_9] : memref<9x8x32xbf16, #tpu.memory_space<vmem>>, vector<1x8x32xbf16>
    %8 = vector.shape_cast %7 : vector<1x8x32xbf16> to vector<8x32xbf16>
    %c4 = arith.constant 4 : index
    %c0_10 = arith.constant 0 : index
    %c0_11 = arith.constant 0 : index
    %9 = vector.load %arg2[%c4, %c0_10, %c0_11] : memref<9x8x32xbf16, #tpu.memory_space<vmem>>, vector<1x8x32xbf16>
    %10 = vector.shape_cast %9 : vector<1x8x32xbf16> to vector<8x32xbf16>
    %c5 = arith.constant 5 : index
    %c0_12 = arith.constant 0 : index
    %c0_13 = arith.constant 0 : index
    %11 = vector.load %arg2[%c5, %c0_12, %c0_13] : memref<9x8x32xbf16, #tpu.memory_space<vmem>>, vector<1x8x32xbf16>
    %12 = vector.shape_cast %11 : vector<1x8x32xbf16> to vector<8x32xbf16>
    %c6 = arith.constant 6 : index
    %c0_14 = arith.constant 0 : index
    %c0_15 = arith.constant 0 : index
    %13 = vector.load %arg2[%c6, %c0_14, %c0_15] : memref<9x8x32xbf16, #tpu.memory_space<vmem>>, vector<1x8x32xbf16>
    %14 = vector.shape_cast %13 : vector<1x8x32xbf16> to vector<8x32xbf16>
    %c7 = arith.constant 7 : index
    %c0_16 = arith.constant 0 : index
    %c0_17 = arith.constant 0 : index
    %15 = vector.load %arg2[%c7, %c0_16, %c0_17] : memref<9x8x32xbf16, #tpu.memory_space<vmem>>, vector<1x8x32xbf16>
    %16 = vector.shape_cast %15 : vector<1x8x32xbf16> to vector<8x32xbf16>
    %c8 = arith.constant 8 : index
    %c0_18 = arith.constant 0 : index
    %c0_19 = arith.constant 0 : index
    %17 = vector.load %arg2[%c8, %c0_18, %c0_19] : memref<9x8x32xbf16, #tpu.memory_space<vmem>>, vector<1x8x32xbf16>
    %18 = vector.shape_cast %17 : vector<1x8x32xbf16> to vector<8x32xbf16>
    %cst = arith.constant 0.000000e+00 : f32
    %19 = vector.broadcast %cst : f32 to vector<24x32xf32>
    %c0_20 = arith.constant 0 : index
    %c0_21 = arith.constant 0 : index
    %c0_22 = arith.constant 0 : index
    %20 = vector.load %arg1[%c0_20, %c0_21, %c0_22] : memref<1x42x8xbf16, #tpu.memory_space<vmem>>, vector<1x24x8xbf16>
    %21 = vector.shape_cast %20 : vector<1x24x8xbf16> to vector<24x8xbf16>
    %cst_23 = arith.constant dense<0.000000e+00> : vector<24x32xf32>
    %22 = tpu.matmul %21, %2, %cst_23 {dimension_numbers = #tpu.dot_dimension_numbers<[1], [0], [0], [1], [0, 0, 1, 1], [], []>} : vector<24x8xbf16>, vector<8x32xbf16>, vector<24x32xf32> -> vector<24x32xf32>
    %23 = arith.addf %19, %22 : vector<24x32xf32>
    %c0_24 = arith.constant 0 : index
    %c1_25 = arith.constant 1 : index
    %c0_26 = arith.constant 0 : index
    %24 = vector.load %arg1[%c0_24, %c1_25, %c0_26] : memref<1x42x8xbf16, #tpu.memory_space<vmem>>, vector<1x24x8xbf16>
    %25 = vector.shape_cast %24 : vector<1x24x8xbf16> to vector<24x8xbf16>
    %cst_27 = arith.constant dense<0.000000e+00> : vector<24x32xf32>
    %26 = tpu.matmul %25, %4, %cst_27 {dimension_numbers = #tpu.dot_dimension_numbers<[1], [0], [0], [1], [0, 0, 1, 1], [], []>} : vector<24x8xbf16>, vector<8x32xbf16>, vector<24x32xf32> -> vector<24x32xf32>
    %27 = arith.addf %23, %26 : vector<24x32xf32>
    %c0_28 = arith.constant 0 : index
    %c2_29 = arith.constant 2 : index
    %c0_30 = arith.constant 0 : index
    %28 = vector.load %arg1[%c0_28, %c2_29, %c0_30] : memref<1x42x8xbf16, #tpu.memory_space<vmem>>, vector<1x24x8xbf16>
    %29 = vector.shape_cast %28 : vector<1x24x8xbf16> to vector<24x8xbf16>
    %cst_31 = arith.constant dense<0.000000e+00> : vector<24x32xf32>
    %30 = tpu.matmul %29, %6, %cst_31 {dimension_numbers = #tpu.dot_dimension_numbers<[1], [0], [0], [1], [0, 0, 1, 1], [], []>} : vector<24x8xbf16>, vector<8x32xbf16>, vector<24x32xf32> -> vector<24x32xf32>
    %31 = arith.addf %27, %30 : vector<24x32xf32>
    %c0_32 = arith.constant 0 : index
    %c6_33 = arith.constant 6 : index
    %c0_34 = arith.constant 0 : index
    %32 = vector.load %arg1[%c0_32, %c6_33, %c0_34] : memref<1x42x8xbf16, #tpu.memory_space<vmem>>, vector<1x24x8xbf16>
    %33 = vector.shape_cast %32 : vector<1x24x8xbf16> to vector<24x8xbf16>
    %cst_35 = arith.constant dense<0.000000e+00> : vector<24x32xf32>
    %34 = tpu.matmul %33, %8, %cst_35 {dimension_numbers = #tpu.dot_dimension_numbers<[1], [0], [0], [1], [0, 0, 1, 1], [], []>} : vector<24x8xbf16>, vector<8x32xbf16>, vector<24x32xf32> -> vector<24x32xf32>
    %35 = arith.addf %31, %34 : vector<24x32xf32>
    %c0_36 = arith.constant 0 : index
    %c7_37 = arith.constant 7 : index
    %c0_38 = arith.constant 0 : index
    %36 = vector.load %arg1[%c0_36, %c7_37, %c0_38] : memref<1x42x8xbf16, #tpu.memory_space<vmem>>, vector<1x24x8xbf16>
    %37 = vector.shape_cast %36 : vector<1x24x8xbf16> to vector<24x8xbf16>
    %cst_39 = arith.constant dense<0.000000e+00> : vector<24x32xf32>
    %38 = tpu.matmul %37, %10, %cst_39 {dimension_numbers = #tpu.dot_dimension_numbers<[1], [0], [0], [1], [0, 0, 1, 1], [], []>} : vector<24x8xbf16>, vector<8x32xbf16>, vector<24x32xf32> -> vector<24x32xf32>
    %39 = arith.addf %35, %38 : vector<24x32xf32>
    %c0_40 = arith.constant 0 : index
    %c8_41 = arith.constant 8 : index
    %c0_42 = arith.constant 0 : index
    %40 = vector.load %arg1[%c0_40, %c8_41, %c0_42] : memref<1x42x8xbf16, #tpu.memory_space<vmem>>, vector<1x24x8xbf16>
    %41 = vector.shape_cast %40 : vector<1x24x8xbf16> to vector<24x8xbf16>
    %cst_43 = arith.constant dense<0.000000e+00> : vector<24x32xf32>
    %42 = tpu.matmul %41, %12, %cst_43 {dimension_numbers = #tpu.dot_dimension_numbers<[1], [0], [0], [1], [0, 0, 1, 1], [], []>} : vector<24x8xbf16>, vector<8x32xbf16>, vector<24x32xf32> -> vector<24x32xf32>
    %43 = arith.addf %39, %42 : vector<24x32xf32>
    %c0_44 = arith.constant 0 : index
    %c12 = arith.constant 12 : index
    %c0_45 = arith.constant 0 : index
    %44 = vector.load %arg1[%c0_44, %c12, %c0_45] : memref<1x42x8xbf16, #tpu.memory_space<vmem>>, vector<1x24x8xbf16>
    %45 = vector.shape_cast %44 : vector<1x24x8xbf16> to vector<24x8xbf16>
    %cst_46 = arith.constant dense<0.000000e+00> : vector<24x32xf32>
    %46 = tpu.matmul %45, %14, %cst_46 {dimension_numbers = #tpu.dot_dimension_numbers<[1], [0], [0], [1], [0, 0, 1, 1], [], []>} : vector<24x8xbf16>, vector<8x32xbf16>, vector<24x32xf32> -> vector<24x32xf32>
    %47 = arith.addf %43, %46 : vector<24x32xf32>
    %c0_47 = arith.constant 0 : index
    %c13 = arith.constant 13 : index
    %c0_48 = arith.constant 0 : index
    %48 = vector.load %arg1[%c0_47, %c13, %c0_48] : memref<1x42x8xbf16, #tpu.memory_space<vmem>>, vector<1x24x8xbf16>
    %49 = vector.shape_cast %48 : vector<1x24x8xbf16> to vector<24x8xbf16>
    %cst_49 = arith.constant dense<0.000000e+00> : vector<24x32xf32>
    %50 = tpu.matmul %49, %16, %cst_49 {dimension_numbers = #tpu.dot_dimension_numbers<[1], [0], [0], [1], [0, 0, 1, 1], [], []>} : vector<24x8xbf16>, vector<8x32xbf16>, vector<24x32xf32> -> vector<24x32xf32>
    %51 = arith.addf %47, %50 : vector<24x32xf32>
    %c0_50 = arith.constant 0 : index
    %c14 = arith.constant 14 : index
    %c0_51 = arith.constant 0 : index
    %52 = vector.load %arg1[%c0_50, %c14, %c0_51] : memref<1x42x8xbf16, #tpu.memory_space<vmem>>, vector<1x24x8xbf16>
    %53 = vector.shape_cast %52 : vector<1x24x8xbf16> to vector<24x8xbf16>
    %cst_52 = arith.constant dense<0.000000e+00> : vector<24x32xf32>
    %54 = tpu.matmul %53, %18, %cst_52 {dimension_numbers = #tpu.dot_dimension_numbers<[1], [0], [0], [1], [0, 0, 1, 1], [], []>} : vector<24x8xbf16>, vector<8x32xbf16>, vector<24x32xf32> -> vector<24x32xf32>
    %55 = arith.addf %51, %54 : vector<24x32xf32>
    %56 = vector.broadcast %0 : vector<1x32xf32> to vector<24x32xf32>
    %57 = arith.addf %55, %56 : vector<24x32xf32>
    %cst_53 = arith.constant 0.000000e+00 : f32
    %58 = vector.broadcast %cst_53 : f32 to vector<24x32xf32>
    %59 = arith.maximumf %57, %58 : vector<24x32xf32>
    %60 = arith.truncf %59 : vector<24x32xf32> to vector<24x32xbf16>
    %61 = vector.extract_strided_slice %60 {offsets = [0, 0], sizes = [4, 32], strides = [1, 1]} : vector<24x32xbf16> to vector<4x32xbf16>
    %c0_54 = arith.constant 0 : index
    %c0_55 = arith.constant 0 : index
    %c0_56 = arith.constant 0 : index
    %c0_57 = arith.constant 0 : index
    %62 = vector.load %arg4[%c0_54, %c0_55, %c0_56, %c0_57] : memref<1x4x4x32xbf16, #tpu.memory_space<vmem>>, vector<1x1x4x32xbf16>
    %63 = vector.shape_cast %62 : vector<1x1x4x32xbf16> to vector<4x32xbf16>
    %64 = vector.shape_cast %61 : vector<4x32xbf16> to vector<1x1x4x32xbf16>
    tpu.vector_store %arg4[%c0_54, %c0_55, %c0_56, %c0_57], %64 {strides = array<i32>} : memref<1x4x4x32xbf16, #tpu.memory_space<vmem>>, vector<1x1x4x32xbf16>,
    %65 = vector.extract_strided_slice %60 {offsets = [6, 0], sizes = [4, 32], strides = [1, 1]} : vector<24x32xbf16> to vector<4x32xbf16>
    %c0_58 = arith.constant 0 : index
    %c1_59 = arith.constant 1 : index
    %c0_60 = arith.constant 0 : index
    %c0_61 = arith.constant 0 : index
    %66 = vector.load %arg4[%c0_58, %c1_59, %c0_60, %c0_61] : memref<1x4x4x32xbf16, #tpu.memory_space<vmem>>, vector<1x1x4x32xbf16>
    %67 = vector.shape_cast %66 : vector<1x1x4x32xbf16> to vector<4x32xbf16>
    %68 = vector.shape_cast %65 : vector<4x32xbf16> to vector<1x1x4x32xbf16>
    tpu.vector_store %arg4[%c0_58, %c1_59, %c0_60, %c0_61], %68 {strides = array<i32>} : memref<1x4x4x32xbf16, #tpu.memory_space<vmem>>, vector<1x1x4x32xbf16>,
    %69 = vector.extract_strided_slice %60 {offsets = [12, 0], sizes = [4, 32], strides = [1, 1]} : vector<24x32xbf16> to vector<4x32xbf16>
    %c0_62 = arith.constant 0 : index
    %c2_63 = arith.constant 2 : index
    %c0_64 = arith.constant 0 : index
    %c0_65 = arith.constant 0 : index
    %70 = vector.load %arg4[%c0_62, %c2_63, %c0_64, %c0_65] : memref<1x4x4x32xbf16, #tpu.memory_space<vmem>>, vector<1x1x4x32xbf16>
    %71 = vector.shape_cast %70 : vector<1x1x4x32xbf16> to vector<4x32xbf16>
    %72 = vector.shape_cast %69 : vector<4x32xbf16> to vector<1x1x4x32xbf16>
    tpu.vector_store %arg4[%c0_62, %c2_63, %c0_64, %c0_65], %72 {strides = array<i32>} : memref<1x4x4x32xbf16, #tpu.memory_space<vmem>>, vector<1x1x4x32xbf16>,
    %73 = vector.extract_strided_slice %60 {offsets = [18, 0], sizes = [4, 32], strides = [1, 1]} : vector<24x32xbf16> to vector<4x32xbf16>
    %c0_66 = arith.constant 0 : index
    %c3_67 = arith.constant 3 : index
    %c0_68 = arith.constant 0 : index
    %c0_69 = arith.constant 0 : index
    %74 = vector.load %arg4[%c0_66, %c3_67, %c0_68, %c0_69] : memref<1x4x4x32xbf16, #tpu.memory_space<vmem>>, vector<1x1x4x32xbf16>
    %75 = vector.shape_cast %74 : vector<1x1x4x32xbf16> to vector<4x32xbf16>
    %76 = vector.shape_cast %73 : vector<4x32xbf16> to vector<1x1x4x32xbf16>
    tpu.vector_store %arg4[%c0_66, %c3_67, %c0_68, %c0_69], %76 {strides = array<i32>} : memref<1x4x4x32xbf16, #tpu.memory_space<vmem>>, vector<1x1x4x32xbf16>,
    return
  }
  func.func @transform_0(%arg0: i32) -> (i32, i32, i32) {
    %c0_i32 = arith.constant 0 : i32
    %c0_i32_0 = arith.constant 0 : i32
    %c0_i32_1 = arith.constant 0 : i32
    return %arg0, %c0_i32, %c0_i32_0 : i32, i32, i32
  }
  func.func @transform_1(%arg0: i32) -> (i32, i32, i32) {
    %c0_i32 = arith.constant 0 : i32
    %c0_i32_0 = arith.constant 0 : i32
    %c0_i32_1 = arith.constant 0 : i32
    %c0_i32_2 = arith.constant 0 : i32
    return %c0_i32, %c0_i32_0, %c0_i32_1 : i32, i32, i32
  }
  func.func @transform_2(%arg0: i32) -> (i32, i32) {
    %c0_i32 = arith.constant 0 : i32
    %c0_i32_0 = arith.constant 0 : i32
    %c0_i32_1 = arith.constant 0 : i32
    return %c0_i32, %c0_i32_0 : i32, i32
  }
  func.func @transform_3(%arg0: i32) -> (i32, i32, i32, i32) {
    %c0_i32 = arith.constant 0 : i32
    %c0_i32_0 = arith.constant 0 : i32
    %c0_i32_1 = arith.constant 0 : i32
    %c0_i32_2 = arith.constant 0 : i32
    return %arg0, %c0_i32, %c0_i32_0, %c0_i32_1 : i32, i32, i32, i32
  }
}

module attributes {stable_mosaic.version = 11 : i64} {
  func.func @_deconv_kernel(%arg0: i32, %arg1: memref<1x42x32xbf16, #tpu.memory_space<vmem>>, %arg2: memref<4x4x32x16xbf16, #tpu.memory_space<vmem>>, %arg3: memref<1x64xf32, #tpu.memory_space<vmem>>, %arg4: memref<1x4x4x64xbf16, #tpu.memory_space<vmem>>) attributes {dimension_semantics = [#tpu.dimension_semantics<parallel>], iteration_bounds = array<i64: 2>, scalar_prefetch = 0 : i64, scratch_operands = 0 : i64, tpu.core_type = #tpu.core_type<tc>, window_params = [{transform_indices = @transform_0, window_bounds = array<i64: 1, 42, 32>}, {pipeline_mode = #tpu.pipeline_mode<synchronous>, transform_indices = @transform_1, window_bounds = array<i64: 4, 4, 32, 16>}, {pipeline_mode = #tpu.pipeline_mode<synchronous>, transform_indices = @transform_2, window_bounds = array<i64: 1, 64>}, {transform_indices = @transform_3, window_bounds = array<i64: 1, 4, 4, 64>}]} {
    %c0 = arith.constant 0 : index
    %c0_0 = arith.constant 0 : index
    %0 = vector.load %arg3[%c0, %c0_0] : memref<1x64xf32, #tpu.memory_space<vmem>>, vector<1x64xf32>
    %c0_1 = arith.constant 0 : index
    %c0_2 = arith.constant 0 : index
    %c0_3 = arith.constant 0 : index
    %c0_4 = arith.constant 0 : index
    %1 = vector.load %arg2[%c0_1, %c0_2, %c0_3, %c0_4] : memref<4x4x32x16xbf16, #tpu.memory_space<vmem>>, vector<1x1x32x16xbf16>
    %2 = vector.shape_cast %1 : vector<1x1x32x16xbf16> to vector<32x16xbf16>
    %c0_5 = arith.constant 0 : index
    %c1 = arith.constant 1 : index
    %c0_6 = arith.constant 0 : index
    %c0_7 = arith.constant 0 : index
    %3 = vector.load %arg2[%c0_5, %c1, %c0_6, %c0_7] : memref<4x4x32x16xbf16, #tpu.memory_space<vmem>>, vector<1x1x32x16xbf16>
    %4 = vector.shape_cast %3 : vector<1x1x32x16xbf16> to vector<32x16xbf16>
    %c0_8 = arith.constant 0 : index
    %c2 = arith.constant 2 : index
    %c0_9 = arith.constant 0 : index
    %c0_10 = arith.constant 0 : index
    %5 = vector.load %arg2[%c0_8, %c2, %c0_9, %c0_10] : memref<4x4x32x16xbf16, #tpu.memory_space<vmem>>, vector<1x1x32x16xbf16>
    %6 = vector.shape_cast %5 : vector<1x1x32x16xbf16> to vector<32x16xbf16>
    %c0_11 = arith.constant 0 : index
    %c3 = arith.constant 3 : index
    %c0_12 = arith.constant 0 : index
    %c0_13 = arith.constant 0 : index
    %7 = vector.load %arg2[%c0_11, %c3, %c0_12, %c0_13] : memref<4x4x32x16xbf16, #tpu.memory_space<vmem>>, vector<1x1x32x16xbf16>
    %8 = vector.shape_cast %7 : vector<1x1x32x16xbf16> to vector<32x16xbf16>
    %c1_14 = arith.constant 1 : index
    %c0_15 = arith.constant 0 : index
    %c0_16 = arith.constant 0 : index
    %c0_17 = arith.constant 0 : index
    %9 = vector.load %arg2[%c1_14, %c0_15, %c0_16, %c0_17] : memref<4x4x32x16xbf16, #tpu.memory_space<vmem>>, vector<1x1x32x16xbf16>
    %10 = vector.shape_cast %9 : vector<1x1x32x16xbf16> to vector<32x16xbf16>
    %c1_18 = arith.constant 1 : index
    %c1_19 = arith.constant 1 : index
    %c0_20 = arith.constant 0 : index
    %c0_21 = arith.constant 0 : index
    %11 = vector.load %arg2[%c1_18, %c1_19, %c0_20, %c0_21] : memref<4x4x32x16xbf16, #tpu.memory_space<vmem>>, vector<1x1x32x16xbf16>
    %12 = vector.shape_cast %11 : vector<1x1x32x16xbf16> to vector<32x16xbf16>
    %c1_22 = arith.constant 1 : index
    %c2_23 = arith.constant 2 : index
    %c0_24 = arith.constant 0 : index
    %c0_25 = arith.constant 0 : index
    %13 = vector.load %arg2[%c1_22, %c2_23, %c0_24, %c0_25] : memref<4x4x32x16xbf16, #tpu.memory_space<vmem>>, vector<1x1x32x16xbf16>
    %14 = vector.shape_cast %13 : vector<1x1x32x16xbf16> to vector<32x16xbf16>
    %c1_26 = arith.constant 1 : index
    %c3_27 = arith.constant 3 : index
    %c0_28 = arith.constant 0 : index
    %c0_29 = arith.constant 0 : index
    %15 = vector.load %arg2[%c1_26, %c3_27, %c0_28, %c0_29] : memref<4x4x32x16xbf16, #tpu.memory_space<vmem>>, vector<1x1x32x16xbf16>
    %16 = vector.shape_cast %15 : vector<1x1x32x16xbf16> to vector<32x16xbf16>
    %c2_30 = arith.constant 2 : index
    %c0_31 = arith.constant 0 : index
    %c0_32 = arith.constant 0 : index
    %c0_33 = arith.constant 0 : index
    %17 = vector.load %arg2[%c2_30, %c0_31, %c0_32, %c0_33] : memref<4x4x32x16xbf16, #tpu.memory_space<vmem>>, vector<1x1x32x16xbf16>
    %18 = vector.shape_cast %17 : vector<1x1x32x16xbf16> to vector<32x16xbf16>
    %c2_34 = arith.constant 2 : index
    %c1_35 = arith.constant 1 : index
    %c0_36 = arith.constant 0 : index
    %c0_37 = arith.constant 0 : index
    %19 = vector.load %arg2[%c2_34, %c1_35, %c0_36, %c0_37] : memref<4x4x32x16xbf16, #tpu.memory_space<vmem>>, vector<1x1x32x16xbf16>
    %20 = vector.shape_cast %19 : vector<1x1x32x16xbf16> to vector<32x16xbf16>
    %c2_38 = arith.constant 2 : index
    %c2_39 = arith.constant 2 : index
    %c0_40 = arith.constant 0 : index
    %c0_41 = arith.constant 0 : index
    %21 = vector.load %arg2[%c2_38, %c2_39, %c0_40, %c0_41] : memref<4x4x32x16xbf16, #tpu.memory_space<vmem>>, vector<1x1x32x16xbf16>
    %22 = vector.shape_cast %21 : vector<1x1x32x16xbf16> to vector<32x16xbf16>
    %c2_42 = arith.constant 2 : index
    %c3_43 = arith.constant 3 : index
    %c0_44 = arith.constant 0 : index
    %c0_45 = arith.constant 0 : index
    %23 = vector.load %arg2[%c2_42, %c3_43, %c0_44, %c0_45] : memref<4x4x32x16xbf16, #tpu.memory_space<vmem>>, vector<1x1x32x16xbf16>
    %24 = vector.shape_cast %23 : vector<1x1x32x16xbf16> to vector<32x16xbf16>
    %c3_46 = arith.constant 3 : index
    %c0_47 = arith.constant 0 : index
    %c0_48 = arith.constant 0 : index
    %c0_49 = arith.constant 0 : index
    %25 = vector.load %arg2[%c3_46, %c0_47, %c0_48, %c0_49] : memref<4x4x32x16xbf16, #tpu.memory_space<vmem>>, vector<1x1x32x16xbf16>
    %26 = vector.shape_cast %25 : vector<1x1x32x16xbf16> to vector<32x16xbf16>
    %c3_50 = arith.constant 3 : index
    %c1_51 = arith.constant 1 : index
    %c0_52 = arith.constant 0 : index
    %c0_53 = arith.constant 0 : index
    %27 = vector.load %arg2[%c3_50, %c1_51, %c0_52, %c0_53] : memref<4x4x32x16xbf16, #tpu.memory_space<vmem>>, vector<1x1x32x16xbf16>
    %28 = vector.shape_cast %27 : vector<1x1x32x16xbf16> to vector<32x16xbf16>
    %c3_54 = arith.constant 3 : index
    %c2_55 = arith.constant 2 : index
    %c0_56 = arith.constant 0 : index
    %c0_57 = arith.constant 0 : index
    %29 = vector.load %arg2[%c3_54, %c2_55, %c0_56, %c0_57] : memref<4x4x32x16xbf16, #tpu.memory_space<vmem>>, vector<1x1x32x16xbf16>
    %30 = vector.shape_cast %29 : vector<1x1x32x16xbf16> to vector<32x16xbf16>
    %c3_58 = arith.constant 3 : index
    %c3_59 = arith.constant 3 : index
    %c0_60 = arith.constant 0 : index
    %c0_61 = arith.constant 0 : index
    %31 = vector.load %arg2[%c3_58, %c3_59, %c0_60, %c0_61] : memref<4x4x32x16xbf16, #tpu.memory_space<vmem>>, vector<1x1x32x16xbf16>
    %32 = vector.shape_cast %31 : vector<1x1x32x16xbf16> to vector<32x16xbf16>
    %cst = arith.constant 0.000000e+00 : f32
    %33 = vector.broadcast %cst : f32 to vector<24x16xf32>
    %cst_62 = arith.constant 0.000000e+00 : f32
    %34 = vector.broadcast %cst_62 : f32 to vector<24x16xf32>
    %cst_63 = arith.constant 0.000000e+00 : f32
    %35 = vector.broadcast %cst_63 : f32 to vector<24x16xf32>
    %cst_64 = arith.constant 0.000000e+00 : f32
    %36 = vector.broadcast %cst_64 : f32 to vector<24x16xf32>
    %c0_65 = arith.constant 0 : index
    %c0_66 = arith.constant 0 : index
    %c0_67 = arith.constant 0 : index
    %37 = vector.load %arg1[%c0_65, %c0_66, %c0_67] : memref<1x42x32xbf16, #tpu.memory_space<vmem>>, vector<1x24x32xbf16>
    %38 = vector.shape_cast %37 : vector<1x24x32xbf16> to vector<24x32xbf16>
    %cst_68 = arith.constant dense<0.000000e+00> : vector<24x16xf32>
    %39 = tpu.matmul %38, %2, %cst_68 {dimension_numbers = #tpu.dot_dimension_numbers<[1], [0], [0], [1], [0, 0, 1, 1], [], []>} : vector<24x32xbf16>, vector<32x16xbf16>, vector<24x16xf32> -> vector<24x16xf32>
    %40 = arith.addf %33, %39 : vector<24x16xf32>
    %c0_69 = arith.constant 0 : index
    %c1_70 = arith.constant 1 : index
    %c0_71 = arith.constant 0 : index
    %41 = vector.load %arg1[%c0_69, %c1_70, %c0_71] : memref<1x42x32xbf16, #tpu.memory_space<vmem>>, vector<1x24x32xbf16>
    %42 = vector.shape_cast %41 : vector<1x24x32xbf16> to vector<24x32xbf16>
    %cst_72 = arith.constant dense<0.000000e+00> : vector<24x16xf32>
    %43 = tpu.matmul %42, %4, %cst_72 {dimension_numbers = #tpu.dot_dimension_numbers<[1], [0], [0], [1], [0, 0, 1, 1], [], []>} : vector<24x32xbf16>, vector<32x16xbf16>, vector<24x16xf32> -> vector<24x16xf32>
    %44 = arith.addf %40, %43 : vector<24x16xf32>
    %cst_73 = arith.constant dense<0.000000e+00> : vector<24x16xf32>
    %45 = tpu.matmul %42, %10, %cst_73 {dimension_numbers = #tpu.dot_dimension_numbers<[1], [0], [0], [1], [0, 0, 1, 1], [], []>} : vector<24x32xbf16>, vector<32x16xbf16>, vector<24x16xf32> -> vector<24x16xf32>
    %46 = arith.addf %34, %45 : vector<24x16xf32>
    %c0_74 = arith.constant 0 : index
    %c2_75 = arith.constant 2 : index
    %c0_76 = arith.constant 0 : index
    %47 = vector.load %arg1[%c0_74, %c2_75, %c0_76] : memref<1x42x32xbf16, #tpu.memory_space<vmem>>, vector<1x24x32xbf16>
    %48 = vector.shape_cast %47 : vector<1x24x32xbf16> to vector<24x32xbf16>
    %cst_77 = arith.constant dense<0.000000e+00> : vector<24x16xf32>
    %49 = tpu.matmul %48, %12, %cst_77 {dimension_numbers = #tpu.dot_dimension_numbers<[1], [0], [0], [1], [0, 0, 1, 1], [], []>} : vector<24x32xbf16>, vector<32x16xbf16>, vector<24x16xf32> -> vector<24x16xf32>
    %50 = arith.addf %46, %49 : vector<24x16xf32>
    %c0_78 = arith.constant 0 : index
    %c6 = arith.constant 6 : index
    %c0_79 = arith.constant 0 : index
    %51 = vector.load %arg1[%c0_78, %c6, %c0_79] : memref<1x42x32xbf16, #tpu.memory_space<vmem>>, vector<1x24x32xbf16>
    %52 = vector.shape_cast %51 : vector<1x24x32xbf16> to vector<24x32xbf16>
    %cst_80 = arith.constant dense<0.000000e+00> : vector<24x16xf32>
    %53 = tpu.matmul %52, %6, %cst_80 {dimension_numbers = #tpu.dot_dimension_numbers<[1], [0], [0], [1], [0, 0, 1, 1], [], []>} : vector<24x32xbf16>, vector<32x16xbf16>, vector<24x16xf32> -> vector<24x16xf32>
    %54 = arith.addf %44, %53 : vector<24x16xf32>
    %cst_81 = arith.constant dense<0.000000e+00> : vector<24x16xf32>
    %55 = tpu.matmul %52, %18, %cst_81 {dimension_numbers = #tpu.dot_dimension_numbers<[1], [0], [0], [1], [0, 0, 1, 1], [], []>} : vector<24x32xbf16>, vector<32x16xbf16>, vector<24x16xf32> -> vector<24x16xf32>
    %56 = arith.addf %35, %55 : vector<24x16xf32>
    %c0_82 = arith.constant 0 : index
    %c7 = arith.constant 7 : index
    %c0_83 = arith.constant 0 : index
    %57 = vector.load %arg1[%c0_82, %c7, %c0_83] : memref<1x42x32xbf16, #tpu.memory_space<vmem>>, vector<1x24x32xbf16>
    %58 = vector.shape_cast %57 : vector<1x24x32xbf16> to vector<24x32xbf16>
    %cst_84 = arith.constant dense<0.000000e+00> : vector<24x16xf32>
    %59 = tpu.matmul %58, %8, %cst_84 {dimension_numbers = #tpu.dot_dimension_numbers<[1], [0], [0], [1], [0, 0, 1, 1], [], []>} : vector<24x32xbf16>, vector<32x16xbf16>, vector<24x16xf32> -> vector<24x16xf32>
    %60 = arith.addf %54, %59 : vector<24x16xf32>
    %cst_85 = arith.constant dense<0.000000e+00> : vector<24x16xf32>
    %61 = tpu.matmul %58, %14, %cst_85 {dimension_numbers = #tpu.dot_dimension_numbers<[1], [0], [0], [1], [0, 0, 1, 1], [], []>} : vector<24x32xbf16>, vector<32x16xbf16>, vector<24x16xf32> -> vector<24x16xf32>
    %62 = arith.addf %50, %61 : vector<24x16xf32>
    %cst_86 = arith.constant dense<0.000000e+00> : vector<24x16xf32>
    %63 = tpu.matmul %58, %20, %cst_86 {dimension_numbers = #tpu.dot_dimension_numbers<[1], [0], [0], [1], [0, 0, 1, 1], [], []>} : vector<24x32xbf16>, vector<32x16xbf16>, vector<24x16xf32> -> vector<24x16xf32>
    %64 = arith.addf %56, %63 : vector<24x16xf32>
    %cst_87 = arith.constant dense<0.000000e+00> : vector<24x16xf32>
    %65 = tpu.matmul %58, %26, %cst_87 {dimension_numbers = #tpu.dot_dimension_numbers<[1], [0], [0], [1], [0, 0, 1, 1], [], []>} : vector<24x32xbf16>, vector<32x16xbf16>, vector<24x16xf32> -> vector<24x16xf32>
    %66 = arith.addf %36, %65 : vector<24x16xf32>
    %c0_88 = arith.constant 0 : index
    %c8 = arith.constant 8 : index
    %c0_89 = arith.constant 0 : index
    %67 = vector.load %arg1[%c0_88, %c8, %c0_89] : memref<1x42x32xbf16, #tpu.memory_space<vmem>>, vector<1x24x32xbf16>
    %68 = vector.shape_cast %67 : vector<1x24x32xbf16> to vector<24x32xbf16>
    %cst_90 = arith.constant dense<0.000000e+00> : vector<24x16xf32>
    %69 = tpu.matmul %68, %16, %cst_90 {dimension_numbers = #tpu.dot_dimension_numbers<[1], [0], [0], [1], [0, 0, 1, 1], [], []>} : vector<24x32xbf16>, vector<32x16xbf16>, vector<24x16xf32> -> vector<24x16xf32>
    %70 = arith.addf %62, %69 : vector<24x16xf32>
    %cst_91 = arith.constant dense<0.000000e+00> : vector<24x16xf32>
    %71 = tpu.matmul %68, %28, %cst_91 {dimension_numbers = #tpu.dot_dimension_numbers<[1], [0], [0], [1], [0, 0, 1, 1], [], []>} : vector<24x32xbf16>, vector<32x16xbf16>, vector<24x16xf32> -> vector<24x16xf32>
    %72 = arith.addf %66, %71 : vector<24x16xf32>
    %c0_92 = arith.constant 0 : index
    %c12 = arith.constant 12 : index
    %c0_93 = arith.constant 0 : index
    %73 = vector.load %arg1[%c0_92, %c12, %c0_93] : memref<1x42x32xbf16, #tpu.memory_space<vmem>>, vector<1x24x32xbf16>
    %74 = vector.shape_cast %73 : vector<1x24x32xbf16> to vector<24x32xbf16>
    %cst_94 = arith.constant dense<0.000000e+00> : vector<24x16xf32>
    %75 = tpu.matmul %74, %22, %cst_94 {dimension_numbers = #tpu.dot_dimension_numbers<[1], [0], [0], [1], [0, 0, 1, 1], [], []>} : vector<24x32xbf16>, vector<32x16xbf16>, vector<24x16xf32> -> vector<24x16xf32>
    %76 = arith.addf %64, %75 : vector<24x16xf32>
    %c0_95 = arith.constant 0 : index
    %c13 = arith.constant 13 : index
    %c0_96 = arith.constant 0 : index
    %77 = vector.load %arg1[%c0_95, %c13, %c0_96] : memref<1x42x32xbf16, #tpu.memory_space<vmem>>, vector<1x24x32xbf16>
    %78 = vector.shape_cast %77 : vector<1x24x32xbf16> to vector<24x32xbf16>
    %cst_97 = arith.constant dense<0.000000e+00> : vector<24x16xf32>
    %79 = tpu.matmul %78, %24, %cst_97 {dimension_numbers = #tpu.dot_dimension_numbers<[1], [0], [0], [1], [0, 0, 1, 1], [], []>} : vector<24x32xbf16>, vector<32x16xbf16>, vector<24x16xf32> -> vector<24x16xf32>
    %80 = arith.addf %76, %79 : vector<24x16xf32>
    %cst_98 = arith.constant dense<0.000000e+00> : vector<24x16xf32>
    %81 = tpu.matmul %78, %30, %cst_98 {dimension_numbers = #tpu.dot_dimension_numbers<[1], [0], [0], [1], [0, 0, 1, 1], [], []>} : vector<24x32xbf16>, vector<32x16xbf16>, vector<24x16xf32> -> vector<24x16xf32>
    %82 = arith.addf %72, %81 : vector<24x16xf32>
    %c0_99 = arith.constant 0 : index
    %c14 = arith.constant 14 : index
    %c0_100 = arith.constant 0 : index
    %83 = vector.load %arg1[%c0_99, %c14, %c0_100] : memref<1x42x32xbf16, #tpu.memory_space<vmem>>, vector<1x24x32xbf16>
    %84 = vector.shape_cast %83 : vector<1x24x32xbf16> to vector<24x32xbf16>
    %cst_101 = arith.constant dense<0.000000e+00> : vector<24x16xf32>
    %85 = tpu.matmul %84, %32, %cst_101 {dimension_numbers = #tpu.dot_dimension_numbers<[1], [0], [0], [1], [0, 0, 1, 1], [], []>} : vector<24x32xbf16>, vector<32x16xbf16>, vector<24x16xf32> -> vector<24x16xf32>
    %86 = arith.addf %82, %85 : vector<24x16xf32>
    %87 = tpu.concatenate %60, %70, %80, %86 in 1 : vector<24x16xf32>, vector<24x16xf32>, vector<24x16xf32>, vector<24x16xf32> -> vector<24x64xf32>
    %88 = vector.broadcast %0 : vector<1x64xf32> to vector<24x64xf32>
    %89 = arith.addf %87, %88 : vector<24x64xf32>
    %cst_102 = arith.constant 0.000000e+00 : f32
    %90 = vector.broadcast %cst_102 : f32 to vector<24x64xf32>
    %91 = arith.maximumf %89, %90 : vector<24x64xf32>
    %92 = arith.truncf %91 : vector<24x64xf32> to vector<24x64xbf16>
    %93 = vector.extract_strided_slice %92 {offsets = [0, 0], sizes = [4, 64], strides = [1, 1]} : vector<24x64xbf16> to vector<4x64xbf16>
    %c0_103 = arith.constant 0 : index
    %c0_104 = arith.constant 0 : index
    %c0_105 = arith.constant 0 : index
    %c0_106 = arith.constant 0 : index
    %94 = vector.load %arg4[%c0_103, %c0_104, %c0_105, %c0_106] : memref<1x4x4x64xbf16, #tpu.memory_space<vmem>>, vector<1x1x4x64xbf16>
    %95 = vector.shape_cast %94 : vector<1x1x4x64xbf16> to vector<4x64xbf16>
    %96 = vector.shape_cast %93 : vector<4x64xbf16> to vector<1x1x4x64xbf16>
    tpu.vector_store %arg4[%c0_103, %c0_104, %c0_105, %c0_106], %96 {strides = array<i32>} : memref<1x4x4x64xbf16, #tpu.memory_space<vmem>>, vector<1x1x4x64xbf16>,
    %97 = vector.extract_strided_slice %92 {offsets = [6, 0], sizes = [4, 64], strides = [1, 1]} : vector<24x64xbf16> to vector<4x64xbf16>
    %c0_107 = arith.constant 0 : index
    %c1_108 = arith.constant 1 : index
    %c0_109 = arith.constant 0 : index
    %c0_110 = arith.constant 0 : index
    %98 = vector.load %arg4[%c0_107, %c1_108, %c0_109, %c0_110] : memref<1x4x4x64xbf16, #tpu.memory_space<vmem>>, vector<1x1x4x64xbf16>
    %99 = vector.shape_cast %98 : vector<1x1x4x64xbf16> to vector<4x64xbf16>
    %100 = vector.shape_cast %97 : vector<4x64xbf16> to vector<1x1x4x64xbf16>
    tpu.vector_store %arg4[%c0_107, %c1_108, %c0_109, %c0_110], %100 {strides = array<i32>} : memref<1x4x4x64xbf16, #tpu.memory_space<vmem>>, vector<1x1x4x64xbf16>,
    %101 = vector.extract_strided_slice %92 {offsets = [12, 0], sizes = [4, 64], strides = [1, 1]} : vector<24x64xbf16> to vector<4x64xbf16>
    %c0_111 = arith.constant 0 : index
    %c2_112 = arith.constant 2 : index
    %c0_113 = arith.constant 0 : index
    %c0_114 = arith.constant 0 : index
    %102 = vector.load %arg4[%c0_111, %c2_112, %c0_113, %c0_114] : memref<1x4x4x64xbf16, #tpu.memory_space<vmem>>, vector<1x1x4x64xbf16>
    %103 = vector.shape_cast %102 : vector<1x1x4x64xbf16> to vector<4x64xbf16>
    %104 = vector.shape_cast %101 : vector<4x64xbf16> to vector<1x1x4x64xbf16>
    tpu.vector_store %arg4[%c0_111, %c2_112, %c0_113, %c0_114], %104 {strides = array<i32>} : memref<1x4x4x64xbf16, #tpu.memory_space<vmem>>, vector<1x1x4x64xbf16>,
    %105 = vector.extract_strided_slice %92 {offsets = [18, 0], sizes = [4, 64], strides = [1, 1]} : vector<24x64xbf16> to vector<4x64xbf16>
    %c0_115 = arith.constant 0 : index
    %c3_116 = arith.constant 3 : index
    %c0_117 = arith.constant 0 : index
    %c0_118 = arith.constant 0 : index
    %106 = vector.load %arg4[%c0_115, %c3_116, %c0_117, %c0_118] : memref<1x4x4x64xbf16, #tpu.memory_space<vmem>>, vector<1x1x4x64xbf16>
    %107 = vector.shape_cast %106 : vector<1x1x4x64xbf16> to vector<4x64xbf16>
    %108 = vector.shape_cast %105 : vector<4x64xbf16> to vector<1x1x4x64xbf16>
    tpu.vector_store %arg4[%c0_115, %c3_116, %c0_117, %c0_118], %108 {strides = array<i32>} : memref<1x4x4x64xbf16, #tpu.memory_space<vmem>>, vector<1x1x4x64xbf16>,
    return
  }
  func.func @transform_0(%arg0: i32) -> (i32, i32, i32) {
    %c0_i32 = arith.constant 0 : i32
    %c0_i32_0 = arith.constant 0 : i32
    %c0_i32_1 = arith.constant 0 : i32
    return %arg0, %c0_i32, %c0_i32_0 : i32, i32, i32
  }
  func.func @transform_1(%arg0: i32) -> (i32, i32, i32, i32) {
    %c0_i32 = arith.constant 0 : i32
    %c0_i32_0 = arith.constant 0 : i32
    %c0_i32_1 = arith.constant 0 : i32
    %c0_i32_2 = arith.constant 0 : i32
    %c0_i32_3 = arith.constant 0 : i32
    return %c0_i32, %c0_i32_0, %c0_i32_1, %c0_i32_2 : i32, i32, i32, i32
  }
  func.func @transform_2(%arg0: i32) -> (i32, i32) {
    %c0_i32 = arith.constant 0 : i32
    %c0_i32_0 = arith.constant 0 : i32
    %c0_i32_1 = arith.constant 0 : i32
    return %c0_i32, %c0_i32_0 : i32, i32
  }
  func.func @transform_3(%arg0: i32) -> (i32, i32, i32, i32) {
    %c0_i32 = arith.constant 0 : i32
    %c0_i32_0 = arith.constant 0 : i32
    %c0_i32_1 = arith.constant 0 : i32
    %c0_i32_2 = arith.constant 0 : i32
    return %arg0, %c0_i32, %c0_i32_0, %c0_i32_1 : i32, i32, i32, i32
  }
}

module attributes {stable_mosaic.version = 11 : i64} {
  func.func @_deconv_kernel(%arg0: i32, %arg1: memref<1x110x16xbf16, #tpu.memory_space<vmem>>, %arg2: memref<4x4x16x3xbf16, #tpu.memory_space<vmem>>, %arg3: memref<1x12xf32, #tpu.memory_space<vmem>>, %arg4: memref<1x8x8x12xf32, #tpu.memory_space<vmem>>) attributes {dimension_semantics = [#tpu.dimension_semantics<parallel>], iteration_bounds = array<i64: 2>, scalar_prefetch = 0 : i64, scratch_operands = 0 : i64, tpu.core_type = #tpu.core_type<tc>, window_params = [{transform_indices = @transform_0, window_bounds = array<i64: 1, 110, 16>}, {pipeline_mode = #tpu.pipeline_mode<synchronous>, transform_indices = @transform_1, window_bounds = array<i64: 4, 4, 16, 3>}, {pipeline_mode = #tpu.pipeline_mode<synchronous>, transform_indices = @transform_2, window_bounds = array<i64: 1, 12>}, {transform_indices = @transform_3, window_bounds = array<i64: 1, 8, 8, 12>}]} {
    %c0 = arith.constant 0 : index
    %c0_0 = arith.constant 0 : index
    %0 = vector.load %arg3[%c0, %c0_0] : memref<1x12xf32, #tpu.memory_space<vmem>>, vector<1x12xf32>
    %c0_1 = arith.constant 0 : index
    %c0_2 = arith.constant 0 : index
    %c0_3 = arith.constant 0 : index
    %c0_4 = arith.constant 0 : index
    %1 = vector.load %arg2[%c0_1, %c0_2, %c0_3, %c0_4] : memref<4x4x16x3xbf16, #tpu.memory_space<vmem>>, vector<1x1x16x3xbf16>
    %2 = vector.shape_cast %1 : vector<1x1x16x3xbf16> to vector<16x3xbf16>
    %c0_5 = arith.constant 0 : index
    %c1 = arith.constant 1 : index
    %c0_6 = arith.constant 0 : index
    %c0_7 = arith.constant 0 : index
    %3 = vector.load %arg2[%c0_5, %c1, %c0_6, %c0_7] : memref<4x4x16x3xbf16, #tpu.memory_space<vmem>>, vector<1x1x16x3xbf16>
    %4 = vector.shape_cast %3 : vector<1x1x16x3xbf16> to vector<16x3xbf16>
    %c0_8 = arith.constant 0 : index
    %c2 = arith.constant 2 : index
    %c0_9 = arith.constant 0 : index
    %c0_10 = arith.constant 0 : index
    %5 = vector.load %arg2[%c0_8, %c2, %c0_9, %c0_10] : memref<4x4x16x3xbf16, #tpu.memory_space<vmem>>, vector<1x1x16x3xbf16>
    %6 = vector.shape_cast %5 : vector<1x1x16x3xbf16> to vector<16x3xbf16>
    %c0_11 = arith.constant 0 : index
    %c3 = arith.constant 3 : index
    %c0_12 = arith.constant 0 : index
    %c0_13 = arith.constant 0 : index
    %7 = vector.load %arg2[%c0_11, %c3, %c0_12, %c0_13] : memref<4x4x16x3xbf16, #tpu.memory_space<vmem>>, vector<1x1x16x3xbf16>
    %8 = vector.shape_cast %7 : vector<1x1x16x3xbf16> to vector<16x3xbf16>
    %c1_14 = arith.constant 1 : index
    %c0_15 = arith.constant 0 : index
    %c0_16 = arith.constant 0 : index
    %c0_17 = arith.constant 0 : index
    %9 = vector.load %arg2[%c1_14, %c0_15, %c0_16, %c0_17] : memref<4x4x16x3xbf16, #tpu.memory_space<vmem>>, vector<1x1x16x3xbf16>
    %10 = vector.shape_cast %9 : vector<1x1x16x3xbf16> to vector<16x3xbf16>
    %c1_18 = arith.constant 1 : index
    %c1_19 = arith.constant 1 : index
    %c0_20 = arith.constant 0 : index
    %c0_21 = arith.constant 0 : index
    %11 = vector.load %arg2[%c1_18, %c1_19, %c0_20, %c0_21] : memref<4x4x16x3xbf16, #tpu.memory_space<vmem>>, vector<1x1x16x3xbf16>
    %12 = vector.shape_cast %11 : vector<1x1x16x3xbf16> to vector<16x3xbf16>
    %c1_22 = arith.constant 1 : index
    %c2_23 = arith.constant 2 : index
    %c0_24 = arith.constant 0 : index
    %c0_25 = arith.constant 0 : index
    %13 = vector.load %arg2[%c1_22, %c2_23, %c0_24, %c0_25] : memref<4x4x16x3xbf16, #tpu.memory_space<vmem>>, vector<1x1x16x3xbf16>
    %14 = vector.shape_cast %13 : vector<1x1x16x3xbf16> to vector<16x3xbf16>
    %c1_26 = arith.constant 1 : index
    %c3_27 = arith.constant 3 : index
    %c0_28 = arith.constant 0 : index
    %c0_29 = arith.constant 0 : index
    %15 = vector.load %arg2[%c1_26, %c3_27, %c0_28, %c0_29] : memref<4x4x16x3xbf16, #tpu.memory_space<vmem>>, vector<1x1x16x3xbf16>
    %16 = vector.shape_cast %15 : vector<1x1x16x3xbf16> to vector<16x3xbf16>
    %c2_30 = arith.constant 2 : index
    %c0_31 = arith.constant 0 : index
    %c0_32 = arith.constant 0 : index
    %c0_33 = arith.constant 0 : index
    %17 = vector.load %arg2[%c2_30, %c0_31, %c0_32, %c0_33] : memref<4x4x16x3xbf16, #tpu.memory_space<vmem>>, vector<1x1x16x3xbf16>
    %18 = vector.shape_cast %17 : vector<1x1x16x3xbf16> to vector<16x3xbf16>
    %c2_34 = arith.constant 2 : index
    %c1_35 = arith.constant 1 : index
    %c0_36 = arith.constant 0 : index
    %c0_37 = arith.constant 0 : index
    %19 = vector.load %arg2[%c2_34, %c1_35, %c0_36, %c0_37] : memref<4x4x16x3xbf16, #tpu.memory_space<vmem>>, vector<1x1x16x3xbf16>
    %20 = vector.shape_cast %19 : vector<1x1x16x3xbf16> to vector<16x3xbf16>
    %c2_38 = arith.constant 2 : index
    %c2_39 = arith.constant 2 : index
    %c0_40 = arith.constant 0 : index
    %c0_41 = arith.constant 0 : index
    %21 = vector.load %arg2[%c2_38, %c2_39, %c0_40, %c0_41] : memref<4x4x16x3xbf16, #tpu.memory_space<vmem>>, vector<1x1x16x3xbf16>
    %22 = vector.shape_cast %21 : vector<1x1x16x3xbf16> to vector<16x3xbf16>
    %c2_42 = arith.constant 2 : index
    %c3_43 = arith.constant 3 : index
    %c0_44 = arith.constant 0 : index
    %c0_45 = arith.constant 0 : index
    %23 = vector.load %arg2[%c2_42, %c3_43, %c0_44, %c0_45] : memref<4x4x16x3xbf16, #tpu.memory_space<vmem>>, vector<1x1x16x3xbf16>
    %24 = vector.shape_cast %23 : vector<1x1x16x3xbf16> to vector<16x3xbf16>
    %c3_46 = arith.constant 3 : index
    %c0_47 = arith.constant 0 : index
    %c0_48 = arith.constant 0 : index
    %c0_49 = arith.constant 0 : index
    %25 = vector.load %arg2[%c3_46, %c0_47, %c0_48, %c0_49] : memref<4x4x16x3xbf16, #tpu.memory_space<vmem>>, vector<1x1x16x3xbf16>
    %26 = vector.shape_cast %25 : vector<1x1x16x3xbf16> to vector<16x3xbf16>
    %c3_50 = arith.constant 3 : index
    %c1_51 = arith.constant 1 : index
    %c0_52 = arith.constant 0 : index
    %c0_53 = arith.constant 0 : index
    %27 = vector.load %arg2[%c3_50, %c1_51, %c0_52, %c0_53] : memref<4x4x16x3xbf16, #tpu.memory_space<vmem>>, vector<1x1x16x3xbf16>
    %28 = vector.shape_cast %27 : vector<1x1x16x3xbf16> to vector<16x3xbf16>
    %c3_54 = arith.constant 3 : index
    %c2_55 = arith.constant 2 : index
    %c0_56 = arith.constant 0 : index
    %c0_57 = arith.constant 0 : index
    %29 = vector.load %arg2[%c3_54, %c2_55, %c0_56, %c0_57] : memref<4x4x16x3xbf16, #tpu.memory_space<vmem>>, vector<1x1x16x3xbf16>
    %30 = vector.shape_cast %29 : vector<1x1x16x3xbf16> to vector<16x3xbf16>
    %c3_58 = arith.constant 3 : index
    %c3_59 = arith.constant 3 : index
    %c0_60 = arith.constant 0 : index
    %c0_61 = arith.constant 0 : index
    %31 = vector.load %arg2[%c3_58, %c3_59, %c0_60, %c0_61] : memref<4x4x16x3xbf16, #tpu.memory_space<vmem>>, vector<1x1x16x3xbf16>
    %32 = vector.shape_cast %31 : vector<1x1x16x3xbf16> to vector<16x3xbf16>
    %cst = arith.constant 0.000000e+00 : f32
    %33 = vector.broadcast %cst : f32 to vector<80x3xf32>
    %cst_62 = arith.constant 0.000000e+00 : f32
    %34 = vector.broadcast %cst_62 : f32 to vector<80x3xf32>
    %cst_63 = arith.constant 0.000000e+00 : f32
    %35 = vector.broadcast %cst_63 : f32 to vector<80x3xf32>
    %cst_64 = arith.constant 0.000000e+00 : f32
    %36 = vector.broadcast %cst_64 : f32 to vector<80x3xf32>
    %c0_65 = arith.constant 0 : index
    %c0_66 = arith.constant 0 : index
    %c0_67 = arith.constant 0 : index
    %37 = vector.load %arg1[%c0_65, %c0_66, %c0_67] : memref<1x110x16xbf16, #tpu.memory_space<vmem>>, vector<1x80x16xbf16>
    %38 = vector.shape_cast %37 : vector<1x80x16xbf16> to vector<80x16xbf16>
    %cst_68 = arith.constant dense<0.000000e+00> : vector<80x3xf32>
    %39 = tpu.matmul %38, %2, %cst_68 {dimension_numbers = #tpu.dot_dimension_numbers<[1], [0], [0], [1], [0, 0, 1, 1], [], []>} : vector<80x16xbf16>, vector<16x3xbf16>, vector<80x3xf32> -> vector<80x3xf32>
    %40 = arith.addf %33, %39 : vector<80x3xf32>
    %c0_69 = arith.constant 0 : index
    %c1_70 = arith.constant 1 : index
    %c0_71 = arith.constant 0 : index
    %41 = vector.load %arg1[%c0_69, %c1_70, %c0_71] : memref<1x110x16xbf16, #tpu.memory_space<vmem>>, vector<1x80x16xbf16>
    %42 = vector.shape_cast %41 : vector<1x80x16xbf16> to vector<80x16xbf16>
    %cst_72 = arith.constant dense<0.000000e+00> : vector<80x3xf32>
    %43 = tpu.matmul %42, %4, %cst_72 {dimension_numbers = #tpu.dot_dimension_numbers<[1], [0], [0], [1], [0, 0, 1, 1], [], []>} : vector<80x16xbf16>, vector<16x3xbf16>, vector<80x3xf32> -> vector<80x3xf32>
    %44 = arith.addf %40, %43 : vector<80x3xf32>
    %cst_73 = arith.constant dense<0.000000e+00> : vector<80x3xf32>
    %45 = tpu.matmul %42, %10, %cst_73 {dimension_numbers = #tpu.dot_dimension_numbers<[1], [0], [0], [1], [0, 0, 1, 1], [], []>} : vector<80x16xbf16>, vector<16x3xbf16>, vector<80x3xf32> -> vector<80x3xf32>
    %46 = arith.addf %34, %45 : vector<80x3xf32>
    %c0_74 = arith.constant 0 : index
    %c2_75 = arith.constant 2 : index
    %c0_76 = arith.constant 0 : index
    %47 = vector.load %arg1[%c0_74, %c2_75, %c0_76] : memref<1x110x16xbf16, #tpu.memory_space<vmem>>, vector<1x80x16xbf16>
    %48 = vector.shape_cast %47 : vector<1x80x16xbf16> to vector<80x16xbf16>
    %cst_77 = arith.constant dense<0.000000e+00> : vector<80x3xf32>
    %49 = tpu.matmul %48, %12, %cst_77 {dimension_numbers = #tpu.dot_dimension_numbers<[1], [0], [0], [1], [0, 0, 1, 1], [], []>} : vector<80x16xbf16>, vector<16x3xbf16>, vector<80x3xf32> -> vector<80x3xf32>
    %50 = arith.addf %46, %49 : vector<80x3xf32>
    %c0_78 = arith.constant 0 : index
    %c10 = arith.constant 10 : index
    %c0_79 = arith.constant 0 : index
    %51 = vector.load %arg1[%c0_78, %c10, %c0_79] : memref<1x110x16xbf16, #tpu.memory_space<vmem>>, vector<1x80x16xbf16>
    %52 = vector.shape_cast %51 : vector<1x80x16xbf16> to vector<80x16xbf16>
    %cst_80 = arith.constant dense<0.000000e+00> : vector<80x3xf32>
    %53 = tpu.matmul %52, %6, %cst_80 {dimension_numbers = #tpu.dot_dimension_numbers<[1], [0], [0], [1], [0, 0, 1, 1], [], []>} : vector<80x16xbf16>, vector<16x3xbf16>, vector<80x3xf32> -> vector<80x3xf32>
    %54 = arith.addf %44, %53 : vector<80x3xf32>
    %cst_81 = arith.constant dense<0.000000e+00> : vector<80x3xf32>
    %55 = tpu.matmul %52, %18, %cst_81 {dimension_numbers = #tpu.dot_dimension_numbers<[1], [0], [0], [1], [0, 0, 1, 1], [], []>} : vector<80x16xbf16>, vector<16x3xbf16>, vector<80x3xf32> -> vector<80x3xf32>
    %56 = arith.addf %35, %55 : vector<80x3xf32>
    %c0_82 = arith.constant 0 : index
    %c11 = arith.constant 11 : index
    %c0_83 = arith.constant 0 : index
    %57 = vector.load %arg1[%c0_82, %c11, %c0_83] : memref<1x110x16xbf16, #tpu.memory_space<vmem>>, vector<1x80x16xbf16>
    %58 = vector.shape_cast %57 : vector<1x80x16xbf16> to vector<80x16xbf16>
    %cst_84 = arith.constant dense<0.000000e+00> : vector<80x3xf32>
    %59 = tpu.matmul %58, %8, %cst_84 {dimension_numbers = #tpu.dot_dimension_numbers<[1], [0], [0], [1], [0, 0, 1, 1], [], []>} : vector<80x16xbf16>, vector<16x3xbf16>, vector<80x3xf32> -> vector<80x3xf32>
    %60 = arith.addf %54, %59 : vector<80x3xf32>
    %cst_85 = arith.constant dense<0.000000e+00> : vector<80x3xf32>
    %61 = tpu.matmul %58, %14, %cst_85 {dimension_numbers = #tpu.dot_dimension_numbers<[1], [0], [0], [1], [0, 0, 1, 1], [], []>} : vector<80x16xbf16>, vector<16x3xbf16>, vector<80x3xf32> -> vector<80x3xf32>
    %62 = arith.addf %50, %61 : vector<80x3xf32>
    %cst_86 = arith.constant dense<0.000000e+00> : vector<80x3xf32>
    %63 = tpu.matmul %58, %20, %cst_86 {dimension_numbers = #tpu.dot_dimension_numbers<[1], [0], [0], [1], [0, 0, 1, 1], [], []>} : vector<80x16xbf16>, vector<16x3xbf16>, vector<80x3xf32> -> vector<80x3xf32>
    %64 = arith.addf %56, %63 : vector<80x3xf32>
    %cst_87 = arith.constant dense<0.000000e+00> : vector<80x3xf32>
    %65 = tpu.matmul %58, %26, %cst_87 {dimension_numbers = #tpu.dot_dimension_numbers<[1], [0], [0], [1], [0, 0, 1, 1], [], []>} : vector<80x16xbf16>, vector<16x3xbf16>, vector<80x3xf32> -> vector<80x3xf32>
    %66 = arith.addf %36, %65 : vector<80x3xf32>
    %c0_88 = arith.constant 0 : index
    %c12 = arith.constant 12 : index
    %c0_89 = arith.constant 0 : index
    %67 = vector.load %arg1[%c0_88, %c12, %c0_89] : memref<1x110x16xbf16, #tpu.memory_space<vmem>>, vector<1x80x16xbf16>
    %68 = vector.shape_cast %67 : vector<1x80x16xbf16> to vector<80x16xbf16>
    %cst_90 = arith.constant dense<0.000000e+00> : vector<80x3xf32>
    %69 = tpu.matmul %68, %16, %cst_90 {dimension_numbers = #tpu.dot_dimension_numbers<[1], [0], [0], [1], [0, 0, 1, 1], [], []>} : vector<80x16xbf16>, vector<16x3xbf16>, vector<80x3xf32> -> vector<80x3xf32>
    %70 = arith.addf %62, %69 : vector<80x3xf32>
    %cst_91 = arith.constant dense<0.000000e+00> : vector<80x3xf32>
    %71 = tpu.matmul %68, %28, %cst_91 {dimension_numbers = #tpu.dot_dimension_numbers<[1], [0], [0], [1], [0, 0, 1, 1], [], []>} : vector<80x16xbf16>, vector<16x3xbf16>, vector<80x3xf32> -> vector<80x3xf32>
    %72 = arith.addf %66, %71 : vector<80x3xf32>
    %c0_92 = arith.constant 0 : index
    %c20 = arith.constant 20 : index
    %c0_93 = arith.constant 0 : index
    %73 = vector.load %arg1[%c0_92, %c20, %c0_93] : memref<1x110x16xbf16, #tpu.memory_space<vmem>>, vector<1x80x16xbf16>
    %74 = vector.shape_cast %73 : vector<1x80x16xbf16> to vector<80x16xbf16>
    %cst_94 = arith.constant dense<0.000000e+00> : vector<80x3xf32>
    %75 = tpu.matmul %74, %22, %cst_94 {dimension_numbers = #tpu.dot_dimension_numbers<[1], [0], [0], [1], [0, 0, 1, 1], [], []>} : vector<80x16xbf16>, vector<16x3xbf16>, vector<80x3xf32> -> vector<80x3xf32>
    %76 = arith.addf %64, %75 : vector<80x3xf32>
    %c0_95 = arith.constant 0 : index
    %c21 = arith.constant 21 : index
    %c0_96 = arith.constant 0 : index
    %77 = vector.load %arg1[%c0_95, %c21, %c0_96] : memref<1x110x16xbf16, #tpu.memory_space<vmem>>, vector<1x80x16xbf16>
    %78 = vector.shape_cast %77 : vector<1x80x16xbf16> to vector<80x16xbf16>
    %cst_97 = arith.constant dense<0.000000e+00> : vector<80x3xf32>
    %79 = tpu.matmul %78, %24, %cst_97 {dimension_numbers = #tpu.dot_dimension_numbers<[1], [0], [0], [1], [0, 0, 1, 1], [], []>} : vector<80x16xbf16>, vector<16x3xbf16>, vector<80x3xf32> -> vector<80x3xf32>
    %80 = arith.addf %76, %79 : vector<80x3xf32>
    %cst_98 = arith.constant dense<0.000000e+00> : vector<80x3xf32>
    %81 = tpu.matmul %78, %30, %cst_98 {dimension_numbers = #tpu.dot_dimension_numbers<[1], [0], [0], [1], [0, 0, 1, 1], [], []>} : vector<80x16xbf16>, vector<16x3xbf16>, vector<80x3xf32> -> vector<80x3xf32>
    %82 = arith.addf %72, %81 : vector<80x3xf32>
    %c0_99 = arith.constant 0 : index
    %c22 = arith.constant 22 : index
    %c0_100 = arith.constant 0 : index
    %83 = vector.load %arg1[%c0_99, %c22, %c0_100] : memref<1x110x16xbf16, #tpu.memory_space<vmem>>, vector<1x80x16xbf16>
    %84 = vector.shape_cast %83 : vector<1x80x16xbf16> to vector<80x16xbf16>
    %cst_101 = arith.constant dense<0.000000e+00> : vector<80x3xf32>
    %85 = tpu.matmul %84, %32, %cst_101 {dimension_numbers = #tpu.dot_dimension_numbers<[1], [0], [0], [1], [0, 0, 1, 1], [], []>} : vector<80x16xbf16>, vector<16x3xbf16>, vector<80x3xf32> -> vector<80x3xf32>
    %86 = arith.addf %82, %85 : vector<80x3xf32>
    %87 = tpu.concatenate %60, %70, %80, %86 in 1 : vector<80x3xf32>, vector<80x3xf32>, vector<80x3xf32>, vector<80x3xf32> -> vector<80x12xf32>
    %88 = vector.broadcast %0 : vector<1x12xf32> to vector<80x12xf32>
    %89 = arith.addf %87, %88 : vector<80x12xf32>
    %90 = vector.extract_strided_slice %89 {offsets = [0, 0], sizes = [8, 12], strides = [1, 1]} : vector<80x12xf32> to vector<8x12xf32>
    %c0_102 = arith.constant 0 : index
    %c0_103 = arith.constant 0 : index
    %c0_104 = arith.constant 0 : index
    %c0_105 = arith.constant 0 : index
    %91 = vector.load %arg4[%c0_102, %c0_103, %c0_104, %c0_105] : memref<1x8x8x12xf32, #tpu.memory_space<vmem>>, vector<1x1x8x12xf32>
    %92 = vector.shape_cast %91 : vector<1x1x8x12xf32> to vector<8x12xf32>
    %93 = vector.shape_cast %90 : vector<8x12xf32> to vector<1x1x8x12xf32>
    tpu.vector_store %arg4[%c0_102, %c0_103, %c0_104, %c0_105], %93 {strides = array<i32>} : memref<1x8x8x12xf32, #tpu.memory_space<vmem>>, vector<1x1x8x12xf32>,
    %94 = vector.extract_strided_slice %89 {offsets = [10, 0], sizes = [8, 12], strides = [1, 1]} : vector<80x12xf32> to vector<8x12xf32>
    %c0_106 = arith.constant 0 : index
    %c1_107 = arith.constant 1 : index
    %c0_108 = arith.constant 0 : index
    %c0_109 = arith.constant 0 : index
    %95 = vector.load %arg4[%c0_106, %c1_107, %c0_108, %c0_109] : memref<1x8x8x12xf32, #tpu.memory_space<vmem>>, vector<1x1x8x12xf32>
    %96 = vector.shape_cast %95 : vector<1x1x8x12xf32> to vector<8x12xf32>
    %97 = vector.shape_cast %94 : vector<8x12xf32> to vector<1x1x8x12xf32>
    tpu.vector_store %arg4[%c0_106, %c1_107, %c0_108, %c0_109], %97 {strides = array<i32>} : memref<1x8x8x12xf32, #tpu.memory_space<vmem>>, vector<1x1x8x12xf32>,
    %98 = vector.extract_strided_slice %89 {offsets = [20, 0], sizes = [8, 12], strides = [1, 1]} : vector<80x12xf32> to vector<8x12xf32>
    %c0_110 = arith.constant 0 : index
    %c2_111 = arith.constant 2 : index
    %c0_112 = arith.constant 0 : index
    %c0_113 = arith.constant 0 : index
    %99 = vector.load %arg4[%c0_110, %c2_111, %c0_112, %c0_113] : memref<1x8x8x12xf32, #tpu.memory_space<vmem>>, vector<1x1x8x12xf32>
    %100 = vector.shape_cast %99 : vector<1x1x8x12xf32> to vector<8x12xf32>
    %101 = vector.shape_cast %98 : vector<8x12xf32> to vector<1x1x8x12xf32>
    tpu.vector_store %arg4[%c0_110, %c2_111, %c0_112, %c0_113], %101 {strides = array<i32>} : memref<1x8x8x12xf32, #tpu.memory_space<vmem>>, vector<1x1x8x12xf32>,
    %102 = vector.extract_strided_slice %89 {offsets = [30, 0], sizes = [8, 12], strides = [1, 1]} : vector<80x12xf32> to vector<8x12xf32>
    %c0_114 = arith.constant 0 : index
    %c3_115 = arith.constant 3 : index
    %c0_116 = arith.constant 0 : index
    %c0_117 = arith.constant 0 : index
    %103 = vector.load %arg4[%c0_114, %c3_115, %c0_116, %c0_117] : memref<1x8x8x12xf32, #tpu.memory_space<vmem>>, vector<1x1x8x12xf32>
    %104 = vector.shape_cast %103 : vector<1x1x8x12xf32> to vector<8x12xf32>
    %105 = vector.shape_cast %102 : vector<8x12xf32> to vector<1x1x8x12xf32>
    tpu.vector_store %arg4[%c0_114, %c3_115, %c0_116, %c0_117], %105 {strides = array<i32>} : memref<1x8x8x12xf32, #tpu.memory_space<vmem>>, vector<1x1x8x12xf32>,
    %106 = vector.extract_strided_slice %89 {offsets = [40, 0], sizes = [8, 12], strides = [1, 1]} : vector<80x12xf32> to vector<8x12xf32>
    %c0_118 = arith.constant 0 : index
    %c4 = arith.constant 4 : index
    %c0_119 = arith.constant 0 : index
    %c0_120 = arith.constant 0 : index
    %107 = vector.load %arg4[%c0_118, %c4, %c0_119, %c0_120] : memref<1x8x8x12xf32, #tpu.memory_space<vmem>>, vector<1x1x8x12xf32>
    %108 = vector.shape_cast %107 : vector<1x1x8x12xf32> to vector<8x12xf32>
    %109 = vector.shape_cast %106 : vector<8x12xf32> to vector<1x1x8x12xf32>
    tpu.vector_store %arg4[%c0_118, %c4, %c0_119, %c0_120], %109 {strides = array<i32>} : memref<1x8x8x12xf32, #tpu.memory_space<vmem>>, vector<1x1x8x12xf32>,
    %110 = vector.extract_strided_slice %89 {offsets = [50, 0], sizes = [8, 12], strides = [1, 1]} : vector<80x12xf32> to vector<8x12xf32>
    %c0_121 = arith.constant 0 : index
    %c5 = arith.constant 5 : index
    %c0_122 = arith.constant 0 : index
    %c0_123 = arith.constant 0 : index
    %111 = vector.load %arg4[%c0_121, %c5, %c0_122, %c0_123] : memref<1x8x8x12xf32, #tpu.memory_space<vmem>>, vector<1x1x8x12xf32>
    %112 = vector.shape_cast %111 : vector<1x1x8x12xf32> to vector<8x12xf32>
    %113 = vector.shape_cast %110 : vector<8x12xf32> to vector<1x1x8x12xf32>
    tpu.vector_store %arg4[%c0_121, %c5, %c0_122, %c0_123], %113 {strides = array<i32>} : memref<1x8x8x12xf32, #tpu.memory_space<vmem>>, vector<1x1x8x12xf32>,
    %114 = vector.extract_strided_slice %89 {offsets = [60, 0], sizes = [8, 12], strides = [1, 1]} : vector<80x12xf32> to vector<8x12xf32>
    %c0_124 = arith.constant 0 : index
    %c6 = arith.constant 6 : index
    %c0_125 = arith.constant 0 : index
    %c0_126 = arith.constant 0 : index
    %115 = vector.load %arg4[%c0_124, %c6, %c0_125, %c0_126] : memref<1x8x8x12xf32, #tpu.memory_space<vmem>>, vector<1x1x8x12xf32>
    %116 = vector.shape_cast %115 : vector<1x1x8x12xf32> to vector<8x12xf32>
    %117 = vector.shape_cast %114 : vector<8x12xf32> to vector<1x1x8x12xf32>
    tpu.vector_store %arg4[%c0_124, %c6, %c0_125, %c0_126], %117 {strides = array<i32>} : memref<1x8x8x12xf32, #tpu.memory_space<vmem>>, vector<1x1x8x12xf32>,
    %118 = vector.extract_strided_slice %89 {offsets = [70, 0], sizes = [8, 12], strides = [1, 1]} : vector<80x12xf32> to vector<8x12xf32>
    %c0_127 = arith.constant 0 : index
    %c7 = arith.constant 7 : index
    %c0_128 = arith.constant 0 : index
    %c0_129 = arith.constant 0 : index
    %119 = vector.load %arg4[%c0_127, %c7, %c0_128, %c0_129] : memref<1x8x8x12xf32, #tpu.memory_space<vmem>>, vector<1x1x8x12xf32>
    %120 = vector.shape_cast %119 : vector<1x1x8x12xf32> to vector<8x12xf32>
    %121 = vector.shape_cast %118 : vector<8x12xf32> to vector<1x1x8x12xf32>
    tpu.vector_store %arg4[%c0_127, %c7, %c0_128, %c0_129], %121 {strides = array<i32>} : memref<1x8x8x12xf32, #tpu.memory_space<vmem>>, vector<1x1x8x12xf32>,
    return
  }
  func.func @transform_0(%arg0: i32) -> (i32, i32, i32) {
    %c0_i32 = arith.constant 0 : i32
    %c0_i32_0 = arith.constant 0 : i32
    %c0_i32_1 = arith.constant 0 : i32
    return %arg0, %c0_i32, %c0_i32_0 : i32, i32, i32
  }
  func.func @transform_1(%arg0: i32) -> (i32, i32, i32, i32) {
    %c0_i32 = arith.constant 0 : i32
    %c0_i32_0 = arith.constant 0 : i32
    %c0_i32_1 = arith.constant 0 : i32
    %c0_i32_2 = arith.constant 0 : i32
    %c0_i32_3 = arith.constant 0 : i32
    return %c0_i32, %c0_i32_0, %c0_i32_1, %c0_i32_2 : i32, i32, i32, i32
  }
  func.func @transform_2(%arg0: i32) -> (i32, i32) {
    %c0_i32 = arith.constant 0 : i32
    %c0_i32_0 = arith.constant 0 : i32
    %c0_i32_1 = arith.constant 0 : i32
    return %c0_i32, %c0_i32_0 : i32, i32
  }
  func.func @transform_3(%arg0: i32) -> (i32, i32, i32, i32) {
    %c0_i32 = arith.constant 0 : i32
    %c0_i32_0 = arith.constant 0 : i32
    %c0_i32_1 = arith.constant 0 : i32
    %c0_i32_2 = arith.constant 0 : i32
    return %arg0, %c0_i32, %c0_i32_0, %c0_i32_1 : i32, i32, i32, i32
  }
}

</mosaic_0001>

<bundles_post_ra>
// kernel: vqvae_forward.11
= control target key start
LH: loop header
LB: loop body
LE: loop exit
PB: predicated region body
PF: predicated region fallthrough
CT: control target
= control target key end

     0   :  { %s1218_s12 = smov 0   ;;  %s1431_s0 = inlined_call_operand.vmem [shape: bf16[2,90,12], index: 0, kind: input, shape index: {}]   ;;  %s1432_s1 = inlined_call_operand.vmem [shape: bf16[4,12,16], index: 1, kind: input, shape index: {}]   ;;  %s1433_s2 = inlined_call_operand.vmem [shape: f32[1,16], index: 2, kind: input, shape index: {}]   ;;  %s1434_s3 = inlined_call_operand.vmem [shape: bf16[2,8,8,16], index: 3, kind: output, shape index: {}]  }
   0x1 LB: > { %s968_s13 = sadd.s32 4294967295, %s1194_s12   ;;  %p972_p0 = scmp.ge.s32.totalorder %s1194_s12, 1  ;;  %s1194_s12 = sphi %s1218_s12, %s13_s12  }
   0x2   : > { %p137_p1 = scmp.lt.s32.totalorder %s1194_s12, 3 }
   0x4   : > { %p138_p2 = pnand %p972_p0, %p137_p1 }
   0x5   : > { %p161_p3 = scmp.lt.s32.totalorder (!%p138_p2), %s968_s13, 1 }
   0x6   : > { %141 = sbr.rel (%p138_p2) target bundleno = 306 (0x132), region = 32 }
   0xb   : > { %vm280_vm0 = vcmask 1045504   ;;  %v1196_v0 = vmov 0.0   ;;  %v1172_v1 = vld [vmem:[%s1432_s1] sm:$0x3f]   ;;  %vm1197_vm1 = vmmov 0   ;;  %s1440_s13 = smov (!%p161_p3, %s968_s13), 1 }
   0xc   : > { %1095 = vmatprep.subr.bf16.mxu1 %v1196_v0  ;;  %1073 = vmatprep.subr.bf16.mxu0 %v1196_v0  ;;  %v1173_v2 = vld [vmem:[%s1432_s1 + $0x8] sm:$0x3f]   ;;  %v374_v3 = vsel %vm280_vm0, %v1172_v1, 0  ;;  %s1161_s18 = smul.u32 48, %s1440_s13  ;;  %v1177_v5 = vld [vmem:[%s1432_s1 + $0x18] sm:$0x3f]  }
   0xd   : > { %1097 = vmatprep.mubr.msk.bf16.mxu1 %vm1197_vm1, %v1196_v0  ;;  %1075 = vmatprep.mubr.msk.bf16.mxu0 %vm1197_vm1, %v1196_v0  ;;  %v282_v4 = vsel %vm280_vm0, %v1173_v2, 0  ;;  %vm264_vm2 = vcmask 97280   ;;  %v661_v7 = vsel %vm280_vm0, %v1177_v5, 0  ;;  %v1176_v12 = vld [vmem:[%s1432_s1 + $0x10] sm:$0x3f]   ;;  %vm630_vm4 = vcmask 1046528  }
   0xe   : > { %1096 = vmatpush3.bf16.msra.mxu1 %v374_v3  ;;  %1074 = vmatpush3.bf16.msra.mxu0 %v282_v4  ;;  %s1251_s23 = scalar_lea.vmem %s1431_s0, %s1161_s18  ;;  %vm219_vm3 = vsmask.f32 7424  ;;  %v543_v19 = vsel %vm280_vm0, %v1176_v12, 0  ;;  %s1040_s28 = sshll.u32 %s1440_s13, 5  ;;  %vm773_vm5 = vcmask 125952   ;;  %vm803_vm8 = vcmask 1042432  }
   0xf   : > { %1139 = vmatprep.subr.bf16.mxu1 %v1196_v0  ;;  %1117 = vmatprep.subr.bf16.mxu0 %v1196_v0  ;;  %v1174_v6 = vld [vmem:[%s1251_s23] sm:$0xff]   ;;  %v1175_v8 = vld [vmem:[%s1251_s23 + $0x8] sm:$0xff]   ;;  %v1178_v13 = vld [vmem:[%s1251_s23 + $0x10] sm:$0xff]   ;;  %s1370_s4 = scalar_lea.vmem %s1434_s3, %s1040_s28  ;;  %vm781_vm6 = vsmask.f32 3328  ;;  %vm804_vm9 = vcmask 1046532  }
  0x10   : > { %v221_v9 = vshrl.u32 %v1174_v6, 16  ;;  %v223_v10 = vshll.u32 %v1174_v6, 16  ;;  %v228_v11 = vshll.u32 %v1175_v8, 16  ;;  %v232_v17 = vshrl.u32 %v1175_v8, 16  ;;  %v1179_v23 = vld [vmem:[%s1251_s23 + $0x18] sm:$0xff]   ;;  %v1183_v43 = vld [vmem:[%s1251_s23 + $0xc] sm:$0xff]   ;;  %vm805_vm11 = vmor %vm803_vm8, %vm804_vm9 }
  0x11   : > { %1098 = vmatmul.mubr.msk.bf16.vlgmr.msra.gmra.mxu1 %vm264_vm2, %v1174_v6  ;;  %v236_v18 = vshll.u32 %v1178_v13, 16  ;;  %v240_v25 = vshrl.u32 %v1178_v13, 16  ;;  %v244_v26 = vshll.u32 %v1179_v23, 16  ;;  %v192_v27 = vld [vmem:[%s1251_s23 + $0x20] sm:$0xf]  ;;  %v248_v33 = vshrl.u32 %v1179_v23, 16 }
  0x12   : > { %1140 = vmatpush3.bf16.msra.mxu1 %v661_v7  ;;  %1101 = vmatprep.mubr.msk.bf16.mxu1 %vm1197_vm1, %v1196_v0  ;;  %v225_v14 = vrot.slane %v223_v10, 1  ;;  %v230_v15 = vrot.slane %v228_v11, 1  ;;  %v193_v28 = vld [vmem:[%s1251_s23 + $0x24] sm:$0x1]  ;;  %v449_v38 = vld [vmem:[%s1251_s23 + $0x8] sm:$0xf]  ;;  %v993_v41 = vcombine.low %v192_v27, %v192_v27 }
  0x13   : > { %v238_v22 = vrot.slane %v236_v18, 1  ;;  %v246_v30 = vrot.slane %v244_v26, 1  ;;  %v986_v31 = vcombine.low %v192_v27, %v193_v28  ;;  %v448_v37 = vld [vmem:[%s1251_s23 + $0x4] sm:$0xf]  ;;  %v632_v48 = vrot.slane %v1183_v43, 1  ;;  %v1185_v54 = vld [vmem:[%s1251_s23 + $0x14] sm:$0xff]  }
  0x14   : > { %v226_v16 = vor.u32 %v225_v14, %v221_v9  ;;  %v234_v21 = vor.u32 %v232_v17, %v230_v15  ;;  %v626_v39 = vld [vmem:[%s1251_s23 + $0x4] sm:$0xe]  ;;  %v1000_v42 = vcombine.low %v448_v37, %v449_v38  ;;  %v491_v52 = vshll.u32 %v1183_v43, 16  ;;  %v1186_v62 = vld [vmem:[%s1251_s23 + $0x1c] sm:$0xff]  }
  0x15   : > { %v242_v29 = vor.u32 %v240_v25, %v238_v22  ;;  %v252_v34 = vshll.u32 %v986_v31, 16  ;;  %v250_v35 = vor.u32 %v248_v33, %v246_v30  ;;  %v1011_v44 = vcombine.low %v626_v39, %v449_v38  ;;  %v1187_v7 = vld [vmem:[%s1251_s23 + $0x24] sm:$0x1f]  }
  0x16   : > { %v231_v20 = vsel %vm219_vm3, %v226_v16, %v230_v15  ;;  %v239_v24 = vsel %vm219_vm3, %v234_v21, %v238_v22  ;;  %v256_v45 = vshrl.u32 %v986_v31, 16  ;;  %v486_v46 = vshll.u32 %v1000_v42, 16 }
  0x17   : > { %1076 = vmatmul.mubr.msk.bf16.vlgmr.msra.gmra.mxu0 %vm264_vm2, %v231_v20  ;;  %v247_v32 = vsel %vm219_vm3, %v242_v29, %v246_v30  ;;  %v254_v36 = vrot.slane %v252_v34, 1  ;;  %v631_v47 = vrot.slane %v1011_v44, 1  ;;  %v484_v50 = vshrl.u32 %v1000_v42, 16 }
  0x18   : > { %1118 = vmatpush3.bf16.msra.mxu0 %v543_v19  ;;  %1079 = vmatprep.mubr.msk.bf16.mxu0 %vm1197_vm1, %v1196_v0  ;;  %v488_v51 = vrot.slane %v486_v46, 1  ;;  %v493_v56 = vrot.slane %v491_v52, 1  ;;  %v634_v57 = vrot.slane %v1185_v54, 1  ;;  %v495_v59 = vshrl.u32 %v1183_v43, 16 }
  0x19   : > { %1102 = vmatmul.mubr.msk.bf16.gmra.mxu1 %vm264_vm2, %v1175_v8  ;;  %v255_v40 = vsel %vm219_vm3, %v250_v35, %v254_v36  ;;  %v258_v49 = vor.u32 %v256_v45, %v254_v36  ;;  %v633_v53 = vsel %vm630_vm4, %v631_v47, %v632_v48  ;;  %v499_v60 = vshll.u32 %v1185_v54, 16 }
  0x1a   : > { %1105 = vmatprep.mubr.msk.bf16.mxu1 %vm1197_vm1, %v1196_v0  ;;  %v489_v55 = vor.u32 %v488_v51, %v484_v50  ;;  %v635_v61 = vsel %vm630_vm4, %v632_v48, %v634_v57  ;;  %v497_v63 = vor.u32 %v495_v59, %v493_v56  ;;  %v636_v2 = vrot.slane %v1186_v62, 1 }
  0x1b   : > { %v501_v1 = vrot.slane %v499_v60, 1  ;;  %v503_v4 = vshrl.u32 %v1185_v54, 16  ;;  %v507_v5 = vshll.u32 %v1186_v62, 16  ;;  %v638_v10 = vrot.slane %v1187_v7, 1 }
  0x1c   : > { %v494_v58 = vsel %vm219_vm3, %v489_v55, %v493_v56  ;;  %v637_v6 = vsel %vm630_vm4, %v634_v57, %v636_v2  ;;  %v511_v12 = vshrl.u32 %v1186_v62, 16  ;;  %v519_v18 = vshrl.u32 %v1187_v7, 16 }
  0x1d   : > { %v502_v3 = vsel %vm219_vm3, %v497_v63, %v501_v1  ;;  %v505_v8 = vor.u32 %v503_v4, %v501_v1  ;;  %v509_v9 = vrot.slane %v507_v5, 1  ;;  %v639_v14 = vsel %vm630_vm4, %v636_v2, %v638_v10 }
  0x1e   : > { %vm782_vm7 = vsmask.f32 7440  ;;  %vm816_vm12 = vsmask.f32 2304  ;;  %vm817_vm13 = vsmask.f32 6416 }
  0x1f   : > { %1080 = vmatmul.mubr.msk.bf16.gmra.mxu0 %vm264_vm2, %v239_v24  ;;  %v510_v11 = vsel %vm219_vm3, %v505_v8, %v509_v9  ;;  %v513_v15 = vor.u32 %v511_v12, %v509_v9  ;;  %v1362_v8 = vld [vmem:[%s1433_s2] ss:$0 sm:$0xff]  ;;  %vm1382_vm10 = vmor %vm781_vm6, %vm782_vm7  ;;  %vm842_vm14 = vcmask 1041408   ;;  %vm843_vm15 = vcmask 1045508  }
  0x20   : > { %1083 = vmatprep.mubr.msk.bf16.mxu0 %vm1197_vm1, %v1196_v0  ;;  %vm855_vm0 = vsmask.f32 1280  ;;  %vm881_vm4 = vcmask 1040384   ;;  %vm882_vm6 = vcmask 1044484   ;;  %vm894_vm9 = vsmask.f32 256 }
  0x21   : > { %1106 = vmatmul.mubr.msk.bf16.gmra.mxu1 %vm264_vm2, %v1178_v13  ;;  %v515_v13 = vshll.u32 %v1187_v7, 16  ;;  %vm883_vm8 = vmor %vm881_vm4, %vm882_vm6 }
  0x22   : > { %1109 = vmatprep.mubr.msk.bf16.mxu1 %vm1197_vm1, %v1196_v0 }
  0x23   : > { %v517_v16 = vrot.slane %v515_v13, 1 }
  0x25   : > { %v518_v17 = vsel %vm219_vm3, %v513_v15, %v517_v16  ;;  %v521_v19 = vor.u32 %v519_v18, %v517_v16  ;;  %vm844_vm3 = vmor %vm842_vm14, %vm843_vm15 }
  0x27   : > { %1084 = vmatmul.mubr.msk.bf16.gmra.mxu0 %vm264_vm2, %v247_v32 }
  0x28   : > { %1087 = vmatprep.mubr.msk.bf16.mxu0 %vm1197_vm1, %v1196_v0 }
  0x29   : > { %1110 = vmatmul.mubr.msk.bf16.gmra.mxu1 %vm264_vm2, %v1179_v23 }
  0x2a   : > { %1113 = vmatprep.mubr.msk.bf16.mxu1 %vm1197_vm1, %v1196_v0 }
  0x2f   : > { %1088 = vmatmul.mubr.msk.bf16.gmra.mxu0 %vm264_vm2, %v255_v40 }
  0x30   : > { %1091 = vmatprep.mubr.msk.bf16.mxu0 %vm1197_vm1, %v1196_v0 }
  0x31   : > { %1114 = vmatmul.mubr.msk.bf16.gmra.mxu1 %vm264_vm2, %v993_v41 }
  0x32   : > { %1141 = vmatprep.mubr.msk.bf16.mxu1 %vm1197_vm1, %v1196_v0 }
  0x37   : > { %1092 = vmatmul.mubr.msk.bf16.gmra.mxu0 %vm264_vm2, %v258_v49 }
  0x38   : > { %1119 = vmatprep.mubr.msk.bf16.mxu0 %vm1197_vm1, %v1196_v0 }
  0x39   : > { %1142 = vmatmul.mubr.msk.bf16.vlgmr.msra.gmra.mxu1 %vm264_vm2, %v633_v53 }
  0x3a   : > { %1145 = vmatprep.mubr.msk.bf16.mxu1 %vm1197_vm1, %v1196_v0 }
  0x3f   : > { %1120 = vmatmul.mubr.msk.bf16.vlgmr.msra.gmra.mxu0 %vm264_vm2, %v494_v58 }
  0x40   : > { %1123 = vmatprep.mubr.msk.bf16.mxu0 %vm1197_vm1, %v1196_v0 }
  0x41   : > { %1146 = vmatmul.mubr.msk.bf16.gmra.mxu1 %vm264_vm2, %v635_v61 }
  0x42   : > { %1149 = vmatprep.mubr.msk.bf16.mxu1 %vm1197_vm1, %v1196_v0 }
  0x47   : > { %1124 = vmatmul.mubr.msk.bf16.gmra.mxu0 %vm264_vm2, %v502_v3 }
  0x48   : > { %1127 = vmatprep.mubr.msk.bf16.mxu0 %vm1197_vm1, %v1196_v0 }
  0x49   : > { %1150 = vmatmul.mubr.msk.bf16.gmra.mxu1 %vm264_vm2, %v637_v6 }
  0x4a   : > { %1153 = vmatprep.mubr.msk.bf16.mxu1 %vm1197_vm1, %v1196_v0 }
  0x4f   : > { %1128 = vmatmul.mubr.msk.bf16.gmra.mxu0 %vm264_vm2, %v510_v11 }
  0x50   : > { %1131 = vmatprep.mubr.msk.bf16.mxu0 %vm1197_vm1, %v1196_v0 }
  0x51   : > { %1154 = vmatmul.mubr.msk.bf16.gmra.mxu1 %vm264_vm2, %v639_v14 }
  0x52   : > { %1157 = vmatprep.mubr.msk.bf16.mxu1 %vm1197_vm1, %v1196_v0 }
  0x57   : > { %1132 = vmatmul.mubr.msk.bf16.gmra.mxu0 %vm264_vm2, %v518_v17 }
  0x58   : > { %1135 = vmatprep.mubr.msk.bf16.mxu0 %vm1197_vm1, %v1196_v0  ;;  %vm856_vm1 = vsmask.f32 5392 }
  0x59   : > { %1158 = vmatmul.mubr.msk.bf16.gmra.mxu1 %vm264_vm2, %v638_v10  ;;  %vm857_vm7 = vmor %vm855_vm0, %vm856_vm1 }
  0x5f   : > { %1136 = vmatmul.mubr.msk.bf16.gmra.mxu0 %vm264_vm2, %v521_v19  ;;  %vm1405_vm2 = vmor %vm816_vm12, %vm817_vm13 }
  0xd1   : > { %v410_v20 = vpop.f32.mrf.mxu1 }
  0xd3   : > { %v1099_v21 = vpop.f32.mrf.mxu1 }
  0xd5   : > { %v413_v22 = vpop.f32.mrf.mxu1 }
  0xd7   : > { %v1100_v23 = vpop.f32.mrf.mxu1  ;;  %v318_v24 = vpop.f32.mrf.mxu0 }
  0xd8   : > { %v411_v62 = vadd.f32 %v410_v20, %v318_v24 }
  0xd9   : > { %v418_v25 = vpop.f32.mrf.mxu1  ;;  %v1077_v26 = vpop.f32.mrf.mxu0 }
  0xdb   : > { %v1103_v27 = vpop.f32.mrf.mxu1  ;;  %v321_v28 = vpop.f32.mrf.mxu0 }
  0xdc   : > { %v414_v5 = vadd.f32 %v413_v22, %v321_v28 }
  0xdd   : > { %v421_v29 = vpop.f32.mrf.mxu1  ;;  %v1078_v30 = vpop.f32.mrf.mxu0 }
  0xdf   : > { %v1104_v31 = vpop.f32.mrf.mxu1  ;;  %v326_v32 = vpop.f32.mrf.mxu0 }
  0xe0   : > { %v419_v13 = vadd.f32 %v418_v25, %v326_v32 }
  0xe1   : > { %v1339_v33 = vpop.f32.mrf.mxu1  ;;  %v1081_v34 = vpop.f32.mrf.mxu0 }
  0xe3   : > { %v1107_v0 = vpop.f32.mrf.mxu1  ;;  %v329_v35 = vpop.f32.mrf.mxu0 }
  0xe4   : > { %v422_v22 = vadd.f32 %v421_v29, %v329_v35 }
  0xe5   : > { %v1341_v36 = vpop.f32.mrf.mxu1  ;;  %v1082_v37 = vpop.f32.mrf.mxu0 }
  0xe7   : > { %v1108_v38 = vpop.f32.mrf.mxu1  ;;  %v1343_v39 = vpop.f32.mrf.mxu0 }
  0xe9   : > { %v1345_v40 = vpop.f32.mrf.mxu1  ;;  %v1085_v41 = vpop.f32.mrf.mxu0 }
  0xeb   : > { %v1111_v42 = vpop.f32.mrf.mxu1  ;;  %v1347_v43 = vpop.f32.mrf.mxu0 }
  0xec   : > { %v427_v42 = vadd.f32 %v1339_v33, %v1343_v39 }
  0xed   : > { %v1349_v44 = vpop.f32.mrf.mxu1  ;;  %v1086_v45 = vpop.f32.mrf.mxu0 }
  0xef   : > { %v1112_v46 = vpop.f32.mrf.mxu1  ;;  %v1351_v47 = vpop.f32.mrf.mxu0 }
  0xf1   : > { %v1353_v48 = vpop.f32.mrf.mxu1  ;;  %v1089_v49 = vpop.f32.mrf.mxu0 }
  0xf3   : > { %v1115_v50 = vpop.f32.mrf.mxu1  ;;  %v1355_v51 = vpop.f32.mrf.mxu0 }
  0xf5   : > { %v445_v52 = vpop.f32.mrf.mxu1  ;;  %v1090_v53 = vpop.f32.mrf.mxu0 }
  0xf7   : > { %v1116_v54 = vpop.f32.mrf.mxu1  ;;  %v1357_v55 = vpop.f32.mrf.mxu0 }
  0xf9   : > { %v697_v56 = vpop.f32.mrf.mxu1  ;;  %v1093_v57 = vpop.f32.mrf.mxu0 }
  0xfa   : > { %v430_v57 = vadd.f32 %v1341_v36, %v1347_v43  ;;  %v435_v36 = vadd.f32 %v1345_v40, %v1351_v47 }
  0xfb   : > { %v1143_v58 = vpop.f32.mrf.mxu1  ;;  %v353_v59 = vpop.f32.mrf.mxu0 }
  0xfd   : > { %v700_v60 = vpop.f32.mrf.mxu1  ;;  %v1094_v61 = vpop.f32.mrf.mxu0 }
  0xff   : > { %v1144_v63 = vpop.f32.mrf.mxu1  ;;  %v579_v1 = vpop.f32.mrf.mxu0 }
 0x100   : > { %v617_v2 = vadd.f32 %v579_v1, %v411_v62 }
 0x101   : > { %v705_v3 = vpop.f32.mrf.mxu1  ;;  %v1121_v4 = vpop.f32.mrf.mxu0 }
 0x102   : > { %v735_v6 = vadd.f32 %v697_v56, %v617_v2 }
 0x103   : > { %v1147_v7 = vpop.f32.mrf.mxu1  ;;  %v582_v9 = vpop.f32.mrf.mxu0 }
 0x104   : > { %v618_v10 = vadd.f32 %v582_v9, %v414_v5  ;;  %v750_v14 = vadd.f32 %v1362_v8, %v735_v6 }
 0x105   : > { %v708_v11 = vpop.f32.mrf.mxu1  ;;  %v1122_v12 = vpop.f32.mrf.mxu0 }
 0x106   : > { %v736_v15 = vadd.f32 %v700_v60, %v618_v10  ;;  %v759_v23 = vmax.f32 %v750_v14, 0.0 }
 0x107   : > { %v1148_v16 = vpop.f32.mrf.mxu1  ;;  %v587_v17 = vpop.f32.mrf.mxu0 }
 0x108   : > { %v751_v18 = vadd.f32 %v1362_v8, %v736_v15  ;;  %v619_v19 = vadd.f32 %v587_v17, %v419_v13 }
 0x109   : > { %v713_v20 = vpop.f32.mrf.mxu1  ;;  %v1125_v21 = vpop.f32.mrf.mxu0 }
 0x10a   : > { %v760_v24 = vmax.f32 %v751_v18, 0.0  ;;  %v737_v26 = vadd.f32 %v705_v3, %v619_v19 }
 0x10b   : > { %v1151_v27 = vpop.f32.mrf.mxu1  ;;  %v590_v25 = vpop.f32.mrf.mxu0 }
 0x10c   : > { %v768_v28 = vpack.c.bf16 %v760_v24, %v759_v23  ;;  %v1041_v30 = vpack.c.bf16 %v760_v24, %v760_v24  ;;  %v752_v31 = vadd.f32 %v1362_v8, %v737_v26  ;;  %v620_v32 = vadd.f32 %v590_v25, %v422_v22 }
 0x10d   : > { %v716_v34 = vpop.f32.mrf.mxu1  ;;  %v1126_v0 = vpop.f32.mrf.mxu0  ;;  %v438_v22 = vadd.f32 %v1349_v44, %v1355_v51 }
 0x10e   : > { %774 = vst.msk [vmem:[%s1370_s4] sm:$0xf] %vm773_vm5, %v768_v28  ;;  %v785_v29 = vshrl.u32 %v1041_v30, 16  ;;  %v788_v35 = vshll.u32 %v1041_v30, 16  ;;  %v761_v37 = vmax.f32 %v752_v31, 0.0  ;;  %v738_v38 = vadd.f32 %v708_v11, %v620_v32 }
 0x10f   : > { %v1152_v41 = vpop.f32.mrf.mxu1  ;;  %v595_v45 = vpop.f32.mrf.mxu0  ;;  %v443_v0 = vadd.f32 %v1353_v48, %v1357_v55 }
 0x110   : > { %v787_v46 = vrot.slane %v785_v29, 4  ;;  %v790_v49 = vrot.slane %v788_v35, 5  ;;  %v1042_v50 = vpack.c.bf16 %v761_v37, %v761_v37  ;;  %v753_v52 = vadd.f32 %v1362_v8, %v738_v38 }
 0x111   : > { %v721_v53 = vpop.f32.mrf.mxu1  ;;  %v621_v54 = vadd.f32 %v595_v45, %v427_v42  ;;  %v1129_v56 = vpop.f32.mrf.mxu0 }
 0x112   : > { %v791_v58 = vor.u32 %v790_v49, %v787_v46  ;;  %v794_v59 = vshll.u32 %v1042_v50, 16  ;;  %v762_v60 = vmax.f32 %v753_v52, 0.0  ;;  %v1023_v43 = vrot.slane %v1042_v50, 9 }
 0x113   : > { %v1155_v33 = vpop.f32.mrf.mxu1  ;;  %v739_v61 = vadd.f32 %v713_v20, %v621_v54  ;;  %v598_v62 = vpop.f32.mrf.mxu0 }
 0x114   : > { %v792_v63 = vrot.slane %v791_v58, 4  ;;  %v796_v1 = vrot.slane %v794_v59, 5  ;;  %v1043_v2 = vpack.c.bf16 %v762_v60, %v762_v60  ;;  %v622_v3 = vadd.f32 %v598_v62, %v430_v57 }
 0x115   : > { %v724_v4 = vpop.f32.mrf.mxu1  ;;  %v754_v5 = vadd.f32 %v1362_v8, %v739_v61  ;;  %v1130_v6 = vpop.f32.mrf.mxu0 }
 0x116   : > { %v797_v7 = vsel %vm1382_vm10, %v792_v63, %v796_v1  ;;  %v808_v9 = vrot.slane %v1043_v2, 5  ;;  %v820_v10 = vshrl.u32 %v1043_v2, 16  ;;  %v823_v11 = vshll.u32 %v1043_v2, 16 }
 0x117   : > { %v1156_v12 = vpop.f32.mrf.mxu1  ;;  %1021 = vst.msk [vmem:[%s1370_s4 + $0x4] sm:$0xf] %vm773_vm5, %v797_v7  ;;  %v763_v13 = vmax.f32 %v754_v5, 0.0  ;;  %v740_v14 = vadd.f32 %v716_v34, %v622_v3  ;;  %v603_v40 = vpop.f32.mrf.mxu0  ;;  %vm895_vm10 = vsmask.f32 4368 }
 0x118   : > { %v809_v47 = vsel %vm805_vm11, %v1023_v43, %v808_v9  ;;  %v822_v15 = vrot.slane %v820_v10, 5  ;;  %v825_v16 = vrot.slane %v823_v11, 6  ;;  %v623_v17 = vadd.f32 %v603_v40, %v435_v36  ;;  %vm896_vm11 = vmor %vm894_vm9, %vm895_vm10 }
 0x119   : > { %v729_v18 = vpop.f32.mrf.mxu1  ;;  %1024 = vst.msk [vmem:[%s1370_s4 + $0x8] sm:$0xf] %vm773_vm5, %v809_v47  ;;  %v1044_v19 = vpack.c.bf16 %v763_v13, %v763_v13  ;;  %v755_v20 = vadd.f32 %v1362_v8, %v740_v14  ;;  %v1133_v21 = vpop.f32.mrf.mxu0 }
 0x11a   : > { %v826_v23 = vor.u32 %v825_v16, %v822_v15  ;;  %v741_v24 = vadd.f32 %v721_v53, %v623_v17 }
 0x11b   : > { %v1159_v26 = vpop.f32.mrf.mxu1  ;;  %v829_v27 = vshrl.u32 %v1044_v19, 16  ;;  %v832_v25 = vshll.u32 %v1044_v19, 16  ;;  %v764_v28 = vmax.f32 %v755_v20, 0.0  ;;  %v606_v30 = vpop.f32.mrf.mxu0  ;;  %v1028_v41 = vrot.slane %v1044_v19, 10 }
 0x11c   : > { %v756_v31 = vadd.f32 %v1362_v8, %v741_v24  ;;  %v624_v32 = vadd.f32 %v606_v30, %v438_v22  ;;  %v827_v38 = vrot.slane %v826_v23, 4 }
 0x11d   : > { %v732_v34 = vpop.f32.mrf.mxu1  ;;  %v831_v51 = vrot.slane %v829_v27, 5  ;;  %v834_v29 = vrot.slane %v832_v25, 6  ;;  %v1045_v35 = vpack.c.bf16 %v764_v28, %v764_v28  ;;  %v1134_v37 = vpop.f32.mrf.mxu0 }
 0x11e   : > { %v765_v42 = vmax.f32 %v756_v31, 0.0  ;;  %v742_v45 = vadd.f32 %v724_v4, %v624_v32 }
 0x11f   : > { %v1160_v46 = vpop.f32.mrf.mxu1  ;;  %v835_v48 = vor.u32 %v834_v29, %v831_v51  ;;  %v847_v55 = vrot.slane %v1045_v35, 6  ;;  %v859_v49 = vshrl.u32 %v1045_v35, 16  ;;  %v862_v50 = vshll.u32 %v1045_v35, 16  ;;  %v611_v52 = vpop.f32.mrf.mxu0 }
 0x120   : > { %v1046_v53 = vpack.c.bf16 %v765_v42, %v765_v42  ;;  %v757_v54 = vadd.f32 %v1362_v8, %v742_v45  ;;  %v625_v56 = vadd.f32 %v611_v52, %v443_v0 }
 0x121   : > { %v836_v57 = vsel %vm1405_vm2, %v827_v38, %v835_v48  ;;  %v848_v58 = vsel %vm844_vm3, %v1028_v41, %v847_v55  ;;  %v861_v59 = vrot.slane %v859_v49, 6  ;;  %v864_v60 = vrot.slane %v862_v50, 7  ;;  %v1137_v33 = vpop.f32.mrf.mxu0 }
 0x122   : > { %1026 = vst.msk [vmem:[%s1370_s4 + $0xc] sm:$0xf] %vm773_vm5, %v836_v57  ;;  %1029 = vst.msk [vmem:[%s1370_s4 + $0x10] sm:$0xf] %vm773_vm5, %v848_v58  ;;  %v868_v39 = vshrl.u32 %v1046_v53, 16  ;;  %v871_v61 = vshll.u32 %v1046_v53, 16  ;;  %v743_v1 = vadd.f32 %v729_v18, %v625_v56 }
 0x123   : > { %v766_v62 = vmax.f32 %v757_v54, 0.0  ;;  %v865_v63 = vor.u32 %v864_v60, %v861_v59  ;;  %v614_v2 = vpop.f32.mrf.mxu0  ;;  %v1033_v9 = vrot.slane %v1046_v53, 11 }
 0x124   : > { %v870_v3 = vrot.slane %v868_v39, 6  ;;  %v873_v4 = vrot.slane %v871_v61, 7  ;;  %v758_v43 = vadd.f32 %v1362_v8, %v743_v1 }
 0x125   : > { %v1047_v36 = vpack.c.bf16 %v766_v62, %v766_v62  ;;  %v1138_v5 = vpop.f32.mrf.mxu0  ;;  %v866_v6 = vrot.slane %v865_v63, 4 }
 0x126   : > { %v874_v7 = vor.u32 %v873_v4, %v870_v3  ;;  %v767_v11 = vmax.f32 %v758_v43, 0.0 }
 0x127   : > { %v886_v10 = vrot.slane %v1047_v36, 7  ;;  %v898_v40 = vshrl.u32 %v1047_v36, 16 }
 0x128   : > { %v875_v12 = vsel %vm857_vm7, %v866_v6, %v874_v7  ;;  %v1048_v14 = vpack.c.bf16 %v767_v11, %v767_v11 }
 0x129   : > { %v887_v13 = vsel %vm883_vm8, %v1033_v9, %v886_v10  ;;  %1031 = vst.msk [vmem:[%s1370_s4 + $0x14] sm:$0xf] %vm773_vm5, %v875_v12  ;;  %v1036_v16 = vrot.slane %v898_v40, 11 }
 0x12a   : > { %1034 = vst.msk [vmem:[%s1370_s4 + $0x18] sm:$0xf] %vm773_vm5, %v887_v13  ;;  %v903_v47 = vshrl.u32 %v1048_v14, 16  ;;  %v906_v8 = vshll.u32 %v1048_v14, 16 }
 0x12c   : > { %v905_v15 = vrot.slane %v903_v47, 7 }
 0x12e   : > { %v908_v17 = vor.u32 %v906_v8, %v905_v15 }
 0x130   : > { %v909_v18 = vsel %vm896_vm11, %v1036_v16, %v908_v17 }
 0x131   : > { %1037 = vst.msk [vmem:[%s1370_s4 + $0x1c] sm:$0xf] %vm773_vm5, %v909_v18 }
 0x132 PF: > { %s13_s12 = sadd.s32 1, %s1194_s12  }
 0x133   : > { %p10_p4 = scmp.ge.s32.totalorder %s13_s12, 4  }
 0x135   :  { %12 = sbr.rel (!%p10_p4) target bundleno = 1 (0x1), region = 72 }

// kernel: vqvae_forward.12
= control target key start
LH: loop header
LB: loop body
LE: loop exit
PB: predicated region body
PF: predicated region fallthrough
CT: control target
= control target key end

     0   :  { %s961_s12 = smov 0   ;;  %s1062_s0 = inlined_call_operand.vmem [shape: bf16[2,30,64], index: 0, kind: input, shape index: {}]   ;;  %s1063_s1 = inlined_call_operand.vmem [shape: bf16[4,64,32], index: 1, kind: input, shape index: {}]   ;;  %s1064_s2 = inlined_call_operand.vmem [shape: f32[1,32], index: 2, kind: input, shape index: {}]   ;;  %s1065_s3 = inlined_call_operand.vmem [shape: bf16[2,4,4,32], index: 3, kind: output, shape index: {}]  }
   0x1 LB: > { %s755_s13 = sadd.s32 4294967295, %s938_s12   ;;  %p759_p0 = scmp.ge.s32.totalorder %s938_s12, 1  ;;  %s938_s12 = sphi %s961_s12, %s13_s12  }
   0x2   : > { %p137_p1 = scmp.lt.s32.totalorder %s938_s12, 3 }
   0x4   : > { %p138_p2 = pnand %p759_p0, %p137_p1 }
   0x5   : > { %p161_p3 = scmp.lt.s32.totalorder (!%p138_p2), %s755_s13, 1 }
   0x6   : > { %141 = sbr.rel (%p138_p2) target bundleno = 267 (0x10b), region = 32 }
   0xb   : > { %v910_v0 = vld [vmem:[%s1063_s1 + $0x38] sm:$0xff]   ;;  %v912_v2 = vld [vmem:[%s1063_s1 + $0x30] sm:$0xff]   ;;  %s1067_s13 = smov (!%p161_p3, %s755_s13), 1  ;;  %v914_v4 = vld [vmem:[%s1063_s1 + $0x28] sm:$0xff]   ;;  %vm260_vm0 = vcmask 523264   ;;  %vm512_vm2 = vcmask 1044480   ;;  %v618_v61 = vlaneseq }
   0xc   : > { %v911_v1 = vld [vmem:[%s1063_s1 + $0x18] sm:$0xff]   ;;  %853 = vmatprep.subr.bf16.mxu0 %v910_v0  ;;  %v913_v3 = vld [vmem:[%s1063_s1 + $0x10] sm:$0xff]   ;;  %s827_s24 = sshll.u32 %s1067_s13, 4  ;;  %v915_v5 = vld [vmem:[%s1063_s1 + $0x8] sm:$0xff]   ;;  %vm220_vm1 = vsmask.f32 7424 }
   0xd   : > { %865 = vmatprep.subr.bf16.mxu1 %v911_v1  ;;  %854 = vmatpush3.bf16.msra.mxu0 %v910_v0  ;;  %s993_s29 = scalar_lea.vmem %s1062_s0, %s827_s24  ;;  %v916_v6 = vld [vmem:[%s1063_s1 + $0x20] sm:$0xff]   ;;  %v921_v10 = vld [vmem:[%s1063_s1 + $0x58] sm:$0xff]   ;;  %v923_v21 = vld [vmem:[%s1063_s1 + $0x50] sm:$0xff]   ;;  %vm409_vm3 = vsmask.f32 5376  ;;  %vm655_vm4 = vcmask 1040384  }
   0xe   : > { %866 = vmatpush3.bf16.msra.mxu1 %v911_v1  ;;  %855 = vmatprep.subr.bf16.mxu0 %v912_v2  ;;  %v917_v7 = vld [vmem:[%s1063_s1] sm:$0xff]   ;;  %v919_v9 = vld [vmem:[%s993_s29 + $0x8] ss:$0 sps:$4 sm:$0x77]   ;;  %v922_v18 = vld [vmem:[%s1063_s1 + $0x78] sm:$0xff]   ;;  %vm656_vm5 = vcmask 1042434  }
   0xf   : > { %867 = vmatprep.subr.bf16.mxu1 %v913_v3  ;;  %v918_v8 = vld [vmem:[%s993_s29] sm:$0xff]   ;;  %v229_v13 = vshll.u32 %v919_v9, 16  ;;  %v233_v14 = vshrl.u32 %v919_v9, 16  ;;  %v920_v17 = vld [vmem:[%s993_s29 + $0x8] ss:$0 sps:$4 sm:$0x33]   ;;  %vm657_vm6 = vmor %vm655_vm4, %vm656_vm5 }
  0x10   : > { %v222_v11 = vshrl.u32 %v918_v8, 16  ;;  %v224_v12 = vshll.u32 %v918_v8, 16  ;;  %873 = vmatprep.mubr.msk.bf16.mxu1 %vm260_vm0, %v918_v8  ;;  %v924_v23 = vld [vmem:[%s1063_s1 + $0x70] sm:$0xff]   ;;  %v395_v24 = vld [vmem:[%s993_s29] sm:$0xc]  ;;  %v925_v28 = vld [vmem:[%s1063_s1 + $0x48] sm:$0xff]  }
  0x11   : > { %856 = vmatpush3.bf16.msra.mxu0 %v912_v2  ;;  %v231_v16 = vrot.slane %v229_v13, 1  ;;  %v396_v25 = vld [vmem:[%s993_s29 + $0x4] sm:$0xf]  ;;  %v930_v27 = vld [vmem:[%s993_s29 + $0x8] sm:$0x1f]   ;;  %s828_s27 = sshll.u32 %s1067_s13, 3 }
  0x12   : > { %868 = vmatpush3.bf16.msra.mxu1 %v913_v3  ;;  %857 = vmatprep.subr.bf16.mxu0 %v914_v4  ;;  %v226_v15 = vrot.slane %v224_v12, 1  ;;  %v803_v26 = vcombine.low %v395_v24, %v396_v25  ;;  %v926_v29 = vld [vmem:[%s1063_s1 + $0x68] sm:$0xff]   ;;  %v508_v30 = vld [vmem:[%s993_s29] sm:$0x8]  ;;  %v419_v33 = vshrl.u32 %v930_v27, 16  ;;  %v422_v34 = vshll.u32 %v930_v27, 16  ;;  %s1049_s30 = scalar_lea.vmem %s1065_s3, %s828_s27 }
  0x13   : > { %869 = vmatprep.subr.bf16.mxu1 %v915_v5  ;;  %v235_v20 = vor.u32 %v233_v14, %v231_v16  ;;  %v811_v35 = vcombine.low %v508_v30, %v396_v25  ;;  %v514_v36 = vrot.slane %v930_v27, 3  ;;  %v927_v41 = vld [vmem:[%s1063_s1 + $0x40] sm:$0xff]   ;;  %v940_v59 = vmov 1983009808  }
  0x14   : > { %v227_v19 = vor.u32 %v226_v15, %v222_v11  ;;  %v411_v31 = vshrl.u32 %v803_v26, 16  ;;  %v414_v32 = vshll.u32 %v803_v26, 16  ;;  %v421_v39 = vrot.slane %v419_v33, 2  ;;  %v928_v42 = vld [vmem:[%s1063_s1 + $0x60] sm:$0xff]  }
  0x15   : > { %858 = vmatpush3.bf16.msra.mxu0 %v914_v4  ;;  %v424_v40 = vrot.slane %v422_v34, 3  ;;  %v513_v43 = vrot.slane %v811_v35, 3  ;;  %v616_v60 = vunpack.c.l.s4 %v940_v59  ;;  %v818_v0 = vld [vmem:[%s1064_s2] ss:$0 sm:$0xff]  ;;  %vm658_vm7 = vcmask 1044484  }
  0x16   : > { %870 = vmatpush3.bf16.msra.mxu1 %v915_v5  ;;  %859 = vmatprep.subr.bf16.mxu0 %v916_v6  ;;  %v232_v22 = vsel %vm220_vm1, %v227_v19, %v231_v16  ;;  %v413_v37 = vrot.slane %v411_v31, 2  ;;  %v416_v38 = vrot.slane %v414_v32, 3  ;;  %vm611_vm8 = vcmask 254976   ;;  %vm659_vm13 = vmor %vm657_vm6, %vm658_vm7 }
  0x17   : > { %871 = vmatprep.subr.bf16.mxu1 %v917_v7  ;;  %861 = vmatprep.mubr.msk.bf16.mxu0 %vm260_vm0, %v232_v22  ;;  %v425_v45 = vor.u32 %v424_v40, %v421_v39  ;;  %v515_v46 = vsel %vm512_vm2, %v513_v43, %v514_v36  ;;  %v617_v5 = vunpack.c.0.s8 %v616_v60  ;;  %vm677_vm9 = vsmask.f32 256 }
  0x18   : > { %v417_v44 = vor.u32 %v416_v38, %v413_v37  ;;  %vm678_vm10 = vsmask.f32 2312  ;;  %vm630_vm11 = vsmask.f32 1280  ;;  %vm631_vm12 = vsmask.f32 3336 }
  0x19   : > { %860 = vmatpush3.bf16.msra.mxu0 %v916_v6  ;;  %v619_v6 = vshrl.u32 %v618_v61, 7  ;;  %vm660_vm14 = vcmask 1046534   ;;  %vm679_vm15 = vmor %vm677_vm9, %vm678_vm10  ;;  %vm633_vm2 = vsmask.f32 5392  ;;  %vm682_vm5 = vsmask.f32 6424 }
  0x1a   : > { %872 = vmatpush3.bf16.msra.mxu1 %v917_v7  ;;  %877 = vmatprep.subr.bf16.mxu0 %v921_v10  ;;  %v426_v47 = vsel %vm409_vm3, %v417_v44, %v425_v45  ;;  %vm632_vm1 = vmor %vm630_vm11, %vm631_vm12  ;;  %vm635_vm7 = vsmask.f32 7448 }
  0x1b   : > { %889 = vmatprep.subr.bf16.mxu1 %v922_v18  ;;  %v620_v15 = vsub.s32 %v617_v5, %v619_v6  ;;  %vm661_vm3 = vmor %vm659_vm13, %vm660_vm14 }
  0x1c   : > { %862 = vmatmul.mubr.msk.bf16.vlgmr.msra.gmra.mxu0 %vm260_vm0, %v235_v20  ;;  %vm634_vm6 = vmor %vm632_vm1, %vm633_vm2 }
  0x1d   : > { %874 = vmatmul.mubr.msk.bf16.vlgmr.msra.gmra.mxu1 %vm260_vm0, %v920_v17  ;;  %878 = vmatpush3.bf16.msra.mxu0 %v921_v10  ;;  %vm636_vm10 = vmor %vm634_vm6, %vm635_vm7 }
  0x1e   : > { %890 = vmatpush3.bf16.msra.mxu1 %v922_v18  ;;  %879 = vmatprep.subr.bf16.mxu0 %v923_v21 }
  0x1f   : > { %891 = vmatprep.subr.bf16.mxu1 %v924_v23  ;;  %885 = vmatprep.mubr.msk.bf16.mxu0 %vm260_vm0, %v426_v47 }
  0x20   : > { %897 = vmatprep.mubr.msk.bf16.mxu1 %vm260_vm0, %v515_v46 }
  0x21   : > { %880 = vmatpush3.bf16.msra.mxu0 %v923_v21 }
  0x22   : > { %892 = vmatpush3.bf16.msra.mxu1 %v924_v23  ;;  %881 = vmatprep.subr.bf16.mxu0 %v925_v28 }
  0x23   : > { %893 = vmatprep.subr.bf16.mxu1 %v926_v29 }
  0x25   : > { %882 = vmatpush3.bf16.msra.mxu0 %v925_v28 }
  0x26   : > { %894 = vmatpush3.bf16.msra.mxu1 %v926_v29  ;;  %883 = vmatprep.subr.bf16.mxu0 %v927_v41 }
  0x27   : > { %895 = vmatprep.subr.bf16.mxu1 %v928_v42 }
  0x29   : > { %884 = vmatpush3.bf16.msra.mxu0 %v927_v41 }
  0x2a   : > { %896 = vmatpush3.bf16.msra.mxu1 %v928_v42 }
  0x2c   : > { %886 = vmatmul.mubr.msk.bf16.vlgmr.msra.gmra.mxu0 %vm260_vm0, %v425_v45 }
  0x2d   : > { %898 = vmatmul.mubr.msk.bf16.vlgmr.msra.gmra.mxu1 %vm260_vm0, %v514_v36  ;;  %vm680_vm0 = vsmask.f32 4368 }
  0x2e   : > { %vm681_vm4 = vmor %vm679_vm15, %vm680_vm0 }
  0x2f   : > { %vm683_vm9 = vmor %vm681_vm4, %vm682_vm5 }
  0xdc   : > { %v863_v48 = vpop.f32.mrf.mxu0 }
  0xdd   : > { %v875_v49 = vpop.f32.mrf.mxu1 }
  0xde   : > { %v301_v50 = vpop.f32.mrf.mxu0  ;;  %v390_v56 = vadd.f32 %v875_v49, %v863_v48 }
  0xdf   : > { %v381_v51 = vpop.f32.mrf.mxu1 }
  0xe0   : > { %v864_v52 = vpop.f32.mrf.mxu0  ;;  %v382_v62 = vadd.f32 %v381_v51, %v301_v50 }
  0xe1   : > { %v876_v53 = vpop.f32.mrf.mxu1 }
  0xe2   : > { %v304_v54 = vpop.f32.mrf.mxu0 }
  0xe3   : > { %v384_v55 = vpop.f32.mrf.mxu1 }
  0xe4   : > { %v385_v9 = vadd.f32 %v384_v55, %v304_v54 }
  0xec   : > { %v887_v57 = vpop.f32.mrf.mxu0 }
  0xed   : > { %v899_v58 = vpop.f32.mrf.mxu1  ;;  %v507_v63 = vadd.f32 %v887_v57, %v390_v56 }
  0xee   : > { %v491_v1 = vpop.f32.mrf.mxu0 }
  0xef   : > { %v580_v2 = vpop.f32.mrf.mxu1  ;;  %v596_v3 = vadd.f32 %v899_v58, %v507_v63  ;;  %v505_v4 = vadd.f32 %v491_v1, %v382_v62 }
  0xf0   : > { %v888_v7 = vpop.f32.mrf.mxu0 }
  0xf1   : > { %v900_v8 = vpop.f32.mrf.mxu1  ;;  %v605_v10 = vadd.f32 %v818_v0, %v596_v3  ;;  %v594_v11 = vadd.f32 %v580_v2, %v505_v4 }
  0xf2   : > { %v494_v12 = vpop.f32.mrf.mxu0 }
  0xf3   : > { %v608_v13 = vmax.f32 %v605_v10, 0.0  ;;  %v506_v14 = vadd.f32 %v494_v12, %v385_v9  ;;  %v583_v16 = vpop.f32.mrf.mxu1  ;;  %v603_v18 = vadd.f32 %v818_v0, %v594_v11 }
  0xf5   : > { %v610_v17 = vpack.c.bf16 %v608_v13, %v608_v13  ;;  %v595_v19 = vadd.f32 %v583_v16, %v506_v14  ;;  %v606_v22 = vmax.f32 %v603_v18, 0.0 }
  0xf7   : > { %v604_v20 = vadd.f32 %v818_v0, %v595_v19  ;;  %v676_v21 = vrot.slane %v610_v17, %v620_v15 }
  0xf9   : > { %v607_v23 = vmax.f32 %v604_v20, 0.0  ;;  %v690_v26 = vshrl.u32 %v676_v21, 16  ;;  %v693_v36 = vshll.u32 %v676_v21, 16 }
  0xfb   : > { %v609_v24 = vpack.c.bf16 %v607_v23, %v606_v22  ;;  %v819_v25 = vpack.c.bf16 %v607_v23, %v607_v23  ;;  %v692_v31 = vrot.slane %v690_v26, 7 }
  0xfd   : > { %612 = vst.msk [vmem:[%s1049_s30] sm:$0x3] %vm611_vm8, %v609_v24  ;;  %v621_v27 = vrot.slane %v609_v24, %v620_v15  ;;  %v628_v28 = vrot.slane %v819_v25, %v620_v15  ;;  %v695_v42 = vor.u32 %v693_v36, %v692_v31 }
  0xff   : > { %v629_v29 = vcombine.high %v621_v27, %v621_v27  ;;  %v654_v30 = vcombine.high %v628_v28, %v628_v28  ;;  %v821_v34 = vrot.slane %v628_v28, 9  ;;  %v647_v40 = vshll.u32 %v628_v28, 16 }
 0x101   : > { %v638_v32 = vshrl.u32 %v629_v29, 16  ;;  %v641_v33 = vshll.u32 %v629_v29, 16  ;;  %v664_v35 = vrot.slane %v654_v30, 7  ;;  %v685_v37 = vshrl.u32 %v654_v30, 16 }
 0x102   : > { %v649_v47 = vrot.slane %v647_v40, 7 }
 0x103   : > { %v640_v38 = vrot.slane %v638_v32, 6  ;;  %v643_v39 = vrot.slane %v641_v33, 7  ;;  %v665_v41 = vsel %vm661_vm3, %v821_v34, %v664_v35  ;;  %v823_v43 = vrot.slane %v685_v37, 9 }
 0x104   : > { %822 = vst.msk [vmem:[%s1049_s30 + $0x4] sm:$0x3] %vm611_vm8, %v665_v41 }
 0x105   : > { %v644_v44 = vor.u32 %v643_v39, %v640_v38  ;;  %v696_v45 = vsel %vm683_vm9, %v823_v43, %v695_v42 }
 0x106   : > { %824 = vst.msk [vmem:[%s1049_s30 + $0x6] sm:$0x3] %vm611_vm8, %v696_v45 }
 0x107   : > { %v645_v46 = vrot.slane %v644_v44, 2 }
 0x109   : > { %v650_v48 = vsel %vm636_vm10, %v645_v46, %v649_v47 }
 0x10a   : > { %820 = vst.msk [vmem:[%s1049_s30 + $0x2] sm:$0x3] %vm611_vm8, %v650_v48 }
 0x10b PF: > { %s13_s12 = sadd.s32 1, %s938_s12  }
 0x10c   : > { %p10_p4 = scmp.ge.s32.totalorder %s13_s12, 4  }
 0x10e   :  { %12 = sbr.rel (!%p10_p4) target bundleno = 1 (0x1), region = 68 }

// kernel: vqvae_forward.13
= control target key start
LH: loop header
LB: loop body
LE: loop exit
PB: predicated region body
PF: predicated region fallthrough
CT: control target
= control target key end

     0   :  { %s1353_s12 = smov 0   ;;  %s1509_s0 = inlined_call_operand.vmem [shape: bf16[2,42,32], index: 0, kind: input, shape index: {}]   ;;  %s1510_s1 = inlined_call_operand.vmem [shape: bf16[9,32,32], index: 1, kind: input, shape index: {}]   ;;  %s1511_s2 = inlined_call_operand.vmem [shape: f32[1,32], index: 2, kind: input, shape index: {}]   ;;  %s1512_s3 = inlined_call_operand.vmem [shape: bf16[2,4,4,32], index: 3, kind: output, shape index: {}]  }
   0x1 LB: > { %s1076_s13 = sadd.s32 4294967295, %s1330_s12   ;;  %p1080_p0 = scmp.ge.s32.totalorder %s1330_s12, 1  ;;  %s1330_s12 = sphi %s1353_s12, %s13_s12  }
   0x2   : > { %p137_p1 = scmp.lt.s32.totalorder %s1330_s12, 3 }
   0x4   : > { %p138_p2 = pnand %p1080_p0, %p137_p1 }
   0x5   : > { %p161_p3 = scmp.lt.s32.totalorder (!%p138_p2), %s1076_s13, 1 }
   0x6   : > { %141 = sbr.rel (%p138_p2) target bundleno = 273 (0x111), region = 32 }
   0xb   : > { %v1293_v0 = vld [vmem:[%s1510_s1 + $0x18] sm:$0xff]   ;;  %v1294_v1 = vld [vmem:[%s1510_s1 + $0x8] sm:$0xff]   ;;  %v1295_v2 = vld [vmem:[%s1510_s1 + $0x10] sm:$0xff]   ;;  %s1516_s13 = smov (!%p161_p3, %s1076_s13), 1  ;;  %vm259_vm0 = vcmask 261120   ;;  %vm384_vm2 = vcmask 1046528  }
   0xc   : > { %1211 = vmatprep.subr.bf16.mxu0 %v1293_v0  ;;  %1219 = vmatprep.subr.bf16.mxu1 %v1294_v1  ;;  %v1296_v3 = vld [vmem:[%s1510_s1] sm:$0xff]   ;;  %s1283_s22 = smul.u32 24, %s1516_s13  ;;  %v1299_v4 = vld [vmem:[%s1510_s1 + $0x28] sm:$0xff]   ;;  %v1301_v5 = vld [vmem:[%s1510_s1 + $0x38] sm:$0xff]   ;;  %vm231_vm1 = vsmask.f32 7424 }
   0xd   : > { %1212 = vmatpush3.bf16.msra.mxu0 %v1293_v0  ;;  %1220 = vmatpush3.bf16.msra.mxu1 %v1294_v1  ;;  %v1303_v13 = vld [vmem:[%s1510_s1 + $0x30] sm:$0xff]   ;;  %vm465_vm3 = vcmask 1044480   ;;  %v1308_v31 = vld [vmem:[%s1510_s1 + $0x58] sm:$0xff]   ;;  %v1302_v35 = vld [vmem:[%s1510_s1 + $0x20] sm:$0xff]   ;;  %vm542_vm4 = vsmask.f32 4352 }
   0xe   : > { %1213 = vmatprep.subr.bf16.mxu0 %v1295_v2  ;;  %1221 = vmatprep.subr.bf16.mxu1 %v1296_v3  ;;  %s1382_s27 = scalar_lea.vmem %s1509_s0, %s1283_s22  ;;  %v1310_v39 = vld [vmem:[%s1510_s1 + $0x50] sm:$0xff]   ;;  %v1307_v43 = vld [vmem:[%s1510_s1 + $0x48] sm:$0xff]   ;;  %v1315_v55 = vld [vmem:[%s1510_s1 + $0x78] sm:$0xff]   ;;  %vm791_vm5 = vsmask.f32 5376  ;;  %vm714_vm6 = vcmask 1045504  }
   0xf   : > { %v217_v6 = vld [vmem:[%s1382_s27] sm:$0xf]  ;;  %v1389_v7 = vld [vmem:[%s1382_s27 + $0x4] sm:$0xf]  ;;  %v1392_v8 = vld [vmem:[%s1382_s27 + $0x8] sm:$0xf] }
  0x10   : > { %v220_v9 = vld [vmem:[%s1382_s27 + $0xc] sm:$0x1]  ;;  %v1116_v10 = vcombine.low %v217_v6, %v1389_v7  ;;  %v1122_v11 = vcombine.low %v1392_v8, %v1392_v8  ;;  %v380_v14 = vld [vmem:[%s1382_s27] sm:$0xe]  ;;  %v1143_v42 = vcombine.low %v1389_v7, %v1392_v8  ;;  %v700_v51 = vld [vmem:[%s1382_s27 + $0x4] sm:$0xc] }
  0x11   : > { %1214 = vmatpush3.bf16.msra.mxu0 %v1295_v2  ;;  %1222 = vmatpush3.bf16.msra.mxu1 %v1296_v3  ;;  %v1399_v12 = vcombine.low %v1392_v8, %v220_v9  ;;  %v1127_v17 = vcombine.low %v380_v14, %v1389_v7  ;;  %v457_v18 = vld [vmem:[%s1382_s27] sm:$0x8]  ;;  %v458_v19 = vld [vmem:[%s1382_s27 + $0xc] sm:$0x7]  ;;  %v701_v52 = vld [vmem:[%s1382_s27 + $0x8] sm:$0xf] }
  0x12   : > { %1227 = vmatprep.subr.bf16.mxu0 %v1299_v4  ;;  %1235 = vmatprep.subr.bf16.mxu1 %v1301_v5  ;;  %v233_v15 = vshrl.u32 %v1116_v10, 16  ;;  %v235_v16 = vshll.u32 %v1116_v10, 16  ;;  %v1132_v23 = vcombine.low %v457_v18, %v1389_v7  ;;  %v1133_v26 = vcombine.low %v1392_v8, %v458_v19  ;;  %v1419_v33 = vld [vmem:[%s1382_s27 + $0xc] sm:$0xf]  ;;  %v703_v56 = vld [vmem:[%s1382_s27 + $0x10] sm:$0x3] }
  0x13   : > { %1223 = vmatprep.mubr.msk.bf16.mxu1 %vm259_vm0, %v1116_v10  ;;  %v240_v20 = vshll.u32 %v1399_v12, 16  ;;  %v244_v21 = vshrl.u32 %v1399_v12, 16  ;;  %v386_v22 = vrot.slane %v1399_v12, 1  ;;  %v385_v25 = vrot.slane %v1127_v17, 1  ;;  %v702_v53 = vld [vmem:[%s1382_s27 + $0xc] sm:$0xf] }
  0x14   : > { %1224 = vmatmul.mubr.msk.bf16.vlgmr.msra.gmra.mxu1 %vm259_vm0, %v1122_v11  ;;  %v237_v24 = vrot.slane %v235_v16, 1  ;;  %v466_v28 = vrot.slane %v1132_v23, 3  ;;  %v467_v30 = vrot.slane %v1133_v26, 3  ;;  %v1138_v38 = vcombine.low %v1392_v8, %v1419_v33  ;;  %v787_v58 = vld [vmem:[%s1382_s27 + $0x10] sm:$0x7]  ;;  %v1309_v61 = vld [vmem:[%s1510_s1 + $0x40] sm:$0xff]  }
  0x15   : > { %1236 = vmatpush3.bf16.msra.mxu1 %v1301_v5  ;;  %v242_v27 = vrot.slane %v240_v20, 1  ;;  %v387_v36 = vsel %vm384_vm2, %v385_v25, %v386_v22  ;;  %v544_v40 = vshrl.u32 %v1132_v23, 16  ;;  %v547_v41 = vshll.u32 %v1132_v23, 16  ;;  %v1313_v9 = vld [vmem:[%s1510_s1 + $0x68] sm:$0xff]   ;;  %v878_v14 = vld [vmem:[%s1382_s27 + $0x4] sm:$0x8] }
  0x16   : > { %1237 = vmatprep.subr.bf16.mxu1 %v1303_v13  ;;  %v238_v29 = vor.u32 %v237_v24, %v233_v15  ;;  %v468_v37 = vsel %vm465_vm3, %v466_v28, %v467_v30  ;;  %v552_v44 = vshrl.u32 %v1138_v38, 16  ;;  %v555_v45 = vshll.u32 %v1138_v38, 16  ;;  %v1316_v16 = vld [vmem:[%s1510_s1 + $0x60] sm:$0xff]   ;;  %v1321_v19 = vld [vmem:[%s1510_s1 + $0x88] sm:$0xff]   ;;  %s1174_s4 = sshll.u32 %s1516_s13, 3 }
  0x17   : > { %v246_v32 = vor.u32 %v244_v21, %v242_v27  ;;  %1239 = vmatprep.mubr.msk.bf16.mxu1 %vm259_vm0, %v468_v37  ;;  %v546_v46 = vrot.slane %v544_v40, 3  ;;  %v549_v47 = vrot.slane %v547_v41, 4  ;;  %v1149_v57 = vcombine.low %v700_v51, %v701_v52  ;;  %s170_s7 = scalar_lea.vmem %s1512_s3, %s1174_s4 }
  0x18   : > { %v243_v34 = vsel %vm231_vm1, %v238_v29, %v242_v27  ;;  %v554_v48 = vrot.slane %v552_v44, 3  ;;  %v557_v49 = vrot.slane %v555_v45, 4  ;;  %v1144_v59 = vcombine.low %v1419_v33, %v1419_v33 }
  0x19   : > { %1238 = vmatpush3.bf16.msra.mxu1 %v1303_v13  ;;  %1215 = vmatprep.mubr.msk.bf16.mxu0 %vm259_vm0, %v243_v34  ;;  %v550_v50 = vor.u32 %v549_v47, %v546_v46  ;;  %v1155_v60 = vcombine.low %v702_v53, %v787_v58  ;;  %v1150_v63 = vcombine.low %v702_v53, %v703_v56  ;;  %v793_v0 = vshrl.u32 %v1149_v57, 16 }
  0x1a   : > { %1216 = vmatmul.mubr.msk.bf16.vlgmr.msra.gmra.mxu0 %vm259_vm0, %v246_v32  ;;  %1251 = vmatprep.subr.bf16.mxu1 %v1308_v31  ;;  %v558_v54 = vor.u32 %v557_v49, %v554_v48  ;;  %v796_v1 = vshll.u32 %v1149_v57, 16  ;;  %v715_v10 = vrot.slane %v1149_v57, 2  ;;  %v1160_v18 = vcombine.low %v878_v14, %v701_v52 }
  0x1b   : > { %1228 = vmatpush3.bf16.msra.mxu0 %v1299_v4  ;;  %1231 = vmatprep.mubr.msk.bf16.mxu0 %vm259_vm0, %v387_v36  ;;  %v801_v2 = vshrl.u32 %v1155_v60, 16  ;;  %v804_v3 = vshll.u32 %v1155_v60, 16  ;;  %v1317_v4 = vld [vmem:[%s1510_s1 + $0x70] sm:$0xff]   ;;  %v795_v5 = vrot.slane %v793_v0, 2  ;;  %v716_v11 = vrot.slane %v1150_v63, 2 }
  0x1c   : > { %1229 = vmatprep.subr.bf16.mxu0 %v1302_v35  ;;  %1240 = vmatmul.mubr.msk.bf16.vlgmr.msra.gmra.mxu1 %vm259_vm0, %v467_v30  ;;  %v559_v62 = vsel %vm542_vm4, %v550_v50, %v558_v54  ;;  %v798_v6 = vrot.slane %v796_v1, 3  ;;  %v882_v20 = vrot.slane %v1160_v18, 3  ;;  %v883_v21 = vrot.slane %v1155_v60, 3 }
  0x1d   : > { %1252 = vmatpush3.bf16.msra.mxu1 %v1308_v31  ;;  %1255 = vmatprep.mubr.msk.bf16.mxu1 %vm259_vm0, %v1143_v42  ;;  %v803_v7 = vrot.slane %v801_v2, 2  ;;  %v806_v8 = vrot.slane %v804_v3, 3  ;;  %v717_v17 = vsel %vm714_vm6, %v715_v10, %v716_v11  ;;  %vm987_vm7 = vcmask 1040384  }
  0x1e   : > { %1253 = vmatprep.subr.bf16.mxu1 %v1310_v39  ;;  %v799_v12 = vor.u32 %v798_v6, %v795_v5  ;;  %v884_v23 = vsel %vm465_vm3, %v882_v20, %v883_v21  ;;  %v1332_v5 = vmov 1983009808   ;;  %vm988_vm8 = vcmask 1042434  }
  0x1f   : > { %1230 = vmatpush3.bf16.msra.mxu0 %v1302_v35  ;;  %v807_v13 = vor.u32 %v806_v8, %v803_v7  ;;  %v973_v6 = vunpack.c.l.s4 %v1332_v5  ;;  %v975_v8 = vlaneseq  ;;  %vm989_vm9 = vmor %vm987_vm7, %vm988_vm8  ;;  %vm990_vm10 = vcmask 1044484  }
  0x20   : > { %1243 = vmatprep.subr.bf16.mxu0 %v1307_v43  ;;  %vm991_vm11 = vmor %vm989_vm9, %vm990_vm10  ;;  %vm992_vm12 = vcmask 1046534   ;;  %vm968_vm14 = vcmask 254976  }
  0x21   : > { %1254 = vmatpush3.bf16.msra.mxu1 %v1310_v39  ;;  %v808_v15 = vsel %vm791_vm5, %v799_v12, %v807_v13  ;;  %v1165_v12 = vld [vmem:[%s1511_s2] ss:$0 sm:$0xff]  ;;  %v974_v14 = vunpack.c.0.s8 %v973_v6  ;;  %v976_v18 = vshrl.u32 %v975_v8, 7  ;;  %vm1491_vm13 = vmor %vm991_vm11, %vm992_vm12 }
  0x22   : > { %1232 = vmatmul.mubr.msk.bf16.vlgmr.msra.gmra.mxu0 %vm259_vm0, %v386_v22  ;;  %1267 = vmatprep.subr.bf16.mxu1 %v1315_v55  ;;  %v1322_v22 = vld [vmem:[%s1510_s1 + $0x80] sm:$0xff]  }
  0x23   : > { %1244 = vmatpush3.bf16.msra.mxu0 %v1307_v43  ;;  %1247 = vmatprep.mubr.msk.bf16.mxu0 %vm259_vm0, %v559_v62 }
  0x24   : > { %1245 = vmatprep.subr.bf16.mxu0 %v1309_v61  ;;  %1256 = vmatmul.mubr.msk.bf16.vlgmr.msra.gmra.mxu1 %vm259_vm0, %v1144_v59 }
  0x25   : > { %1268 = vmatpush3.bf16.msra.mxu1 %v1315_v55  ;;  %1271 = vmatprep.mubr.msk.bf16.mxu1 %vm259_vm0, %v808_v15 }
  0x26   : > { %1269 = vmatprep.subr.bf16.mxu1 %v1317_v4 }
  0x27   : > { %1246 = vmatpush3.bf16.msra.mxu0 %v1309_v61 }
  0x28   : > { %1259 = vmatprep.subr.bf16.mxu0 %v1313_v9 }
  0x29   : > { %1270 = vmatpush3.bf16.msra.mxu1 %v1317_v4 }
  0x2a   : > { %1248 = vmatmul.mubr.msk.bf16.vlgmr.msra.gmra.mxu0 %vm259_vm0, %v558_v54 }
  0x2b   : > { %1260 = vmatpush3.bf16.msra.mxu0 %v1313_v9  ;;  %1263 = vmatprep.mubr.msk.bf16.mxu0 %vm259_vm0, %v717_v17 }
  0x2c   : > { %1261 = vmatprep.subr.bf16.mxu0 %v1316_v16  ;;  %1272 = vmatmul.mubr.msk.bf16.vlgmr.msra.gmra.mxu1 %vm259_vm0, %v807_v13 }
  0x2f   : > { %1262 = vmatpush3.bf16.msra.mxu0 %v1316_v16 }
  0x30   : > { %1275 = vmatprep.subr.bf16.mxu0 %v1321_v19 }
  0x32   : > { %1264 = vmatmul.mubr.msk.bf16.vlgmr.msra.gmra.mxu0 %vm259_vm0, %v716_v11 }
  0x33   : > { %1276 = vmatpush3.bf16.msra.mxu0 %v1321_v19  ;;  %1279 = vmatprep.mubr.msk.bf16.mxu0 %vm259_vm0, %v884_v23 }
  0x34   : > { %1277 = vmatprep.subr.bf16.mxu0 %v1322_v22 }
  0x37   : > { %1278 = vmatpush3.bf16.msra.mxu0 %v1322_v22 }
  0x3a   : > { %1280 = vmatmul.mubr.msk.bf16.vlgmr.msra.gmra.mxu0 %vm259_vm0, %v883_v21 }
  0xd4   : > { %v1225_v24 = vpop.f32.mrf.mxu1 }
  0xd6   : > { %v366_v25 = vpop.f32.mrf.mxu1 }
  0xd8   : > { %v1226_v26 = vpop.f32.mrf.mxu1 }
  0xd9   : > { %v977_v26 = vsub.s32 %v974_v14, %v976_v18 }
  0xda   : > { %v369_v27 = vpop.f32.mrf.mxu1  ;;  %v1217_v28 = vpop.f32.mrf.mxu0 }
  0xdb   : > { %v375_v41 = vadd.f32 %v1225_v24, %v1217_v28 }
  0xdc   : > { %v300_v29 = vpop.f32.mrf.mxu0  ;;  %v1241_v30 = vpop.f32.mrf.mxu1 }
  0xdd   : > { %v367_v44 = vadd.f32 %v366_v25, %v300_v29 }
  0xde   : > { %v1218_v31 = vpop.f32.mrf.mxu0  ;;  %v521_v32 = vpop.f32.mrf.mxu1 }
  0xe0   : > { %v303_v33 = vpop.f32.mrf.mxu0  ;;  %v1242_v34 = vpop.f32.mrf.mxu1 }
  0xe1   : > { %v370_v51 = vadd.f32 %v369_v27, %v303_v33 }
  0xe2   : > { %v1233_v35 = vpop.f32.mrf.mxu0  ;;  %v524_v36 = vpop.f32.mrf.mxu1 }
  0xe3   : > { %v456_v45 = vadd.f32 %v1233_v35, %v375_v41 }
  0xe4   : > { %v440_v37 = vpop.f32.mrf.mxu0  ;;  %v1257_v38 = vpop.f32.mrf.mxu1 }
  0xe5   : > { %v454_v48 = vadd.f32 %v440_v37, %v367_v44  ;;  %v537_v52 = vadd.f32 %v1241_v30, %v456_v45 }
  0xe6   : > { %v1234_v39 = vpop.f32.mrf.mxu0  ;;  %v683_v40 = vpop.f32.mrf.mxu1 }
  0xe7   : > { %v535_v55 = vadd.f32 %v521_v32, %v454_v48 }
  0xe8   : > { %v443_v42 = vpop.f32.mrf.mxu0  ;;  %v1258_v43 = vpop.f32.mrf.mxu1 }
  0xe9   : > { %v455_v56 = vadd.f32 %v443_v42, %v370_v51 }
  0xea   : > { %v1249_v46 = vpop.f32.mrf.mxu0  ;;  %v686_v47 = vpop.f32.mrf.mxu1 }
  0xeb   : > { %v628_v57 = vadd.f32 %v1249_v46, %v537_v52  ;;  %v536_v62 = vadd.f32 %v524_v36, %v455_v56 }
  0xec   : > { %v612_v49 = vpop.f32.mrf.mxu0  ;;  %v1273_v50 = vpop.f32.mrf.mxu1 }
  0xed   : > { %v626_v60 = vadd.f32 %v612_v49, %v535_v55  ;;  %v699_v63 = vadd.f32 %v1257_v38, %v628_v57 }
  0xee   : > { %v1250_v53 = vpop.f32.mrf.mxu0  ;;  %v861_v54 = vpop.f32.mrf.mxu1 }
  0xef   : > { %v697_v1 = vadd.f32 %v683_v40, %v626_v60 }
  0xf0   : > { %v615_v58 = vpop.f32.mrf.mxu0  ;;  %v1274_v59 = vpop.f32.mrf.mxu1 }
  0xf1   : > { %v627_v2 = vadd.f32 %v615_v58, %v536_v62 }
  0xf2   : > { %v1265_v61 = vpop.f32.mrf.mxu0  ;;  %v864_v22 = vpop.f32.mrf.mxu1 }
  0xf3   : > { %v786_v3 = vadd.f32 %v1265_v61, %v699_v63  ;;  %v698_v10 = vadd.f32 %v686_v47, %v627_v2 }
  0xf4   : > { %v770_v0 = vpop.f32.mrf.mxu0 }
  0xf5   : > { %v784_v7 = vadd.f32 %v770_v0, %v697_v1  ;;  %v877_v11 = vadd.f32 %v1273_v50, %v786_v3 }
  0xf6   : > { %v1266_v4 = vpop.f32.mrf.mxu0 }
  0xf7   : > { %v875_v15 = vadd.f32 %v861_v54, %v784_v7 }
  0xf8   : > { %v773_v9 = vpop.f32.mrf.mxu0 }
  0xf9   : > { %v785_v16 = vadd.f32 %v773_v9, %v698_v10 }
  0xfa   : > { %v1281_v13 = vpop.f32.mrf.mxu0 }
  0xfb   : > { %v953_v17 = vadd.f32 %v1281_v13, %v877_v11  ;;  %v876_v24 = vadd.f32 %v864_v22, %v785_v16 }
  0xfc   : > { %v937_v19 = vpop.f32.mrf.mxu0 }
  0xfd   : > { %v962_v20 = vadd.f32 %v1165_v12, %v953_v17  ;;  %v951_v21 = vadd.f32 %v937_v19, %v875_v15 }
  0xfe   : > { %v1282_v23 = vpop.f32.mrf.mxu0 }
  0xff   : > { %v965_v25 = vmax.f32 %v962_v20, 0.0  ;;  %v960_v29 = vadd.f32 %v1165_v12, %v951_v21 }
 0x100   : > { %v940_v27 = vpop.f32.mrf.mxu0 }
 0x101   : > { %v967_v28 = vpack.c.bf16 %v965_v25, %v965_v25  ;;  %v952_v30 = vadd.f32 %v940_v27, %v876_v24  ;;  %v963_v34 = vmax.f32 %v960_v29, 0.0 }
 0x103   : > { %v1012_v31 = vrot.slane %v967_v28, %v977_v26  ;;  %v961_v32 = vadd.f32 %v1165_v12, %v952_v30 }
 0x105   : > { %v1013_v33 = vcombine.high %v1012_v31, %v1012_v31  ;;  %v964_v35 = vmax.f32 %v961_v32, 0.0  ;;  %v1170_v37 = vrot.slane %v1012_v31, 9 }
 0x107   : > { %v1016_v38 = vrot.slane %v1013_v33, 7  ;;  %v966_v39 = vpack.c.bf16 %v964_v35, %v963_v34  ;;  %v1166_v40 = vpack.c.bf16 %v964_v35, %v964_v35 }
 0x109   : > { %v1017_v41 = vsel %vm1491_vm13, %v1170_v37, %v1016_v38  ;;  %969 = vst.msk [vmem:[%s170_s7] sm:$0x3] %vm968_vm14, %v966_v39  ;;  %v978_v42 = vrot.slane %v966_v39, %v977_v26  ;;  %v985_v43 = vrot.slane %v1166_v40, %v977_v26 }
 0x10a   : > { %1171 = vst.msk [vmem:[%s170_s7 + $0x6] sm:$0x3] %vm968_vm14, %v1017_v41 }
 0x10b   : > { %v986_v44 = vcombine.high %v978_v42, %v978_v42  ;;  %v1001_v45 = vcombine.high %v985_v43, %v985_v43  ;;  %v996_v47 = vrot.slane %v985_v43, 7 }
 0x10d   : > { %v1167_v46 = vrot.slane %v986_v44, 9  ;;  %1169 = vst.msk [vmem:[%s170_s7 + $0x4] sm:$0x3] %vm968_vm14, %v1001_v45 }
 0x10f   : > { %v997_v48 = vsel %vm1491_vm13, %v1167_v46, %v996_v47 }
 0x110   : > { %1168 = vst.msk [vmem:[%s170_s7 + $0x2] sm:$0x3] %vm968_vm14, %v997_v48 }
 0x111 PF: > { %s13_s12 = sadd.s32 1, %s1330_s12  }
 0x112   : > { %p10_p4 = scmp.ge.s32.totalorder %s13_s12, 4  }
 0x114   :  { %12 = sbr.rel (!%p10_p4) target bundleno = 1 (0x1), region = 73 }

// kernel: vqvae_forward.14
= control target key start
LH: loop header
LB: loop body
LE: loop exit
PB: predicated region body
PF: predicated region fallthrough
CT: control target
= control target key end

     0   :  { %s1524_s18 = smov 0   ;;  %s1697_s0 = inlined_call_operand.vmem [shape: bf16[2,42,32], index: 0, kind: input, shape index: {}]   ;;  %s1698_s1 = inlined_call_operand.vmem [shape: bf16[9,32,8], index: 1, kind: input, shape index: {}]   ;;  %s1699_s2 = inlined_call_operand.vmem [shape: f32[1,8], index: 2, kind: input, shape index: {}]   ;;  %s1700_s3 = inlined_call_operand.vmem [shape: bf16[8,32], index: 3, kind: input, shape index: {}]   ;;  %s1701_s4 = inlined_call_operand.vmem [shape: f32[1,32], index: 4, kind: input, shape index: {}]   ;;  %s1702_s5 = inlined_call_operand.vmem [shape: bf16[2,4,4,32], index: 5, kind: output, shape index: {}]  }
   0x1 LB: > { %s1224_s19 = sadd.s32 4294967295, %s1491_s18   ;;  %p1228_p0 = scmp.ge.s32.totalorder %s1491_s18, 1  ;;  %s1491_s18 = sphi %s1524_s18, %s15_s18  }
   0x2   : > { %p187_p1 = scmp.lt.s32.totalorder %s1491_s18, 3 }
   0x4   : > { %p188_p2 = pnand %p1228_p0, %p187_p1 }
   0x5   : > { %p215_p3 = scmp.lt.s32.totalorder (!%p188_p2), %s1224_s19, 1 }
   0x6   : > { %191 = sbr.rel (%p188_p2) target bundleno = 481 (0x1e1), region = 40 }
   0xb   : > { %v1454_v0 = vld [vmem:[%s1698_s1 + $0x18] sm:$0xff]   ;;  %v1455_v1 = vld [vmem:[%s1698_s1 + $0x8] sm:$0xff]   ;;  %v1456_v2 = vld [vmem:[%s1698_s1 + $0x10] sm:$0xff]   ;;  %s1706_s19 = smov (!%p215_p3, %s1224_s19), 1  ;;  %vm315_vm0 = vcmask 261120   ;;  %vm440_vm2 = vcmask 1046528  }
   0xc   : > { %1365 = vmatprep.subr.bf16.mxu0 %v1454_v0  ;;  %1373 = vmatprep.subr.bf16.mxu1 %v1455_v1  ;;  %v1457_v3 = vld [vmem:[%s1698_s1] sm:$0xff]   ;;  %s1444_s28 = smul.u32 24, %s1706_s19  ;;  %v1460_v4 = vld [vmem:[%s1698_s1 + $0x28] sm:$0xff]   ;;  %v1462_v5 = vld [vmem:[%s1698_s1 + $0x38] sm:$0xff]   ;;  %vm287_vm1 = vsmask.f32 7424 }
   0xd   : > { %1366 = vmatpush3.bf16.msra.mxu0 %v1454_v0  ;;  %1374 = vmatpush3.bf16.msra.mxu1 %v1455_v1  ;;  %v1464_v13 = vld [vmem:[%s1698_s1 + $0x30] sm:$0xff]   ;;  %vm521_vm3 = vcmask 1044480   ;;  %v1469_v31 = vld [vmem:[%s1698_s1 + $0x58] sm:$0xff]   ;;  %v1463_v35 = vld [vmem:[%s1698_s1 + $0x20] sm:$0xff]   ;;  %vm598_vm4 = vsmask.f32 4352 }
   0xe   : > { %1367 = vmatprep.subr.bf16.mxu0 %v1456_v2  ;;  %1375 = vmatprep.subr.bf16.mxu1 %v1457_v3  ;;  %s1553_s8 = scalar_lea.vmem %s1697_s0, %s1444_s28  ;;  %v1471_v39 = vld [vmem:[%s1698_s1 + $0x50] sm:$0xff]   ;;  %v1468_v43 = vld [vmem:[%s1698_s1 + $0x48] sm:$0xff]   ;;  %v1476_v55 = vld [vmem:[%s1698_s1 + $0x78] sm:$0xff]   ;;  %vm847_vm5 = vsmask.f32 5376  ;;  %vm770_vm6 = vcmask 1045504  }
   0xf   : > { %v273_v6 = vld [vmem:[%s1553_s8] sm:$0xf]  ;;  %v1560_v7 = vld [vmem:[%s1553_s8 + $0x4] sm:$0xf]  ;;  %v1563_v8 = vld [vmem:[%s1553_s8 + $0x8] sm:$0xf] }
  0x10   : > { %v276_v9 = vld [vmem:[%s1553_s8 + $0xc] sm:$0x1]  ;;  %v1264_v10 = vcombine.low %v273_v6, %v1560_v7  ;;  %v1270_v11 = vcombine.low %v1563_v8, %v1563_v8  ;;  %v436_v14 = vld [vmem:[%s1553_s8] sm:$0xe]  ;;  %v1291_v42 = vcombine.low %v1560_v7, %v1563_v8  ;;  %v756_v51 = vld [vmem:[%s1553_s8 + $0x4] sm:$0xc] }
  0x11   : > { %1368 = vmatpush3.bf16.msra.mxu0 %v1456_v2  ;;  %1376 = vmatpush3.bf16.msra.mxu1 %v1457_v3  ;;  %v1570_v12 = vcombine.low %v1563_v8, %v276_v9  ;;  %v1275_v17 = vcombine.low %v436_v14, %v1560_v7  ;;  %v1579_v18 = vld [vmem:[%s1553_s8] sm:$0x8]  ;;  %v514_v19 = vld [vmem:[%s1553_s8 + $0xc] sm:$0x7]  ;;  %v757_v52 = vld [vmem:[%s1553_s8 + $0x8] sm:$0xf] }
  0x12   : > { %1381 = vmatprep.subr.bf16.mxu0 %v1460_v4  ;;  %1389 = vmatprep.subr.bf16.mxu1 %v1462_v5  ;;  %v289_v15 = vshrl.u32 %v1264_v10, 16  ;;  %v291_v16 = vshll.u32 %v1264_v10, 16  ;;  %v1280_v23 = vcombine.low %v1579_v18, %v1560_v7  ;;  %v1281_v26 = vcombine.low %v1563_v8, %v514_v19  ;;  %v1593_v33 = vld [vmem:[%s1553_s8 + $0xc] sm:$0xf]  ;;  %v759_v56 = vld [vmem:[%s1553_s8 + $0x10] sm:$0x3] }
  0x13   : > { %1377 = vmatprep.mubr.msk.bf16.mxu1 %vm315_vm0, %v1264_v10  ;;  %v296_v20 = vshll.u32 %v1570_v12, 16  ;;  %v300_v21 = vshrl.u32 %v1570_v12, 16  ;;  %v442_v22 = vrot.slane %v1570_v12, 1  ;;  %v441_v25 = vrot.slane %v1275_v17, 1  ;;  %v758_v53 = vld [vmem:[%s1553_s8 + $0xc] sm:$0xf] }
  0x14   : > { %1378 = vmatmul.mubr.msk.bf16.vlgmr.msra.gmra.mxu1 %vm315_vm0, %v1270_v11  ;;  %v293_v24 = vrot.slane %v291_v16, 1  ;;  %v522_v28 = vrot.slane %v1280_v23, 3  ;;  %v523_v30 = vrot.slane %v1281_v26, 3  ;;  %v1286_v38 = vcombine.low %v1563_v8, %v1593_v33  ;;  %v843_v58 = vld [vmem:[%s1553_s8 + $0x10] sm:$0x7]  ;;  %v1470_v61 = vld [vmem:[%s1698_s1 + $0x40] sm:$0xff]  }
  0x15   : > { %1390 = vmatpush3.bf16.msra.mxu1 %v1462_v5  ;;  %v298_v27 = vrot.slane %v296_v20, 1  ;;  %v443_v36 = vsel %vm440_vm2, %v441_v25, %v442_v22  ;;  %v600_v40 = vshrl.u32 %v1280_v23, 16  ;;  %v603_v41 = vshll.u32 %v1280_v23, 16  ;;  %v1474_v11 = vld [vmem:[%s1698_s1 + $0x68] sm:$0xff]   ;;  %v934_v16 = vld [vmem:[%s1553_s8 + $0x4] sm:$0x8] }
  0x16   : > { %1391 = vmatprep.subr.bf16.mxu1 %v1464_v13  ;;  %v294_v29 = vor.u32 %v293_v24, %v289_v15  ;;  %v524_v37 = vsel %vm521_vm3, %v522_v28, %v523_v30  ;;  %v608_v44 = vshrl.u32 %v1286_v38, 16  ;;  %v611_v45 = vshll.u32 %v1286_v38, 16  ;;  %v1477_v19 = vld [vmem:[%s1698_s1 + $0x60] sm:$0xff]   ;;  %s1325_s20 = sshll.u32 %s1706_s19, 3 }
  0x17   : > { %v302_v32 = vor.u32 %v300_v21, %v298_v27  ;;  %1393 = vmatprep.mubr.msk.bf16.mxu1 %vm315_vm0, %v524_v37  ;;  %v602_v46 = vrot.slane %v600_v40, 3  ;;  %v605_v47 = vrot.slane %v603_v41, 4  ;;  %v1297_v57 = vcombine.low %v756_v51, %v757_v52  ;;  %v1483_v25 = vld [vmem:[%s1698_s1 + $0x80] sm:$0xff]   ;;  %s224_s23 = scalar_lea.vmem %s1702_s5, %s1325_s20 }
  0x18   : > { %v299_v34 = vsel %vm287_vm1, %v294_v29, %v298_v27  ;;  %v610_v48 = vrot.slane %v608_v44, 3  ;;  %v613_v49 = vrot.slane %v611_v45, 4  ;;  %v1292_v59 = vcombine.low %v1593_v33, %v1593_v33  ;;  %v271_v27 = vld [vmem:[%s1700_s3] sm:$0xf] }
  0x19   : > { %1392 = vmatpush3.bf16.msra.mxu1 %v1464_v13  ;;  %1369 = vmatprep.mubr.msk.bf16.mxu0 %vm315_vm0, %v299_v34  ;;  %v606_v50 = vor.u32 %v605_v47, %v602_v46  ;;  %v1303_v60 = vcombine.low %v758_v53, %v843_v58  ;;  %v1298_v63 = vcombine.low %v758_v53, %v759_v56  ;;  %v849_v0 = vshrl.u32 %v1297_v57, 16 }
  0x1a   : > { %1370 = vmatmul.mubr.msk.bf16.vlgmr.msra.gmra.mxu0 %vm315_vm0, %v302_v32  ;;  %1405 = vmatprep.subr.bf16.mxu1 %v1469_v31  ;;  %v614_v54 = vor.u32 %v613_v49, %v610_v48  ;;  %v852_v1 = vshll.u32 %v1297_v57, 16  ;;  %v771_v12 = vrot.slane %v1297_v57, 2  ;;  %v1308_v21 = vcombine.low %v934_v16, %v757_v52 }
  0x1b   : > { %1382 = vmatpush3.bf16.msra.mxu0 %v1460_v4  ;;  %1385 = vmatprep.mubr.msk.bf16.mxu0 %vm315_vm0, %v443_v36  ;;  %v857_v2 = vshrl.u32 %v1303_v60, 16  ;;  %v860_v3 = vshll.u32 %v1303_v60, 16  ;;  %v1478_v4 = vld [vmem:[%s1698_s1 + $0x70] sm:$0xff]   ;;  %v851_v5 = vrot.slane %v849_v0, 2  ;;  %v772_v13 = vrot.slane %v1298_v63, 2 }
  0x1c   : > { %1383 = vmatprep.subr.bf16.mxu0 %v1463_v35  ;;  %1394 = vmatmul.mubr.msk.bf16.vlgmr.msra.gmra.mxu1 %vm315_vm0, %v523_v30  ;;  %v615_v62 = vsel %vm598_vm4, %v606_v50, %v614_v54  ;;  %v854_v6 = vrot.slane %v852_v1, 3  ;;  %v938_v23 = vrot.slane %v1308_v21, 3  ;;  %v939_v24 = vrot.slane %v1303_v60, 3 }
  0x1d   : > { %1406 = vmatpush3.bf16.msra.mxu1 %v1469_v31  ;;  %1409 = vmatprep.mubr.msk.bf16.mxu1 %vm315_vm0, %v1291_v42  ;;  %v859_v9 = vrot.slane %v857_v2, 2  ;;  %v862_v10 = vrot.slane %v860_v3, 3  ;;  %v773_v20 = vsel %vm770_vm6, %v771_v12, %v772_v13  ;;  %vm1041_vm7 = vcmask 1043456  }
  0x1e   : > { %1407 = vmatprep.subr.bf16.mxu1 %v1471_v39  ;;  %v855_v14 = vor.u32 %v854_v6, %v851_v5  ;;  %v940_v26 = vsel %vm521_vm3, %v938_v23, %v939_v24  ;;  %v1043_v28 = vsel %vm1041_vm7, %v271_v27, 0  ;;  %v1313_v23 = vld [vmem:[%s1699_s2] ss:$0 sm:$0xff]  ;;  %vm1034_vm8 = vcmask 64512  }
  0x1f   : > { %1384 = vmatpush3.bf16.msra.mxu0 %v1463_v35  ;;  %v863_v15 = vor.u32 %v862_v10, %v859_v9  ;;  %vm1097_vm9 = vcmask 1040384   ;;  %vm1136_vm10 = vcmask 1042434   ;;  %vm1138_vm12 = vcmask 1044484  }
  0x20   : > { %1397 = vmatprep.subr.bf16.mxu0 %v1468_v43  ;;  %vm1137_vm11 = vmor %vm1097_vm9, %vm1136_vm10  ;;  %vm1140_vm14 = vcmask 1046534  }
  0x21   : > { %1408 = vmatpush3.bf16.msra.mxu1 %v1471_v39  ;;  %v864_v17 = vsel %vm847_vm5, %v855_v14, %v863_v15  ;;  %vm1139_vm13 = vmor %vm1137_vm11, %vm1138_vm12 }
  0x22   : > { %1386 = vmatmul.mubr.msk.bf16.vlgmr.msra.gmra.mxu0 %vm315_vm0, %v442_v22  ;;  %1421 = vmatprep.subr.bf16.mxu1 %v1476_v55  ;;  %v1482_v22 = vld [vmem:[%s1698_s1 + $0x88] sm:$0xff]   ;;  %vm1679_vm15 = vmor %vm1139_vm13, %vm1140_vm14 }
  0x23   : > { %1398 = vmatpush3.bf16.msra.mxu0 %v1468_v43  ;;  %1401 = vmatprep.mubr.msk.bf16.mxu0 %vm315_vm0, %v615_v62 }
  0x24   : > { %1399 = vmatprep.subr.bf16.mxu0 %v1470_v61  ;;  %1410 = vmatmul.mubr.msk.bf16.vlgmr.msra.gmra.mxu1 %vm315_vm0, %v1292_v59 }
  0x25   : > { %1422 = vmatpush3.bf16.msra.mxu1 %v1476_v55  ;;  %1425 = vmatprep.mubr.msk.bf16.mxu1 %vm315_vm0, %v864_v17 }
  0x26   : > { %1423 = vmatprep.subr.bf16.mxu1 %v1478_v4 }
  0x27   : > { %1400 = vmatpush3.bf16.msra.mxu0 %v1470_v61 }
  0x28   : > { %1413 = vmatprep.subr.bf16.mxu0 %v1474_v11 }
  0x29   : > { %1424 = vmatpush3.bf16.msra.mxu1 %v1478_v4 }
  0x2a   : > { %1402 = vmatmul.mubr.msk.bf16.vlgmr.msra.gmra.mxu0 %vm315_vm0, %v614_v54  ;;  %1443 = vmatprep.subr.msk.bf16.mxu1 %vm1041_vm7, %v271_v27 }
  0x2b   : > { %1414 = vmatpush3.bf16.msra.mxu0 %v1474_v11  ;;  %1417 = vmatprep.mubr.msk.bf16.mxu0 %vm315_vm0, %v773_v20 }
  0x2c   : > { %1415 = vmatprep.subr.bf16.mxu0 %v1477_v19  ;;  %1426 = vmatmul.mubr.msk.bf16.vlgmr.msra.gmra.mxu1 %vm315_vm0, %v863_v15 }
  0x2d   : > { %1438 = vmatpush3.bf16.msra.mxu1 %v1043_v28 }
  0x2f   : > { %1416 = vmatpush3.bf16.msra.mxu0 %v1477_v19 }
  0x30   : > { %1429 = vmatprep.subr.bf16.mxu0 %v1482_v22 }
  0x32   : > { %1418 = vmatmul.mubr.msk.bf16.vlgmr.msra.gmra.mxu0 %vm315_vm0, %v772_v13 }
  0x33   : > { %1430 = vmatpush3.bf16.msra.mxu0 %v1482_v22  ;;  %1433 = vmatprep.mubr.msk.bf16.mxu0 %vm315_vm0, %v940_v26 }
  0x34   : > { %1431 = vmatprep.subr.bf16.mxu0 %v1483_v25 }
  0x37   : > { %1432 = vmatpush3.bf16.msra.mxu0 %v1483_v25 }
  0x3a   : > { %1434 = vmatmul.mubr.msk.bf16.vlgmr.msra.gmra.mxu0 %vm315_vm0, %v939_v24  ;;  %vm1116_vm0 = vcmask 254976  }
  0xd4   : > { %v1379_v29 = vpop.f32.mrf.mxu1 }
  0xd6   : > { %v422_v30 = vpop.f32.mrf.mxu1 }
  0xd8   : > { %v1380_v31 = vpop.f32.mrf.mxu1 }
  0xda   : > { %v425_v32 = vpop.f32.mrf.mxu1  ;;  %v1371_v34 = vpop.f32.mrf.mxu0 }
  0xdb   : > { %v431_v47 = vadd.f32 %v1379_v29, %v1371_v34 }
  0xdc   : > { %v356_v35 = vpop.f32.mrf.mxu0  ;;  %v1395_v36 = vpop.f32.mrf.mxu1 }
  0xdd   : > { %v423_v50 = vadd.f32 %v422_v30, %v356_v35 }
  0xde   : > { %v1372_v37 = vpop.f32.mrf.mxu0  ;;  %v577_v38 = vpop.f32.mrf.mxu1 }
  0xe0   : > { %v359_v39 = vpop.f32.mrf.mxu0  ;;  %v1396_v40 = vpop.f32.mrf.mxu1 }
  0xe1   : > { %v426_v57 = vadd.f32 %v425_v32, %v359_v39  ;;  %v1026_v39 = vunpack.c.l.bf16 %v1563_v8  ;;  %v1027_v40 = vunpack.c.l.bf16 %v1593_v33 }
  0xe2   : > { %v1387_v41 = vpop.f32.mrf.mxu0  ;;  %v580_v42 = vpop.f32.mrf.mxu1 }
  0xe3   : > { %v512_v51 = vadd.f32 %v1387_v41, %v431_v47  ;;  %v1101_v41 = vrot.slane %v1026_v39, 7  ;;  %v1123_v47 = vlaneseq }
  0xe4   : > { %v496_v43 = vpop.f32.mrf.mxu0  ;;  %v1411_v44 = vpop.f32.mrf.mxu1 }
  0xe5   : > { %v510_v54 = vadd.f32 %v496_v43, %v423_v50  ;;  %v593_v58 = vadd.f32 %v1395_v36, %v512_v51  ;;  %v1024_v43 = vunpack.c.l.bf16 %v1579_v18 }
  0xe6   : > { %v1388_v45 = vpop.f32.mrf.mxu0  ;;  %v739_v46 = vpop.f32.mrf.mxu1 }
  0xe7   : > { %v591_v61 = vadd.f32 %v577_v38, %v510_v54  ;;  %v1493_v45 = vmov 1983009808   ;;  %v1098_v8 = vrot.slane %v1024_v43, 7 }
  0xe8   : > { %v499_v48 = vpop.f32.mrf.mxu0  ;;  %v1412_v49 = vpop.f32.mrf.mxu1 }
  0xe9   : > { %v511_v62 = vadd.f32 %v499_v48, %v426_v57  ;;  %v1314_v48 = vld [vmem:[%s1701_s4] ss:$0 sm:$0xff] }
  0xea   : > { %v1403_v52 = vpop.f32.mrf.mxu0  ;;  %v742_v53 = vpop.f32.mrf.mxu1 }
  0xeb   : > { %v684_v63 = vadd.f32 %v1403_v52, %v593_v58  ;;  %v592_v4 = vadd.f32 %v580_v42, %v511_v62  ;;  %v1103_v42 = vrot.slane %v1027_v40, 7 }
  0xec   : > { %v668_v55 = vpop.f32.mrf.mxu0  ;;  %v1427_v56 = vpop.f32.mrf.mxu1 }
  0xed   : > { %v682_v2 = vadd.f32 %v668_v55, %v591_v61  ;;  %v755_v5 = vadd.f32 %v1411_v44, %v684_v63  ;;  %v1025_v44 = vunpack.c.l.bf16 %v1560_v7  ;;  %v1104_v50 = vsel %vm1097_vm9, %v1101_v41, %v1103_v42 }
  0xee   : > { %v1404_v59 = vpop.f32.mrf.mxu0  ;;  %v917_v60 = vpop.f32.mrf.mxu1 }
  0xef   : > { %v753_v9 = vadd.f32 %v739_v46, %v682_v2  ;;  %v1121_v46 = vunpack.c.l.s4 %v1493_v45  ;;  %v1099_v51 = vrot.slane %v1025_v44, 7 }
  0xf0   : > { %v671_v0 = vpop.f32.mrf.mxu0  ;;  %v1428_v1 = vpop.f32.mrf.mxu1 }
  0xf1   : > { %v683_v10 = vadd.f32 %v671_v0, %v592_v4  ;;  %v1122_v52 = vunpack.c.0.s8 %v1121_v46  ;;  %v1100_v55 = vsel %vm1097_vm9, %v1098_v8, %v1099_v51 }
  0xf2   : > { %v1419_v3 = vpop.f32.mrf.mxu0  ;;  %v920_v25 = vpop.f32.mrf.mxu1 }
  0xf3   : > { %v842_v11 = vadd.f32 %v1419_v3, %v755_v5  ;;  %v754_v15 = vadd.f32 %v742_v53, %v683_v10  ;;  %v1124_v53 = vshrl.u32 %v1123_v47, 7 }
  0xf4   : > { %v826_v6 = vpop.f32.mrf.mxu0 }
  0xf5   : > { %v840_v13 = vadd.f32 %v826_v6, %v753_v9  ;;  %v933_v16 = vadd.f32 %v1427_v56, %v842_v11  ;;  %v1125_v58 = vsub.s32 %v1122_v52, %v1124_v53 }
  0xf6   : > { %v1420_v12 = vpop.f32.mrf.mxu0 }
  0xf7   : > { %v931_v19 = vadd.f32 %v917_v60, %v840_v13  ;;  %v1102_v60 = vsel %vm1097_vm9, %v1099_v51, %v1101_v41 }
  0xf8   : > { %v829_v14 = vpop.f32.mrf.mxu0 }
  0xf9   : > { %v841_v20 = vadd.f32 %v829_v14, %v754_v15 }
  0xfa   : > { %v1435_v17 = vpop.f32.mrf.mxu0 }
  0xfb   : > { %v1009_v21 = vadd.f32 %v1435_v17, %v933_v16  ;;  %v932_v27 = vadd.f32 %v920_v25, %v841_v20 }
  0xfc   : > { %v993_v22 = vpop.f32.mrf.mxu0 }
  0xfd   : > { %v1007_v24 = vadd.f32 %v993_v22, %v931_v19  ;;  %v1018_v28 = vadd.f32 %v1313_v23, %v1009_v21 }
  0xfe   : > { %v1436_v26 = vpop.f32.mrf.mxu0 }
  0xff   : > { %v1016_v30 = vadd.f32 %v1313_v23, %v1007_v24  ;;  %v1021_v34 = vmax.f32 %v1018_v28, 0.0 }
 0x100   : > { %v996_v29 = vpop.f32.mrf.mxu0 }
 0x101   : > { %v1008_v31 = vadd.f32 %v996_v29, %v932_v27  ;;  %v1019_v35 = vmax.f32 %v1016_v30, 0.0  ;;  %v1023_v38 = vpack.c.bf16 %v1021_v34, %v1021_v34 }
 0x103   : > { %v1017_v32 = vadd.f32 %v1313_v23, %v1008_v31 }
 0x105   : > { %v1020_v36 = vmax.f32 %v1017_v32, 0.0 }
 0x107   : > { %v1022_v37 = vpack.c.bf16 %v1020_v36, %v1019_v35 }
 0x109   : > { %1439 = vmatprep.mubr.msk.bf16.mxu1 %vm1034_vm8, %v1022_v37 }
 0x10a   : > { %1440 = vmatmul.mubr.msk.bf16.vlgmr.msra.gmra.mxu1 %vm1034_vm8, %v1023_v38 }
 0x1ca   : > { %v1441_v49 = vpop.f32.mrf.mxu1 }
 0x1cb   : > { %v1088_v33 = vadd.f32 %v1441_v49, %v1314_v48 }
 0x1cc   : > { %v1079_v54 = vpop.f32.mrf.mxu1 }
 0x1cd   : > { %v1110_v18 = vadd.f32 %v1104_v50, %v1088_v33  ;;  %v1080_v7 = vadd.f32 %v1314_v48, %v1079_v54 }
 0x1ce   : > { %v1442_v56 = vpop.f32.mrf.mxu1 }
 0x1cf   : > { %v1113_v57 = vmax.f32 %v1110_v18, 0.0  ;;  %v1108_v62 = vadd.f32 %v1100_v55, %v1080_v7 }
 0x1d0   : > { %v1082_v59 = vpop.f32.mrf.mxu1 }
 0x1d1   : > { %v1115_v61 = vpack.c.bf16 %v1113_v57, %v1113_v57  ;;  %v1083_v63 = vadd.f32 %v1314_v48, %v1082_v59  ;;  %v1111_v3 = vmax.f32 %v1108_v62, 0.0 }
 0x1d3   : > { %v1160_v0 = vrot.slane %v1115_v61, %v1125_v58  ;;  %v1109_v1 = vadd.f32 %v1102_v60, %v1083_v63 }
 0x1d5   : > { %v1161_v2 = vcombine.high %v1160_v0, %v1160_v0  ;;  %v1112_v4 = vmax.f32 %v1109_v1, 0.0  ;;  %v1321_v6 = vrot.slane %v1160_v0, 9 }
 0x1d7   : > { %v1164_v9 = vrot.slane %v1161_v2, 7  ;;  %v1114_v10 = vpack.c.bf16 %v1112_v4, %v1111_v3  ;;  %v1317_v11 = vpack.c.bf16 %v1112_v4, %v1112_v4 }
 0x1d9   : > { %v1165_v12 = vsel %vm1679_vm15, %v1321_v6, %v1164_v9  ;;  %1117 = vst.msk [vmem:[%s224_s23] sm:$0x3] %vm1116_vm0, %v1114_v10  ;;  %v1126_v13 = vrot.slane %v1114_v10, %v1125_v58  ;;  %v1133_v14 = vrot.slane %v1317_v11, %v1125_v58 }
 0x1da   : > { %1322 = vst.msk [vmem:[%s224_s23 + $0x6] sm:$0x3] %vm1116_vm0, %v1165_v12 }
 0x1db   : > { %v1134_v15 = vcombine.high %v1126_v13, %v1126_v13  ;;  %v1149_v16 = vcombine.high %v1133_v14, %v1133_v14  ;;  %v1144_v19 = vrot.slane %v1133_v14, 7 }
 0x1dd   : > { %v1318_v17 = vrot.slane %v1134_v15, 9  ;;  %1320 = vst.msk [vmem:[%s224_s23 + $0x4] sm:$0x3] %vm1116_vm0, %v1149_v16 }
 0x1df   : > { %v1145_v20 = vsel %vm1679_vm15, %v1318_v17, %v1144_v19 }
 0x1e0   : > { %1319 = vst.msk [vmem:[%s224_s23 + $0x2] sm:$0x3] %vm1116_vm0, %v1145_v20 }
 0x1e1 PF: > { %s15_s18 = sadd.s32 1, %s1491_s18  }
 0x1e2   : > { %p12_p4 = scmp.ge.s32.totalorder %s15_s18, 4  }
 0x1e4   :  { %14 = sbr.rel (!%p12_p4) target bundleno = 1 (0x1), region = 81 }

// kernel: vqvae_forward.15
= control target key start
LH: loop header
LB: loop body
LE: loop exit
PB: predicated region body
PF: predicated region fallthrough
CT: control target
= control target key end

     0   :  { %s1674_s24 = smov 0   ;;  %s1843_s0 = inlined_call_operand.vmem [shape: bf16[2,42,32], index: 0, kind: input, shape index: {}]   ;;  %s1844_s1 = inlined_call_operand.vmem [shape: bf16[9,32,8], index: 1, kind: input, shape index: {}]   ;;  %s1845_s2 = inlined_call_operand.vmem [shape: f32[1,8], index: 2, kind: input, shape index: {}]   ;;  %s1846_s3 = inlined_call_operand.vmem [shape: bf16[8,32], index: 3, kind: input, shape index: {}]   ;;  %s1847_s4 = inlined_call_operand.vmem [shape: f32[1,32], index: 4, kind: input, shape index: {}]   ;;  %s1848_s5 = inlined_call_operand.vmem [shape: f32[32,8], index: 5, kind: input, shape index: {}]   ;;  %s1849_s6 = inlined_call_operand.vmem [shape: f32[1,8], index: 6, kind: input, shape index: {}]   ;;  %s1850_s7 = inlined_call_operand.vmem [shape: f32[2,4,4,8], index: 7, kind: output, shape index: {}]  }
   0x1 LB: > { %s1336_s25 = sadd.s32 4294967295, %s1630_s24   ;;  %p1340_p0 = scmp.ge.s32.totalorder %s1630_s24, 1  ;;  %s1630_s24 = sphi %s1674_s24, %s17_s24  }
   0x2   : > { %p237_p1 = scmp.lt.s32.totalorder %s1630_s24, 3 }
   0x4   : > { %p238_p2 = pnand %p1340_p0, %p237_p1 }
   0x5   : > { %p269_p3 = scmp.lt.s32.totalorder (!%p238_p2), %s1336_s25, 1 }
   0x6   : > { %241 = sbr.rel (%p238_p2) target bundleno = 673 (0x2a1), region = 48 }
   0xb   : > { %v1593_v0 = vld [vmem:[%s1844_s1 + $0x18] sm:$0xff]   ;;  %v1594_v1 = vld [vmem:[%s1844_s1 + $0x10] sm:$0xff]   ;;  %v1595_v2 = vld [vmem:[%s1844_s1 + $0x28] sm:$0xff]   ;;  %s1852_s25 = smov (!%p269_p3, %s1336_s25), 1  ;;  %vm341_vm0 = vsmask.f32 7424 }
   0xc   : > { %1486 = vmatprep.subr.bf16.mxu1 %v1593_v0  ;;  %1502 = vmatprep.subr.bf16.mxu0 %v1595_v2  ;;  %s1582_s9 = smul.u32 24, %s1852_s25  ;;  %v1598_v3 = vld [vmem:[%s1844_s1 + $0x8] sm:$0xff]   ;;  %v1599_v4 = vld [vmem:[%s1844_s1 + $0x20] sm:$0xff]   ;;  %vm494_vm1 = vcmask 1046528   ;;  %vm369_vm2 = vcmask 261120   ;;  %vm575_vm4 = vcmask 1044480  }
   0xd   : > { %1487 = vmatpush3.bf16.msra.mxu1 %v1593_v0  ;;  %1503 = vmatpush3.bf16.msra.mxu0 %v1595_v2  ;;  %v1602_v11 = vld [vmem:[%s1844_s1 + $0x48] sm:$0xff]   ;;  %v1605_v23 = vld [vmem:[%s1844_s1 + $0x40] sm:$0xff]   ;;  %vm652_vm3 = vsmask.f32 4352  ;;  %v1603_v42 = vld [vmem:[%s1844_s1 + $0x38] sm:$0xff]   ;;  %vm824_vm5 = vcmask 1045504  }
   0xe   : > { %1488 = vmatprep.subr.bf16.mxu1 %v1594_v1  ;;  %s1703_s16 = scalar_lea.vmem %s1843_s0, %s1582_s9  ;;  %1504 = vmatprep.subr.bf16.mxu0 %v1599_v4  ;;  %v1600_v32 = vld [vmem:[%s1844_s1] sm:$0xff]   ;;  %v1609_v37 = vld [vmem:[%s1844_s1 + $0x68] sm:$0xff]   ;;  %v1606_v57 = vld [vmem:[%s1844_s1 + $0x30] sm:$0xff]   ;;  %vm901_vm6 = vsmask.f32 5376  ;;  %vm1095_vm7 = vcmask 1043456  }
   0xf   : > { %v327_v5 = vld [vmem:[%s1703_s16] sm:$0xf]  ;;  %v1707_v6 = vld [vmem:[%s1703_s16 + $0x4] sm:$0xf]  ;;  %v1710_v7 = vld [vmem:[%s1703_s16 + $0x8] sm:$0xf] }
  0x10   : > { %v330_v8 = vld [vmem:[%s1703_s16 + $0xc] sm:$0x1]  ;;  %v1376_v9 = vcombine.low %v327_v5, %v1707_v6  ;;  %v490_v10 = vld [vmem:[%s1703_s16] sm:$0xe]  ;;  %v810_v44 = vld [vmem:[%s1703_s16 + $0x4] sm:$0xc]  ;;  %v1382_v55 = vcombine.low %v1710_v7, %v1710_v7 }
  0x11   : > { %1489 = vmatpush3.bf16.msra.mxu1 %v1594_v1  ;;  %v1377_v12 = vcombine.low %v1710_v7, %v330_v8  ;;  %1505 = vmatpush3.bf16.msra.mxu0 %v1599_v4  ;;  %v1387_v13 = vcombine.low %v490_v10, %v1707_v6  ;;  %v1724_v24 = vld [vmem:[%s1703_s16] sm:$0x8]  ;;  %v1727_v25 = vld [vmem:[%s1703_s16 + $0xc] sm:$0xf]  ;;  %v811_v45 = vld [vmem:[%s1703_s16 + $0x8] sm:$0xf] }
  0x12   : > { %1494 = vmatprep.subr.bf16.mxu1 %v1598_v3  ;;  %v343_v14 = vshrl.u32 %v1376_v9, 16  ;;  %v345_v15 = vshll.u32 %v1376_v9, 16  ;;  %1518 = vmatprep.subr.bf16.mxu0 %v1602_v11  ;;  %v1392_v27 = vcombine.low %v1724_v24, %v1707_v6  ;;  %v1398_v28 = vcombine.low %v1710_v7, %v1727_v25  ;;  %v568_v30 = vld [vmem:[%s1703_s16 + $0xc] sm:$0x7]  ;;  %v813_v50 = vld [vmem:[%s1703_s16 + $0x10] sm:$0x3] }
  0x13   : > { %v350_v16 = vshll.u32 %v1377_v12, 16  ;;  %v354_v17 = vshrl.u32 %v1377_v12, 16  ;;  %v495_v18 = vrot.slane %v1387_v13, 1  ;;  %v496_v19 = vrot.slane %v1377_v12, 1  ;;  %v812_v49 = vld [vmem:[%s1703_s16 + $0xc] sm:$0xf] }
  0x14   : > { %v347_v20 = vrot.slane %v345_v15, 1  ;;  %v654_v33 = vshrl.u32 %v1392_v27, 16  ;;  %v657_v34 = vshll.u32 %v1392_v27, 16  ;;  %v662_v35 = vshrl.u32 %v1398_v28, 16  ;;  %v897_v54 = vld [vmem:[%s1703_s16 + $0x10] sm:$0x7] }
  0x15   : > { %v352_v21 = vrot.slane %v350_v16, 1  ;;  %v497_v22 = vsel %vm494_vm1, %v495_v18, %v496_v19  ;;  %v665_v36 = vshll.u32 %v1398_v28, 16  ;;  %v1393_v38 = vcombine.low %v1710_v7, %v568_v30  ;;  %v1612_v61 = vld [vmem:[%s1844_s1 + $0x60] sm:$0xff]   ;;  %v1617_v2 = vld [vmem:[%s1844_s1 + $0x88] sm:$0xff]   ;;  %v1613_v13 = vld [vmem:[%s1844_s1 + $0x50] sm:$0xff]   ;;  %s1439_s15 = sshll.u32 %s1852_s25, 4 }
  0x16   : > { %v348_v26 = vor.u32 %v347_v20, %v343_v14  ;;  %1506 = vmatprep.mubr.msk.bf16.mxu0 %vm369_vm2, %v497_v22  ;;  %v656_v39 = vrot.slane %v654_v33, 3  ;;  %v659_v40 = vrot.slane %v657_v34, 4  ;;  %v664_v41 = vrot.slane %v662_v35, 3  ;;  %v988_v63 = vld [vmem:[%s1703_s16 + $0x4] sm:$0x8]  ;;  %v1619_v20 = vld [vmem:[%s1844_s1 + $0x78] sm:$0xff]   ;;  %s278_s20 = scalar_lea.vmem %s1850_s7, %s1439_s15 }
  0x17   : > { %v356_v29 = vor.u32 %v354_v17, %v352_v21  ;;  %1507 = vmatmul.mubr.msk.bf16.vlgmr.msra.gmra.mxu0 %vm369_vm2, %v496_v19  ;;  %v667_v43 = vrot.slane %v665_v36, 4  ;;  %v576_v47 = vrot.slane %v1392_v27, 3  ;;  %v577_v48 = vrot.slane %v1393_v38, 3  ;;  %v1621_v14 = vld [vmem:[%s1844_s1 + $0x80] sm:$0xff]  }
  0x18   : > { %v353_v31 = vsel %vm341_vm0, %v348_v26, %v352_v21  ;;  %1519 = vmatpush3.bf16.msra.mxu0 %v1602_v11  ;;  %v660_v46 = vor.u32 %v659_v40, %v656_v39  ;;  %v1409_v51 = vcombine.low %v810_v44, %v811_v45  ;;  %v1410_v53 = vcombine.low %v812_v49, %v813_v50  ;;  %v1622_v26 = vld [vmem:[%s1844_s1 + $0x70] sm:$0xff]   ;;  %v325_v28 = vld [vmem:[%s1846_s3] sm:$0xf] }
  0x19   : > { %1490 = vmatprep.mubr.msk.bf16.mxu1 %vm369_vm2, %v353_v31  ;;  %1520 = vmatprep.subr.bf16.mxu0 %v1605_v23  ;;  %v668_v52 = vor.u32 %v667_v43, %v664_v41  ;;  %v578_v60 = vsel %vm575_vm4, %v576_v47, %v577_v48  ;;  %v1415_v62 = vcombine.low %v812_v49, %v897_v54  ;;  %vm1088_vm8 = vcmask 64512  }
  0x1a   : > { %1491 = vmatmul.mubr.msk.bf16.vlgmr.msra.gmra.mxu1 %vm369_vm2, %v356_v29  ;;  %v825_v56 = vrot.slane %v1409_v51, 2  ;;  %v826_v59 = vrot.slane %v1410_v53, 2  ;;  %v1420_v1 = vcombine.low %v988_v63, %v811_v45  ;;  %v903_v4 = vshrl.u32 %v1409_v51, 16 }
  0x1b   : > { %1495 = vmatpush3.bf16.msra.mxu1 %v1598_v3  ;;  %1498 = vmatprep.mubr.msk.bf16.mxu1 %vm369_vm2, %v1376_v9  ;;  %v669_v58 = vsel %vm652_vm3, %v660_v46, %v668_v52  ;;  %v1611_v3 = vld [vmem:[%s1844_s1 + $0x58] sm:$0xff]   ;;  %v906_v5 = vshll.u32 %v1409_v51, 16  ;;  %v911_v8 = vshrl.u32 %v1415_v62, 16  ;;  %v914_v9 = vshll.u32 %v1415_v62, 16 }
  0x1c   : > { %1496 = vmatprep.subr.bf16.mxu1 %v1600_v32  ;;  %1521 = vmatpush3.bf16.msra.mxu0 %v1605_v23  ;;  %v827_v0 = vsel %vm824_vm5, %v825_v56, %v826_v59  ;;  %v992_v10 = vrot.slane %v1420_v1, 3  ;;  %v993_v11 = vrot.slane %v1415_v62, 3  ;;  %v1403_v12 = vcombine.low %v1707_v6, %v1710_v7 }
  0x1d   : > { %1534 = vmatprep.subr.bf16.mxu0 %v1609_v37  ;;  %1522 = vmatprep.mubr.msk.bf16.mxu0 %vm369_vm2, %v669_v58  ;;  %v905_v15 = vrot.slane %v903_v4, 2  ;;  %v908_v16 = vrot.slane %v906_v5, 3  ;;  %v913_v17 = vrot.slane %v911_v8, 2  ;;  %v916_v18 = vrot.slane %v914_v9, 3 }
  0x1e   : > { %v994_v19 = vsel %vm575_vm4, %v992_v10, %v993_v11  ;;  %v1404_v23 = vcombine.low %v1727_v25, %v1727_v25  ;;  %v1097_v29 = vsel %vm1095_vm7, %v325_v28, 0  ;;  %vm1633_vm9 = vmmov 0  }
  0x1f   : > { %1497 = vmatpush3.bf16.msra.mxu1 %v1600_v32  ;;  %1523 = vmatmul.mubr.msk.bf16.vlgmr.msra.gmra.mxu0 %vm369_vm2, %v668_v52  ;;  %v909_v21 = vor.u32 %v908_v16, %v905_v15  ;;  %v917_v22 = vor.u32 %v916_v18, %v913_v17  ;;  %vm1151_vm10 = vcmask 1040384   ;;  %vm1268_vm11 = vcmask 60416  }
  0x20   : > { %1510 = vmatprep.subr.bf16.mxu1 %v1603_v42  ;;  %1535 = vmatpush3.bf16.msra.mxu0 %v1609_v37  ;;  %vm1271_vm12 = vcmask 64518   ;;  %vm1273_vm13 = vcmask 58368   ;;  %vm1276_vm14 = vcmask 64516   ;;  %vm1279_vm15 = vcmask 62466  }
  0x21   : > { %1536 = vmatprep.subr.bf16.mxu0 %v1612_v61  ;;  %1538 = vmatprep.mubr.msk.bf16.mxu0 %vm369_vm2, %v827_v0  ;;  %v918_v27 = vsel %vm901_vm6, %v909_v21, %v917_v22 }
  0x22   : > { %1499 = vmatmul.mubr.msk.bf16.vlgmr.msra.gmra.mxu1 %vm369_vm2, %v1382_v55 }
  0x23   : > { %1511 = vmatpush3.bf16.msra.mxu1 %v1603_v42  ;;  %1514 = vmatprep.mubr.msk.bf16.mxu1 %vm369_vm2, %v578_v60 }
  0x24   : > { %1512 = vmatprep.subr.bf16.mxu1 %v1606_v57  ;;  %1537 = vmatpush3.bf16.msra.mxu0 %v1612_v61 }
  0x25   : > { %1550 = vmatprep.subr.bf16.mxu0 %v1617_v2 }
  0x27   : > { %1513 = vmatpush3.bf16.msra.mxu1 %v1606_v57  ;;  %1539 = vmatmul.mubr.msk.bf16.vlgmr.msra.gmra.mxu0 %vm369_vm2, %v826_v59 }
  0x28   : > { %1526 = vmatprep.subr.bf16.mxu1 %v1611_v3  ;;  %1551 = vmatpush3.bf16.msra.mxu0 %v1617_v2 }
  0x29   : > { %1552 = vmatprep.subr.bf16.mxu0 %v1621_v14  ;;  %1554 = vmatprep.mubr.msk.bf16.mxu0 %vm369_vm2, %v994_v19 }
  0x2a   : > { %1515 = vmatmul.mubr.msk.bf16.vlgmr.msra.gmra.mxu1 %vm369_vm2, %v577_v48 }
  0x2b   : > { %1527 = vmatpush3.bf16.msra.mxu1 %v1611_v3  ;;  %1530 = vmatprep.mubr.msk.bf16.mxu1 %vm369_vm2, %v1403_v12 }
  0x2c   : > { %1528 = vmatprep.subr.bf16.mxu1 %v1613_v13  ;;  %1553 = vmatpush3.bf16.msra.mxu0 %v1621_v14 }
  0x2f   : > { %1529 = vmatpush3.bf16.msra.mxu1 %v1613_v13  ;;  %1555 = vmatmul.mubr.msk.bf16.vlgmr.msra.gmra.mxu0 %vm369_vm2, %v993_v11 }
  0x30   : > { %1542 = vmatprep.subr.bf16.mxu1 %v1619_v20 }
  0x32   : > { %1531 = vmatmul.mubr.msk.bf16.vlgmr.msra.gmra.mxu1 %vm369_vm2, %v1404_v23 }
  0x33   : > { %1543 = vmatpush3.bf16.msra.mxu1 %v1619_v20  ;;  %1546 = vmatprep.mubr.msk.bf16.mxu1 %vm369_vm2, %v918_v27 }
  0x34   : > { %1544 = vmatprep.subr.bf16.mxu1 %v1622_v26 }
  0x37   : > { %1545 = vmatpush3.bf16.msra.mxu1 %v1622_v26 }
  0x38   : > { %1581 = vmatprep.subr.msk.bf16.mxu1 %vm1095_vm7, %v325_v28 }
  0x3a   : > { %1547 = vmatmul.mubr.msk.bf16.vlgmr.msra.gmra.mxu1 %vm369_vm2, %v917_v22  ;;  %v1425_v22 = vld [vmem:[%s1845_s2] ss:$0 sm:$0xff] }
  0x3b   : > { %1559 = vmatpush3.bf16.msra.mxu1 %v1097_v29 }
  0xd7   : > { %v1508_v30 = vpop.f32.mrf.mxu0 }
  0xd9   : > { %v550_v31 = vpop.f32.mrf.mxu0 }
  0xda   : > { %v1492_v32 = vpop.f32.mrf.mxu1 }
  0xdb   : > { %v1509_v33 = vpop.f32.mrf.mxu0 }
  0xdc   : > { %v410_v34 = vpop.f32.mrf.mxu1 }
  0xdd   : > { %v553_v35 = vpop.f32.mrf.mxu0 }
  0xde   : > { %v1493_v36 = vpop.f32.mrf.mxu1 }
  0xdf   : > { %v1524_v38 = vpop.f32.mrf.mxu0 }
  0xe0   : > { %v413_v37 = vpop.f32.mrf.mxu1 }
  0xe1   : > { %v722_v40 = vpop.f32.mrf.mxu0 }
  0xe2   : > { %v1500_v39 = vpop.f32.mrf.mxu1 }
  0xe3   : > { %v1525_v42 = vpop.f32.mrf.mxu0  ;;  %v485_v46 = vadd.f32 %v1500_v39, %v1492_v32  ;;  %v1632_v39 = vmov 0.0  }
  0xe4   : > { %v476_v41 = vpop.f32.mrf.mxu1  ;;  %1564 = vmatprep.subr.mxu0 %v1632_v39  ;;  %v1169_v42 = vld [vmem:[%s1848_s5 + $0x8] sm:$0xff]  ;;  %1572 = vmatprep.mubr.msk.f32.mxu0 %vm1633_vm9, %v1632_v39 }
  0xe5   : > { %v725_v44 = vpop.f32.mrf.mxu0  ;;  %v477_v49 = vadd.f32 %v476_v41, %v410_v34  ;;  %v566_v52 = vadd.f32 %v1508_v30, %v485_v46  ;;  %v1170_v41 = vld [vmem:[%s1848_s5 + $0x10] sm:$0xff] }
  0xe6   : > { %v1501_v43 = vpop.f32.mrf.mxu1 }
  0xe7   : > { %v1540_v47 = vpop.f32.mrf.mxu0  ;;  %v564_v57 = vadd.f32 %v550_v31, %v477_v49  ;;  %v1168_v43 = vld [vmem:[%s1848_s5] sm:$0xff]  ;;  %v1081_v49 = vunpack.c.l.bf16 %v1727_v25 }
  0xe8   : > { %v479_v45 = vpop.f32.mrf.mxu1 }
  0xe9   : > { %v880_v50 = vpop.f32.mrf.mxu0  ;;  %v480_v55 = vadd.f32 %v479_v45, %v413_v37  ;;  %v1079_v45 = vunpack.c.l.bf16 %v1707_v6 }
  0xea   : > { %v1516_v48 = vpop.f32.mrf.mxu1 }
  0xeb   : > { %v1541_v53 = vpop.f32.mrf.mxu0  ;;  %v647_v56 = vadd.f32 %v1516_v48, %v566_v52  ;;  %v565_v63 = vadd.f32 %v553_v35, %v480_v55  ;;  %v1080_v48 = vunpack.c.l.bf16 %v1710_v7 }
  0xec   : > { %v631_v51 = vpop.f32.mrf.mxu1 }
  0xed   : > { %v883_v58 = vpop.f32.mrf.mxu0  ;;  %v645_v60 = vadd.f32 %v631_v51, %v564_v57  ;;  %v738_v0 = vadd.f32 %v1524_v38, %v647_v56  ;;  %v1426_v51 = vld [vmem:[%s1847_s4] ss:$0 sm:$0xff]  ;;  %v1155_v55 = vrot.slane %v1080_v48, 7  ;;  %v1157_v56 = vrot.slane %v1081_v49, 7 }
  0xee   : > { %v1517_v54 = vpop.f32.mrf.mxu1 }
  0xef   : > { %v1556_v61 = vpop.f32.mrf.mxu0  ;;  %v736_v5 = vadd.f32 %v722_v40, %v645_v60  ;;  %v1171_v40 = vld [vmem:[%s1848_s5 + $0x18] sm:$0xff]  ;;  %v1158_v25 = vsel %vm1151_vm10, %v1155_v55, %v1157_v56 }
  0xf0   : > { %v634_v59 = vpop.f32.mrf.mxu1  ;;  %1565 = vmatpush3.msra.mxu0 %v1171_v40 }
  0xf1   : > { %v1047_v1 = vpop.f32.mrf.mxu0  ;;  %v646_v3 = vadd.f32 %v634_v59, %v565_v63  ;;  %1566 = vmatprep.subr.mxu0 %v1632_v39 }
  0xf2   : > { %v1532_v62 = vpop.f32.mrf.mxu1  ;;  %1567 = vmatpush3.msra.mxu0 %v1170_v41 }
  0xf3   : > { %v809_v4 = vadd.f32 %v1532_v62, %v738_v0  ;;  %v1557_v8 = vpop.f32.mrf.mxu0  ;;  %v737_v12 = vadd.f32 %v725_v44, %v646_v3  ;;  %1568 = vmatprep.subr.mxu0 %v1632_v39  ;;  %v1078_v44 = vunpack.c.l.bf16 %v1724_v24 }
  0xf4   : > { %v793_v2 = vpop.f32.mrf.mxu1  ;;  %1569 = vmatpush3.msra.mxu0 %v1169_v42 }
  0xf5   : > { %v807_v10 = vadd.f32 %v793_v2, %v736_v5  ;;  %v896_v13 = vadd.f32 %v1540_v47, %v809_v4  ;;  %v1050_v30 = vpop.f32.mrf.mxu0  ;;  %1570 = vmatprep.subr.mxu0 %v1632_v39  ;;  %v1152_v46 = vrot.slane %v1078_v44, 7  ;;  %v1153_v47 = vrot.slane %v1079_v45, 7 }
  0xf6   : > { %v1533_v9 = vpop.f32.mrf.mxu1  ;;  %1571 = vmatpush3.msra.mxu0 %v1168_v43 }
  0xf7   : > { %v894_v17 = vadd.f32 %v880_v50, %v807_v10  ;;  %v1154_v53 = vsel %vm1151_vm10, %v1152_v46, %v1153_v47 }
  0xf8   : > { %v796_v11 = vpop.f32.mrf.mxu1 }
  0xf9   : > { %v808_v15 = vadd.f32 %v796_v11, %v737_v12 }
  0xfa   : > { %v1548_v14 = vpop.f32.mrf.mxu1 }
  0xfb   : > { %v987_v16 = vadd.f32 %v1548_v14, %v896_v13  ;;  %v895_v26 = vadd.f32 %v883_v58, %v808_v15  ;;  %v1156_v58 = vsel %vm1151_vm10, %v1153_v47, %v1155_v55 }
  0xfc   : > { %v971_v18 = vpop.f32.mrf.mxu1 }
  0xfd   : > { %v985_v19 = vadd.f32 %v971_v18, %v894_v17  ;;  %v1063_v20 = vadd.f32 %v1556_v61, %v987_v16 }
  0xfe   : > { %v1549_v21 = vpop.f32.mrf.mxu1 }
  0xff   : > { %v1061_v23 = vadd.f32 %v1047_v1, %v985_v19  ;;  %v1072_v29 = vadd.f32 %v1425_v22, %v1063_v20  ;;  %v1429_v1 = vld [vmem:[%s1849_s6] ss:$0 sm:$0xff] }
 0x100   : > { %v974_v27 = vpop.f32.mrf.mxu1 }
 0x101   : > { %v986_v28 = vadd.f32 %v974_v27, %v895_v26  ;;  %v1070_v31 = vadd.f32 %v1425_v22, %v1061_v23  ;;  %v1075_v34 = vmax.f32 %v1072_v29, 0.0 }
 0x103   : > { %v1062_v32 = vadd.f32 %v1050_v30, %v986_v28  ;;  %v1073_v35 = vmax.f32 %v1070_v31, 0.0  ;;  %v1077_v38 = vpack.c.bf16 %v1075_v34, %v1075_v34 }
 0x105   : > { %v1071_v33 = vadd.f32 %v1425_v22, %v1062_v32 }
 0x107   : > { %v1074_v36 = vmax.f32 %v1071_v33, 0.0 }
 0x109   : > { %v1076_v37 = vpack.c.bf16 %v1074_v36, %v1073_v35 }
 0x10b   : > { %1560 = vmatprep.mubr.msk.bf16.mxu1 %vm1088_vm8, %v1076_v37 }
 0x10c   : > { %1561 = vmatmul.mubr.msk.bf16.vlgmr.msra.gmra.mxu1 %vm1088_vm8, %v1077_v38 }
 0x1cc   : > { %v1562_v50 = vpop.f32.mrf.mxu1 }
 0x1cd   : > { %v1142_v59 = vadd.f32 %v1562_v50, %v1426_v51 }
 0x1ce   : > { %v1133_v52 = vpop.f32.mrf.mxu1 }
 0x1cf   : > { %v1134_v54 = vadd.f32 %v1426_v51, %v1133_v52  ;;  %v1164_v62 = vadd.f32 %v1158_v25, %v1142_v59 }
 0x1d0   : > { %v1563_v24 = vpop.f32.mrf.mxu1 }
 0x1d1   : > { %v1162_v57 = vadd.f32 %v1154_v53, %v1134_v54  ;;  %v1167_v0 = vmax.f32 %v1164_v62, 0.0 }
 0x1d2   : > { %v1136_v6 = vpop.f32.mrf.mxu1 }
 0x1d3   : > { %v1165_v7 = vmax.f32 %v1162_v57, 0.0  ;;  %v1137_v60 = vadd.f32 %v1426_v51, %v1136_v6 }
 0x1d5   : > { %v1163_v61 = vadd.f32 %v1156_v58, %v1137_v60  ;;  %1573 = vmatmul.mubr.msk.f32.vlgmr.msra.gmra.mxu0 %vm369_vm2, %v1165_v7 }
 0x1d6   : > { %1575 = vmatprep.mubr.msk.f32.mxu0 %vm1633_vm9, %v1632_v39 }
 0x1d7   : > { %v1166_v63 = vmax.f32 %v1163_v61, 0.0 }
 0x1d9   : > { %1576 = vmatmul.mubr.msk.f32.gmra.mxu0 %vm369_vm2, %v1166_v63 }
 0x1da   : > { %1578 = vmatprep.mubr.msk.f32.mxu0 %vm1633_vm9, %v1632_v39 }
 0x1dd   : > { %1579 = vmatmul.mubr.msk.f32.gmra.mxu0 %vm369_vm2, %v1167_v0 }
 0x295   : > { %v1254_v2 = vpop.f32.mrf.mxu0 }
 0x296   : > { %v1255_v3 = vadd.f32 %v1429_v1, %v1254_v2 }
 0x297   : > { %v1574_v4 = vpop.f32.mrf.mxu0 }
 0x298   : > { %1269 = vst.msk [vmem:[%s278_s20] sm:$0xf] %vm1268_vm11, %v1255_v3 }
 0x299   : > { %1433 = vst.msk [vmem:[%s278_s20 - $0x2] sm:$0xc0] %vm1271_vm12, %v1255_v3  ;;  %v1259_v5 = vpop.f32.mrf.mxu0 }
 0x29a   : > { %v1260_v8 = vadd.f32 %v1429_v1, %v1259_v5 }
 0x29b   : > { %v1577_v9 = vpop.f32.mrf.mxu0 }
 0x29c   : > { %1434 = vst.msk [vmem:[%s278_s20 + $0x6] sm:$0x3] %vm1273_vm13, %v1260_v8 }
 0x29d   : > { %1435 = vst.msk [vmem:[%s278_s20 + $0x4] sm:$0xf0] %vm1276_vm14, %v1260_v8  ;;  %v1264_v10 = vpop.f32.mrf.mxu0 }
 0x29e   : > { %v1265_v11 = vadd.f32 %v1429_v1, %v1264_v10 }
 0x29f   : > { %v1580_v12 = vpop.f32.mrf.mxu0 }
 0x2a0   : > { %1436 = vst.msk [vmem:[%s278_s20 + $0xa] sm:$0x3c] %vm1279_vm15, %v1265_v11 }
 0x2a1 PF: > { %s17_s24 = sadd.s32 1, %s1630_s24  }
 0x2a2   : > { %p14_p4 = scmp.ge.s32.totalorder %s17_s24, 4  }
 0x2a4   :  { %16 = sbr.rel (!%p14_p4) target bundleno = 1 (0x1), region = 89 }

// kernel: vqvae_forward.16
= control target key start
LH: loop header
LB: loop body
LE: loop exit
PB: predicated region body
PF: predicated region fallthrough
CT: control target
= control target key end

     0   :  { %vm25_vm0 = vcmask 64512   ;;  %vm137_vm1 = vcmask 261120   ;;  %v150_v22 = vlaneseq  ;;  %vm337_vm10 = vcmask 7168   ;;  %s526_s1 = inlined_call_operand.vmem [shape: f32[8,32], index: 1, kind: input, shape index: {}]   ;;  %s527_s0 = inlined_call_operand.vmem [shape: f32[32,8], index: 0, kind: input, shape index: {}]   ;;  %s528_s3 = inlined_call_operand.vmem [shape: f32[1,32], index: 3, kind: input, shape index: {}]   ;;  %s529_s2 = inlined_call_operand.vmem [shape: f32[32,8], index: 2, kind: input, shape index: {}]   ;;  %s530_s5 = inlined_call_operand.vmem [shape: s32[32,1], index: 5, kind: output, shape index: {1}]   ;;  %s531_s4 = inlined_call_operand.vmem [shape: f32[32,8], index: 4, kind: output, shape index: {0}]  }
   0x1   :  { %v24_v0 = vld [vmem:[%s526_s1] sm:$0xff]  ;;  %v20_v2 = vld [vmem:[%s527_s0 + $0x8] sm:$0xff]  ;;  %v21_v3 = vld [vmem:[%s527_s0 + $0x10] sm:$0xff] }
   0x2   :  { %v19_v1 = vld [vmem:[%s527_s0] sm:$0xff]  ;;  %376 = vmatprep.subr.mxu0 %v24_v0  ;;  %v22_v4 = vld [vmem:[%s527_s0 + $0x18] sm:$0xff]  ;;  %v464_v23 = vand.u32 127, %v150_v22  ;;  %v234_v61 = vld [vmem:[%s529_s2 + $0x10] sm:$0xff] }
   0x3   :  { %378 = vmatprep.mubr.msk.f32.mxu0 %vm25_vm0, %v19_v1  ;;  %377 = vmatpush3.msra.mxu0 %v24_v0  ;;  %v354_v6 = vld [vmem:[%s528_s3] ss:$0 sm:$0xff]  ;;  %v235_v60 = vld [vmem:[%s529_s2 + $0x18] sm:$0xff]  ;;  %v233_v62 = vld [vmem:[%s529_s2 + $0x8] sm:$0xff] }
   0x4   :  { %379 = vmatmul.mubr.msk.f32.vlgmr.msra.gmra.mxu0 %vm25_vm0, %v20_v2  ;;  %384 = vmatprep.subr.mxu0 %v235_v60  ;;  %v232_v63 = vld [vmem:[%s529_s2] sm:$0xff] }
   0x5   :  { %381 = vmatprep.mubr.msk.f32.mxu0 %vm25_vm0, %v21_v3  ;;  %398 = vmatprep.subr.mxu1 %v235_v60 }
   0x6   :  { %385 = vmatpush3.msra.mxu0 %v235_v60  ;;  %402 = vmatpush3.msra.mxu1 %v235_v60 }
   0x7   :  { %386 = vmatprep.subr.mxu0 %v234_v61  ;;  %399 = vmatprep.subr.mxu1 %v234_v61 }
   0x8   :  { %382 = vmatmul.mubr.msk.f32.gmra.mxu0 %vm25_vm0, %v22_v4  ;;  %403 = vmatpush3.msra.mxu1 %v234_v61 }
   0x9   :  { %387 = vmatpush3.msra.mxu0 %v234_v61  ;;  %400 = vmatprep.subr.mxu1 %v233_v62 }
   0xa   :  { %388 = vmatprep.subr.mxu0 %v233_v62  ;;  %404 = vmatpush3.msra.mxu1 %v233_v62 }
   0xb   :  { %389 = vmatpush3.msra.mxu0 %v233_v62  ;;  %401 = vmatprep.subr.mxu1 %v232_v63 }
   0xc   :  { %390 = vmatprep.subr.mxu0 %v232_v63  ;;  %405 = vmatpush3.msra.mxu1 %v232_v63 }
   0xd   :  { %391 = vmatpush3.msra.mxu0 %v232_v63 }
  0xc4   :  { %v380_v5 = vpop.f32.mrf.mxu0 }
  0xc5   :  { %v124_v7 = vmul.f32 2.0, %v380_v5 }
  0xc6   :  { %v104_v8 = vpop.f32.mrf.mxu0 }
  0xc7   :  { %v123_v9 = vmul.f32 2.0, %v104_v8  ;;  %v134_v10 = vsub.f32 %v354_v6, %v124_v7 }
  0xc8   :  { %v383_v11 = vpop.f32.mrf.mxu0 }
  0xc9   :  { %v126_v12 = vmul.f32 2.0, %v383_v11  ;;  %v141_v13 = vsel %vm137_vm1, %v134_v10, inf  ;;  %v133_v14 = vsub.f32 %v354_v6, %v123_v9 }
  0xca   :  { %142 = vmin.xlane.f32.xlu1 %v141_v13  ;;  %v114_v15 = vpop.f32.mrf.mxu0 }
  0xcb   :  { %v125_v16 = vmul.f32 2.0, %v114_v15  ;;  %v138_v17 = vsel %vm137_vm1, %v133_v14, inf  ;;  %v136_v18 = vsub.f32 %v354_v6, %v126_v12 }
  0xcc   :  { %139 = vmin.xlane.f32.xlu0 %v138_v17 }
  0xcd   :  { %v147_v19 = vsel %vm137_vm1, %v136_v18, inf  ;;  %v135_v20 = vsub.f32 %v354_v6, %v125_v16 }
  0xce   :  { %148 = vmin.xlane.f32.xlu1 %v147_v19 }
  0xcf   :  { %v144_v21 = vsel %vm137_vm1, %v135_v20, inf }
  0xd0   :  { %145 = vmin.xlane.f32.xlu0 %v144_v21 }
 0x153   :  { %v143_v24 = vpop.xlane.xlu1 %142 }
 0x154   :  { %vm153_vm2 = vcmp.le.f32.partialorder %v134_v10, %v143_v24 }
 0x155   :  { %v157_v25 = vsel %vm153_vm2, %v464_v23, 1073741824  ;;  %v140_v26 = vpop.xlane.xlu0 %139 }
 0x156   :  { %vm152_vm3 = vcmp.le.f32.partialorder %v133_v14, %v140_v26  ;;  %v175_v29 = vsel %vm137_vm1, %v157_v25, 2147483647  ;;  %v407_v14 = vmov 0.0  }
 0x157   :  { %v156_v27 = vsel %vm152_vm3, %v464_v23, 1073741824  ;;  %v149_v28 = vpop.xlane.xlu1 %148  ;;  %v177_v36 = vshra.s32 %v175_v29, 16  ;;  %v176_v48 = vand.u32 65535, %v175_v29 }
 0x158   :  { %v160_v30 = vsel %vm137_vm1, %v156_v27, 2147483647  ;;  %vm155_vm4 = vcmp.le.f32.partialorder %v136_v18, %v149_v28 }
 0x159   :  { %v159_v31 = vsel %vm155_vm4, %v464_v23, 1073741824  ;;  %v146_v32 = vpop.xlane.xlu0 %145  ;;  %v162_v33 = vshra.s32 %v160_v30, 16  ;;  %v179_v40 = vcvt.s32.f32 %v177_v36  ;;  %v161_v44 = vand.u32 65535, %v160_v30 }
 0x15a   :  { %vm154_vm5 = vcmp.le.f32.partialorder %v135_v20, %v146_v32  ;;  %v205_v37 = vsel %vm137_vm1, %v159_v31, 2147483647  ;;  %v178_v53 = vcvt.s32.f32 %v176_v48 }
 0x15b   :  { %v158_v34 = vsel %vm154_vm5, %v464_v23, 1073741824  ;;  %v164_v35 = vcvt.s32.f32 %v162_v33  ;;  %v207_v42 = vshra.s32 %v205_v37, 16  ;;  %v163_v46 = vcvt.s32.f32 %v161_v44 }
 0x15c   :  { %v190_v38 = vsel %vm137_vm1, %v158_v34, 2147483647  ;;  %v206_v54 = vand.u32 65535, %v205_v37 }
 0x15d   :  { %165 = vmin.xlane.f32.xlu0 %v164_v35  ;;  %v192_v39 = vshra.s32 %v190_v38, 16  ;;  %v209_v43 = vcvt.s32.f32 %v207_v42  ;;  %v191_v47 = vand.u32 65535, %v190_v38 }
 0x15e   :  { %v208_v58 = vcvt.s32.f32 %v206_v54 }
 0x15f   :  { %v194_v41 = vcvt.s32.f32 %v192_v39  ;;  %v193_v52 = vcvt.s32.f32 %v191_v47 }
 0x161   :  { %180 = vmin.xlane.f32.xlu0 %v179_v40  ;;  %195 = vmin.xlane.f32.xlu1 %v194_v41 }
 0x165   :  { %210 = vmin.xlane.f32.xlu1 %v209_v43 }
 0x1e6   :  { %v166_v45 = vpop.xlane.xlu0 %165 }
 0x1e7   :  { %vm167_vm6 = vcmp.eq.f32.partialorder %v164_v35, %v166_v45  ;;  %v172_v0 = vcvt.f32.s32 %v166_v45 }
 0x1e8   :  { %v168_v49 = vsel %vm167_vm6, %v163_v46, inf }
 0x1e9   :  { %169 = vmin.xlane.f32.xlu0 %v168_v49  ;;  %v173_v4 = vshll.u32 %v172_v0, 16 }
 0x1ea   :  { %v196_v50 = vpop.xlane.xlu1 %195  ;;  %v181_v51 = vpop.xlane.xlu0 %180 }
 0x1eb   :  { %vm197_vm7 = vcmp.eq.f32.partialorder %v194_v41, %v196_v50  ;;  %vm182_vm8 = vcmp.eq.f32.partialorder %v179_v40, %v181_v51  ;;  %v202_v1 = vcvt.f32.s32 %v196_v50  ;;  %v187_v2 = vcvt.f32.s32 %v181_v51 }
 0x1ec   :  { %v198_v55 = vsel %vm197_vm7, %v193_v52, inf  ;;  %v183_v56 = vsel %vm182_vm8, %v178_v53, inf }
 0x1ed   :  { %199 = vmin.xlane.f32.xlu1 %v198_v55  ;;  %184 = vmin.xlane.f32.xlu0 %v183_v56  ;;  %v203_v7 = vshll.u32 %v202_v1, 16  ;;  %v188_v8 = vshll.u32 %v187_v2, 16 }
 0x1ee   :  { %v211_v57 = vpop.xlane.xlu1 %210 }
 0x1ef   :  { %vm212_vm9 = vcmp.eq.f32.partialorder %v209_v43, %v211_v57  ;;  %v217_v11 = vcvt.f32.s32 %v211_v57 }
 0x1f0   :  { %v213_v59 = vsel %vm212_vm9, %v208_v58, inf }
 0x1f1   :  { %214 = vmin.xlane.f32.xlu1 %v213_v59  ;;  %v218_v19 = vshll.u32 %v217_v11, 16 }
 0x272   :  { %v170_v3 = vpop.xlane.xlu0 %169 }
 0x273   :  { %v171_v5 = vcvt.f32.s32 %v170_v3 }
 0x275   :  { %v174_v6 = vadd.s32 %v173_v4, %v171_v5 }
 0x276   :  { %v200_v9 = vpop.xlane.xlu1 %199  ;;  %v185_v10 = vpop.xlane.xlu0 %184 }
 0x277   :  { %338 = vst.msk [vmem:[%s530_s5] sm:$0xff] %vm337_vm10, %v174_v6  ;;  %v201_v12 = vcvt.f32.s32 %v200_v9  ;;  %v186_v13 = vcvt.f32.s32 %v185_v10  ;;  %vm220_vm11 = vcmp.eq.s32.totalorder %v464_v23, %v174_v6 }
 0x278   :  { %v355_v15 = vsel %vm220_vm11, 1.0, %v407_v14 }
 0x279   :  { %v204_v16 = vadd.s32 %v203_v7, %v201_v12  ;;  %v189_v17 = vadd.s32 %v188_v8, %v186_v13  ;;  %392 = vmatprep.mubr.msk.f32.mxu0 %vm137_vm1, %v355_v15 }
 0x27a   :  { %v215_v18 = vpop.xlane.xlu1 %214 }
 0x27b   :  { %340 = vst.msk [vmem:[%s530_s5 + $0x10] sm:$0xff] %vm337_vm10, %v204_v16  ;;  %vm221_vm12 = vcmp.eq.s32.totalorder %v464_v23, %v189_v17  ;;  %339 = vst.msk [vmem:[%s530_s5 + $0x8] sm:$0xff] %vm337_vm10, %v189_v17  ;;  %v216_v20 = vcvt.f32.s32 %v215_v18  ;;  %vm222_vm13 = vcmp.eq.s32.totalorder %v464_v23, %v204_v16 }
 0x27c   :  { %v356_v21 = vsel %vm221_vm12, 1.0, %v407_v14  ;;  %v357_v22 = vsel %vm222_vm13, 1.0, %v407_v14 }
 0x27d   :  { %v219_v24 = vadd.s32 %v218_v19, %v216_v20  ;;  %393 = vmatmul.mubr.msk.f32.vlgmr.msra.gmra.mxu0 %vm137_vm1, %v356_v21  ;;  %395 = vmatprep.mubr.msk.f32.mxu1 %vm137_vm1, %v357_v22 }
 0x27f   :  { %vm223_vm14 = vcmp.eq.s32.totalorder %v464_v23, %v219_v24  ;;  %341 = vst.msk [vmem:[%s530_s5 + $0x18] sm:$0xff] %vm337_vm10, %v219_v24 }
 0x280   :  { %v358_v25 = vsel %vm223_vm14, 1.0, %v407_v14 }
 0x281   :  { %396 = vmatmul.mubr.msk.f32.vlgmr.msra.gmra.mxu1 %vm137_vm1, %v358_v25 }
 0x33d   :  { %v394_v26 = vpop.f32.mrf.mxu0 }
 0x33e   :  { %334 = vst.msk [vmem:[%s531_s4 + $0x8] sm:$0xff] %vm25_vm0, %v394_v26 }
 0x33f   :  { %v314_v27 = vpop.f32.mrf.mxu0 }
 0x340   :  { %333 = vst.msk [vmem:[%s531_s4] sm:$0xff] %vm25_vm0, %v314_v27 }
 0x341   :  { %v397_v23 = vpop.f32.mrf.mxu1 }
 0x342   :  { %336 = vst.msk [vmem:[%s531_s4 + $0x18] sm:$0xff] %vm25_vm0, %v397_v23 }
 0x343   :  { %v324_v28 = vpop.f32.mrf.mxu1 }
 0x344   :  { %335 = vst.msk [vmem:[%s531_s4 + $0x10] sm:$0xff] %vm25_vm0, %v324_v28 }

// kernel: vqvae_forward.17
= control target key start
LH: loop header
LB: loop body
LE: loop exit
PB: predicated region body
PF: predicated region fallthrough
CT: control target
= control target key end

     0   :  { %s1168_s12 = smov 0   ;;  %s1315_s0 = inlined_call_operand.vmem [shape: bf16[2,42,8], index: 0, kind: input, shape index: {}]   ;;  %s1316_s1 = inlined_call_operand.vmem [shape: bf16[9,8,32], index: 1, kind: input, shape index: {}]   ;;  %s1317_s2 = inlined_call_operand.vmem [shape: f32[1,32], index: 2, kind: input, shape index: {}]   ;;  %s1318_s3 = inlined_call_operand.vmem [shape: bf16[2,4,4,32], index: 3, kind: output, shape index: {}]  }
   0x1 LB: > { %s969_s13 = sadd.s32 4294967295, %s1145_s12   ;;  %p973_p0 = scmp.ge.s32.totalorder %s1145_s12, 1  ;;  %s1145_s12 = sphi %s1168_s12, %s13_s12  }
   0x2   : > { %p137_p1 = scmp.lt.s32.totalorder %s1145_s12, 3 }
   0x4   : > { %p138_p2 = pnand %p973_p0, %p137_p1 }
   0x5   : > { %p161_p3 = scmp.lt.s32.totalorder (!%p138_p2), %s969_s13, 1 }
   0x6   : > { %141 = sbr.rel (%p138_p2) target bundleno = 274 (0x112), region = 32 }
   0xb   : > { %v977_v0 = vld [vmem:[%s1316_s1 + $0x4] sm:$0xf]  ;;  %vm227_vm0 = vcmask 1043456   ;;  %v173_v1 = vld [vmem:[%s1316_s1] sm:$0xf]  ;;  %s1322_s13 = smov (!%p161_p3, %s969_s13), 1 }
   0xc   : > { %1107 = vmatprep.subr.msk.bf16.mxu0 %vm227_vm0, %v977_v0  ;;  %v229_v2 = vsel %vm227_vm0, %v977_v0, 0  ;;  %1108 = vmatprep.subr.msk.bf16.mxu1 %vm227_vm0, %v173_v1  ;;  %v286_v3 = vsel %vm227_vm0, %v173_v1, 0  ;;  %v978_v4 = vld [vmem:[%s1316_s1 + $0x8] sm:$0xf]  ;;  %v979_v5 = vld [vmem:[%s1316_s1 + $0xc] sm:$0xf] }
   0xd   : > { %1054 = vmatpush3.bf16.msra.mxu0 %v229_v2  ;;  %1060 = vmatpush3.bf16.msra.mxu1 %v286_v3  ;;  %s1116_s22 = smul.u32 24, %s1322_s13  ;;  %vm204_vm1 = vsmask.f32 7424  ;;  %vm220_vm2 = vcmask 64512   ;;  %v423_v6 = vsel %vm227_vm0, %v979_v5, 0  ;;  %vm340_vm3 = vcmask 1046528  }
   0xe   : > { %1109 = vmatprep.subr.msk.bf16.mxu0 %vm227_vm0, %v978_v4  ;;  %1110 = vmatprep.subr.msk.bf16.mxu1 %vm227_vm0, %v979_v5  ;;  %vm412_vm4 = vcmask 1044480   ;;  %v981_v23 = vld [vmem:[%s1316_s1 + $0x14] sm:$0xf]  ;;  %v351_v39 = vsel %vm227_vm0, %v978_v4, 0  ;;  %v980_v52 = vld [vmem:[%s1316_s1 + $0x10] sm:$0xf] }
   0xf   : > { %s1200_s25 = scalar_lea.vmem %s1315_s0, %s1116_s22  ;;  %v567_v55 = vsel %vm227_vm0, %v981_v23, 0  ;;  %v983_v57 = vld [vmem:[%s1316_s1 + $0x1c] sm:$0xf]  ;;  %vm480_vm5 = vsmask.f32 4352  ;;  %vm634_vm7 = vcmask 1045504  }
  0x10   : > { %v190_v7 = vld [vmem:[%s1200_s25] sm:$0xf]  ;;  %v1205_v8 = vld [vmem:[%s1200_s25 + $0x4] sm:$0xf]  ;;  %v1208_v9 = vld [vmem:[%s1200_s25 + $0x8] sm:$0xf] }
  0x11   : > { %v193_v10 = vld [vmem:[%s1200_s25 + $0xc] sm:$0x1]  ;;  %v985_v11 = vcombine.low %v190_v7, %v1205_v8  ;;  %v989_v12 = vcombine.low %v1208_v9, %v1208_v9  ;;  %v336_v13 = vld [vmem:[%s1200_s25] sm:$0xe]  ;;  %v620_v33 = vld [vmem:[%s1200_s25 + $0x4] sm:$0xc]  ;;  %v1002_v53 = vcombine.low %v1205_v8, %v1208_v9 }
  0x12   : > { %v404_v14 = vld [vmem:[%s1200_s25] sm:$0x8]  ;;  %v1217_v15 = vcombine.low %v1208_v9, %v193_v10  ;;  %v992_v16 = vcombine.low %v336_v13, %v1205_v8  ;;  %v405_v17 = vld [vmem:[%s1200_s25 + $0xc] sm:$0x7]  ;;  %v1239_v37 = vld [vmem:[%s1200_s25 + $0x8] sm:$0xf] }
  0x13   : > { %v995_v18 = vcombine.low %v404_v14, %v1205_v8  ;;  %v1223_v19 = vld [vmem:[%s1200_s25 + $0xc] sm:$0xf]  ;;  %v206_v20 = vshrl.u32 %v985_v11, 16  ;;  %v208_v21 = vshll.u32 %v985_v11, 16  ;;  %1061 = vmatprep.mubr.msk.bf16.mxu1 %vm220_vm2, %v985_v11  ;;  %v996_v22 = vcombine.low %v1208_v9, %v405_v17  ;;  %v698_v43 = vld [vmem:[%s1200_s25 + $0x10] sm:$0x7] }
  0x14   : > { %v999_v24 = vcombine.low %v1208_v9, %v1223_v19  ;;  %v213_v25 = vshll.u32 %v1217_v15, 16  ;;  %v217_v26 = vshrl.u32 %v1217_v15, 16  ;;  %1062 = vmatmul.mubr.msk.bf16.vlgmr.msra.gmra.mxu1 %vm220_vm2, %v989_v12  ;;  %v341_v27 = vrot.slane %v992_v16, 1  ;;  %v622_v42 = vld [vmem:[%s1200_s25 + $0xc] sm:$0xf]  ;;  %s1025_s11 = sshll.u32 %s1322_s13, 3 }
  0x15   : > { %v342_v28 = vrot.slane %v1217_v15, 1  ;;  %v210_v29 = vrot.slane %v208_v21, 1  ;;  %1072 = vmatpush3.bf16.msra.mxu1 %v423_v6  ;;  %v413_v30 = vrot.slane %v995_v18, 3  ;;  %v414_v31 = vrot.slane %v996_v22, 3  ;;  %v623_v0 = vld [vmem:[%s1200_s25 + $0x10] sm:$0x3]  ;;  %s170_s16 = scalar_lea.vmem %s1318_s3, %s1025_s11 }
  0x16   : > { %v482_v32 = vshrl.u32 %v995_v18, 16  ;;  %v215_v34 = vrot.slane %v213_v25, 1  ;;  %1112 = vmatprep.subr.msk.bf16.mxu1 %vm227_vm0, %v981_v23  ;;  %v485_v35 = vshll.u32 %v995_v18, 16  ;;  %v490_v36 = vshrl.u32 %v999_v24, 16  ;;  %v982_v10 = vld [vmem:[%s1316_s1 + $0x18] sm:$0xf] }
  0x17   : > { %v211_v38 = vor.u32 %v210_v29, %v206_v20  ;;  %v415_v40 = vsel %vm412_vm4, %v413_v30, %v414_v31  ;;  %v493_v41 = vshll.u32 %v999_v24, 16  ;;  %v343_v45 = vsel %vm340_vm3, %v341_v27, %v342_v28  ;;  %v780_v15 = vld [vmem:[%s1200_s25 + $0x4] sm:$0x8] }
  0x18   : > { %v219_v44 = vor.u32 %v217_v26, %v215_v34  ;;  %1073 = vmatprep.mubr.msk.bf16.mxu1 %vm220_vm2, %v415_v40  ;;  %v484_v46 = vrot.slane %v482_v32, 3  ;;  %v487_v47 = vrot.slane %v485_v35, 4  ;;  %v492_v49 = vrot.slane %v490_v36, 3 }
  0x19   : > { %v216_v48 = vsel %vm204_vm1, %v211_v38, %v215_v34  ;;  %v495_v50 = vrot.slane %v493_v41, 4  ;;  %v1006_v51 = vcombine.low %v620_v33, %v1239_v37  ;;  %v1010_v54 = vcombine.low %v622_v42, %v698_v43 }
  0x1a   : > { %1055 = vmatprep.mubr.msk.bf16.mxu0 %vm220_vm2, %v216_v48  ;;  %v488_v61 = vor.u32 %v487_v47, %v484_v46  ;;  %vm702_vm6 = vsmask.f32 5376  ;;  %v505_v6 = vsel %vm227_vm0, %v980_v52, 0  ;;  %v1003_v8 = vcombine.low %v1223_v19, %v1223_v19  ;;  %v984_v19 = vld [vmem:[%s1316_s1 + $0x20] sm:$0xf] }
  0x1b   : > { %1056 = vmatmul.mubr.msk.bf16.vlgmr.msra.gmra.mxu0 %vm220_vm2, %v219_v44  ;;  %v704_v56 = vshrl.u32 %v1006_v51, 16  ;;  %v707_v58 = vshll.u32 %v1006_v51, 16  ;;  %v712_v59 = vshrl.u32 %v1010_v54, 16  ;;  %v715_v60 = vshll.u32 %v1010_v54, 16 }
  0x1c   : > { %1066 = vmatpush3.bf16.msra.mxu0 %v351_v39  ;;  %1067 = vmatprep.mubr.msk.bf16.mxu0 %vm220_vm2, %v343_v45  ;;  %v496_v62 = vor.u32 %v495_v50, %v492_v49  ;;  %v1007_v9 = vcombine.low %v622_v42, %v623_v0  ;;  %v727_v11 = vsel %vm227_vm0, %v983_v57, 0  ;;  %v635_v13 = vrot.slane %v1006_v51, 2 }
  0x1d   : > { %1111 = vmatprep.subr.msk.bf16.mxu0 %vm227_vm0, %v980_v52  ;;  %1074 = vmatmul.mubr.msk.bf16.vlgmr.msra.gmra.mxu1 %vm220_vm2, %v414_v31  ;;  %v706_v63 = vrot.slane %v704_v56, 2  ;;  %v709_v1 = vrot.slane %v707_v58, 3  ;;  %v714_v2 = vrot.slane %v712_v59, 2  ;;  %v717_v3 = vrot.slane %v715_v60, 3 }
  0x1e   : > { %1084 = vmatpush3.bf16.msra.mxu1 %v567_v55  ;;  %1085 = vmatprep.mubr.msk.bf16.mxu1 %vm220_vm2, %v1002_v53  ;;  %v497_v7 = vsel %vm480_vm5, %v488_v61, %v496_v62  ;;  %v636_v14 = vrot.slane %v1007_v9, 2  ;;  %v645_v16 = vsel %vm227_vm0, %v982_v10, 0  ;;  %v1013_v18 = vcombine.low %v780_v15, %v1239_v37 }
  0x1f   : > { %1114 = vmatprep.subr.msk.bf16.mxu1 %vm227_vm0, %v983_v57  ;;  %v710_v4 = vor.u32 %v709_v1, %v706_v63  ;;  %v718_v5 = vor.u32 %v717_v3, %v714_v2  ;;  %v785_v21 = vrot.slane %v1010_v54, 3  ;;  %v794_v22 = vsel %vm227_vm0, %v984_v19, 0 }
  0x20   : > { %v637_v17 = vsel %vm634_vm7, %v635_v13, %v636_v14  ;;  %v784_v20 = vrot.slane %v1013_v18, 3  ;;  %vm880_vm8 = vcmask 1040384   ;;  %vm881_vm9 = vcmask 1042434  }
  0x21   : > { %v719_v12 = vsel %vm702_vm6, %v710_v4, %v718_v5  ;;  %vm882_vm10 = vmor %vm880_vm8, %vm881_vm9  ;;  %vm883_vm11 = vcmask 1044484   ;;  %vm885_vm13 = vcmask 1046534   ;;  %vm861_vm15 = vcmask 254976  }
  0x22   : > { %v786_v23 = vsel %vm412_vm4, %v784_v20, %v785_v21  ;;  %vm884_vm12 = vmor %vm882_vm10, %vm883_vm11 }
  0x23   : > { %1068 = vmatmul.mubr.msk.bf16.vlgmr.msra.gmra.mxu0 %vm220_vm2, %v342_v28  ;;  %vm1297_vm14 = vmor %vm884_vm12, %vm885_vm13 }
  0x24   : > { %1078 = vmatpush3.bf16.msra.mxu0 %v505_v6  ;;  %1079 = vmatprep.mubr.msk.bf16.mxu0 %vm220_vm2, %v497_v7 }
  0x25   : > { %1113 = vmatprep.subr.msk.bf16.mxu0 %vm227_vm0, %v982_v10  ;;  %1086 = vmatmul.mubr.msk.bf16.vlgmr.msra.gmra.mxu1 %vm220_vm2, %v1003_v8  ;;  %v868_v8 = vlaneseq }
  0x26   : > { %1096 = vmatpush3.bf16.msra.mxu1 %v727_v11  ;;  %1097 = vmatprep.mubr.msk.bf16.mxu1 %vm220_vm2, %v719_v12  ;;  %v1016_v12 = vld [vmem:[%s1317_s2] ss:$0 sm:$0xff] }
  0x27   : > { %v869_v18 = vshrl.u32 %v868_v8, 7 }
  0x2b   : > { %1080 = vmatmul.mubr.msk.bf16.vlgmr.msra.gmra.mxu0 %vm220_vm2, %v496_v62 }
  0x2c   : > { %1090 = vmatpush3.bf16.msra.mxu0 %v645_v16  ;;  %1091 = vmatprep.mubr.msk.bf16.mxu0 %vm220_vm2, %v637_v17 }
  0x2d   : > { %1115 = vmatprep.subr.msk.bf16.mxu0 %vm227_vm0, %v984_v19  ;;  %1098 = vmatmul.mubr.msk.bf16.vlgmr.msra.gmra.mxu1 %vm220_vm2, %v718_v5  ;;  %v1147_v5 = vmov 1983009808  }
  0x2e   : > { %v866_v6 = vunpack.c.l.s4 %v1147_v5 }
  0x33   : > { %1092 = vmatmul.mubr.msk.bf16.vlgmr.msra.gmra.mxu0 %vm220_vm2, %v636_v14  ;;  %v867_v14 = vunpack.c.0.s8 %v866_v6 }
  0x34   : > { %1102 = vmatpush3.bf16.msra.mxu0 %v794_v22  ;;  %1103 = vmatprep.mubr.msk.bf16.mxu0 %vm220_vm2, %v786_v23 }
  0x3b   : > { %1104 = vmatmul.mubr.msk.bf16.vlgmr.msra.gmra.mxu0 %vm220_vm2, %v785_v21 }
  0xd4   : > { %v1063_v24 = vpop.f32.mrf.mxu1 }
  0xd6   : > { %v322_v25 = vpop.f32.mrf.mxu1 }
  0xd8   : > { %v1064_v26 = vpop.f32.mrf.mxu1 }
  0xd9   : > { %v870_v26 = vsub.s32 %v867_v14, %v869_v18 }
  0xda   : > { %v325_v27 = vpop.f32.mrf.mxu1 }
  0xdb   : > { %v1057_v28 = vpop.f32.mrf.mxu0 }
  0xdc   : > { %v331_v41 = vadd.f32 %v1063_v24, %v1057_v28 }
  0xdd   : > { %v265_v29 = vpop.f32.mrf.mxu0  ;;  %v1075_v30 = vpop.f32.mrf.mxu1 }
  0xde   : > { %v323_v44 = vadd.f32 %v322_v25, %v265_v29 }
  0xdf   : > { %v1058_v31 = vpop.f32.mrf.mxu0  ;;  %v459_v32 = vpop.f32.mrf.mxu1 }
  0xe1   : > { %v268_v33 = vpop.f32.mrf.mxu0  ;;  %v1076_v34 = vpop.f32.mrf.mxu1 }
  0xe2   : > { %v326_v51 = vadd.f32 %v325_v27, %v268_v33 }
  0xe3   : > { %v1069_v35 = vpop.f32.mrf.mxu0  ;;  %v462_v36 = vpop.f32.mrf.mxu1 }
  0xe4   : > { %v403_v45 = vadd.f32 %v1069_v35, %v331_v41 }
  0xe5   : > { %v387_v37 = vpop.f32.mrf.mxu0  ;;  %v1087_v38 = vpop.f32.mrf.mxu1 }
  0xe6   : > { %v401_v48 = vadd.f32 %v387_v37, %v323_v44  ;;  %v475_v52 = vadd.f32 %v1075_v30, %v403_v45 }
  0xe7   : > { %v1070_v39 = vpop.f32.mrf.mxu0  ;;  %v603_v40 = vpop.f32.mrf.mxu1 }
  0xe8   : > { %v473_v55 = vadd.f32 %v459_v32, %v401_v48 }
  0xe9   : > { %v390_v42 = vpop.f32.mrf.mxu0  ;;  %v1088_v43 = vpop.f32.mrf.mxu1 }
  0xea   : > { %v402_v56 = vadd.f32 %v390_v42, %v326_v51 }
  0xeb   : > { %v1081_v46 = vpop.f32.mrf.mxu0  ;;  %v606_v47 = vpop.f32.mrf.mxu1 }
  0xec   : > { %v557_v57 = vadd.f32 %v1081_v46, %v475_v52  ;;  %v474_v62 = vadd.f32 %v462_v36, %v402_v56 }
  0xed   : > { %v541_v49 = vpop.f32.mrf.mxu0  ;;  %v1099_v50 = vpop.f32.mrf.mxu1 }
  0xee   : > { %v555_v60 = vadd.f32 %v541_v49, %v473_v55  ;;  %v619_v63 = vadd.f32 %v1087_v38, %v557_v57 }
  0xef   : > { %v1082_v53 = vpop.f32.mrf.mxu0  ;;  %v763_v54 = vpop.f32.mrf.mxu1 }
  0xf0   : > { %v617_v1 = vadd.f32 %v603_v40, %v555_v60 }
  0xf1   : > { %v544_v58 = vpop.f32.mrf.mxu0  ;;  %v1100_v59 = vpop.f32.mrf.mxu1 }
  0xf2   : > { %v556_v2 = vadd.f32 %v544_v58, %v474_v62 }
  0xf3   : > { %v1093_v61 = vpop.f32.mrf.mxu0  ;;  %v766_v22 = vpop.f32.mrf.mxu1 }
  0xf4   : > { %v697_v3 = vadd.f32 %v1093_v61, %v619_v63  ;;  %v618_v10 = vadd.f32 %v606_v47, %v556_v2 }
  0xf5   : > { %v681_v0 = vpop.f32.mrf.mxu0 }
  0xf6   : > { %v695_v7 = vadd.f32 %v681_v0, %v617_v1  ;;  %v779_v11 = vadd.f32 %v1099_v50, %v697_v3 }
  0xf7   : > { %v1094_v4 = vpop.f32.mrf.mxu0 }
  0xf8   : > { %v777_v15 = vadd.f32 %v763_v54, %v695_v7 }
  0xf9   : > { %v684_v9 = vpop.f32.mrf.mxu0 }
  0xfa   : > { %v696_v16 = vadd.f32 %v684_v9, %v618_v10 }
  0xfb   : > { %v1105_v13 = vpop.f32.mrf.mxu0 }
  0xfc   : > { %v846_v17 = vadd.f32 %v1105_v13, %v779_v11  ;;  %v778_v24 = vadd.f32 %v766_v22, %v696_v16 }
  0xfd   : > { %v830_v19 = vpop.f32.mrf.mxu0 }
  0xfe   : > { %v855_v20 = vadd.f32 %v1016_v12, %v846_v17  ;;  %v844_v21 = vadd.f32 %v830_v19, %v777_v15 }
  0xff   : > { %v1106_v23 = vpop.f32.mrf.mxu0 }
 0x100   : > { %v858_v25 = vmax.f32 %v855_v20, 0.0  ;;  %v853_v29 = vadd.f32 %v1016_v12, %v844_v21 }
 0x101   : > { %v833_v27 = vpop.f32.mrf.mxu0 }
 0x102   : > { %v860_v28 = vpack.c.bf16 %v858_v25, %v858_v25  ;;  %v845_v30 = vadd.f32 %v833_v27, %v778_v24  ;;  %v856_v34 = vmax.f32 %v853_v29, 0.0 }
 0x104   : > { %v905_v31 = vrot.slane %v860_v28, %v870_v26  ;;  %v854_v32 = vadd.f32 %v1016_v12, %v845_v30 }
 0x106   : > { %v906_v33 = vcombine.high %v905_v31, %v905_v31  ;;  %v857_v35 = vmax.f32 %v854_v32, 0.0  ;;  %v1021_v37 = vrot.slane %v905_v31, 9 }
 0x108   : > { %v909_v38 = vrot.slane %v906_v33, 7  ;;  %v859_v39 = vpack.c.bf16 %v857_v35, %v856_v34  ;;  %v1017_v40 = vpack.c.bf16 %v857_v35, %v857_v35 }
 0x10a   : > { %v910_v41 = vsel %vm1297_vm14, %v1021_v37, %v909_v38  ;;  %862 = vst.msk [vmem:[%s170_s16] sm:$0x3] %vm861_vm15, %v859_v39  ;;  %v871_v42 = vrot.slane %v859_v39, %v870_v26  ;;  %v878_v43 = vrot.slane %v1017_v40, %v870_v26 }
 0x10b   : > { %1022 = vst.msk [vmem:[%s170_s16 + $0x6] sm:$0x3] %vm861_vm15, %v910_v41 }
 0x10c   : > { %v879_v44 = vcombine.high %v871_v42, %v871_v42  ;;  %v894_v45 = vcombine.high %v878_v43, %v878_v43  ;;  %v889_v47 = vrot.slane %v878_v43, 7 }
 0x10e   : > { %v1018_v46 = vrot.slane %v879_v44, 9  ;;  %1020 = vst.msk [vmem:[%s170_s16 + $0x4] sm:$0x3] %vm861_vm15, %v894_v45 }
 0x110   : > { %v890_v48 = vsel %vm1297_vm14, %v1018_v46, %v889_v47 }
 0x111   : > { %1019 = vst.msk [vmem:[%s170_s16 + $0x2] sm:$0x3] %vm861_vm15, %v890_v48 }
 0x112 PF: > { %s13_s12 = sadd.s32 1, %s1145_s12  }
 0x113   : > { %p10_p4 = scmp.ge.s32.totalorder %s13_s12, 4  }
 0x115   :  { %12 = sbr.rel (!%p10_p4) target bundleno = 1 (0x1), region = 73 }

// kernel: vqvae_forward.20
= control target key start
LH: loop header
LB: loop body
LE: loop exit
PB: predicated region body
PF: predicated region fallthrough
CT: control target
= control target key end

     0   :  { %s2018_s12 = smov 0   ;;  %s2274_s0 = inlined_call_operand.vmem [shape: bf16[2,42,32], index: 0, kind: input, shape index: {}]   ;;  %s2275_s1 = inlined_call_operand.vmem [shape: bf16[4,4,32,16], index: 1, kind: input, shape index: {}]   ;;  %s2276_s2 = inlined_call_operand.vmem [shape: f32[1,64], index: 2, kind: input, shape index: {}]   ;;  %s2277_s3 = inlined_call_operand.vmem [shape: bf16[2,4,4,64], index: 3, kind: output, shape index: {}]  }
   0x1 LB: > { %s1581_s13 = sadd.s32 4294967295, %s1992_s12   ;;  %p1585_p0 = scmp.ge.s32.totalorder %s1992_s12, 1  ;;  %s1992_s12 = sphi %s2018_s12, %s13_s12  }
   0x2   : > { %p137_p1 = scmp.lt.s32.totalorder %s1992_s12, 3 }
   0x4   : > { %p138_p2 = pnand %p1585_p0, %p137_p1 }
   0x5   : > { %p161_p3 = scmp.lt.s32.totalorder (!%p138_p2), %s1581_s13, 1  ;;  %s1994_s6 = smov (!%p138_p2), 16  }
   0x6   : > { %141 = sbr.rel (%p138_p2) target bundleno = 415 (0x19f), region = 32  ;;  %s1995_s7 = smov (!%p138_p2), 32  }
   0x7   : > { %s1996_s8 = smov (!%p138_p2), 48  }
   0xb   : > { %v1941_v0 = vld [vmem:[%s2275_s1 + $0x8] sm:$0xff]   ;;  %v1942_v1 = vld [vmem:[%s2275_s1] sm:$0xff]   ;;  %v1943_v2 = vld [vmem:[%s2275_s1 + $0x18] sm:$0xff]   ;;  %s2279_s13 = smov (!%p161_p3, %s1581_s13), 1  ;;  %vm294_vm0 = vcmask 261120   ;;  %vm419_vm2 = vcmask 1046528  }
   0xc   : > { %1808 = vmatprep.subr.bf16.mxu1 %v1941_v0  ;;  %v1948_v3 = vld [vmem:[%s2275_s1 + $0x48] sm:$0xff]   ;;  %1800 = vmatprep.subr.bf16.mxu0 %v1943_v2  ;;  %s1928_s22 = smul.u32 24, %s2279_s13  ;;  %v1949_v4 = vld [vmem:[%s2275_s1 + $0x10] sm:$0xff]   ;;  %v1950_v8 = vld [vmem:[%s2275_s1 + $0x40] sm:$0xff]   ;;  %vm266_vm1 = vsmask.f32 7424 }
   0xd   : > { %1809 = vmatpush3.bf16.msra.mxu1 %v1941_v0  ;;  %1801 = vmatpush3.bf16.msra.mxu0 %v1943_v2  ;;  %v1952_v15 = vld [vmem:[%s2275_s1 + $0x58] sm:$0xff]   ;;  %v1954_v28 = vld [vmem:[%s2275_s1 + $0x50] sm:$0xff]   ;;  %vm634_vm3 = vsmask.f32 4352  ;;  %v1957_v47 = vld [vmem:[%s2275_s1 + $0x28] sm:$0xff]   ;;  %vm557_vm4 = vcmask 1044480  }
   0xe   : > { %1810 = vmatprep.subr.bf16.mxu1 %v1942_v1  ;;  %s2047_s27 = scalar_lea.vmem %s2274_s0, %s1928_s22  ;;  %1802 = vmatprep.subr.bf16.mxu0 %v1949_v4  ;;  %v1953_v27 = vld [vmem:[%s2275_s1 + $0x38] sm:$0xff]   ;;  %v1955_v33 = vld [vmem:[%s2275_s1 + $0x30] sm:$0xff]   ;;  %v1959_v52 = vld [vmem:[%s2275_s1 + $0x20] sm:$0xff]   ;;  %vm1186_vm5 = vsmask.f32 5376  ;;  %vm1109_vm6 = vcmask 1045504  }
   0xf   : > { %v252_v5 = vld [vmem:[%s2047_s27] sm:$0xf]  ;;  %v2051_v6 = vld [vmem:[%s2047_s27 + $0x4] sm:$0xf]  ;;  %v2059_v10 = vld [vmem:[%s2047_s27 + $0x8] sm:$0xf] }
  0x10   : > { %v549_v7 = vld [vmem:[%s2047_s27] sm:$0x8]  ;;  %v1649_v9 = vcombine.low %v252_v5, %v2051_v6  ;;  %v2062_v11 = vld [vmem:[%s2047_s27 + $0xc] sm:$0xf]  ;;  %v1655_v13 = vcombine.low %v2059_v10, %v2059_v10  ;;  %v1958_v49 = vld [vmem:[%s2275_s1 + $0x98] sm:$0xff]   ;;  %v1692_v62 = vcombine.low %v2051_v6, %v2059_v10  ;;  %vm1448_vm7 = vcmask 130048  }
  0x11   : > { %1811 = vmatpush3.bf16.msra.mxu1 %v1942_v1  ;;  %v255_v12 = vld [vmem:[%s2047_s27 + $0xc] sm:$0x1]  ;;  %1803 = vmatpush3.bf16.msra.mxu0 %v1949_v4  ;;  %v2075_v16 = vcombine.low %v549_v7, %v2051_v6  ;;  %v1675_v19 = vcombine.low %v2059_v10, %v2062_v11  ;;  %v415_v23 = vld [vmem:[%s2047_s27] sm:$0xe]  ;;  %v1960_v53 = vld [vmem:[%s2275_s1 + $0x90] sm:$0xff]   ;;  %vm1455_vm8 = vcmask 392192  }
  0x12   : > { %1824 = vmatprep.subr.bf16.mxu1 %v1948_v3  ;;  %v2068_v14 = vcombine.low %v2059_v10, %v255_v12  ;;  %1812 = vmatprep.mubr.msk.bf16.mxu1 %vm294_vm0, %v1649_v9  ;;  %v268_v17 = vshrl.u32 %v1649_v9, 16  ;;  %v270_v18 = vshll.u32 %v1649_v9, 16  ;;  %v1660_v25 = vcombine.low %v415_v23, %v2051_v6  ;;  %v550_v44 = vld [vmem:[%s2047_s27 + $0xc] sm:$0x7]  ;;  %v1963_v56 = vld [vmem:[%s2275_s1 + $0x78] sm:$0xff]   ;;  %v1964_v57 = vld [vmem:[%s2275_s1 + $0x60] sm:$0xff]  }
  0x13   : > { %1816 = vmatprep.subr.bf16.mxu0 %v1952_v15  ;;  %v636_v30 = vshrl.u32 %v2075_v16, 16  ;;  %v639_v31 = vshll.u32 %v2075_v16, 16  ;;  %v644_v35 = vshrl.u32 %v1675_v19, 16  ;;  %v647_v36 = vshll.u32 %v1675_v19, 16  ;;  %v1962_v55 = vld [vmem:[%s2275_s1 + $0x68] sm:$0xff]   ;;  %v1965_v58 = vld [vmem:[%s2275_s1 + $0x70] sm:$0xff]  }
  0x14   : > { %1813 = vmatmul.mubr.msk.bf16.vlgmr.msra.gmra.mxu1 %vm294_vm0, %v1655_v13  ;;  %v275_v20 = vshll.u32 %v2068_v14, 16  ;;  %v279_v21 = vshrl.u32 %v2068_v14, 16  ;;  %v272_v22 = vrot.slane %v270_v18, 1  ;;  %v421_v29 = vrot.slane %v2068_v14, 1  ;;  %v1095_v59 = vld [vmem:[%s2047_s27 + $0x4] sm:$0xc] }
  0x15   : > { %1825 = vmatpush3.bf16.msra.mxu1 %v1948_v3  ;;  %v420_v34 = vrot.slane %v1660_v25, 1  ;;  %v638_v38 = vrot.slane %v636_v30, 3  ;;  %v641_v39 = vrot.slane %v639_v31, 4  ;;  %v646_v40 = vrot.slane %v644_v35, 3  ;;  %v2149_v60 = vld [vmem:[%s2047_s27 + $0x8] sm:$0xf] }
  0x16   : > { %1826 = vmatprep.subr.bf16.mxu1 %v1950_v8  ;;  %v277_v24 = vrot.slane %v275_v20, 1  ;;  %v273_v26 = vor.u32 %v272_v22, %v268_v17  ;;  %v649_v41 = vrot.slane %v647_v36, 4  ;;  %v1670_v46 = vcombine.low %v2059_v10, %v550_v44  ;;  %v2152_v61 = vld [vmem:[%s2047_s27 + $0xc] sm:$0xf]  ;;  %v1182_v0 = vld [vmem:[%s2047_s27 + $0x10] sm:$0x7] }
  0x17   : > { %v422_v42 = vsel %vm419_vm2, %v420_v34, %v421_v29  ;;  %v642_v43 = vor.u32 %v641_v39, %v638_v38  ;;  %v558_v50 = vrot.slane %v2075_v16, 3  ;;  %v2159_v63 = vcombine.low %v1095_v59, %v2149_v60  ;;  %v1966_v2 = vld [vmem:[%s2275_s1 + $0x88] sm:$0xff]   ;;  %v1969_v9 = vld [vmem:[%s2275_s1 + $0x80] sm:$0xff]   ;;  %v1974_v16 = vld [vmem:[%s2275_s1 + $0xb8] sm:$0xff]   ;;  %s1735_s11 = sshll.u32 %s2279_s13, 3 }
  0x18   : > { %v281_v32 = vor.u32 %v279_v21, %v277_v24  ;;  %v278_v37 = vsel %vm266_vm1, %v273_v26, %v277_v24  ;;  %v2103_v45 = vor.u32 %v649_v41, %v646_v40  ;;  %v2119_v51 = vrot.slane %v1670_v46, 3  ;;  %v1970_v3 = vld [vmem:[%s2275_s1 + $0xc8] sm:$0xff]   ;;  %v1972_v10 = vld [vmem:[%s2275_s1 + $0xc0] sm:$0xff]   ;;  %v1098_v19 = vld [vmem:[%s2047_s27 + $0x10] sm:$0x3]  ;;  %s170_s16 = scalar_lea.vmem %s2277_s3, %s1735_s11 }
  0x19   : > { %1827 = vmatpush3.bf16.msra.mxu1 %v1950_v8  ;;  %1804 = vmatprep.mubr.msk.bf16.mxu0 %vm294_vm0, %v278_v37  ;;  %v2165_v1 = vcombine.low %v2152_v61, %v1182_v0  ;;  %v1188_v4 = vshrl.u32 %v2159_v63, 16  ;;  %v1191_v5 = vshll.u32 %v2159_v63, 16  ;;  %v1693_v6 = vcombine.low %v2062_v11, %v2062_v11  ;;  %v1973_v20 = vld [vmem:[%s2275_s1 + $0xd0] sm:$0xff]   ;;  %v1336_v21 = vld [vmem:[%s2047_s27 + $0x4] sm:$0x8]  ;;  %v1975_v26 = vld [vmem:[%s2275_s1 + $0xa8] sm:$0xff]  }
  0x1a   : > { %1828 = vmatprep.mubr.msk.bf16.mxu1 %vm294_vm0, %v278_v37  ;;  %1805 = vmatmul.mubr.msk.bf16.vlgmr.msra.gmra.mxu0 %vm294_vm0, %v281_v32  ;;  %v2111_v48 = vsel %vm634_vm3, %v642_v43, %v2103_v45  ;;  %v560_v54 = vsel %vm557_vm4, %v558_v50, %v2119_v51  ;;  %v1976_v22 = vld [vmem:[%s2275_s1 + $0xb0] sm:$0xff]   ;;  %v1707_v23 = vcombine.low %v2152_v61, %v1098_v19  ;;  %v1982_v36 = vld [vmem:[%s2275_s1 + $0xe8] sm:$0xff]   ;;  %v1984_v37 = vld [vmem:[%s2275_s1 + $0xe0] sm:$0xff]   ;;  %vm1492_vm9 = vcmask 1040384  }
  0x1b   : > { %1840 = vmatprep.subr.bf16.mxu1 %v1953_v27  ;;  %1817 = vmatpush3.bf16.msra.mxu0 %v1952_v15  ;;  %v1196_v7 = vshrl.u32 %v2165_v1, 16  ;;  %v1199_v8 = vshll.u32 %v2165_v1, 16  ;;  %v1190_v11 = vrot.slane %v1188_v4, 2  ;;  %v1193_v12 = vrot.slane %v1191_v5, 3  ;;  %v1971_v15 = vld [vmem:[%s2275_s1 + $0xd8] sm:$0xff]  }
  0x1c   : > { %1829 = vmatmul.mubr.msk.bf16.vlgmr.msra.gmra.mxu1 %vm294_vm0, %v281_v32  ;;  %1818 = vmatprep.subr.bf16.mxu0 %v1954_v28  ;;  %v1721_v25 = vcombine.low %v1336_v21, %v2149_v60  ;;  %v1341_v31 = vrot.slane %v2165_v1, 3  ;;  %v1977_v32 = vld [vmem:[%s2275_s1 + $0xa0] sm:$0xff]   ;;  %vm1493_vm10 = vcmask 1042434   ;;  %vm1473_vm11 = vcmask 517120  }
  0x1d   : > { %1841 = vmatpush3.bf16.msra.mxu1 %v1953_v27  ;;  %1820 = vmatprep.mubr.msk.bf16.mxu0 %vm294_vm0, %v422_v42  ;;  %v1198_v13 = vrot.slane %v1196_v7, 2  ;;  %v1201_v14 = vrot.slane %v1199_v8, 3  ;;  %v1194_v17 = vor.u32 %v1193_v12, %v1190_v11  ;;  %v1980_v27 = vld [vmem:[%s2275_s1 + $0xf8] sm:$0xff]   ;;  %vm1494_vm12 = vmor %vm1492_vm9, %vm1493_vm10  ;;  %vm1495_vm13 = vcmask 1044484  }
  0x1e   : > { %1842 = vmatprep.subr.bf16.mxu1 %v1955_v33  ;;  %1844 = vmatprep.mubr.msk.bf16.mxu1 %vm294_vm0, %v2111_v48  ;;  %v1340_v30 = vrot.slane %v1721_v25, 3  ;;  %vm1496_vm14 = vmor %vm1494_vm12, %vm1495_vm13  ;;  %vm1497_vm15 = vcmask 1046534  }
  0x1f   : > { %1819 = vmatpush3.bf16.msra.mxu0 %v1954_v28  ;;  %v1202_v18 = vor.u32 %v1201_v14, %v1198_v13  ;;  %v1110_v28 = vrot.slane %v2159_v63, 2 }
  0x20   : > { %1832 = vmatprep.subr.bf16.mxu0 %v1957_v47  ;;  %v1342_v35 = vsel %vm557_vm4, %v1340_v30, %v1341_v31 }
  0x21   : > { %1843 = vmatpush3.bf16.msra.mxu1 %v1955_v33  ;;  %v1203_v24 = vsel %vm1186_vm5, %v1194_v17, %v1202_v18  ;;  %v1983_v33 = vld [vmem:[%s2275_s1 + $0xf0] sm:$0xff]  }
  0x22   : > { %1856 = vmatprep.subr.bf16.mxu1 %v1958_v49  ;;  %1821 = vmatmul.mubr.msk.bf16.vlgmr.msra.gmra.mxu0 %vm294_vm0, %v421_v29  ;;  %v1111_v29 = vrot.slane %v1707_v23, 2 }
  0x23   : > { %1833 = vmatpush3.bf16.msra.mxu0 %v1957_v47  ;;  %1836 = vmatprep.mubr.msk.bf16.mxu0 %vm294_vm0, %v560_v54 }
  0x24   : > { %1845 = vmatmul.mubr.msk.bf16.vlgmr.msra.gmra.mxu1 %vm294_vm0, %v2103_v45  ;;  %1834 = vmatprep.subr.bf16.mxu0 %v1959_v52  ;;  %v1112_v34 = vsel %vm1109_vm6, %v1110_v28, %v1111_v29 }
  0x25   : > { %1857 = vmatpush3.bf16.msra.mxu1 %v1958_v49  ;;  %1860 = vmatprep.mubr.msk.bf16.mxu1 %vm294_vm0, %v2111_v48 }
  0x26   : > { %1858 = vmatprep.subr.bf16.mxu1 %v1960_v53 }
  0x27   : > { %1835 = vmatpush3.bf16.msra.mxu0 %v1959_v52 }
  0x28   : > { %1848 = vmatprep.subr.bf16.mxu0 %v1962_v55 }
  0x29   : > { %1859 = vmatpush3.bf16.msra.mxu1 %v1960_v53 }
  0x2a   : > { %1872 = vmatprep.subr.bf16.mxu1 %v1963_v56  ;;  %1837 = vmatmul.mubr.msk.bf16.vlgmr.msra.gmra.mxu0 %vm294_vm0, %v2119_v51 }
  0x2b   : > { %1849 = vmatpush3.bf16.msra.mxu0 %v1962_v55  ;;  %1852 = vmatprep.mubr.msk.bf16.mxu0 %vm294_vm0, %v2111_v48 }
  0x2c   : > { %1861 = vmatmul.mubr.msk.bf16.vlgmr.msra.gmra.mxu1 %vm294_vm0, %v2103_v45  ;;  %1850 = vmatprep.subr.bf16.mxu0 %v1964_v57 }
  0x2d   : > { %1873 = vmatpush3.bf16.msra.mxu1 %v1963_v56  ;;  %1876 = vmatprep.mubr.msk.bf16.mxu1 %vm294_vm0, %v1692_v62 }
  0x2e   : > { %1874 = vmatprep.subr.bf16.mxu1 %v1965_v58 }
  0x2f   : > { %1851 = vmatpush3.bf16.msra.mxu0 %v1964_v57 }
  0x30   : > { %1864 = vmatprep.subr.bf16.mxu0 %v1966_v2 }
  0x31   : > { %1875 = vmatpush3.bf16.msra.mxu1 %v1965_v58 }
  0x32   : > { %1888 = vmatprep.subr.bf16.mxu1 %v1970_v3  ;;  %1853 = vmatmul.mubr.msk.bf16.vlgmr.msra.gmra.mxu0 %vm294_vm0, %v2103_v45 }
  0x33   : > { %1865 = vmatpush3.bf16.msra.mxu0 %v1966_v2  ;;  %1868 = vmatprep.mubr.msk.bf16.mxu0 %vm294_vm0, %v560_v54 }
  0x34   : > { %1877 = vmatmul.mubr.msk.bf16.vlgmr.msra.gmra.mxu1 %vm294_vm0, %v1693_v6  ;;  %1866 = vmatprep.subr.bf16.mxu0 %v1969_v9 }
  0x35   : > { %1889 = vmatpush3.bf16.msra.mxu1 %v1970_v3  ;;  %1892 = vmatprep.mubr.msk.bf16.mxu1 %vm294_vm0, %v2111_v48 }
  0x36   : > { %1890 = vmatprep.subr.bf16.mxu1 %v1972_v10 }
  0x37   : > { %1867 = vmatpush3.bf16.msra.mxu0 %v1969_v9 }
  0x38   : > { %1880 = vmatprep.subr.bf16.mxu0 %v1971_v15 }
  0x39   : > { %1891 = vmatpush3.bf16.msra.mxu1 %v1972_v10 }
  0x3a   : > { %1904 = vmatprep.subr.bf16.mxu1 %v1974_v16  ;;  %1869 = vmatmul.mubr.msk.bf16.vlgmr.msra.gmra.mxu0 %vm294_vm0, %v2119_v51 }
  0x3b   : > { %1881 = vmatpush3.bf16.msra.mxu0 %v1971_v15  ;;  %1884 = vmatprep.mubr.msk.bf16.mxu0 %vm294_vm0, %v1692_v62 }
  0x3c   : > { %1893 = vmatmul.mubr.msk.bf16.vlgmr.msra.gmra.mxu1 %vm294_vm0, %v2103_v45  ;;  %1882 = vmatprep.subr.bf16.mxu0 %v1973_v20 }
  0x3d   : > { %1905 = vmatpush3.bf16.msra.mxu1 %v1974_v16  ;;  %1908 = vmatprep.mubr.msk.bf16.mxu1 %vm294_vm0, %v1203_v24 }
  0x3e   : > { %1906 = vmatprep.subr.bf16.mxu1 %v1976_v22 }
  0x3f   : > { %1883 = vmatpush3.bf16.msra.mxu0 %v1973_v20 }
  0x40   : > { %1896 = vmatprep.subr.bf16.mxu0 %v1975_v26 }
  0x41   : > { %1907 = vmatpush3.bf16.msra.mxu1 %v1976_v22 }
  0x42   : > { %1920 = vmatprep.subr.bf16.mxu1 %v1980_v27  ;;  %1885 = vmatmul.mubr.msk.bf16.vlgmr.msra.gmra.mxu0 %vm294_vm0, %v1693_v6 }
  0x43   : > { %1897 = vmatpush3.bf16.msra.mxu0 %v1975_v26  ;;  %1900 = vmatprep.mubr.msk.bf16.mxu0 %vm294_vm0, %v1112_v34 }
  0x44   : > { %1909 = vmatmul.mubr.msk.bf16.vlgmr.msra.gmra.mxu1 %vm294_vm0, %v1202_v18  ;;  %1898 = vmatprep.subr.bf16.mxu0 %v1977_v32 }
  0x45   : > { %1921 = vmatpush3.bf16.msra.mxu1 %v1980_v27  ;;  %1924 = vmatprep.mubr.msk.bf16.mxu1 %vm294_vm0, %v1342_v35 }
  0x46   : > { %1922 = vmatprep.subr.bf16.mxu1 %v1983_v33 }
  0x47   : > { %1899 = vmatpush3.bf16.msra.mxu0 %v1977_v32 }
  0x48   : > { %1912 = vmatprep.subr.bf16.mxu0 %v1982_v36 }
  0x49   : > { %1923 = vmatpush3.bf16.msra.mxu1 %v1983_v33 }
  0x4a   : > { %1901 = vmatmul.mubr.msk.bf16.vlgmr.msra.gmra.mxu0 %vm294_vm0, %v1111_v29 }
  0x4b   : > { %1913 = vmatpush3.bf16.msra.mxu0 %v1982_v36  ;;  %1916 = vmatprep.mubr.msk.bf16.mxu0 %vm294_vm0, %v1203_v24 }
  0x4c   : > { %1925 = vmatmul.mubr.msk.bf16.vlgmr.msra.gmra.mxu1 %vm294_vm0, %v1341_v31  ;;  %1914 = vmatprep.subr.bf16.mxu0 %v1984_v37 }
  0x4f   : > { %1915 = vmatpush3.bf16.msra.mxu0 %v1984_v37 }
  0x52   : > { %1917 = vmatmul.mubr.msk.bf16.vlgmr.msra.gmra.mxu0 %vm294_vm0, %v1202_v18 }
  0xd4   : > { %v1814_v38 = vpop.f32.mrf.mxu1 }
  0xd6   : > { %v401_v39 = vpop.f32.mrf.mxu1 }
  0xd8   : > { %v1815_v40 = vpop.f32.mrf.mxu1 }
  0xda   : > { %v404_v41 = vpop.f32.mrf.mxu1  ;;  %v1806_v42 = vpop.f32.mrf.mxu0 }
  0xdb   : > { %v410_v43 = vadd.f32 %v1814_v38, %v1806_v42 }
  0xdc   : > { %v1830_v44 = vpop.f32.mrf.mxu1  ;;  %v335_v45 = vpop.f32.mrf.mxu0 }
  0xdd   : > { %v402_v46 = vadd.f32 %v401_v39, %v335_v45 }
  0xde   : > { %v535_v47 = vpop.f32.mrf.mxu1  ;;  %v1807_v48 = vpop.f32.mrf.mxu0 }
  0xe0   : > { %v1831_v49 = vpop.f32.mrf.mxu1  ;;  %v338_v50 = vpop.f32.mrf.mxu0 }
  0xe1   : > { %v405_v51 = vadd.f32 %v404_v41, %v338_v50 }
  0xe2   : > { %v538_v52 = vpop.f32.mrf.mxu1  ;;  %v1822_v53 = vpop.f32.mrf.mxu0 }
  0xe3   : > { %v544_v8 = vadd.f32 %v1830_v44, %v1822_v53 }
  0xe4   : > { %v1846_v54 = vpop.f32.mrf.mxu1  ;;  %v475_v55 = vpop.f32.mrf.mxu0 }
  0xe5   : > { %v536_v12 = vadd.f32 %v535_v47, %v475_v55 }
  0xe6   : > { %v704_v56 = vpop.f32.mrf.mxu1  ;;  %v1823_v57 = vpop.f32.mrf.mxu0 }
  0xe8   : > { %v1847_v58 = vpop.f32.mrf.mxu1  ;;  %v478_v59 = vpop.f32.mrf.mxu0 }
  0xe9   : > { %v539_v21 = vadd.f32 %v538_v52, %v478_v59 }
  0xea   : > { %v707_v60 = vpop.f32.mrf.mxu1  ;;  %v1838_v61 = vpop.f32.mrf.mxu0 }
  0xeb   : > { %v629_v62 = vadd.f32 %v1838_v61, %v410_v43 }
  0xec   : > { %v1862_v63 = vpop.f32.mrf.mxu1  ;;  %v613_v0 = vpop.f32.mrf.mxu0 }
  0xed   : > { %v2245_v1 = vadd.f32 %v1846_v54, %v629_v62  ;;  %v627_v2 = vadd.f32 %v613_v0, %v402_v46 }
  0xee   : > { %v830_v3 = vpop.f32.mrf.mxu1  ;;  %v1839_v4 = vpop.f32.mrf.mxu0 }
  0xef   : > { %v2247_v5 = vadd.f32 %v704_v56, %v627_v2 }
  0xf0   : > { %v1863_v6 = vpop.f32.mrf.mxu1  ;;  %v616_v7 = vpop.f32.mrf.mxu0 }
  0xf1   : > { %v628_v9 = vadd.f32 %v616_v7, %v405_v51 }
  0xf2   : > { %v833_v10 = vpop.f32.mrf.mxu1  ;;  %v1854_v11 = vpop.f32.mrf.mxu0 }
  0xf3   : > { %v2249_v13 = vadd.f32 %v707_v60, %v628_v9  ;;  %v783_v14 = vadd.f32 %v1854_v11, %v544_v8 }
  0xf4   : > { %v1878_v15 = vpop.f32.mrf.mxu1  ;;  %v767_v16 = vpop.f32.mrf.mxu0 }
  0xf5   : > { %v781_v17 = vadd.f32 %v767_v16, %v536_v12  ;;  %v974_v18 = vadd.f32 %v1878_v15, %v783_v14 }
  0xf6   : > { %v958_v19 = vpop.f32.mrf.mxu1  ;;  %v1855_v20 = vpop.f32.mrf.mxu0 }
  0xf7   : > { %v972_v22 = vadd.f32 %v958_v19, %v781_v17  ;;  %1419 = vrot.lane.b32.xlu1 %v974_v18, %s1994_s6  ;;  %v1480_v20 = vlaneseq }
  0xf8   : > { %v1879_v23 = vpop.f32.mrf.mxu1  ;;  %v770_v24 = vpop.f32.mrf.mxu0 }
  0xf9   : > { %v782_v25 = vadd.f32 %v770_v24, %v539_v21  ;;  %1415 = vrot.lane.b32.xlu0 %v972_v22, %s1994_s6  ;;  %v1997_v23 = vmov 1983009808  }
  0xfa   : > { %v961_v26 = vpop.f32.mrf.mxu1  ;;  %v1870_v27 = vpop.f32.mrf.mxu0  ;;  %v1478_v24 = vunpack.c.l.s4 %v1997_v23 }
  0xfb   : > { %v973_v28 = vadd.f32 %v961_v26, %v782_v25  ;;  %v899_v43 = vadd.f32 %v1870_v27, %v1862_v63  ;;  %v1726_v25 = vld [vmem:[%s2276_s2] ss:$0 sm:$0xff] }
  0xfc   : > { %v1894_v29 = vpop.f32.mrf.mxu1  ;;  %v890_v30 = vpop.f32.mrf.mxu0 }
  0xfd   : > { %1417 = vrot.lane.b32.xlu0 %v973_v28, %s1994_s6  ;;  %v891_v46 = vadd.f32 %v890_v30, %v830_v3 }
  0xfe   : > { %v1081_v31 = vpop.f32.mrf.mxu1  ;;  %v1871_v32 = vpop.f32.mrf.mxu0 }
  0xff   : > { %v1479_v32 = vunpack.c.0.s8 %v1478_v24 }
 0x100   : > { %v1895_v33 = vpop.f32.mrf.mxu1  ;;  %v893_v34 = vpop.f32.mrf.mxu0 }
 0x101   : > { %v894_v54 = vadd.f32 %v893_v34, %v833_v10 }
 0x102   : > { %v1084_v35 = vpop.f32.mrf.mxu1  ;;  %v1886_v36 = vpop.f32.mrf.mxu0 }
 0x103   : > { %v1090_v63 = vadd.f32 %v1894_v29, %v1886_v36  ;;  %v1481_v29 = vshrl.u32 %v1480_v20, 7 }
 0x104   : > { %v1910_v37 = vpop.f32.mrf.mxu1  ;;  %v1021_v38 = vpop.f32.mrf.mxu0 }
 0x105   : > { %v1082_v60 = vadd.f32 %v1081_v31, %v1021_v38 }
 0x106   : > { %v1256_v39 = vpop.f32.mrf.mxu1  ;;  %v1887_v40 = vpop.f32.mrf.mxu0 }
 0x108   : > { %v1911_v41 = vpop.f32.mrf.mxu1  ;;  %v1024_v42 = vpop.f32.mrf.mxu0 }
 0x109   : > { %v1085_v3 = vadd.f32 %v1084_v35, %v1024_v42 }
 0x10a   : > { %v1259_v44 = vpop.f32.mrf.mxu1  ;;  %v1902_v45 = vpop.f32.mrf.mxu0 }
 0x10b   : > { %v1181_v47 = vadd.f32 %v1902_v45, %v899_v43 }
 0x10c   : > { %v1926_v48 = vpop.f32.mrf.mxu1  ;;  %v1165_v49 = vpop.f32.mrf.mxu0 }
 0x10d   : > { %v1272_v50 = vadd.f32 %v1910_v37, %v1181_v47  ;;  %v1179_v51 = vadd.f32 %v1165_v49, %v891_v46 }
 0x10e   : > { %v1395_v52 = vpop.f32.mrf.mxu1  ;;  %v1903_v53 = vpop.f32.mrf.mxu0 }
 0x10f   : > { %1431 = vrot.lane.b32.xlu1 %v1272_v50, %s1995_s7  ;;  %v1270_v57 = vadd.f32 %v1256_v39, %v1179_v51 }
 0x110   : > { %v1927_v55 = vpop.f32.mrf.mxu1  ;;  %v1168_v56 = vpop.f32.mrf.mxu0 }
 0x111   : > { %v1180_v58 = vadd.f32 %v1168_v56, %v894_v54 }
 0x112   : > { %v1918_v59 = vpop.f32.mrf.mxu0  ;;  %v1398_v9 = vpop.f32.mrf.mxu1 }
 0x113   : > { %v1271_v61 = vadd.f32 %v1259_v44, %v1180_v58  ;;  %1427 = vrot.lane.b32.xlu1 %v1270_v57, %s1995_s7  ;;  %v1335_v4 = vadd.f32 %v1918_v59, %v1090_v63 }
 0x114   : > { %v1319_v62 = vpop.f32.mrf.mxu0 }
 0x115   : > { %v1333_v0 = vadd.f32 %v1319_v62, %v1082_v60  ;;  %1429 = vrot.lane.b32.xlu0 %v1271_v61, %s1995_s7  ;;  %v1411_v10 = vadd.f32 %v1926_v48, %v1335_v4 }
 0x116   : > { %v1919_v2 = vpop.f32.mrf.mxu0 }
 0x117   : > { %v1409_v6 = vadd.f32 %v1395_v52, %v1333_v0 }
 0x118   : > { %v1322_v7 = vpop.f32.mrf.mxu0 }
 0x119   : > { %v1334_v8 = vadd.f32 %v1322_v7, %v1085_v3  ;;  %1439 = vrot.lane.b32.xlu0 %v1409_v6, %s1996_s8 }
 0x11b   : > { %v1410_v11 = vadd.f32 %v1398_v9, %v1334_v8 }
 0x11d   : > { %1441 = vrot.lane.b32.xlu1 %v1410_v11, %s1996_s8  ;;  %1443 = vrot.lane.b32.xlu0 %v1411_v10, %s1996_s8 }
 0x169   : > { %v1420_v14 = vpop.permute.xlu1 %1419 }
 0x16a   : > { %v1451_v27 = vsel %vm1448_vm7, %v2245_v1, %v1420_v14 }
 0x16b   : > { %v1416_v12 = vpop.permute.xlu0 %1415 }
 0x16c   : > { %v1449_v19 = vsel %vm1448_vm7, %v2247_v5, %v1416_v12 }
 0x16f   : > { %v1418_v16 = vpop.permute.xlu0 %1417 }
 0x170   : > { %v1450_v28 = vsel %vm1448_vm7, %v2249_v13, %v1418_v16  ;;  %v1482_v13 = vsub.s32 %v1479_v32, %v1481_v29 }
 0x181   : > { %v1432_v15 = vpop.permute.xlu1 %1431 }
 0x182   : > { %v1454_v5 = vsel %vm294_vm0, %v1451_v27, %v1432_v15 }
 0x185   : > { %v1428_v18 = vpop.permute.xlu1 %1427 }
 0x186   : > { %v1452_v21 = vsel %vm294_vm0, %v1449_v19, %v1428_v18 }
 0x187   : > { %v1430_v17 = vpop.permute.xlu0 %1429 }
 0x188   : > { %v1453_v30 = vsel %vm294_vm0, %v1450_v28, %v1430_v17  ;;  %vm1498_vm0 = vmor %vm1496_vm14, %vm1497_vm15 }
 0x18b   : > { %v1440_v22 = vpop.permute.xlu0 %1439 }
 0x18c   : > { %v1456_v26 = vsel %vm1455_vm8, %v1452_v21, %v1440_v22 }
 0x18d   : > { %v1465_v31 = vadd.f32 %v1726_v25, %v1456_v26 }
 0x18f   : > { %v1442_v33 = vpop.permute.xlu1 %1441  ;;  %v1444_v34 = vpop.permute.xlu0 %1443  ;;  %v1468_v38 = vmax.f32 %v1465_v31, 0.0 }
 0x190   : > { %v1457_v35 = vsel %vm1455_vm8, %v1453_v30, %v1442_v33  ;;  %v1458_v36 = vsel %vm1455_vm8, %v1454_v5, %v1444_v34 }
 0x191   : > { %v1466_v37 = vadd.f32 %v1726_v25, %v1457_v35  ;;  %v1467_v1 = vadd.f32 %v1726_v25, %v1458_v36 }
 0x193   : > { %v1469_v39 = vmax.f32 %v1466_v37, 0.0  ;;  %v1470_v40 = vmax.f32 %v1467_v1, 0.0 }
 0x195   : > { %v1471_v41 = vpack.c.bf16 %v1469_v39, %v1468_v38  ;;  %v1727_v42 = vpack.c.bf16 %v1469_v39, %v1469_v39  ;;  %v1472_v43 = vpack.c.bf16 %v1470_v40, %v1470_v40 }
 0x197   : > { %1474 = vst.msk [vmem:[%s170_s16] sm:$0x3] %vm1473_vm11, %v1471_v41  ;;  %v1483_v44 = vrot.slane %v1471_v41, %v1482_v13  ;;  %v1490_v45 = vrot.slane %v1727_v42, %v1482_v13  ;;  %v1517_v46 = vrot.slane %v1472_v43, %v1482_v13 }
 0x199   : > { %v1491_v47 = vcombine.high %v1483_v44, %v1483_v44  ;;  %v1506_v48 = vcombine.high %v1490_v45, %v1490_v45  ;;  %v1518_v49 = vcombine.high %v1517_v46, %v1517_v46  ;;  %v1501_v51 = vrot.slane %v1490_v45, 7 }
 0x19a   : > { %v1731_v52 = vrot.slane %v1517_v46, 9 }
 0x19b   : > { %v1728_v50 = vrot.slane %v1491_v47, 9  ;;  %1730 = vst.msk [vmem:[%s170_s16 + $0x4] sm:$0x3] %vm1473_vm11, %v1506_v48  ;;  %v1521_v53 = vrot.slane %v1518_v49, 7 }
 0x19d   : > { %v1502_v54 = vsel %vm1498_vm0, %v1728_v50, %v1501_v51  ;;  %v1522_v55 = vsel %vm1498_vm0, %v1731_v52, %v1521_v53 }
 0x19e   : > { %1729 = vst.msk [vmem:[%s170_s16 + $0x2] sm:$0x3] %vm1473_vm11, %v1502_v54  ;;  %1732 = vst.msk [vmem:[%s170_s16 + $0x6] sm:$0x3] %vm1473_vm11, %v1522_v55 }
 0x19f PF: > { %s13_s12 = sadd.s32 1, %s1992_s12  }
 0x1a0   : > { %p10_p4 = scmp.ge.s32.totalorder %s13_s12, 4  }
 0x1a2   :  { %12 = sbr.rel (!%p10_p4) target bundleno = 1 (0x1), region = 80 }

// kernel: squeeze.1
= control target key start
LH: loop header
LB: loop body
LE: loop exit
PB: predicated region body
PF: predicated region fallthrough
CT: control target
= control target key end

     0   :  { %s139_s0 = inlined_call_operand.vmem [shape: s32[32], index: 0, kind: input, shape index: {}]   ;;  %s140_s1 = inlined_call_operand.hbm [shape: s32[2,4,4], index: 1, kind: output, shape index: {}]  }
   0x1   :  { %v6_v0 = vld [vmem:[%s139_s0] sm:$0x1] }
   0x2   :  { %7 = vst [vmem:[#allocation3] sm:$0x1] %v6_v0 }
   0x3   :  { %2 = vsyncpa [#allocation1], 0  ;;  %s107_s0 = smov 124   ;;  %s108_s8 = smov 116   ;;  %vm9_vm0 = vcmask 31744  }
   0x4   :  { %s109_s9 = smov 120   ;;  %s110_s10 = smov 112  }
   0x5   :  { %s111_s11 = smov 108   ;;  %s112_s12 = smov 104  }
   0x6   :  { %s113_s13 = smov 100   ;;  %s114_s14 = smov [#allocation0]  }
   0x7   :  { %s71_s15 = sshll.u32 %s114_s14, 4  ;;  %s72_s15 = int_to_ptr.vmem [resolvable:$true] %s71_s15 }
   0x8   :  { %s85_s16 = scalar_lea.vmem %s72_s15, 128  ;;  %p90_p1 = scmp.lt.s32.totalorder %s72_s15, %s72_s15 }
   0x9   :  { %v11_v1 = vld [vmem:[#allocation3] sm:$0x1]   ;;  %p86_p0 = scmp.ne.s32.totalorder %s72_s15, %s85_s16  ;;  %p91_p2 = scmp.lt.s32.totalorder %s85_s16, %s85_s16 }
   0xa   :  { %v23_v2 = vld [vmem:[#allocation3] sm:$0x1]   ;;  %12 = vrot.lane.b32.xlu0 %v11_v1, %s107_s0 }
   0xb   :  { %24 = vrot.lane.b32.xlu1 %v23_v2, %s108_s8  ;;  %v17_v3 = vld [vmem:[#allocation3] sm:$0x1]   ;;  %p92_p3 = por %p91_p2, %p90_p1 }
   0xc   :  { %v29_v4 = vld [vmem:[#allocation3] sm:$0x1]  }
   0xd   :  { %v8_v5 = vld [vmem:[#allocation3] sm:$0x1]   ;;  %p93_p4 = pnand %p92_p3, %p86_p0 }
   0xe   :  { %10 = vst.msk [vmem:[#allocation2] sm:$0x1] %vm9_vm0, %v8_v5   ;;  %18 = vrot.lane.b32.xlu0 %v17_v3, %s109_s9  ;;  %v35_v6 = vld [vmem:[#allocation3] sm:$0x1]  }
   0xf   :  { %30 = vrot.lane.b32.xlu1 %v29_v4, %s110_s10  ;;  %v41_v7 = vld [vmem:[#allocation3] sm:$0x1]  }
  0x10   :  { %v47_v8 = vld [vmem:[#allocation3] sm:$0x1]  }
  0x12   :  { %36 = vrot.lane.b32.xlu0 %v35_v6, %s111_s11 }
  0x13   :  { %42 = vrot.lane.b32.xlu1 %v41_v7, %s112_s12 }
  0x16   :  { %48 = vrot.lane.b32.xlu0 %v47_v8, %s113_s13 }
  0x7c   :  { %v13_v9 = vpop.permute.xlu0 %12  }
  0x7d   :  { %v25_v10 = vpop.permute.xlu1 %24   ;;  %16 = vst.msk [vmem:[#allocation2 + $0x1] sm:$0x1] %vm9_vm0, %v13_v9  }
  0x7e   :  { %28 = vst.msk [vmem:[#allocation2 + $0x3] sm:$0x1] %vm9_vm0, %v25_v10  }
  0x80   :  { %v19_v11 = vpop.permute.xlu0 %18  }
  0x81   :  { %v31_v12 = vpop.permute.xlu1 %30   ;;  %22 = vst.msk [vmem:[#allocation2 + $0x2] sm:$0x1] %vm9_vm0, %v19_v11  }
  0x82   :  { %34 = vst.msk [vmem:[#allocation2 + $0x8] sm:$0x1] %vm9_vm0, %v31_v12  }
  0x84   :  { %v37_v13 = vpop.permute.xlu0 %36  }
  0x85   :  { %v43_v14 = vpop.permute.xlu1 %42   ;;  %40 = vst.msk [vmem:[#allocation2 + $0x9] sm:$0x1] %vm9_vm0, %v37_v13  }
  0x86   :  { %46 = vst.msk [vmem:[#allocation2 + $0xa] sm:$0x1] %vm9_vm0, %v43_v14  }
  0x88   :  { %v49_v15 = vpop.permute.xlu0 %48   ;;  %v57_v16 = vld [vmem:[#allocation2] sm:$0xf] }
  0x89   :  { %52 = vst.msk [vmem:[#allocation2 + $0xb] sm:$0x1] %vm9_vm0, %v49_v15   ;;  %60 = vst [vmem:[#allocation0] sm:$0xf] %v57_v16 }
  0x90   :  { %v62_v17 = vld [vmem:[#allocation2 + $0x8] sm:$0xf] }
  0x91   :  { %66 = vst [vmem:[#allocation0 + $0x4] sm:$0xf] %v62_v17 }
  0x92   :  { %96 = shalt.err (!%p93_p4)
}
  0x93   :  { %74 = dma.vmem_to_hbm [thread:$0]  %s72_s15, 128, %s140_s1, [#allocation1]  }
  0x94   :  { %105 = dma.done.wait [#allocation1], 128  }
  0x95   :  { %106 = vsyncadd [#allocation1], 4294967168 }
  0x96   :  { %76 = vsyncpa [#allocation1], 1 }

// kernel: vqvae_forward.21
= control target key start
LH: loop header
LB: loop body
LE: loop exit
PB: predicated region body
PF: predicated region fallthrough
CT: control target
= control target key end

     0   :  { %s3003_s12 = smov 0   ;;  %s3874_s0 = inlined_call_operand.vmem [shape: bf16[2,110,16], index: 0, kind: input, shape index: {}]   ;;  %s3875_s1 = inlined_call_operand.vmem [shape: bf16[4,4,16,3], index: 1, kind: input, shape index: {}]   ;;  %s3876_s2 = inlined_call_operand.vmem [shape: f32[1,12], index: 2, kind: input, shape index: {}]   ;;  %s3877_s3 = inlined_call_operand.vmem [shape: f32[2,8,8,12], index: 3, kind: output, shape index: {}]  }
   0x1 LB: > { %s2295_s13 = sadd.s32 4294967295, %s2976_s12   ;;  %p2299_p0 = scmp.ge.s32.totalorder %s2976_s12, 1  ;;  %s2976_s12 = sphi %s3003_s12, %s13_s12  }
   0x2   : > { %p137_p1 = scmp.lt.s32.totalorder %s2976_s12, 3 }
   0x4   : > { %p138_p2 = pnand %p2299_p0, %p137_p1 }
   0x5   : > { %p161_p3 = scmp.lt.s32.totalorder (!%p138_p2), %s2295_s13, 1  ;;  %s2981_s26 = smov (!%p138_p2), 6  }
   0x6   : > { %141 = sbr.rel (%p138_p2) target bundleno = 657 (0x291), region = 32  ;;  %s2982_s27 = smov (!%p138_p2), 9  }
   0xb   : > { %v2931_v0 = vld [vmem:[%s3875_s1] sm:$0xff]   ;;  %v2978_v1 = vmov 0.0   ;;  %v2934_v2 = vld [vmem:[%s3875_s1 + $0x8] sm:$0xff]   ;;  %vm2979_vm0 = vmmov 0   ;;  %s3879_s13 = smov (!%p161_p3, %s2295_s13), 1  ;;  %vm310_vm1 = vcmask 130048  }
   0xc   : > { %2587 = vmatprep.subr.bf16.mxu1 %v2978_v1  ;;  %2565 = vmatprep.subr.bf16.mxu0 %v2978_v1  ;;  %s2917_s18 = smul.u32 56, %s3879_s13  ;;  %v2937_v5 = vld [vmem:[%s3875_s1 + $0x20] sm:$0xff]   ;;  %vm259_vm2 = vsmask.f32 7424  ;;  %v2936_v15 = vld [vmem:[%s3875_s1 + $0x28] sm:$0xff]   ;;  %vm1244_vm3 = vcmask 1045504  }
   0xd   : > { %2588 = vmatpush3.bf16.msra.mxu1 %v2931_v0  ;;  %2589 = vmatprep.mubr.msk.bf16.mxu1 %vm2979_vm0, %v2978_v1  ;;  %v2943_v50 = vld [vmem:[%s3875_s1 + $0x18] sm:$0xff]   ;;  %vm492_vm4 = vcmask 1046528   ;;  %v2942_v57 = vld [vmem:[%s3875_s1 + $0x10] sm:$0xff]   ;;  %vm835_vm5 = vsmask.f32 6400  ;;  %vm1927_vm7 = vcmask 1044480  }
   0xe   : > { %2566 = vmatpush3.bf16.msra.mxu0 %v2934_v2  ;;  %2567 = vmatprep.mubr.msk.bf16.mxu0 %vm2979_vm0, %v2978_v1  ;;  %s3031_s21 = scalar_lea.vmem %s3874_s0, %s2917_s18  ;;  %vm1676_vm6 = vsmask.f32 5376  ;;  %vm2163_vm8 = vcmask 23552   ;;  %vm2174_vm9 = vcmask 48128   ;;  %s2468_s28 = sshll.u32 %s3879_s13, 6  ;;  %vm2185_vm10 = vcmask 72704  }
   0xf   : > { %2609 = vmatprep.subr.bf16.mxu0 %v2978_v1  ;;  %2631 = vmatprep.subr.bf16.mxu1 %v2978_v1  ;;  %v220_v3 = vld [vmem:[%s3031_s21] sm:$0xf]  ;;  %v3035_v4 = vld [vmem:[%s3031_s21 + $0x4] sm:$0xf]  ;;  %v3042_v7 = vld [vmem:[%s3031_s21 + $0x8] sm:$0xff]   ;;  %s3788_s6 = scalar_lea.vmem %s3877_s3, %s2468_s28  ;;  %vm2212_vm11 = vcmask 97280  }
  0x10   : > { %v2333_v6 = vcombine.low %v220_v3, %v3035_v4  ;;  %v268_v10 = vshll.u32 %v3042_v7, 16  ;;  %v3047_v11 = vld [vmem:[%s3031_s21 + $0x10] sm:$0xff]   ;;  %v272_v16 = vshrl.u32 %v3042_v7, 16  ;;  %v3062_v21 = vld [vmem:[%s3031_s21 + $0x18] sm:$0xff]   ;;  %v3073_v25 = vld [vmem:[%s3031_s21 + $0x20] sm:$0xff]   ;;  %v494_v54 = vrot.slane %v3042_v7, 1 }
  0x11   : > { %v276_v17 = vshll.u32 %v3047_v11, 16  ;;  %v280_v23 = vshrl.u32 %v3047_v11, 16  ;;  %v284_v24 = vshll.u32 %v3062_v21, 16  ;;  %v292_v28 = vshll.u32 %v3073_v25, 16  ;;  %v678_v34 = vld [vmem:[%s3031_s21 + $0x8] sm:$0xf] }
  0x12   : > { %2590 = vmatmul.mubr.msk.bf16.vlgmr.msra.gmra.mxu1 %vm310_vm1, %v2333_v6  ;;  %v261_v8 = vshrl.u32 %v2333_v6, 16  ;;  %v263_v9 = vshll.u32 %v2333_v6, 16  ;;  %v270_v13 = vrot.slane %v268_v10, 1  ;;  %v288_v30 = vshrl.u32 %v3062_v21, 16  ;;  %v1240_v35 = vld [vmem:[%s3031_s21 + $0x4] sm:$0xc] }
  0x13   : > { %2593 = vmatprep.mubr.msk.bf16.mxu1 %vm2979_vm0, %v2978_v1  ;;  %2632 = vmatpush3.bf16.msra.mxu1 %v2937_v5  ;;  %v278_v20 = vrot.slane %v276_v17, 1  ;;  %v286_v27 = vrot.slane %v284_v24, 1  ;;  %v294_v31 = vrot.slane %v292_v28, 1  ;;  %v3086_v32 = vld [vmem:[%s3031_s21 + $0x28] ss:$0 sps:$4 sm:$0x11]   ;;  %v2401_v37 = vcombine.low %v1240_v35, %v678_v34 }
  0x14   : > { %v265_v12 = vrot.slane %v263_v9, 1  ;;  %2675 = vmatprep.subr.bf16.mxu1 %v2978_v1  ;;  %v274_v19 = vor.u32 %v272_v16, %v270_v13  ;;  %v3098_v36 = vld [vmem:[%s3031_s21 + $0xc] sm:$0xff]   ;;  %v296_v39 = vshrl.u32 %v3073_v25, 16  ;;  %v300_v40 = vshll.u32 %v3086_v32, 16  ;;  %v488_v46 = vld [vmem:[%s3031_s21] sm:$0xe] }
  0x15   : > { %v282_v26 = vor.u32 %v280_v23, %v278_v20  ;;  %v290_v33 = vor.u32 %v288_v30, %v286_v27  ;;  %v1245_v41 = vrot.slane %v2401_v37, 2  ;;  %v1246_v42 = vrot.slane %v3098_v36, 2  ;;  %v3116_v47 = vld [vmem:[%s3031_s21 + $0x14] sm:$0xff]   ;;  %v3136_v55 = vld [vmem:[%s3031_s21 + $0x1c] sm:$0xff]   ;;  %v3155_v61 = vld [vmem:[%s3031_s21 + $0x24] sm:$0xff]  }
  0x16   : > { %v266_v14 = vor.u32 %v265_v12, %v261_v8  ;;  %v279_v22 = vsel %vm259_vm2, %v274_v19, %v278_v20  ;;  %v298_v44 = vor.u32 %v296_v39, %v294_v31  ;;  %v302_v45 = vrot.slane %v300_v40, 1  ;;  %v677_v3 = vld [vmem:[%s3031_s21 + $0x4] sm:$0xe]  ;;  %v2948_v28 = vld [vmem:[%s3875_s1 + $0x48] sm:$0xff]   ;;  %v2946_v35 = vld [vmem:[%s3875_s1 + $0x30] sm:$0xff]  }
  0x17   : > { %v287_v29 = vsel %vm259_vm2, %v282_v26, %v286_v27  ;;  %v295_v38 = vsel %vm259_vm2, %v290_v33, %v294_v31  ;;  %v3106_v43 = vsel %vm1244_vm3, %v1245_v41, %v1246_v42  ;;  %v2351_v48 = vcombine.low %v488_v46, %v3035_v4  ;;  %v3171_v4 = vld [vmem:[%s3031_s21 + $0x2c] ss:$0 sps:$4 sm:$0x33]  }
  0x18   : > { %v271_v18 = vsel %vm259_vm2, %v266_v14, %v270_v13  ;;  %v303_v49 = vsel %vm259_vm2, %v298_v44, %v302_v45  ;;  %v1248_v51 = vrot.slane %v3116_v47, 2  ;;  %v1250_v58 = vrot.slane %v3136_v55, 2 }
  0x19   : > { %2568 = vmatmul.mubr.msk.bf16.vlgmr.msra.gmra.mxu0 %vm310_vm1, %v271_v18  ;;  %v493_v53 = vrot.slane %v2351_v48, 1  ;;  %v496_v60 = vrot.slane %v3047_v11, 1  ;;  %v1252_v63 = vrot.slane %v3155_v61, 2  ;;  %v498_v2 = vrot.slane %v3062_v21, 1 }
  0x1a   : > { %2610 = vmatpush3.bf16.msra.mxu0 %v2936_v15  ;;  %2594 = vmatmul.mubr.msk.bf16.gmra.mxu1 %vm310_vm1, %v3042_v7  ;;  %v3126_v52 = vsel %vm1244_vm3, %v1246_v42, %v1248_v51  ;;  %v3145_v59 = vsel %vm1244_vm3, %v1248_v51, %v1250_v58  ;;  %v2364_v6 = vcombine.low %v677_v3, %v678_v34  ;;  %v1254_v7 = vrot.slane %v3171_v4, 2  ;;  %v2954_v3 = vld [vmem:[%s3875_s1 + $0x38] sm:$0xff]  }
  0x1b   : > { %2571 = vmatprep.mubr.msk.bf16.mxu0 %vm2979_vm0, %v2978_v1  ;;  %2597 = vmatprep.mubr.msk.bf16.mxu1 %vm2979_vm0, %v2978_v1  ;;  %v495_v56 = vsel %vm492_vm4, %v493_v53, %v494_v54  ;;  %v497_v62 = vsel %vm492_vm4, %v494_v54, %v496_v60  ;;  %v3161_v0 = vsel %vm1244_vm3, %v1250_v58, %v1252_v63  ;;  %v500_v9 = vrot.slane %v3073_v25, 1 }
  0x1c   : > { %2653 = vmatprep.subr.bf16.mxu0 %v2978_v1  ;;  %v499_v5 = vsel %vm492_vm4, %v496_v60, %v498_v2  ;;  %v3177_v8 = vsel %vm1244_vm3, %v1252_v63, %v1254_v7  ;;  %v837_v10 = vshrl.u32 %v2364_v6, 16  ;;  %v845_v12 = vshrl.u32 %v3098_v36, 16 }
  0x1d   : > { %v848_v13 = vshll.u32 %v3098_v36, 16  ;;  %v501_v14 = vsel %vm492_vm4, %v498_v2, %v500_v9  ;;  %v502_v19 = vrot.slane %v3086_v32, 1  ;;  %v857_v23 = vshll.u32 %v3116_v47, 16 }
  0x1e   : > { %v839_v15 = vrot.slane %v837_v10, 1  ;;  %v847_v17 = vrot.slane %v845_v12, 1  ;;  %v717_v30 = vrot.slane %v3098_v36, 1  ;;  %v863_v32 = vshrl.u32 %v3136_v55, 16 }
  0x1f   : > { %v503_v24 = vsel %vm492_vm4, %v500_v9, %v502_v19  ;;  %v859_v27 = vrot.slane %v857_v23, 2  ;;  %v866_v33 = vshll.u32 %v3136_v55, 16  ;;  %v719_v39 = vrot.slane %v3116_v47, 1 }
  0x20   : > { %v865_v37 = vrot.slane %v863_v32, 1  ;;  %v872_v41 = vshrl.u32 %v3155_v61, 16  ;;  %v875_v42 = vshll.u32 %v3155_v61, 16  ;;  %v721_v48 = vrot.slane %v3136_v55, 1 }
  0x21   : > { %2572 = vmatmul.mubr.msk.bf16.gmra.mxu0 %vm310_vm1, %v279_v22  ;;  %v3237_v44 = vsel %vm492_vm4, %v717_v30, %v719_v39  ;;  %v884_v51 = vshll.u32 %v3171_v4, 16  ;;  %v723_v55 = vrot.slane %v3155_v61, 1  ;;  %vm2215_vm12 = vcmask 97282  }
  0x22   : > { %2598 = vmatmul.mubr.msk.bf16.gmra.mxu1 %vm310_vm1, %v3047_v11  ;;  %2575 = vmatprep.mubr.msk.bf16.mxu0 %vm2979_vm0, %v2978_v1  ;;  %v840_v11 = vshll.u32 %v2364_v6, 16  ;;  %v874_v46 = vrot.slane %v872_v41, 1  ;;  %v3254_v53 = vsel %vm492_vm4, %v719_v39, %v721_v48  ;;  %v3418_v39 = vld [vmem:[%s3031_s21 + $0xc] sm:$0xf]  ;;  %vm2217_vm13 = vcmask 91136  }
  0x23   : > { %2601 = vmatprep.mubr.msk.bf16.mxu1 %vm2979_vm0, %v2978_v1  ;;  %v724_v60 = vsel %vm492_vm4, %v721_v48, %v723_v55  ;;  %vm2220_vm14 = vcmask 97284   ;;  %vm2222_vm15 = vcmask 93184  }
  0x24   : > { %v842_v16 = vrot.slane %v840_v11, 2  ;;  %v2959_v11 = vld [vmem:[%s3875_s1 + $0x58] sm:$0xff]  }
  0x26   : > { %v843_v20 = vor.u32 %v842_v16, %v839_v15 }
  0x29   : > { %2576 = vmatmul.mubr.msk.bf16.gmra.mxu0 %vm310_vm1, %v287_v29 }
  0x2a   : > { %2602 = vmatmul.mubr.msk.bf16.gmra.mxu1 %vm310_vm1, %v3062_v21  ;;  %2579 = vmatprep.mubr.msk.bf16.mxu0 %vm2979_vm0, %v2978_v1 }
  0x2b   : > { %2605 = vmatprep.mubr.msk.bf16.mxu1 %vm2979_vm0, %v2978_v1 }
  0x31   : > { %2580 = vmatmul.mubr.msk.bf16.gmra.mxu0 %vm310_vm1, %v295_v38 }
  0x32   : > { %2606 = vmatmul.mubr.msk.bf16.gmra.mxu1 %vm310_vm1, %v3073_v25  ;;  %2583 = vmatprep.mubr.msk.bf16.mxu0 %vm2979_vm0, %v2978_v1 }
  0x33   : > { %2633 = vmatprep.mubr.msk.bf16.mxu1 %vm2979_vm0, %v2978_v1 }
  0x39   : > { %2584 = vmatmul.mubr.msk.bf16.gmra.mxu0 %vm310_vm1, %v303_v49 }
  0x3a   : > { %2634 = vmatmul.mubr.msk.bf16.vlgmr.msra.gmra.mxu1 %vm310_vm1, %v271_v18  ;;  %2611 = vmatprep.mubr.msk.bf16.mxu0 %vm2979_vm0, %v2978_v1  ;;  %v850_v18 = vrot.slane %v848_v13, 2 }
  0x3b   : > { %2637 = vmatprep.mubr.msk.bf16.mxu1 %vm2979_vm0, %v2978_v1  ;;  %2676 = vmatpush3.bf16.msra.mxu1 %v2943_v50  ;;  %v881_v50 = vshrl.u32 %v3171_v4, 16  ;;  %v2953_v4 = vld [vmem:[%s3875_s1 + $0x40] sm:$0xff]  }
  0x3c   : > { %2719 = vmatprep.subr.bf16.mxu1 %v2978_v1  ;;  %v851_v21 = vor.u32 %v850_v18, %v847_v17 }
  0x3e   : > { %v3199_v25 = vsel %vm835_vm5, %v843_v20, %v851_v21 }
  0x41   : > { %2612 = vmatmul.mubr.msk.bf16.vlgmr.msra.gmra.mxu0 %vm310_vm1, %v495_v56  ;;  %v883_v56 = vrot.slane %v881_v50, 1 }
  0x42   : > { %2654 = vmatpush3.bf16.msra.mxu0 %v2942_v57  ;;  %2638 = vmatmul.mubr.msk.bf16.gmra.mxu1 %vm310_vm1, %v279_v22  ;;  %v854_v22 = vshrl.u32 %v3116_v47, 16  ;;  %v877_v47 = vrot.slane %v875_v42, 2  ;;  %v886_v57 = vrot.slane %v884_v51, 2 }
  0x43   : > { %2615 = vmatprep.mubr.msk.bf16.mxu0 %vm2979_vm0, %v2978_v1  ;;  %2641 = vmatprep.mubr.msk.bf16.mxu1 %vm2979_vm0, %v2978_v1 }
  0x44   : > { %2697 = vmatprep.subr.bf16.mxu0 %v2978_v1  ;;  %v856_v26 = vrot.slane %v854_v22, 1  ;;  %v887_v58 = vor.u32 %v886_v57, %v883_v56 }
  0x46   : > { %v860_v31 = vor.u32 %v859_v27, %v856_v26 }
  0x48   : > { %v3222_v36 = vsel %vm835_vm5, %v851_v21, %v860_v31  ;;  %v2958_v21 = vld [vmem:[%s3875_s1 + $0x50] sm:$0xff]  }
  0x49   : > { %2616 = vmatmul.mubr.msk.bf16.gmra.mxu0 %vm310_vm1, %v497_v62  ;;  %v2952_v62 = vld [vmem:[%s3031_s21 + $0x2c] ss:$0 sps:$4 sm:$0x11]  }
  0x4a   : > { %2642 = vmatmul.mubr.msk.bf16.gmra.mxu1 %vm310_vm1, %v287_v29  ;;  %2619 = vmatprep.mubr.msk.bf16.mxu0 %vm2979_vm0, %v2978_v1  ;;  %v716_v29 = vrot.slane %v2364_v6, 1  ;;  %v725_v2 = vrot.slane %v2952_v62, 1  ;;  %v2956_v6 = vld [vmem:[%s3875_s1 + $0x68] sm:$0xff]  }
  0x4b   : > { %2645 = vmatprep.mubr.msk.bf16.mxu1 %vm2979_vm0, %v2978_v1 }
  0x4c   : > { %v3216_v34 = vsel %vm492_vm4, %v716_v29, %v717_v30  ;;  %v726_v61 = vsel %vm492_vm4, %v723_v55, %v725_v2 }
  0x51   : > { %2620 = vmatmul.mubr.msk.bf16.gmra.mxu0 %vm310_vm1, %v499_v5  ;;  %v2957_v5 = vld [vmem:[%s3875_s1 + $0x60] sm:$0xff]  }
  0x52   : > { %2646 = vmatmul.mubr.msk.bf16.gmra.mxu1 %vm310_vm1, %v295_v38  ;;  %2623 = vmatprep.mubr.msk.bf16.mxu0 %vm2979_vm0, %v2978_v1  ;;  %v868_v38 = vrot.slane %v866_v33, 2 }
  0x53   : > { %2649 = vmatprep.mubr.msk.bf16.mxu1 %vm2979_vm0, %v2978_v1 }
  0x54   : > { %v869_v40 = vor.u32 %v868_v38, %v865_v37  ;;  %v1518_v38 = vld [vmem:[%s3031_s21 + $0x8] sm:$0xc] }
  0x56   : > { %v3240_v45 = vsel %vm835_vm5, %v860_v31, %v869_v40 }
  0x59   : > { %2624 = vmatmul.mubr.msk.bf16.gmra.mxu0 %vm310_vm1, %v501_v14 }
  0x5a   : > { %2650 = vmatmul.mubr.msk.bf16.gmra.mxu1 %vm310_vm1, %v303_v49  ;;  %2627 = vmatprep.mubr.msk.bf16.mxu0 %vm2979_vm0, %v2978_v1  ;;  %v878_v49 = vor.u32 %v877_v47, %v874_v46 }
  0x5b   : > { %2677 = vmatprep.mubr.msk.bf16.mxu1 %vm2979_vm0, %v2978_v1 }
  0x5c   : > { %v3257_v54 = vsel %vm835_vm5, %v869_v40, %v878_v49  ;;  %v3271_v63 = vsel %vm835_vm5, %v878_v49, %v887_v58 }
  0x61   : > { %2628 = vmatmul.mubr.msk.bf16.gmra.mxu0 %vm310_vm1, %v503_v24 }
  0x62   : > { %2678 = vmatmul.mubr.msk.bf16.vlgmr.msra.gmra.mxu1 %vm310_vm1, %v3199_v25  ;;  %2655 = vmatprep.mubr.msk.bf16.mxu0 %vm2979_vm0, %v2978_v1 }
  0x63   : > { %2681 = vmatprep.mubr.msk.bf16.mxu1 %vm2979_vm0, %v2978_v1  ;;  %2720 = vmatpush3.bf16.msra.mxu1 %v2948_v28 }
  0x64   : > { %2763 = vmatprep.subr.bf16.mxu1 %v2978_v1 }
  0x69   : > { %2656 = vmatmul.mubr.msk.bf16.vlgmr.msra.gmra.mxu0 %vm310_vm1, %v3216_v34 }
  0x6a   : > { %2698 = vmatpush3.bf16.msra.mxu0 %v2946_v35  ;;  %2682 = vmatmul.mubr.msk.bf16.gmra.mxu1 %vm310_vm1, %v3222_v36 }
  0x6b   : > { %2659 = vmatprep.mubr.msk.bf16.mxu0 %vm2979_vm0, %v2978_v1  ;;  %2685 = vmatprep.mubr.msk.bf16.mxu1 %vm2979_vm0, %v2978_v1 }
  0x6c   : > { %2741 = vmatprep.subr.bf16.mxu0 %v2978_v1 }
  0x71   : > { %2660 = vmatmul.mubr.msk.bf16.gmra.mxu0 %vm310_vm1, %v3237_v44 }
  0x72   : > { %2686 = vmatmul.mubr.msk.bf16.gmra.mxu1 %vm310_vm1, %v3240_v45  ;;  %2663 = vmatprep.mubr.msk.bf16.mxu0 %vm2979_vm0, %v2978_v1 }
  0x73   : > { %2689 = vmatprep.mubr.msk.bf16.mxu1 %vm2979_vm0, %v2978_v1 }
  0x79   : > { %2664 = vmatmul.mubr.msk.bf16.gmra.mxu0 %vm310_vm1, %v3254_v53 }
  0x7a   : > { %2690 = vmatmul.mubr.msk.bf16.gmra.mxu1 %vm310_vm1, %v3257_v54  ;;  %2667 = vmatprep.mubr.msk.bf16.mxu0 %vm2979_vm0, %v2978_v1 }
  0x7b   : > { %2693 = vmatprep.mubr.msk.bf16.mxu1 %vm2979_vm0, %v2978_v1 }
  0x81   : > { %2668 = vmatmul.mubr.msk.bf16.gmra.mxu0 %vm310_vm1, %v724_v60 }
  0x82   : > { %2694 = vmatmul.mubr.msk.bf16.gmra.mxu1 %vm310_vm1, %v3271_v63  ;;  %2671 = vmatprep.mubr.msk.bf16.mxu0 %vm2979_vm0, %v2978_v1 }
  0x83   : > { %2721 = vmatprep.mubr.msk.bf16.mxu1 %vm2979_vm0, %v2978_v1 }
  0x89   : > { %2672 = vmatmul.mubr.msk.bf16.gmra.mxu0 %vm310_vm1, %v726_v61 }
  0x8a   : > { %2722 = vmatmul.mubr.msk.bf16.vlgmr.msra.gmra.mxu1 %vm310_vm1, %v3199_v25  ;;  %2699 = vmatprep.mubr.msk.bf16.mxu0 %vm2979_vm0, %v2978_v1 }
  0x8b   : > { %2725 = vmatprep.mubr.msk.bf16.mxu1 %vm2979_vm0, %v2978_v1  ;;  %2764 = vmatpush3.bf16.msra.mxu1 %v2954_v3 }
  0x8c   : > { %2807 = vmatprep.subr.bf16.mxu1 %v2978_v1 }
  0x91   : > { %2700 = vmatmul.mubr.msk.bf16.vlgmr.msra.gmra.mxu0 %vm310_vm1, %v3199_v25 }
  0x92   : > { %2742 = vmatpush3.bf16.msra.mxu0 %v2953_v4  ;;  %2726 = vmatmul.mubr.msk.bf16.gmra.mxu1 %vm310_vm1, %v3222_v36  ;;  %v3445_v4 = vld [vmem:[%s3031_s21 + $0x18] sm:$0xff]  }
  0x93   : > { %2703 = vmatprep.mubr.msk.bf16.mxu0 %vm2979_vm0, %v2978_v1  ;;  %2729 = vmatprep.mubr.msk.bf16.mxu1 %vm2979_vm0, %v2978_v1 }
  0x94   : > { %2785 = vmatprep.subr.bf16.mxu0 %v2978_v1 }
  0x99   : > { %2704 = vmatmul.mubr.msk.bf16.gmra.mxu0 %vm310_vm1, %v3222_v36 }
  0x9a   : > { %2730 = vmatmul.mubr.msk.bf16.gmra.mxu1 %vm310_vm1, %v3240_v45  ;;  %2707 = vmatprep.mubr.msk.bf16.mxu0 %vm2979_vm0, %v2978_v1 }
  0x9b   : > { %2733 = vmatprep.mubr.msk.bf16.mxu1 %vm2979_vm0, %v2978_v1 }
  0xa1   : > { %2708 = vmatmul.mubr.msk.bf16.gmra.mxu0 %vm310_vm1, %v3240_v45 }
  0xa2   : > { %2734 = vmatmul.mubr.msk.bf16.gmra.mxu1 %vm310_vm1, %v3257_v54  ;;  %2711 = vmatprep.mubr.msk.bf16.mxu0 %vm2979_vm0, %v2978_v1 }
  0xa3   : > { %2737 = vmatprep.mubr.msk.bf16.mxu1 %vm2979_vm0, %v2978_v1 }
  0xa9   : > { %2712 = vmatmul.mubr.msk.bf16.gmra.mxu0 %vm310_vm1, %v3257_v54 }
  0xaa   : > { %2738 = vmatmul.mubr.msk.bf16.gmra.mxu1 %vm310_vm1, %v3271_v63  ;;  %2715 = vmatprep.mubr.msk.bf16.mxu0 %vm2979_vm0, %v2978_v1 }
  0xab   : > { %2765 = vmatprep.mubr.msk.bf16.mxu1 %vm2979_vm0, %v2978_v1 }
  0xb1   : > { %2716 = vmatmul.mubr.msk.bf16.gmra.mxu0 %vm310_vm1, %v3271_v63 }
  0xb2   : > { %2766 = vmatmul.mubr.msk.bf16.vlgmr.msra.gmra.mxu1 %vm310_vm1, %v3106_v43  ;;  %2743 = vmatprep.mubr.msk.bf16.mxu0 %vm2979_vm0, %v2978_v1 }
  0xb3   : > { %2769 = vmatprep.mubr.msk.bf16.mxu1 %vm2979_vm0, %v2978_v1  ;;  %2808 = vmatpush3.bf16.msra.mxu1 %v2957_v5 }
  0xb4   : > { %2851 = vmatprep.subr.bf16.mxu1 %v2978_v1 }
  0xb9   : > { %2744 = vmatmul.mubr.msk.bf16.vlgmr.msra.gmra.mxu0 %vm310_vm1, %v3216_v34 }
  0xba   : > { %2786 = vmatpush3.bf16.msra.mxu0 %v2956_v6  ;;  %2770 = vmatmul.mubr.msk.bf16.gmra.mxu1 %vm310_vm1, %v3126_v52 }
  0xbb   : > { %2747 = vmatprep.mubr.msk.bf16.mxu0 %vm2979_vm0, %v2978_v1  ;;  %2773 = vmatprep.mubr.msk.bf16.mxu1 %vm2979_vm0, %v2978_v1 }
  0xbc   : > { %2829 = vmatprep.subr.bf16.mxu0 %v2978_v1 }
  0xc1   : > { %2748 = vmatmul.mubr.msk.bf16.gmra.mxu0 %vm310_vm1, %v3237_v44  ;;  %v3423_v44 = vcombine.low %v1518_v38, %v3418_v39 }
  0xc2   : > { %2774 = vmatmul.mubr.msk.bf16.gmra.mxu1 %vm310_vm1, %v3145_v59  ;;  %2751 = vmatprep.mubr.msk.bf16.mxu0 %vm2979_vm0, %v2978_v1 }
  0xc3   : > { %2777 = vmatprep.mubr.msk.bf16.mxu1 %vm2979_vm0, %v2978_v1  ;;  %v1678_v51 = vshrl.u32 %v3423_v44, 16 }
  0xc5   : > { %v1680_v62 = vrot.slane %v1678_v51, 2 }
  0xc9   : > { %2752 = vmatmul.mubr.msk.bf16.gmra.mxu0 %vm310_vm1, %v3254_v53  ;;  %v1681_v53 = vshll.u32 %v3423_v44, 16 }
  0xca   : > { %2778 = vmatmul.mubr.msk.bf16.gmra.mxu1 %vm310_vm1, %v3161_v0  ;;  %2755 = vmatprep.mubr.msk.bf16.mxu0 %vm2979_vm0, %v2978_v1 }
  0xcb   : > { %2781 = vmatprep.mubr.msk.bf16.mxu1 %vm2979_vm0, %v2978_v1  ;;  %v1683_v2 = vrot.slane %v1681_v53, 3 }
  0xd1   : > { %2756 = vmatmul.mubr.msk.bf16.gmra.mxu0 %vm310_vm1, %v724_v60 }
  0xd2   : > { %v449_v7 = vpop.f32.mrf.mxu1  ;;  %2782 = vmatmul.mubr.msk.bf16.gmra.mxu1 %vm310_vm1, %v3177_v8  ;;  %2759 = vmatprep.mubr.msk.bf16.mxu0 %vm2979_vm0, %v2978_v1 }
  0xd3   : > { %2809 = vmatprep.mubr.msk.bf16.mxu1 %vm2979_vm0, %v2978_v1 }
  0xd4   : > { %v2591_v9 = vpop.f32.mrf.mxu1 }
  0xd6   : > { %v452_v10 = vpop.f32.mrf.mxu1 }
  0xd8   : > { %v2592_v12 = vpop.f32.mrf.mxu1 }
  0xd9   : > { %v360_v13 = vpop.f32.mrf.mxu0  ;;  %2760 = vmatmul.mubr.msk.bf16.gmra.mxu0 %vm310_vm1, %v726_v61 }
  0xda   : > { %v3379_v14 = vadd.f32 %v449_v7, %v360_v13  ;;  %v457_v15 = vpop.f32.mrf.mxu1  ;;  %2810 = vmatmul.mubr.msk.bf16.vlgmr.msra.gmra.mxu1 %vm310_vm1, %v3199_v25  ;;  %2787 = vmatprep.mubr.msk.bf16.mxu0 %vm2979_vm0, %v2978_v1  ;;  %v1695_v13 = vshrl.u32 %v3445_v4, 16 }
  0xdb   : > { %v2569_v16 = vpop.f32.mrf.mxu0  ;;  %2852 = vmatpush3.bf16.msra.mxu1 %v2959_v11  ;;  %2813 = vmatprep.mubr.msk.bf16.mxu1 %vm2979_vm0, %v2978_v1  ;;  %v1684_v11 = vor.u32 %v1683_v2, %v1680_v62 }
  0xdc   : > { %v2595_v17 = vpop.f32.mrf.mxu1  ;;  %2895 = vmatprep.subr.bf16.mxu1 %v2978_v1 }
  0xdd   : > { %v363_v18 = vpop.f32.mrf.mxu0 }
  0xde   : > { %v3388_v19 = vadd.f32 %v452_v10, %v363_v18  ;;  %v460_v20 = vpop.f32.mrf.mxu1 }
  0xdf   : > { %v2570_v22 = vpop.f32.mrf.mxu0 }
  0xe0   : > { %v2596_v23 = vpop.f32.mrf.mxu1  ;;  %v1697_v22 = vrot.slane %v1695_v13, 2  ;;  %v3515_v13 = vld [vmem:[%s3031_s21 + $0x30] ss:$0 sps:$4 sm:$0x77]  }
  0xe1   : > { %v368_v24 = vpop.f32.mrf.mxu0  ;;  %2788 = vmatmul.mubr.msk.bf16.vlgmr.msra.gmra.mxu0 %vm310_vm1, %v3106_v43 }
  0xe2   : > { %v3395_v25 = vadd.f32 %v457_v15, %v368_v24  ;;  %2830 = vmatpush3.bf16.msra.mxu0 %v2958_v21  ;;  %v465_v26 = vpop.f32.mrf.mxu1  ;;  %2814 = vmatmul.mubr.msk.bf16.gmra.mxu1 %vm310_vm1, %v3222_v36  ;;  %v2963_v21 = vld [vmem:[%s3875_s1 + $0x78] sm:$0xff]   ;;  %v3468_v24 = vld [vmem:[%s3031_s21 + $0x20] sm:$0xff]  }
  0xe3   : > { %v2573_v27 = vpop.f32.mrf.mxu0  ;;  %2791 = vmatprep.mubr.msk.bf16.mxu0 %vm2979_vm0, %v2978_v1  ;;  %2817 = vmatprep.mubr.msk.bf16.mxu1 %vm2979_vm0, %v2978_v1 }
  0xe4   : > { %v2599_v28 = vpop.f32.mrf.mxu1  ;;  %2873 = vmatprep.subr.bf16.mxu0 %v2978_v1 }
  0xe5   : > { %v371_v43 = vpop.f32.mrf.mxu0 }
  0xe6   : > { %v3404_v29 = vadd.f32 %v460_v20, %v371_v43  ;;  %v468_v30 = vpop.f32.mrf.mxu1 }
  0xe7   : > { %v2574_v31 = vpop.f32.mrf.mxu0 }
  0xe8   : > { %v2600_v32 = vpop.f32.mrf.mxu1 }
  0xe9   : > { %v376_v33 = vpop.f32.mrf.mxu0  ;;  %2792 = vmatmul.mubr.msk.bf16.gmra.mxu0 %vm310_vm1, %v3126_v52 }
  0xea   : > { %v3408_v34 = vadd.f32 %v465_v26, %v376_v33  ;;  %v473_v35 = vpop.f32.mrf.mxu1  ;;  %2818 = vmatmul.mubr.msk.bf16.gmra.mxu1 %vm310_vm1, %v3240_v45  ;;  %2795 = vmatprep.mubr.msk.bf16.mxu0 %vm2979_vm0, %v2978_v1  ;;  %v3426_v45 = vld [vmem:[%s3031_s21 + $0x10] sm:$0xff]   ;;  %v1704_v33 = vshrl.u32 %v3468_v24, 16 }
  0xeb   : > { %v2577_v36 = vpop.f32.mrf.mxu0  ;;  %2821 = vmatprep.mubr.msk.bf16.mxu1 %vm2979_vm0, %v2978_v1  ;;  %v1689_v56 = vshll.u32 %v3426_v45, 16  ;;  %v1558_v31 = vrot.slane %v3426_v45, 2 }
  0xec   : > { %v2603_v37 = vpop.f32.mrf.mxu1 }
  0xed   : > { %v379_v40 = vpop.f32.mrf.mxu0  ;;  %v1691_v3 = vrot.slane %v1689_v56, 3 }
  0xee   : > { %v3420_v41 = vadd.f32 %v468_v30, %v379_v40  ;;  %v476_v52 = vpop.f32.mrf.mxu1  ;;  %v1557_v30 = vrot.slane %v3423_v44, 2 }
  0xef   : > { %v2578_v42 = vpop.f32.mrf.mxu0 }
  0xf0   : > { %v2604_v46 = vpop.f32.mrf.mxu1  ;;  %v2962_v42 = vld [vmem:[%s3875_s1 + $0x70] sm:$0xff]  }
  0xf1   : > { %v384_v47 = vpop.f32.mrf.mxu0  ;;  %2796 = vmatmul.mubr.msk.bf16.gmra.mxu0 %vm310_vm1, %v3145_v59  ;;  %v1686_v59 = vshrl.u32 %v3426_v45, 16 }
  0xf2   : > { %v3430_v48 = vadd.f32 %v473_v35, %v384_v47  ;;  %v481_v49 = vpop.f32.mrf.mxu1  ;;  %2822 = vmatmul.mubr.msk.bf16.gmra.mxu1 %vm310_vm1, %v3257_v54  ;;  %2799 = vmatprep.mubr.msk.bf16.mxu0 %vm2979_vm0, %v2978_v1  ;;  %v1707_v35 = vshll.u32 %v3468_v24, 16  ;;  %v1706_v47 = vrot.slane %v1704_v33, 2 }
  0xf3   : > { %v2581_v50 = vpop.f32.mrf.mxu0  ;;  %2825 = vmatprep.mubr.msk.bf16.mxu1 %vm2979_vm0, %v2978_v1  ;;  %v1688_v61 = vrot.slane %v1686_v59, 2 }
  0xf4   : > { %v2607_v57 = vpop.f32.mrf.mxu1  ;;  %v3494_v50 = vld [vmem:[%s3031_s21 + $0x28] sm:$0xff]  }
  0xf5   : > { %v387_v55 = vpop.f32.mrf.mxu0  ;;  %v1692_v12 = vor.u32 %v1691_v3, %v1688_v61  ;;  %v1560_v57 = vrot.slane %v3445_v4, 2  ;;  %v1716_v62 = vshll.u32 %v3494_v50, 16 }
  0xf6   : > { %v3442_v58 = vadd.f32 %v476_v52, %v387_v55  ;;  %v484_v54 = vpop.f32.mrf.mxu1  ;;  %v1559_v52 = vsel %vm1244_vm3, %v1557_v30, %v1558_v31 }
  0xf7   : > { %v2582_v60 = vpop.f32.mrf.mxu0  ;;  %v3462_v20 = vsel %vm1676_vm6, %v1684_v11, %v1692_v12 }
  0xf8   : > { %v2608_v5 = vpop.f32.mrf.mxu1  ;;  %v1713_v60 = vshrl.u32 %v3494_v50, 16 }
  0xf9   : > { %v392_v6 = vpop.f32.mrf.mxu0  ;;  %2800 = vmatmul.mubr.msk.bf16.gmra.mxu0 %vm310_vm1, %v3161_v0  ;;  %v1698_v0 = vshll.u32 %v3445_v4, 16 }
  0xfa   : > { %v3449_v7 = vadd.f32 %v481_v49, %v392_v6  ;;  %v638_v9 = vpop.f32.mrf.mxu1  ;;  %2826 = vmatmul.mubr.msk.bf16.gmra.mxu1 %vm310_vm1, %v3271_v63  ;;  %2803 = vmatprep.mubr.msk.bf16.mxu0 %vm2979_vm0, %v2978_v1  ;;  %v1709_v49 = vrot.slane %v1707_v35, 3  ;;  %v1561_v6 = vsel %vm1244_vm3, %v1558_v31, %v1560_v57  ;;  %v1715_v11 = vrot.slane %v1713_v60, 2  ;;  %v2968_v60 = vld [vmem:[%s3031_s21 + $0x30] ss:$0 sps:$4 sm:$0x33]  }
  0xfb   : > { %v2585_v10 = vpop.f32.mrf.mxu0  ;;  %2853 = vmatprep.mubr.msk.bf16.mxu1 %vm2979_vm0, %v2978_v1  ;;  %v1700_v23 = vrot.slane %v1698_v0, 3 }
  0xfc   : > { %v2635_v15 = vpop.f32.mrf.mxu1 }
  0xfd   : > { %v395_v16 = vpop.f32.mrf.mxu0 }
  0xfe   : > { %v3459_v17 = vadd.f32 %v484_v54, %v395_v16  ;;  %v641_v63 = vpop.f32.mrf.mxu1  ;;  %v1710_v54 = vor.u32 %v1709_v49, %v1706_v47 }
  0xff   : > { %v2586_v18 = vpop.f32.mrf.mxu0 }
 0x100   : > { %v2636_v26 = vpop.f32.mrf.mxu1  ;;  %v1562_v18 = vrot.slane %v3468_v24, 2 }
 0x101   : > { %v559_v27 = vpop.f32.mrf.mxu0  ;;  %2804 = vmatmul.mubr.msk.bf16.gmra.mxu0 %vm310_vm1, %v3177_v8  ;;  %v1701_v8 = vor.u32 %v1700_v23, %v1697_v22  ;;  %v1722_v23 = vshrl.u32 %v3515_v13, 16  ;;  %v1725_v26 = vshll.u32 %v3515_v13, 16 }
 0x102   : > { %v3472_v28 = vadd.f32 %v638_v9, %v559_v27  ;;  %v646_v43 = vpop.f32.mrf.mxu1  ;;  %2854 = vmatmul.mubr.msk.bf16.vlgmr.msra.gmra.mxu1 %vm310_vm1, %v3462_v20  ;;  %2831 = vmatprep.mubr.msk.bf16.mxu0 %vm2979_vm0, %v2978_v1 }
 0x103   : > { %v2613_v32 = vpop.f32.mrf.mxu0  ;;  %2896 = vmatpush3.bf16.msra.mxu1 %v2963_v21  ;;  %2857 = vmatprep.mubr.msk.bf16.mxu1 %vm2979_vm0, %v2978_v1  ;;  %v3491_v46 = vsel %vm1676_vm6, %v1692_v12, %v1701_v8  ;;  %v3512_v10 = vsel %vm1676_vm6, %v1701_v8, %v1710_v54  ;;  %v1718_v12 = vrot.slane %v1716_v62, 3  ;;  %v1724_v35 = vrot.slane %v1722_v23, 2 }
 0x104   : > { %v2639_v36 = vpop.f32.mrf.mxu1  ;;  %v1563_v32 = vsel %vm1244_vm3, %v1560_v57, %v1562_v18 }
 0x105   : > { %v562_v37 = vpop.f32.mrf.mxu0  ;;  %v1719_v22 = vor.u32 %v1718_v12, %v1715_v11  ;;  %v1727_v36 = vrot.slane %v1725_v26, 3  ;;  %v1566_v12 = vrot.slane %v2968_v60, 2 }
 0x106   : > { %v3484_v38 = vadd.f32 %v641_v63, %v562_v37  ;;  %v649_v40 = vpop.f32.mrf.mxu1 }
 0x107   : > { %v2614_v44 = vpop.f32.mrf.mxu0  ;;  %v3533_v33 = vsel %vm1676_vm6, %v1710_v54, %v1719_v22  ;;  %v1728_v49 = vor.u32 %v1727_v36, %v1724_v35  ;;  %v1931_v35 = vrot.slane %v3445_v4, 3 }
 0x108   : > { %v2640_v51 = vpop.f32.mrf.mxu1  ;;  %v1564_v44 = vrot.slane %v3494_v50, 2 }
 0x109   : > { %v567_v53 = vpop.f32.mrf.mxu0  ;;  %2832 = vmatmul.mubr.msk.bf16.vlgmr.msra.gmra.mxu0 %vm310_vm1, %v1559_v52 }
 0x10a   : > { %v3497_v59 = vadd.f32 %v646_v43, %v567_v53  ;;  %2874 = vmatpush3.bf16.msra.mxu0 %v2962_v42  ;;  %v654_v56 = vpop.f32.mrf.mxu1  ;;  %2858 = vmatmul.mubr.msk.bf16.gmra.mxu1 %vm310_vm1, %v3491_v46  ;;  %v1923_v53 = vld [vmem:[%s3031_s21 + $0x8] sm:$0x8]  ;;  %v1565_v54 = vsel %vm1244_vm3, %v1562_v18, %v1564_v44  ;;  %v1567_v23 = vsel %vm1244_vm3, %v1564_v44, %v1566_v12  ;;  %s2980_s21 = smov 3  }
 0x10b   : > { %v2617_v55 = vpop.f32.mrf.mxu0  ;;  %2835 = vmatprep.mubr.msk.bf16.mxu0 %vm2979_vm0, %v2978_v1  ;;  %2861 = vmatprep.mubr.msk.bf16.mxu1 %vm2979_vm0, %v2978_v1 }
 0x10c   : > { %v2643_v2 = vpop.f32.mrf.mxu1 }
 0x10d   : > { %v570_v61 = vpop.f32.mrf.mxu0  ;;  %v3551_v2 = vsel %vm1676_vm6, %v1719_v22, %v1728_v49 }
 0x10e   : > { %v3508_v3 = vadd.f32 %v649_v40, %v570_v61  ;;  %v657_v5 = vpop.f32.mrf.mxu1  ;;  %v2445_v61 = vcombine.low %v1923_v53, %v3418_v39  ;;  %v1929_v39 = vrot.slane %v3426_v45, 3 }
 0x10f   : > { %v2618_v9 = vpop.f32.mrf.mxu0 }
 0x110   : > { %v2644_v0 = vpop.f32.mrf.mxu1 }
 0x111   : > { %v575_v15 = vpop.f32.mrf.mxu0  ;;  %2836 = vmatmul.mubr.msk.bf16.gmra.mxu0 %vm310_vm1, %v1561_v6 }
 0x112   : > { %v3518_v16 = vadd.f32 %v654_v56, %v575_v15  ;;  %v662_v63 = vpop.f32.mrf.mxu1  ;;  %2862 = vmatmul.mubr.msk.bf16.gmra.mxu1 %vm310_vm1, %v3512_v10  ;;  %2839 = vmatprep.mubr.msk.bf16.mxu0 %vm2979_vm0, %v2978_v1  ;;  %v1928_v15 = vrot.slane %v2445_v61, 3 }
 0x113   : > { %v2621_v21 = vpop.f32.mrf.mxu0  ;;  %2865 = vmatprep.mubr.msk.bf16.mxu1 %vm2979_vm0, %v2978_v1 }
 0x114   : > { %v2647_v27 = vpop.f32.mrf.mxu1 }
 0x115   : > { %v578_v43 = vpop.f32.mrf.mxu0  ;;  %v1930_v27 = vsel %vm1927_vm7, %v1928_v15, %v1929_v39  ;;  %v1935_v15 = vrot.slane %v3494_v50, 3 }
 0x116   : > { %v3529_v30 = vadd.f32 %v657_v5, %v578_v43  ;;  %v665_v31 = vpop.f32.mrf.mxu1 }
 0x117   : > { %v2622_v8 = vpop.f32.mrf.mxu0 }
 0x118   : > { %v2648_v37 = vpop.f32.mrf.mxu1 }
 0x119   : > { %v583_v40 = vpop.f32.mrf.mxu0  ;;  %2840 = vmatmul.mubr.msk.bf16.gmra.mxu0 %vm310_vm1, %v1563_v32 }
 0x11a   : > { %v3536_v52 = vadd.f32 %v662_v63, %v583_v40  ;;  %v670_v42 = vpop.f32.mrf.mxu1  ;;  %2866 = vmatmul.mubr.msk.bf16.gmra.mxu1 %vm310_vm1, %v3533_v33  ;;  %2843 = vmatprep.mubr.msk.bf16.mxu0 %vm2979_vm0, %v2978_v1 }
 0x11b   : > { %v2625_v47 = vpop.f32.mrf.mxu0  ;;  %2869 = vmatprep.mubr.msk.bf16.mxu1 %vm2979_vm0, %v2978_v1 }
 0x11c   : > { %v2651_v51 = vpop.f32.mrf.mxu1  ;;  %v1932_v47 = vsel %vm1927_vm7, %v1929_v39, %v1931_v35 }
 0x11d   : > { %v586_v56 = vpop.f32.mrf.mxu0 }
 0x11e   : > { %v3546_v57 = vadd.f32 %v665_v31, %v586_v56  ;;  %v673_v55 = vpop.f32.mrf.mxu1 }
 0x11f   : > { %v2626_v62 = vpop.f32.mrf.mxu0 }
 0x120   : > { %v2652_v5 = vpop.f32.mrf.mxu1 }
 0x121   : > { %v591_v6 = vpop.f32.mrf.mxu0  ;;  %2844 = vmatmul.mubr.msk.bf16.gmra.mxu0 %vm310_vm1, %v1565_v54 }
 0x122   : > { %v3555_v9 = vadd.f32 %v670_v42, %v591_v6  ;;  %v944_v11 = vpop.f32.mrf.mxu1  ;;  %2870 = vmatmul.mubr.msk.bf16.gmra.mxu1 %vm310_vm1, %v3551_v2  ;;  %2847 = vmatprep.mubr.msk.bf16.mxu0 %vm2979_vm0, %v2978_v1 }
 0x123   : > { %v2629_v0 = vpop.f32.mrf.mxu0  ;;  %2897 = vmatprep.mubr.msk.bf16.mxu1 %vm2979_vm0, %v2978_v1 }
 0x124   : > { %v2679_v63 = vpop.f32.mrf.mxu1 }
 0x125   : > { %v594_v18 = vpop.f32.mrf.mxu0 }
 0x126   : > { %v3564_v21 = vadd.f32 %v673_v55, %v594_v18  ;;  %v947_v22 = vpop.f32.mrf.mxu1  ;;  %v1933_v55 = vrot.slane %v3468_v24, 3 }
 0x127   : > { %v2630_v26 = vpop.f32.mrf.mxu0 }
 0x128   : > { %v2680_v43 = vpop.f32.mrf.mxu1  ;;  %v1934_v5 = vsel %vm1927_vm7, %v1931_v35, %v1933_v55 }
 0x129   : > { %v782_v31 = vpop.f32.mrf.mxu0  ;;  %2848 = vmatmul.mubr.msk.bf16.gmra.mxu0 %vm310_vm1, %v1567_v23  ;;  %v1936_v23 = vsel %vm1927_vm7, %v1933_v55, %v1935_v15 }
 0x12a   : > { %v821_v32 = vadd.f32 %v782_v31, %v3379_v14  ;;  %v952_v8 = vpop.f32.mrf.mxu1  ;;  %2898 = vmatmul.mubr.msk.bf16.vlgmr.msra.gmra.mxu1 %vm310_vm1, %v1930_v27  ;;  %2875 = vmatprep.mubr.msk.bf16.mxu0 %vm2979_vm0, %v2978_v1 }
 0x12b   : > { %v2657_v45 = vpop.f32.mrf.mxu0  ;;  %2901 = vmatprep.mubr.msk.bf16.mxu1 %vm2979_vm0, %v2978_v1 }
 0x12c   : > { %v3576_v36 = vadd.f32 %v944_v11, %v821_v32  ;;  %v2683_v37 = vpop.f32.mrf.mxu1  ;;  %v1937_v32 = vrot.slane %v3515_v13, 3 }
 0x12d   : > { %v785_v40 = vpop.f32.mrf.mxu0 }
 0x12e   : > { %v822_v42 = vadd.f32 %v785_v40, %v3388_v19  ;;  %v955_v44 = vpop.f32.mrf.mxu1  ;;  %v1938_v40 = vsel %vm1927_vm7, %v1935_v15, %v1937_v32 }
 0x12f   : > { %v2658_v14 = vpop.f32.mrf.mxu0 }
 0x130   : > { %v3580_v49 = vadd.f32 %v947_v22, %v822_v42  ;;  %v2684_v51 = vpop.f32.mrf.mxu1 }
 0x131   : > { %v790_v53 = vpop.f32.mrf.mxu0  ;;  %2876 = vmatmul.mubr.msk.bf16.vlgmr.msra.gmra.mxu0 %vm310_vm1, %v3462_v20 }
 0x132   : > { %v823_v56 = vadd.f32 %v790_v53, %v3395_v25  ;;  %v960_v4 = vpop.f32.mrf.mxu1  ;;  %2902 = vmatmul.mubr.msk.bf16.gmra.mxu1 %vm310_vm1, %v1932_v47  ;;  %2879 = vmatprep.mubr.msk.bf16.mxu0 %vm2979_vm0, %v2978_v1 }
 0x133   : > { %v2661_v19 = vpop.f32.mrf.mxu0  ;;  %2905 = vmatprep.mubr.msk.bf16.mxu1 %vm2979_vm0, %v2978_v1 }
 0x134   : > { %v3591_v54 = vadd.f32 %v952_v8, %v823_v56  ;;  %v2687_v60 = vpop.f32.mrf.mxu1 }
 0x135   : > { %v793_v62 = vpop.f32.mrf.mxu0 }
 0x136   : > { %v824_v20 = vadd.f32 %v793_v62, %v3404_v29  ;;  %v963_v61 = vpop.f32.mrf.mxu1 }
 0x137   : > { %v2662_v25 = vpop.f32.mrf.mxu0 }
 0x138   : > { %v3595_v6 = vadd.f32 %v955_v44, %v824_v20  ;;  %v2688_v11 = vpop.f32.mrf.mxu1 }
 0x139   : > { %v798_v12 = vpop.f32.mrf.mxu0  ;;  %2880 = vmatmul.mubr.msk.bf16.gmra.mxu0 %vm310_vm1, %v3491_v46 }
 0x13a   : > { %v825_v0 = vadd.f32 %v798_v12, %v3408_v34  ;;  %v968_v24 = vpop.f32.mrf.mxu1  ;;  %2906 = vmatmul.mubr.msk.bf16.gmra.mxu1 %vm310_vm1, %v1934_v5  ;;  %2883 = vmatprep.mubr.msk.bf16.mxu0 %vm2979_vm0, %v2978_v1 }
 0x13b   : > { %v2665_v29 = vpop.f32.mrf.mxu0  ;;  %2909 = vmatprep.mubr.msk.bf16.mxu1 %vm2979_vm0, %v2978_v1 }
 0x13c   : > { %v3606_v39 = vadd.f32 %v960_v4, %v825_v0  ;;  %v2691_v63 = vpop.f32.mrf.mxu1 }
 0x13d   : > { %v801_v18 = vpop.f32.mrf.mxu0 }
 0x13e   : > { %v826_v46 = vadd.f32 %v801_v18, %v3420_v41  ;;  %v971_v22 = vpop.f32.mrf.mxu1 }
 0x13f   : > { %v2666_v34 = vpop.f32.mrf.mxu0 }
 0x140   : > { %v3610_v26 = vadd.f32 %v963_v61, %v826_v46  ;;  %v2692_v27 = vpop.f32.mrf.mxu1 }
 0x141   : > { %v806_v43 = vpop.f32.mrf.mxu0  ;;  %2884 = vmatmul.mubr.msk.bf16.gmra.mxu0 %vm310_vm1, %v3512_v10 }
 0x142   : > { %v827_v31 = vadd.f32 %v806_v43, %v3430_v48  ;;  %v976_v50 = vpop.f32.mrf.mxu1  ;;  %2910 = vmatmul.mubr.msk.bf16.gmra.mxu1 %vm310_vm1, %v1936_v23  ;;  %2887 = vmatprep.mubr.msk.bf16.mxu0 %vm2979_vm0, %v2978_v1 }
 0x143   : > { %v2669_v41 = vpop.f32.mrf.mxu0  ;;  %2913 = vmatprep.mubr.msk.bf16.mxu1 %vm2979_vm0, %v2978_v1 }
 0x144   : > { %v3621_v8 = vadd.f32 %v968_v24, %v827_v31  ;;  %v2695_v45 = vpop.f32.mrf.mxu1 }
 0x145   : > { %v809_v35 = vpop.f32.mrf.mxu0 }
 0x146   : > { %v828_v10 = vadd.f32 %v809_v35, %v3442_v58  ;;  %v979_v37 = vpop.f32.mrf.mxu1 }
 0x147   : > { %v2670_v48 = vpop.f32.mrf.mxu0 }
 0x148   : > { %v3625_v42 = vadd.f32 %v971_v22, %v828_v10  ;;  %v2696_v44 = vpop.f32.mrf.mxu1 }
 0x149   : > { %v814_v14 = vpop.f32.mrf.mxu0  ;;  %2888 = vmatmul.mubr.msk.bf16.gmra.mxu0 %vm310_vm1, %v3533_v33 }
 0x14a   : > { %v829_v47 = vadd.f32 %v814_v14, %v3449_v7  ;;  %v1122_v13 = vpop.f32.mrf.mxu1  ;;  %2914 = vmatmul.mubr.msk.bf16.gmra.mxu1 %vm310_vm1, %v1938_v40  ;;  %2891 = vmatprep.mubr.msk.bf16.mxu0 %vm2979_vm0, %v2978_v1  ;;  %vm2225_vm0 = vcmask 97286  }
 0x14b   : > { %v2673_v58 = vpop.f32.mrf.mxu0 }
 0x14c   : > { %v3633_v51 = vadd.f32 %v976_v50, %v829_v47  ;;  %v2723_v53 = vpop.f32.mrf.mxu1 }
 0x14d   : > { %v817_v56 = vpop.f32.mrf.mxu0 }
 0x14e   : > { %v830_v4 = vadd.f32 %v817_v56, %v3459_v17  ;;  %v1125_v19 = vpop.f32.mrf.mxu1 }
 0x14f   : > { %v2674_v55 = vpop.f32.mrf.mxu0 }
 0x150   : > { %v3636_v60 = vadd.f32 %v979_v37, %v830_v4  ;;  %v2724_v33 = vpop.f32.mrf.mxu1 }
 0x151   : > { %v1033_v62 = vpop.f32.mrf.mxu0  ;;  %2892 = vmatmul.mubr.msk.bf16.gmra.mxu0 %vm310_vm1, %v3551_v2  ;;  %vm2227_vm1 = vcmask 95232  }
 0x152   : > { %v3640_v7 = vpop.f32.mrf.mxu1  ;;  %v1072_v40 = vadd.f32 %v1033_v62, %v3472_v28 }
 0x153   : > { %v2701_v20 = vpop.f32.mrf.mxu0 }
 0x154   : > { %v2727_v1 = vpop.f32.mrf.mxu1 }
 0x155   : > { %v1036_v61 = vpop.f32.mrf.mxu0 }
 0x156   : > { %v3642_v25 = vpop.f32.mrf.mxu1  ;;  %v1073_v56 = vadd.f32 %v1036_v61, %v3484_v38 }
 0x157   : > { %v2702_v5 = vpop.f32.mrf.mxu0 }
 0x158   : > { %v2728_v11 = vpop.f32.mrf.mxu1 }
 0x159   : > { %v1041_v12 = vpop.f32.mrf.mxu0 }
 0x15a   : > { %v3644_v17 = vpop.f32.mrf.mxu1  ;;  %v1074_v5 = vadd.f32 %v1041_v12, %v3497_v59 }
 0x15b   : > { %v2705_v0 = vpop.f32.mrf.mxu0 }
 0x15c   : > { %v2731_v24 = vpop.f32.mrf.mxu1 }
 0x15d   : > { %v1044_v29 = vpop.f32.mrf.mxu0 }
 0x15e   : > { %v3646_v15 = vpop.f32.mrf.mxu1  ;;  %v1075_v38 = vadd.f32 %v1044_v29, %v3508_v3 }
 0x15f   : > { %v2706_v63 = vpop.f32.mrf.mxu0 }
 0x160   : > { %v2732_v18 = vpop.f32.mrf.mxu1 }
 0x161   : > { %v1049_v2 = vpop.f32.mrf.mxu0 }
 0x162   : > { %v3648_v46 = vpop.f32.mrf.mxu1  ;;  %v1076_v12 = vadd.f32 %v1049_v2, %v3518_v16 }
 0x163   : > { %v2709_v22 = vpop.f32.mrf.mxu0 }
 0x164   : > { %v2735_v34 = vpop.f32.mrf.mxu1 }
 0x165   : > { %v1052_v23 = vpop.f32.mrf.mxu0 }
 0x166   : > { %v3650_v27 = vpop.f32.mrf.mxu1 }
 0x167   : > { %v2710_v43 = vpop.f32.mrf.mxu0 }
 0x168   : > { %v2736_v31 = vpop.f32.mrf.mxu1 }
 0x169   : > { %v1057_v50 = vpop.f32.mrf.mxu0 }
 0x16a   : > { %v3652_v41 = vpop.f32.mrf.mxu1 }
 0x16b   : > { %v2713_v32 = vpop.f32.mrf.mxu0 }
 0x16c   : > { %v2739_v45 = vpop.f32.mrf.mxu1 }
 0x16d   : > { %v1060_v35 = vpop.f32.mrf.mxu0 }
 0x16e   : > { %v3654_v10 = vpop.f32.mrf.mxu1 }
 0x16f   : > { %v2714_v37 = vpop.f32.mrf.mxu0 }
 0x170   : > { %v2740_v48 = vpop.f32.mrf.mxu1  ;;  %v1077_v37 = vadd.f32 %v1052_v23, %v3529_v30 }
 0x171   : > { %v1065_v44 = vpop.f32.mrf.mxu0 }
 0x172   : > { %v1311_v14 = vpop.f32.mrf.mxu1 }
 0x173   : > { %v1350_v47 = vadd.f32 %v1311_v14, %v1072_v40  ;;  %v2717_v58 = vpop.f32.mrf.mxu0 }
 0x174   : > { %v2767_v53 = vpop.f32.mrf.mxu1 }
 0x175   : > { %2053 = vrot.lane.b32.xlu0 %v1350_v47, %s2980_s21  ;;  %v1068_v4 = vpop.f32.mrf.mxu0  ;;  %v1078_v47 = vadd.f32 %v1057_v50, %v3536_v52 }
 0x176   : > { %v1314_v55 = vpop.f32.mrf.mxu1 }
 0x177   : > { %v1351_v33 = vadd.f32 %v1314_v55, %v1073_v56  ;;  %v2718_v20 = vpop.f32.mrf.mxu0  ;;  %v1079_v55 = vadd.f32 %v1060_v35, %v3546_v57 }
 0x178   : > { %v2768_v1 = vpop.f32.mrf.mxu1 }
 0x179   : > { %2055 = vrot.lane.b32.xlu0 %v1351_v33, %s2980_s21  ;;  %v1201_v28 = vpop.f32.mrf.mxu0 }
 0x17a   : > { %v3661_v62 = vadd.f32 %v1201_v28, %v1122_v13  ;;  %v1319_v11 = vpop.f32.mrf.mxu1 }
 0x17b   : > { %v1352_v0 = vadd.f32 %v1319_v11, %v1074_v5  ;;  %v2745_v24 = vpop.f32.mrf.mxu0  ;;  %v1080_v5 = vadd.f32 %v1065_v44, %v3555_v9 }
 0x17c   : > { %v2771_v63 = vpop.f32.mrf.mxu1  ;;  %v1081_v24 = vadd.f32 %v1068_v4, %v3564_v21 }
 0x17d   : > { %2057 = vrot.lane.b32.xlu1 %v1352_v0, %s2980_s21  ;;  %v1204_v61 = vpop.f32.mrf.mxu0 }
 0x17e   : > { %v3665_v18 = vadd.f32 %v1204_v61, %v1125_v19  ;;  %v1322_v22 = vpop.f32.mrf.mxu1 }
 0x17f   : > { %v1353_v34 = vadd.f32 %v1322_v22, %v1075_v38  ;;  %v2746_v43 = vpop.f32.mrf.mxu0 }
 0x180   : > { %v2772_v59 = vpop.f32.mrf.mxu1 }
 0x181   : > { %2059 = vrot.lane.b32.xlu1 %v1353_v34, %s2980_s21  ;;  %v1209_v13 = vpop.f32.mrf.mxu0 }
 0x182   : > { %v3670_v31 = vadd.f32 %v1209_v13, %v3640_v7  ;;  %v1327_v32 = vpop.f32.mrf.mxu1 }
 0x183   : > { %v1354_v45 = vadd.f32 %v1327_v32, %v1076_v12  ;;  %v2749_v3 = vpop.f32.mrf.mxu0 }
 0x184   : > { %v2775_v29 = vpop.f32.mrf.mxu1 }
 0x185   : > { %2061 = vrot.lane.b32.xlu0 %v1354_v45, %s2980_s21  ;;  %v1212_v19 = vpop.f32.mrf.mxu0 }
 0x186   : > { %v3675_v48 = vadd.f32 %v1212_v19, %v3642_v25  ;;  %v1330_v40 = vpop.f32.mrf.mxu1 }
 0x187   : > { %v1355_v16 = vadd.f32 %v1330_v40, %v1077_v37  ;;  %v2750_v2 = vpop.f32.mrf.mxu0 }
 0x188   : > { %v2776_v14 = vpop.f32.mrf.mxu1 }
 0x189   : > { %2063 = vrot.lane.b32.xlu1 %v1355_v16, %s2980_s21  ;;  %v1217_v7 = vpop.f32.mrf.mxu0 }
 0x18a   : > { %v3680_v58 = vadd.f32 %v1217_v7, %v3644_v17  ;;  %v1335_v53 = vpop.f32.mrf.mxu1 }
 0x18b   : > { %v1356_v30 = vadd.f32 %v1335_v53, %v1078_v47  ;;  %v2753_v23 = vpop.f32.mrf.mxu0 }
 0x18c   : > { %v2779_v56 = vpop.f32.mrf.mxu1 }
 0x18d   : > { %2065 = vrot.lane.b32.xlu0 %v1356_v30, %s2980_s21  ;;  %v1220_v25 = vpop.f32.mrf.mxu0 }
 0x18e   : > { %v3685_v33 = vadd.f32 %v1220_v25, %v3646_v15  ;;  %v1338_v20 = vpop.f32.mrf.mxu1 }
 0x18f   : > { %v1357_v52 = vadd.f32 %v1338_v20, %v1079_v55  ;;  %v2754_v50 = vpop.f32.mrf.mxu0 }
 0x190   : > { %v2780_v1 = vpop.f32.mrf.mxu1 }
 0x191   : > { %2067 = vrot.lane.b32.xlu1 %v1357_v52, %s2980_s21  ;;  %v1225_v17 = vpop.f32.mrf.mxu0 }
 0x192   : > { %v3690_v28 = vadd.f32 %v1225_v17, %v3648_v46  ;;  %v1343_v11 = vpop.f32.mrf.mxu1 }
 0x193   : > { %v1358_v57 = vadd.f32 %v1343_v11, %v1080_v5  ;;  %v2757_v35 = vpop.f32.mrf.mxu0 }
 0x194   : > { %v2783_v0 = vpop.f32.mrf.mxu1 }
 0x195   : > { %2069 = vrot.lane.b32.xlu0 %v1358_v57, %s2980_s21  ;;  %v1228_v15 = vpop.f32.mrf.mxu0 }
 0x196   : > { %v3695_v63 = vadd.f32 %v1228_v15, %v3650_v27  ;;  %v1346_v38 = vpop.f32.mrf.mxu1 }
 0x197   : > { %v1359_v9 = vadd.f32 %v1346_v38, %v1081_v24  ;;  %v2758_v44 = vpop.f32.mrf.mxu0 }
 0x198   : > { %v2784_v61 = vpop.f32.mrf.mxu1 }
 0x199   : > { %2071 = vrot.lane.b32.xlu1 %v1359_v9, %s2980_s21  ;;  %v1233_v46 = vpop.f32.mrf.mxu0 }
 0x19a   : > { %v3699_v22 = vadd.f32 %v1233_v46, %v3652_v41  ;;  %v1479_v34 = vpop.f32.mrf.mxu1 }
 0x19b   : > { %v2761_v43 = vpop.f32.mrf.mxu0 }
 0x19c   : > { %v2811_v59 = vpop.f32.mrf.mxu1 }
 0x19d   : > { %v1236_v21 = vpop.f32.mrf.mxu0 }
 0x19e   : > { %v3702_v4 = vadd.f32 %v1236_v21, %v3654_v10  ;;  %v1482_v12 = vpop.f32.mrf.mxu1 }
 0x19f   : > { %v2762_v27 = vpop.f32.mrf.mxu0 }
 0x1a0   : > { %v2812_v13 = vpop.f32.mrf.mxu1 }
 0x1a1   : > { %v1400_v32 = vpop.f32.mrf.mxu0 }
 0x1a2   : > { %v3704_v45 = vadd.f32 %v1479_v34, %v1400_v32  ;;  %v1487_v3 = vpop.f32.mrf.mxu1 }
 0x1a3   : > { %v2789_v29 = vpop.f32.mrf.mxu0 }
 0x1a4   : > { %v2815_v37 = vpop.f32.mrf.mxu1 }
 0x1a5   : > { %v1403_v19 = vpop.f32.mrf.mxu0 }
 0x1a6   : > { %v3706_v40 = vadd.f32 %v1482_v12, %v1403_v19  ;;  %v1490_v41 = vpop.f32.mrf.mxu1 }
 0x1a7   : > { %v2790_v16 = vpop.f32.mrf.mxu0 }
 0x1a8   : > { %v2816_v2 = vpop.f32.mrf.mxu1 }
 0x1a9   : > { %v1408_v14 = vpop.f32.mrf.mxu0 }
 0x1aa   : > { %v3708_v47 = vadd.f32 %v1487_v3, %v1408_v14  ;;  %v1495_v10 = vpop.f32.mrf.mxu1 }
 0x1ab   : > { %v2793_v7 = vpop.f32.mrf.mxu0 }
 0x1ac   : > { %v2819_v53 = vpop.f32.mrf.mxu1 }
 0x1ad   : > { %v1411_v30 = vpop.f32.mrf.mxu0 }
 0x1ae   : > { %v3710_v23 = vadd.f32 %v1490_v41, %v1411_v30  ;;  %v1498_v56 = vpop.f32.mrf.mxu1 }
 0x1af   : > { %v2794_v55 = vpop.f32.mrf.mxu0 }
 0x1b0   : > { %v2820_v25 = vpop.f32.mrf.mxu1 }
 0x1b1   : > { %v1416_v20 = vpop.f32.mrf.mxu0 }
 0x1b2   : > { %v3712_v52 = vadd.f32 %v1495_v10, %v1416_v20  ;;  %v1503_v50 = vpop.f32.mrf.mxu1 }
 0x1b3   : > { %v2797_v1 = vpop.f32.mrf.mxu0 }
 0x1b4   : > { %v2823_v5 = vpop.f32.mrf.mxu1 }
 0x1b5   : > { %v1419_v17 = vpop.f32.mrf.mxu0 }
 0x1b6   : > { %v3714_v11 = vadd.f32 %v1498_v56, %v1419_v17  ;;  %v1506_v57 = vpop.f32.mrf.mxu1 }
 0x1b7   : > { %v2798_v35 = vpop.f32.mrf.mxu0 }
 0x1b8   : > { %v2824_v0 = vpop.f32.mrf.mxu1 }
 0x1b9   : > { %v1424_v24 = vpop.f32.mrf.mxu0 }
 0x1ba   : > { %v3716_v15 = vadd.f32 %v1503_v50, %v1424_v24  ;;  %v1511_v38 = vpop.f32.mrf.mxu1 }
 0x1bb   : > { %v2801_v9 = vpop.f32.mrf.mxu0 }
 0x1bc   : > { %v2827_v44 = vpop.f32.mrf.mxu1 }
 0x1bd   : > { %v1427_v61 = vpop.f32.mrf.mxu0 }
 0x1be   : > { %v3718_v46 = vadd.f32 %v1506_v57, %v1427_v61  ;;  %v1514_v34 = vpop.f32.mrf.mxu1 }
 0x1bf   : > { %v2802_v43 = vpop.f32.mrf.mxu0 }
 0x1c0   : > { %v2828_v59 = vpop.f32.mrf.mxu1 }
 0x1c1   : > { %v1432_v21 = vpop.f32.mrf.mxu0 }
 0x1c2   : > { %v3720_v12 = vadd.f32 %v1511_v38, %v1432_v21  ;;  %v1785_v27 = vpop.f32.mrf.mxu1 }
 0x1c3   : > { %v2805_v13 = vpop.f32.mrf.mxu0 }
 0x1c4   : > { %v2855_v32 = vpop.f32.mrf.mxu1 }
 0x1c5   : > { %v1435_v3 = vpop.f32.mrf.mxu0 }
 0x1c6   : > { %v3722_v29 = vadd.f32 %v1514_v34, %v1435_v3  ;;  %v1788_v37 = vpop.f32.mrf.mxu1 }
 0x1c7   : > { %v2806_v19 = vpop.f32.mrf.mxu0 }
 0x1c8   : > { %v2856_v41 = vpop.f32.mrf.mxu1 }
 0x1c9   : > { %v1623_v16 = vpop.f32.mrf.mxu0 }
 0x1ca   : > { %v1662_v2 = vadd.f32 %v1623_v16, %v3661_v62  ;;  %v1793_v14 = vpop.f32.mrf.mxu1 }
 0x1cb   : > { %v2833_v10 = vpop.f32.mrf.mxu0 }
 0x1cc   : > { %v1824_v7 = vadd.f32 %v1785_v27, %v1662_v2  ;;  %v2859_v53 = vpop.f32.mrf.mxu1 }
 0x1cd   : > { %v1626_v30 = vpop.f32.mrf.mxu0 }
 0x1ce   : > { %v1663_v56 = vadd.f32 %v1626_v30, %v3665_v18  ;;  %2093 = vrot.lane.b32.xlu0 %v1824_v7, %s2981_s26  ;;  %v1796_v55 = vpop.f32.mrf.mxu1 }
 0x1cf   : > { %v2834_v25 = vpop.f32.mrf.mxu0 }
 0x1d0   : > { %v1825_v20 = vadd.f32 %v1788_v37, %v1663_v56  ;;  %v2860_v50 = vpop.f32.mrf.mxu1 }
 0x1d1   : > { %v1631_v1 = vpop.f32.mrf.mxu0 }
 0x1d2   : > { %v1664_v5 = vadd.f32 %v1631_v1, %v3670_v31  ;;  %2095 = vrot.lane.b32.xlu1 %v1825_v20, %s2981_s26  ;;  %v1801_v62 = vpop.f32.mrf.mxu1 }
 0x1d3   : > { %v2837_v17 = vpop.f32.mrf.mxu0 }
 0x1d4   : > { %v1826_v57 = vadd.f32 %v1793_v14, %v1664_v5  ;;  %v2863_v35 = vpop.f32.mrf.mxu1 }
 0x1d5   : > { %v1634_v0 = vpop.f32.mrf.mxu0 }
 0x1d6   : > { %v1665_v24 = vadd.f32 %v1634_v0, %v3675_v48  ;;  %2097 = vrot.lane.b32.xlu0 %v1826_v57, %s2981_s26  ;;  %v1804_v18 = vpop.f32.mrf.mxu1 }
 0x1d7   : > { %v2838_v38 = vpop.f32.mrf.mxu0 }
 0x1d8   : > { %v1827_v9 = vadd.f32 %v1796_v55, %v1665_v24  ;;  %v2864_v44 = vpop.f32.mrf.mxu1 }
 0x1d9   : > { %v1639_v61 = vpop.f32.mrf.mxu0 }
 0x1da   : > { %v1666_v34 = vadd.f32 %v1639_v61, %v3680_v58  ;;  %2099 = vrot.lane.b32.xlu1 %v1827_v9, %s2981_s26  ;;  %v1809_v31 = vpop.f32.mrf.mxu1 }
 0x1db   : > { %v2841_v43 = vpop.f32.mrf.mxu0 }
 0x1dc   : > { %v1828_v59 = vadd.f32 %v1801_v62, %v1666_v34  ;;  %v2867_v21 = vpop.f32.mrf.mxu1 }
 0x1dd   : > { %v1642_v27 = vpop.f32.mrf.mxu0 }
 0x1de   : > { %v1667_v13 = vadd.f32 %v1642_v27, %v3685_v33  ;;  %2101 = vrot.lane.b32.xlu0 %v1828_v59, %s2981_s26  ;;  %v1812_v48 = vpop.f32.mrf.mxu1 }
 0x1df   : > { %v2842_v32 = vpop.f32.mrf.mxu0 }
 0x1e0   : > { %v1829_v3 = vadd.f32 %v1804_v18, %v1667_v13  ;;  %v2868_v37 = vpop.f32.mrf.mxu1 }
 0x1e1   : > { %v1647_v19 = vpop.f32.mrf.mxu0 }
 0x1e2   : > { %v1668_v41 = vadd.f32 %v1647_v19, %v3690_v28  ;;  %2103 = vrot.lane.b32.xlu1 %v1829_v3, %s2981_s26  ;;  %v1817_v58 = vpop.f32.mrf.mxu1 }
 0x1e3   : > { %v2845_v16 = vpop.f32.mrf.mxu0 }
 0x1e4   : > { %v1830_v2 = vadd.f32 %v1809_v31, %v1668_v41  ;;  %v2871_v14 = vpop.f32.mrf.mxu1 }
 0x1e5   : > { %v1650_v10 = vpop.f32.mrf.mxu0 }
 0x1e6   : > { %v1669_v7 = vadd.f32 %v1650_v10, %v3695_v63  ;;  %2105 = vrot.lane.b32.xlu0 %v1830_v2, %s2981_s26  ;;  %v1820_v33 = vpop.f32.mrf.mxu1 }
 0x1e7   : > { %v2846_v53 = vpop.f32.mrf.mxu0 }
 0x1e8   : > { %v1831_v30 = vadd.f32 %v1812_v48, %v1669_v7  ;;  %v2872_v56 = vpop.f32.mrf.mxu1 }
 0x1e9   : > { %v1655_v55 = vpop.f32.mrf.mxu0 }
 0x1ea   : > { %v1670_v25 = vadd.f32 %v1655_v55, %v3699_v22  ;;  %2107 = vrot.lane.b32.xlu1 %v1831_v30, %s2981_s26  ;;  %v1994_v28 = vpop.f32.mrf.mxu1 }
 0x1eb   : > { %v2849_v20 = vpop.f32.mrf.mxu0 }
 0x1ec   : > { %v1832_v50 = vadd.f32 %v1817_v58, %v1670_v25  ;;  %v2899_v1 = vpop.f32.mrf.mxu1 }
 0x1ed   : > { %v1658_v5 = vpop.f32.mrf.mxu0 }
 0x1ee   : > { %v1671_v62 = vadd.f32 %v1658_v5, %v3702_v4  ;;  %2109 = vrot.lane.b32.xlu0 %v1832_v50, %s2981_s26  ;;  %v1997_v63 = vpop.f32.mrf.mxu1 }
 0x1ef   : > { %v2850_v17 = vpop.f32.mrf.mxu0 }
 0x1f0   : > { %v1833_v57 = vadd.f32 %v1820_v33, %v1671_v62  ;;  %v2900_v35 = vpop.f32.mrf.mxu1 }
 0x1f1   : > { %v1874_v0 = vpop.f32.mrf.mxu0 }
 0x1f2   : > { %v1913_v24 = vadd.f32 %v1874_v0, %v3704_v45  ;;  %2111 = vrot.lane.b32.xlu1 %v1833_v57, %s2981_s26  ;;  %v2002_v22 = vpop.f32.mrf.mxu1 }
 0x1f3   : > { %v2877_v18 = vpop.f32.mrf.mxu0 }
 0x1f4   : > { %v2033_v38 = vadd.f32 %v1994_v28, %v1913_v24  ;;  %v2903_v9 = vpop.f32.mrf.mxu1 }
 0x1f5   : > { %v1877_v44 = vpop.f32.mrf.mxu0  ;;  %v2058_v9 = vpop.permute.xlu1 %2057 }
 0x1f6   : > { %v1914_v61 = vadd.f32 %v1877_v44, %v3706_v40  ;;  %2133 = vrot.lane.b32.xlu0 %v2033_v38, %s2982_s27  ;;  %v2005_v4 = vpop.f32.mrf.mxu1  ;;  %v2054_v38 = vpop.permute.xlu0 %2053 }
 0x1f7   : > { %v2878_v34 = vpop.f32.mrf.mxu0 }
 0x1f8   : > { %v2034_v31 = vadd.f32 %v1997_v63, %v1914_v61  ;;  %v2904_v43 = vpop.f32.mrf.mxu1 }
 0x1f9   : > { %v1882_v59 = vpop.f32.mrf.mxu0  ;;  %v2060_v61 = vpop.permute.xlu1 %2059 }
 0x1fa   : > { %v1915_v21 = vadd.f32 %v1882_v59, %v3708_v47  ;;  %2135 = vrot.lane.b32.xlu1 %v2034_v31, %s2982_s27  ;;  %v2010_v45 = vpop.f32.mrf.mxu1  ;;  %v2056_v44 = vpop.permute.xlu0 %2055 }
 0x1fb   : > { %v2881_v27 = vpop.f32.mrf.mxu0 }
 0x1fc   : > { %v2035_v13 = vadd.f32 %v2002_v22, %v1915_v21  ;;  %v2907_v48 = vpop.f32.mrf.mxu1 }
 0x1fd   : > { %v1885_v32 = vpop.f32.mrf.mxu0  ;;  %v2064_v34 = vpop.permute.xlu1 %2063 }
 0x1fe   : > { %v1916_v3 = vadd.f32 %v1885_v32, %v3710_v23  ;;  %2137 = vrot.lane.b32.xlu0 %v2035_v13, %s2982_s27  ;;  %v2013_v40 = vpop.f32.mrf.mxu1 }
 0x1ff   : > { %v2882_v37 = vpop.f32.mrf.mxu0 }
 0x200   : > { %v2036_v19 = vadd.f32 %v2005_v4, %v1916_v3  ;;  %v2908_v41 = vpop.f32.mrf.mxu1  ;;  %v2062_v4 = vpop.permute.xlu0 %2061  ;;  %v2164_v37 = vsel %vm2163_vm8, %v3576_v36, %v2054_v38 }
 0x201   : > { %v1890_v58 = vpop.f32.mrf.mxu0 }
 0x202   : > { %v1917_v16 = vadd.f32 %v1890_v58, %v3712_v52  ;;  %2139 = vrot.lane.b32.xlu1 %v2036_v19, %s2982_s27  ;;  %v2018_v47 = vpop.f32.mrf.mxu1  ;;  %v3780_v19 = vld [vmem:[%s3876_s2] ss:$0 sm:$0xff] }
 0x203   : > { %v2885_v2 = vpop.f32.mrf.mxu0  ;;  %v3766_v31 = vpop.permute.xlu1 %2067 }
 0x204   : > { %v2037_v14 = vadd.f32 %v2010_v45, %v1917_v16  ;;  %v2911_v10 = vpop.f32.mrf.mxu1  ;;  %v2165_v2 = vsel %vm2163_vm8, %v3580_v49, %v2056_v44 }
 0x205   : > { %v1893_v7 = vpop.f32.mrf.mxu0 }
 0x206   : > { %v1918_v33 = vadd.f32 %v1893_v7, %v3714_v11  ;;  %2141 = vrot.lane.b32.xlu0 %v2037_v14, %s2982_s27  ;;  %v2021_v23 = vpop.f32.mrf.mxu1 }
 0x207   : > { %v2886_v53 = vpop.f32.mrf.mxu0 }
 0x208   : > { %v2038_v30 = vadd.f32 %v2013_v40, %v1918_v33  ;;  %v2912_v56 = vpop.f32.mrf.mxu1 }
 0x209   : > { %v1898_v55 = vpop.f32.mrf.mxu0 }
 0x20a   : > { %v1919_v25 = vadd.f32 %v1898_v55, %v3716_v15  ;;  %2143 = vrot.lane.b32.xlu1 %v2038_v30, %s2982_s27  ;;  %v2026_v52 = vpop.f32.mrf.mxu1  ;;  %v2167_v55 = vsel %vm2163_vm8, %v3595_v6, %v2060_v61 }
 0x20b   : > { %v2889_v28 = vpop.f32.mrf.mxu0 }
 0x20c   : > { %v2039_v20 = vadd.f32 %v2018_v47, %v1919_v25  ;;  %v2915_v50 = vpop.f32.mrf.mxu1 }
 0x20d   : > { %v1901_v1 = vpop.f32.mrf.mxu0 }
 0x20e   : > { %v1920_v5 = vadd.f32 %v1901_v1, %v3718_v46  ;;  %2145 = vrot.lane.b32.xlu0 %v2039_v20, %s2982_s27  ;;  %v2029_v11 = vpop.f32.mrf.mxu1  ;;  %v2168_v20 = vsel %vm2163_vm8, %v3606_v39, %v2062_v4 }
 0x20f   : > { %v2890_v62 = vpop.f32.mrf.mxu0 }
 0x210   : > { %v2040_v63 = vadd.f32 %v2021_v23, %v1920_v5  ;;  %v2916_v17 = vpop.f32.mrf.mxu1  ;;  %v2166_v23 = vsel %vm2163_vm8, %v3591_v54, %v2058_v9 }
 0x211   : > { %v1906_v57 = vpop.f32.mrf.mxu0 }
 0x212   : > { %v1921_v35 = vadd.f32 %v1906_v57, %v3720_v12  ;;  %2147 = vrot.lane.b32.xlu1 %v2040_v63, %s2982_s27  ;;  %v3764_v12 = vpop.permute.xlu0 %2065 }
 0x213   : > { %v2893_v15 = vpop.f32.mrf.mxu0  ;;  %v2170_v57 = vsel %vm2163_vm8, %v3621_v8, %v3764_v12 }
 0x214   : > { %v2041_v0 = vadd.f32 %v2026_v52, %v1921_v35 }
 0x215   : > { %v1909_v24 = vpop.f32.mrf.mxu0 }
 0x216   : > { %v1922_v22 = vadd.f32 %v1909_v24, %v3722_v29  ;;  %2149 = vrot.lane.b32.xlu0 %v2041_v0, %s2982_s27  ;;  %v3768_v43 = vpop.permute.xlu0 %2069  ;;  %v3770_v29 = vpop.permute.xlu1 %2071  ;;  %v2171_v24 = vsel %vm2163_vm8, %v3625_v42, %v3766_v31 }
 0x217   : > { %v2894_v18 = vpop.f32.mrf.mxu0  ;;  %v2172_v38 = vsel %vm2163_vm8, %v3633_v51, %v3768_v43  ;;  %v2173_v4 = vsel %vm2163_vm8, %v3636_v60, %v3770_v29 }
 0x218   : > { %v2042_v46 = vadd.f32 %v2029_v11, %v1922_v22  ;;  %v2169_v11 = vsel %vm2163_vm8, %v3610_v26, %v2064_v34 }
 0x21a   : > { %2151 = vrot.lane.b32.xlu1 %v2042_v46, %s2982_s27 }
 0x240   : > { %v2094_v59 = vpop.permute.xlu0 %2093 }
 0x241   : > { %v2175_v41 = vsel %vm2174_vm9, %v2164_v37, %v2094_v59 }
 0x244   : > { %v2096_v21 = vpop.permute.xlu1 %2095 }
 0x245   : > { %v2176_v14 = vsel %vm2174_vm9, %v2165_v2, %v2096_v21 }
 0x248   : > { %v2098_v45 = vpop.permute.xlu0 %2097 }
 0x249   : > { %v2177_v53 = vsel %vm2174_vm9, %v2166_v23, %v2098_v45 }
 0x24c   : > { %v2100_v27 = vpop.permute.xlu1 %2099 }
 0x24d   : > { %v2178_v25 = vsel %vm2174_vm9, %v2167_v55, %v2100_v27 }
 0x250   : > { %v2102_v13 = vpop.permute.xlu0 %2101 }
 0x251   : > { %v2179_v6 = vsel %vm2174_vm9, %v2168_v20, %v2102_v13 }
 0x254   : > { %v2104_v48 = vpop.permute.xlu1 %2103 }
 0x255   : > { %v2180_v62 = vsel %vm2174_vm9, %v2169_v11, %v2104_v48 }
 0x258   : > { %v2106_v32 = vpop.permute.xlu0 %2105 }
 0x259   : > { %v2181_v35 = vsel %vm2174_vm9, %v2170_v57, %v2106_v32 }
 0x25c   : > { %v2108_v3 = vpop.permute.xlu1 %2107 }
 0x25d   : > { %v2182_v22 = vsel %vm2174_vm9, %v2171_v24, %v2108_v3 }
 0x260   : > { %v3772_v40 = vpop.permute.xlu0 %2109 }
 0x261   : > { %v2183_v9 = vsel %vm2174_vm9, %v2172_v38, %v3772_v40 }
 0x264   : > { %v3783_v58 = vpop.permute.xlu1 %2111 }
 0x265   : > { %v2184_v34 = vsel %vm2174_vm9, %v2173_v4, %v3783_v58 }
 0x268   : > { %v2134_v16 = vpop.permute.xlu0 %2133 }
 0x269   : > { %v2186_v36 = vsel %vm2185_vm10, %v2175_v41, %v2134_v16 }
 0x26a   : > { %v2202_v47 = vadd.f32 %v3780_v19, %v2186_v36 }
 0x26c   : > { %2213 = vst.msk [vmem:[%s3788_s6] sm:$0xff] %vm2212_vm11, %v2202_v47  ;;  %v2136_v10 = vpop.permute.xlu1 %2135 }
 0x26d   : > { %v2187_v7 = vsel %vm2185_vm10, %v2176_v14, %v2136_v10 }
 0x26e   : > { %v2203_v33 = vadd.f32 %v3780_v19, %v2187_v7 }
 0x270   : > { %2453 = vst.msk [vmem:[%s3788_s6 + $0x6] sm:$0xfc] %vm2215_vm12, %v2203_v33  ;;  %v2138_v49 = vpop.permute.xlu0 %2137 }
 0x271   : > { %v2188_v30 = vsel %vm2185_vm10, %v2177_v53, %v2138_v49 }
 0x272   : > { %v2204_v56 = vadd.f32 %v3780_v19, %v2188_v30 }
 0x274   : > { %2454 = vst.msk [vmem:[%s3788_s6 + $0xe] sm:$0x3] %vm2217_vm13, %v2204_v56  ;;  %v2140_v54 = vpop.permute.xlu1 %2139 }
 0x275   : > { %2455 = vst.msk [vmem:[%s3788_s6 + $0xc] sm:$0xf0] %vm2220_vm14, %v2204_v56  ;;  %v2189_v52 = vsel %vm2185_vm10, %v2178_v25, %v2140_v54 }
 0x276   : > { %v2205_v28 = vadd.f32 %v3780_v19, %v2189_v52 }
 0x278   : > { %2456 = vst.msk [vmem:[%s3788_s6 + $0x14] sm:$0xf] %vm2222_vm15, %v2205_v28  ;;  %v2142_v50 = vpop.permute.xlu0 %2141 }
 0x279   : > { %2457 = vst.msk [vmem:[%s3788_s6 + $0x12] sm:$0xc0] %vm2225_vm0, %v2205_v28  ;;  %v2190_v1 = vsel %vm2185_vm10, %v2179_v6, %v2142_v50 }
 0x27a   : > { %v2206_v5 = vadd.f32 %v3780_v19, %v2190_v1 }
 0x27c   : > { %2458 = vst.msk [vmem:[%s3788_s6 + $0x1a] sm:$0x3f] %vm2227_vm1, %v2206_v5  ;;  %v2144_v39 = vpop.permute.xlu1 %2143 }
 0x27d   : > { %v2191_v63 = vsel %vm2185_vm10, %v2180_v62, %v2144_v39 }
 0x27e   : > { %v2207_v17 = vadd.f32 %v3780_v19, %v2191_v63 }
 0x280   : > { %2459 = vst.msk [vmem:[%s3788_s6 + $0x20] sm:$0xff] %vm2212_vm11, %v2207_v17  ;;  %v2146_v26 = vpop.permute.xlu0 %2145 }
 0x281   : > { %v2192_v15 = vsel %vm2185_vm10, %v2181_v35, %v2146_v26 }
 0x282   : > { %v2208_v0 = vadd.f32 %v3780_v19, %v2192_v15 }
 0x284   : > { %2460 = vst.msk [vmem:[%s3788_s6 + $0x26] sm:$0xfc] %vm2215_vm12, %v2208_v0  ;;  %v2148_v8 = vpop.permute.xlu1 %2147 }
 0x285   : > { %v2193_v18 = vsel %vm2185_vm10, %v2182_v22, %v2148_v8 }
 0x286   : > { %v2209_v46 = vadd.f32 %v3780_v19, %v2193_v18 }
 0x288   : > { %2461 = vst.msk [vmem:[%s3788_s6 + $0x2e] sm:$0x3] %vm2217_vm13, %v2209_v46  ;;  %v2150_v42 = vpop.permute.xlu0 %2149 }
 0x289   : > { %2462 = vst.msk [vmem:[%s3788_s6 + $0x2c] sm:$0xf0] %vm2220_vm14, %v2209_v46  ;;  %v2194_v44 = vsel %vm2185_vm10, %v2183_v9, %v2150_v42 }
 0x28a   : > { %v2210_v61 = vadd.f32 %v3780_v19, %v2194_v44 }
 0x28c   : > { %2463 = vst.msk [vmem:[%s3788_s6 + $0x34] sm:$0xf] %vm2222_vm15, %v2210_v61  ;;  %v2152_v51 = vpop.permute.xlu1 %2151 }
 0x28d   : > { %2464 = vst.msk [vmem:[%s3788_s6 + $0x32] sm:$0xc0] %vm2225_vm0, %v2210_v61  ;;  %v2195_v12 = vsel %vm2185_vm10, %v2184_v34, %v2152_v51 }
 0x28e   : > { %v2211_v31 = vadd.f32 %v3780_v19, %v2195_v12 }
 0x290   : > { %2465 = vst.msk [vmem:[%s3788_s6 + $0x3a] sm:$0x3f] %vm2227_vm1, %v2211_v31 }
 0x291 PF: > { %s13_s12 = sadd.s32 1, %s2976_s12  }
 0x292   : > { %p10_p4 = scmp.ge.s32.totalorder %s13_s12, 4  }
 0x294   :  { %12 = sbr.rel (!%p10_p4) target bundleno = 1 (0x1), region = 84 }

</bundles_post_ra>
